<compile_context>
chip_gen: v7x
topology: tpu7x:2x2x1
jax: 0.10.0
libtpu: 0.0.40
codegen_flags: <defaults>
</compile_context>

<pallas_src>
import jax
import jax.numpy as jnp
from jax.experimental import pallas as pl
from jax.experimental.pallas import tpu as pltpu

MEAN_RGB = jnp.array([0.485, 0.456, 0.406], dtype=jnp.float32)
STDDEV_RGB = jnp.array([0.229, 0.224, 0.225], dtype=jnp.float32)

IMG_HW = 96
PATCH = 32                        # surrogate conv-stem kernel/stride
GRID_HW = IMG_HW // PATCH         # 3  -> 3x3 feature grid
NUM_PATCH = GRID_HW * GRID_HW     # 9
PATCH_DIM = PATCH * PATCH * 3     # 3072 (one patch, channel fastest)
STRIP_DIM = PATCH * IMG_HW * 3    # 9216 (one 32x96x3 horizontal strip, raw layout)
NUM_FEATURES = 128                # stand-in for efficientnet._conv_head out-channels
LANG_DIM = 32                     # lang_encoding_dim (small, synthetic)
OUT_W = GRID_HW * NUM_FEATURES    # 384  lane-dense kernel output width


def _tokenizer_kernel(x_ref, ws_ref, bs_ref, wc_ref, bc_ref, rep_ref,
                      mult_ref, add_ref, out_ref):
    # Surrogate EfficientNet stem: one bf16 MXU matmul per strip row against the
    # gw-block-diagonal weight (RGB mean/std normalization already folded in).
    x = x_ref[...].astype(jnp.bfloat16)                                # (ti, 9216)
    h = jnp.dot(x, ws_ref[...], preferred_element_type=jnp.float32)    # (ti, 3*C)
    h = jnp.maximum(h + bs_ref[...], 0.0)

    # self.conv: 1x1 Conv2d == per-location channel matmul, block-diag over gw.
    y = jnp.dot(h, wc_ref[...], preferred_element_type=jnp.float32) + bc_ref[...]

    # FiLM apply: x * (1 + mult(ctx)) + add(ctx).  mult/add arrive unexpanded at
    # (ti//3, C); expand image rows -> strip rows with a constant 0/1 repeat-matrix
    # matmul (avoids sublane reshapes) and tile x3 along lanes (one copy per gw).
    mult = jnp.dot(rep_ref[...], mult_ref[...], preferred_element_type=jnp.float32)
    add = jnp.dot(rep_ref[...], add_ref[...], preferred_element_type=jnp.float32)
    mult3 = jnp.concatenate([mult] * GRID_HW, axis=-1)                 # (ti, 3*C)
    add3 = jnp.concatenate([add] * GRID_HW, axis=-1)
    out_ref[...] = y * (1.0 + mult3) + add3


def _round_up(x, m):
    return ((x + m - 1) // m) * m


def _pick_tile(strips, target):
    """Strips per grid step: a multiple of 24 (8 sublanes x 3 strips/image) when the
    problem is tiled, and clamped so the grid keeps >= 2 steps (v7x megacore)."""
    if strips <= 24:
        return strips                              # single full-extent block
    return min(_round_up(target, 24), _round_up(pl.cdiv(strips, 2), 24))


def _fold_stem(params):
    """Fold RGB normalization into the stem and expand it to a gw-block-diagonal
    (9216, 3*C) weight so one matmul maps a raw 32x96x3 strip row to all three patches
    of that strip.  The bias fold uses the bf16-rounded weight (exact fold identity)."""
    C = NUM_FEATURES
    w4 = params["w_stem"].reshape(PATCH, PATCH, 3, C)                  # (ph, pw, c, C)
    w4 = (w4 / STDDEV_RGB[None, None, :, None]).astype(jnp.bfloat16)   # fold 1/std
    w4_f32 = w4.astype(jnp.float32)
    b_fold = params["b_stem"] - jnp.einsum("pwcf,c->f", w4_f32, MEAN_RGB)[None, :]
    # Strip-row element order is (ph, gw, pw, c); output columns are (gw, C); the
    # weight is zero wherever a pixel does not belong to the column's patch.
    w_big = jnp.einsum("pwcf,gh->pgwchf", w4_f32,
                       jnp.eye(GRID_HW, dtype=jnp.float32))
    w_big = w_big.reshape(STRIP_DIM, OUT_W).astype(jnp.bfloat16)       # (9216, 3*C)
    b_big = jnp.tile(b_fold, (1, GRID_HW))                             # (1, 3*C)
    # 1x1 conv head as a block-diagonal (3*C, 3*C) matmul (keeps the kernel 2-D).
    wc_big = jnp.kron(jnp.eye(GRID_HW, dtype=jnp.float32), params["w_conv"])
    bc_big = jnp.tile(params["b_conv"], (1, GRID_HW))
    return w_big, b_big, wc_big, bc_big


def image_tokenizer_forward(img, context, params, *, ti=192):
    """img: (bs, 3*context_size, 96, 96)  context: (bs*context_size, LANG_DIM)."""
    C = NUM_FEATURES
    bs, c3, _, _ = img.shape
    n = bs * (c3 // 3)
    strips = n * GRID_HW

    # PyTorch: torch.reshape(img, (bs*cs, 96, 96, 3)) is a raw row-major reshape;
    # flattening straight to (n*3, 9216) strip rows is the same raw reshape and moves
    # no data -- the f32 image is read exactly once, by the kernel.
    x = jnp.reshape(img.astype(jnp.float32), (strips, STRIP_DIM))

    w_big, b_big, wc_big, bc_big = _fold_stem(params)

    # FiLM projections (tiny n x 32 x 128 matmuls) hoisted to XLA, kept UNEXPANDED.
    ctx = context.astype(jnp.float32)
    mult = ctx @ params["w_mult"] + params["b_mult"]                   # (n, C)
    add = ctx @ params["w_add"] + params["b_add"]                      # (n, C)

    ti = _pick_tile(strips, ti)
    rows_img = ti // GRID_HW
    # Constant 0/1 matrix mapping per-image FiLM rows to per-strip rows (r -> r // 3).
    rep = jnp.repeat(jnp.eye(rows_img, dtype=jnp.float32), GRID_HW, axis=0)

    const = lambda shape: pl.BlockSpec(shape, lambda i: (0, 0))

    out = pl.pallas_call(
        _tokenizer_kernel,
        out_shape=jax.ShapeDtypeStruct((strips, OUT_W), jnp.float32),
        grid_spec=pltpu.PrefetchScalarGridSpec(
            num_scalar_prefetch=0,
            grid=(pl.cdiv(strips, ti),),            # no padding: last block is partial
            in_specs=[
                pl.BlockSpec((ti, STRIP_DIM), lambda i: (i, 0)),       # f32 strip rows
                const((STRIP_DIM, OUT_W)),                             # stem W (bf16)
                const((1, OUT_W)),                                     # stem bias
                const((OUT_W, OUT_W)),                                 # 1x1 conv W
                const((1, OUT_W)),                                     # 1x1 conv bias
                const((ti, rows_img)),                                 # FiLM repeat matrix
                pl.BlockSpec((rows_img, C), lambda i: (i, 0)),         # FiLM mult (n, C)
                pl.BlockSpec((rows_img, C), lambda i: (i, 0)),         # FiLM add  (n, C)
            ],
            out_specs=pl.BlockSpec((ti, OUT_W), lambda i: (i, 0)),
        ),
        compiler_params=pltpu.CompilerParams(
            dimension_semantics=("parallel",),
            # Double-buffered 6.75 MiB stem weight + f32 strip blocks exceed the
            # 16/32 MiB default scoped VMEM; 48 MiB stays under v7x's 64 MiB physical.
            vmem_limit_bytes=48 * 1024 * 1024),
    )(x, w_big, b_big, wc_big, bc_big, rep, mult, add)

    # rows are (image, gh), columns are (gw, C) -> NCHW (n, C, 3, 3) like the module.
    return out.reshape(n, GRID_HW, GRID_HW, C).transpose(0, 3, 1, 2)


def init_params(key):
    C, D = NUM_FEATURES, LANG_DIM
    ks = jax.random.split(key, 6)
    kaiming = lambda k, fan_in, shape: (
        jax.random.normal(k, shape, jnp.float32) * jnp.sqrt(2.0 / fan_in))
    return {
        "w_stem": kaiming(ks[0], PATCH_DIM, (PATCH_DIM, C)),
        "b_stem": jnp.zeros((1, C), jnp.float32),
        # self.conv: 1x1 conv, kaiming_normal fan_in init (fan_in = C)
        "w_conv": kaiming(ks[1], C, (C, C)),
        "b_conv": jnp.zeros((1, C), jnp.float32),
        # FiLM projections (context -> per-channel mult / add)
        "w_mult": 0.02 * jax.random.normal(ks[2], (D, C), jnp.float32),
        "b_mult": jnp.zeros((1, C), jnp.float32),
        "w_add": 0.02 * jax.random.normal(ks[3], (D, C), jnp.float32),
        "b_add": jnp.zeros((1, C), jnp.float32),
    }


def _reference(img, context, params):
    """Pure-JAX f32 reference of the same surrogate pipeline (module semantics:
    explicit RGB normalization, un-folded weights, f32 matmuls)."""
    bs, c3, _, _ = img.shape
    n = bs * (c3 // 3)
    imgs = jnp.reshape(img.astype(jnp.float32), (n, IMG_HW, IMG_HW, 3))
    imgs = (imgs - MEAN_RGB) / STDDEV_RGB
    p = imgs.reshape(n, GRID_HW, PATCH, GRID_HW, PATCH, 3)
    p = p.transpose(0, 1, 3, 2, 4, 5).reshape(n, NUM_PATCH, PATCH_DIM)
    h = jnp.maximum(p @ params["w_stem"] + params["b_stem"], 0.0)
    y = h @ params["w_conv"] + params["b_conv"]
    mult = context @ params["w_mult"] + params["b_mult"]
    add = context @ params["w_add"] + params["b_add"]
    out = y * (1.0 + mult[:, None, :]) + add[:, None, :]
    return out.reshape(n, GRID_HW, GRID_HW, NUM_FEATURES).transpose(0, 3, 1, 2)


if __name__ == "__main__":
    key = jax.random.PRNGKey(0)
    k_img, k_ctx, k_par = jax.random.split(key, 3)

    bs, context_size = 2, 2                      # img second dim = 3 * context_size
    img = jax.random.uniform(k_img, (bs, 3 * context_size, IMG_HW, IMG_HW),
                             dtype=jnp.float32)
    context = jax.random.normal(k_ctx, (bs * context_size, LANG_DIM),
                                dtype=jnp.float32)
    params = init_params(k_par)

    out = image_tokenizer_forward(img, context, params)
    out = jax.block_until_ready(out)

    ref = _reference(img, context, params)
    n = bs * context_size
    assert out.shape == (n, NUM_FEATURES, GRID_HW, GRID_HW), out.shape
    # Kernel uses bf16 matmul inputs (f32 accumulate); tolerance is sized for the
    # bf16 pixel/weight quantization (observed |error| well below this bound).
    assert jnp.allclose(out, ref, atol=1e-1, rtol=1e-1), "mismatch vs reference"

    print("KERNEL_OK")
</pallas_src>

<mosaic_0001>
module attributes {stable_mosaic.version = 11 : i64} {
  func.func @_tokenizer_kernel(%arg0: i32, %arg1: memref<12x9216xf32, #tpu.memory_space<vmem>>, %arg2: memref<9216x384xbf16, #tpu.memory_space<vmem>>, %arg3: memref<1x384xf32, #tpu.memory_space<vmem>>, %arg4: memref<384x384xf32, #tpu.memory_space<vmem>>, %arg5: memref<1x384xf32, #tpu.memory_space<vmem>>, %arg6: memref<12x4xf32, #tpu.memory_space<vmem>>, %arg7: memref<4x128xf32, #tpu.memory_space<vmem>>, %arg8: memref<4x128xf32, #tpu.memory_space<vmem>>, %arg9: memref<12x384xf32, #tpu.memory_space<vmem>>) attributes {dimension_semantics = [#tpu.dimension_semantics<parallel>], iteration_bounds = array<i64: 1>, scalar_prefetch = 0 : i64, scratch_operands = 0 : i64, tpu.core_type = #tpu.core_type<tc>, window_params = [{transform_indices = @transform_0, window_bounds = array<i64: 12, 9216>}, {pipeline_mode = #tpu.pipeline_mode<synchronous>, transform_indices = @transform_1, window_bounds = array<i64: 9216, 384>}, {pipeline_mode = #tpu.pipeline_mode<synchronous>, transform_indices = @transform_2, window_bounds = array<i64: 1, 384>}, {pipeline_mode = #tpu.pipeline_mode<synchronous>, transform_indices = @transform_3, window_bounds = array<i64: 384, 384>}, {pipeline_mode = #tpu.pipeline_mode<synchronous>, transform_indices = @transform_4, window_bounds = array<i64: 1, 384>}, {pipeline_mode = #tpu.pipeline_mode<synchronous>, transform_indices = @transform_5, window_bounds = array<i64: 12, 4>}, {transform_indices = @transform_6, window_bounds = array<i64: 4, 128>}, {transform_indices = @transform_7, window_bounds = array<i64: 4, 128>}, {transform_indices = @transform_8, window_bounds = array<i64: 12, 384>}]} {
    %c0 = arith.constant 0 : index
    %c0_0 = arith.constant 0 : index
    %0 = vector.load %arg1[%c0, %c0_0] : memref<12x9216xf32, #tpu.memory_space<vmem>>, vector<12x9216xf32>
    %1 = arith.truncf %0 : vector<12x9216xf32> to vector<12x9216xbf16>
    %c0_1 = arith.constant 0 : index
    %c0_2 = arith.constant 0 : index
    %2 = vector.load %arg2[%c0_1, %c0_2] : memref<9216x384xbf16, #tpu.memory_space<vmem>>, vector<9216x384xbf16>
    %cst = arith.constant dense<0.000000e+00> : vector<12x384xf32>
    %3 = tpu.matmul %1, %2, %cst {dimension_numbers = #tpu.dot_dimension_numbers<[1], [0], [0], [1], [0, 0, 1, 1], [], []>} : vector<12x9216xbf16>, vector<9216x384xbf16>, vector<12x384xf32> -> vector<12x384xf32>
    %c0_3 = arith.constant 0 : index
    %c0_4 = arith.constant 0 : index
    %4 = vector.load %arg3[%c0_3, %c0_4] : memref<1x384xf32, #tpu.memory_space<vmem>>, vector<1x384xf32>
    %5 = vector.broadcast %4 : vector<1x384xf32> to vector<12x384xf32>
    %6 = arith.addf %3, %5 : vector<12x384xf32>
    %cst_5 = arith.constant 0.000000e+00 : f32
    %7 = vector.broadcast %cst_5 : f32 to vector<12x384xf32>
    %8 = arith.maximumf %6, %7 : vector<12x384xf32>
    %c0_6 = arith.constant 0 : index
    %c0_7 = arith.constant 0 : index
    %9 = vector.load %arg4[%c0_6, %c0_7] : memref<384x384xf32, #tpu.memory_space<vmem>>, vector<384x384xf32>
    %cst_8 = arith.constant dense<0.000000e+00> : vector<12x384xf32>
    %10 = tpu.matmul %8, %9, %cst_8 {dimension_numbers = #tpu.dot_dimension_numbers<[1], [0], [0], [1], [0, 0, 1, 1], [], []>} : vector<12x384xf32>, vector<384x384xf32>, vector<12x384xf32> -> vector<12x384xf32>
    %c0_9 = arith.constant 0 : index
    %c0_10 = arith.constant 0 : index
    %11 = vector.load %arg5[%c0_9, %c0_10] : memref<1x384xf32, #tpu.memory_space<vmem>>, vector<1x384xf32>
    %12 = vector.broadcast %11 : vector<1x384xf32> to vector<12x384xf32>
    %13 = arith.addf %10, %12 : vector<12x384xf32>
    %c0_11 = arith.constant 0 : index
    %c0_12 = arith.constant 0 : index
    %14 = vector.load %arg6[%c0_11, %c0_12] : memref<12x4xf32, #tpu.memory_space<vmem>>, vector<12x4xf32>
    %c0_13 = arith.constant 0 : index
    %c0_14 = arith.constant 0 : index
    %15 = vector.load %arg7[%c0_13, %c0_14] : memref<4x128xf32, #tpu.memory_space<vmem>>, vector<4x128xf32>
    %cst_15 = arith.constant dense<0.000000e+00> : vector<12x128xf32>
    %16 = tpu.matmul %14, %15, %cst_15 {dimension_numbers = #tpu.dot_dimension_numbers<[1], [0], [0], [1], [0, 0, 1, 1], [], []>} : vector<12x4xf32>, vector<4x128xf32>, vector<12x128xf32> -> vector<12x128xf32>
    %c0_16 = arith.constant 0 : index
    %c0_17 = arith.constant 0 : index
    %17 = vector.load %arg6[%c0_16, %c0_17] : memref<12x4xf32, #tpu.memory_space<vmem>>, vector<12x4xf32>
    %c0_18 = arith.constant 0 : index
    %c0_19 = arith.constant 0 : index
    %18 = vector.load %arg8[%c0_18, %c0_19] : memref<4x128xf32, #tpu.memory_space<vmem>>, vector<4x128xf32>
    %cst_20 = arith.constant dense<0.000000e+00> : vector<12x128xf32>
    %19 = tpu.matmul %17, %18, %cst_20 {dimension_numbers = #tpu.dot_dimension_numbers<[1], [0], [0], [1], [0, 0, 1, 1], [], []>} : vector<12x4xf32>, vector<4x128xf32>, vector<12x128xf32> -> vector<12x128xf32>
    %20 = tpu.concatenate %16, %16, %16 in 1 : vector<12x128xf32>, vector<12x128xf32>, vector<12x128xf32> -> vector<12x384xf32>
    %21 = tpu.concatenate %19, %19, %19 in 1 : vector<12x128xf32>, vector<12x128xf32>, vector<12x128xf32> -> vector<12x384xf32>
    %cst_21 = arith.constant 1.000000e+00 : f32
    %22 = vector.broadcast %cst_21 : f32 to vector<12x384xf32>
    %23 = arith.addf %22, %20 : vector<12x384xf32>
    %24 = arith.mulf %13, %23 : vector<12x384xf32>
    %25 = arith.addf %24, %21 : vector<12x384xf32>
    %c0_22 = arith.constant 0 : index
    %c0_23 = arith.constant 0 : index
    %26 = vector.load %arg9[%c0_22, %c0_23] : memref<12x384xf32, #tpu.memory_space<vmem>>, vector<12x384xf32>
    tpu.vector_store %arg9[%c0_22, %c0_23], %25 {strides = array<i32>} : memref<12x384xf32, #tpu.memory_space<vmem>>, vector<12x384xf32>,
    return
  }
  func.func @transform_0(%arg0: i32) -> (i32, i32) {
    %c0_i32 = arith.constant 0 : i32
    %c0_i32_0 = arith.constant 0 : i32
    return %arg0, %c0_i32 : i32, i32
  }
  func.func @transform_1(%arg0: i32) -> (i32, i32) {
    %c0_i32 = arith.constant 0 : i32
    %c0_i32_0 = arith.constant 0 : i32
    %c0_i32_1 = arith.constant 0 : i32
    return %c0_i32, %c0_i32_0 : i32, i32
  }
  func.func @transform_2(%arg0: i32) -> (i32, i32) {
    %c0_i32 = arith.constant 0 : i32
    %c0_i32_0 = arith.constant 0 : i32
    %c0_i32_1 = arith.constant 0 : i32
    return %c0_i32, %c0_i32_0 : i32, i32
  }
  func.func @transform_3(%arg0: i32) -> (i32, i32) {
    %c0_i32 = arith.constant 0 : i32
    %c0_i32_0 = arith.constant 0 : i32
    %c0_i32_1 = arith.constant 0 : i32
    return %c0_i32, %c0_i32_0 : i32, i32
  }
  func.func @transform_4(%arg0: i32) -> (i32, i32) {
    %c0_i32 = arith.constant 0 : i32
    %c0_i32_0 = arith.constant 0 : i32
    %c0_i32_1 = arith.constant 0 : i32
    return %c0_i32, %c0_i32_0 : i32, i32
  }
  func.func @transform_5(%arg0: i32) -> (i32, i32) {
    %c0_i32 = arith.constant 0 : i32
    %c0_i32_0 = arith.constant 0 : i32
    %c0_i32_1 = arith.constant 0 : i32
    return %c0_i32, %c0_i32_0 : i32, i32
  }
  func.func @transform_6(%arg0: i32) -> (i32, i32) {
    %c0_i32 = arith.constant 0 : i32
    %c0_i32_0 = arith.constant 0 : i32
    return %arg0, %c0_i32 : i32, i32
  }
  func.func @transform_7(%arg0: i32) -> (i32, i32) {
    %c0_i32 = arith.constant 0 : i32
    %c0_i32_0 = arith.constant 0 : i32
    return %arg0, %c0_i32 : i32, i32
  }
  func.func @transform_8(%arg0: i32) -> (i32, i32) {
    %c0_i32 = arith.constant 0 : i32
    %c0_i32_0 = arith.constant 0 : i32
    return %arg0, %c0_i32 : i32, i32
  }
}

</mosaic_0001>

<bundles_post_ra>
// kernel: tpu_custom_call.1
= control target key start
LH: loop header
LB: loop body
LE: loop exit
PB: predicated region body
PF: predicated region fallthrough
CT: control target
= control target key end

     0   :  { %13 = vsyncpa [#allocation3], 0  ;;  %s21725_s0 = inlined_call_operand.hbm [shape: f32[12,9216], index: 0, kind: input, shape index: {}]   ;;  %s21726_s1 = inlined_call_operand.hbm [shape: bf16[9216,384], index: 1, kind: input, shape index: {}]   ;;  %s21727_s2 = inlined_call_operand.hbm [shape: f32[1,384], index: 2, kind: input, shape index: {}]   ;;  %s21728_s3 = inlined_call_operand.hbm [shape: f32[384,384], index: 3, kind: input, shape index: {}]   ;;  %s21729_s4 = inlined_call_operand.hbm [shape: f32[1,384], index: 4, kind: input, shape index: {}]   ;;  %s21730_s5 = inlined_call_operand.vmem [shape: f32[12,4], index: 5, kind: input, shape index: {}]   ;;  %s21731_s6 = inlined_call_operand.hbm [shape: f32[4,128], index: 6, kind: input, shape index: {}]   ;;  %s21732_s7 = inlined_call_operand.hbm [shape: f32[4,128], index: 7, kind: input, shape index: {}]   ;;  %s21733_s8 = inlined_call_operand.hbm [shape: f32[12,384], index: 8, kind: output, shape index: {}]  }
   0x1   :  { %14 = vsyncpa [#allocation6], 0 }
   0x2   :  { %15 = vsyncpa [#allocation9], 0 }
   0x3   :  { %16 = vsyncpa [#allocation12], 0 }
   0x4   :  { %17 = vsyncpa [#allocation4], 0  ;;  %s21025_s27 = smov [#allocation5]   ;;  %s20839_s9 = scalar_lea.hbm %s21726_s1, 221184 }
   0x5   :  { %s35_s28 = sshll.u32 %s21025_s27, 4  ;;  %p20840_p0 = scmp.ne.s32.totalorder %s21726_s1, %s20839_s9  ;;  %s36_s28 = int_to_ptr.vmem [resolvable:$true] %s35_s28 }
   0x6   :  { %p20843_p1 = scmp.lt.u32.totalorder %s20839_s9, %s21726_s1 }
   0x8   :  { %p20845_p2 = pnand %p20843_p1, %p20840_p0 }
   0xa   :  { %20848 = shalt.err (!%p20845_p2)
}
   0xb   :  { %s20849_s14 = scalar_lea.vmem %s36_s28, 221184  ;;  %p20854_p4 = scmp.lt.s32.totalorder %s36_s28, %s36_s28 }
   0xc   :  { %p20850_p3 = scmp.ne.s32.totalorder %s36_s28, %s20849_s14  ;;  %p20855_p5 = scmp.lt.s32.totalorder %s20849_s14, %s20849_s14 }
   0xe   :  { %p20856_p6 = por %p20855_p5, %p20854_p4 }
  0x10   :  { %p20857_p7 = pnand %p20856_p6, %p20850_p3 }
  0x12   :  { %20860 = shalt.err (!%p20857_p7)
}
  0x13   :  { %s21026_s15 = smov 192   ;;  %s21027_s16 = smov 12  }
  0x14   :  { %41 = dma.hbm_to_vmem [thread:$0]  %s21726_s1, 221184, %s36_s28, [#allocation6], %s21026_s15, %s21026_s15, %s21027_s16  }
  0x15   :  { %s21028_s19 = smov [#allocation8]   ;;  %s20861_s23 = scalar_lea.hbm %s21728_s3, 18432 }
  0x16   :  { %s57_s20 = sshll.u32 %s21028_s19, 4  ;;  %p20862_p8 = scmp.ne.s32.totalorder %s21728_s3, %s20861_s23  ;;  %s58_s20 = int_to_ptr.vmem [resolvable:$true] %s57_s20 }
  0x17   :  { %p20865_p9 = scmp.lt.u32.totalorder %s20861_s23, %s21728_s3 }
  0x19   :  { %p20867_p10 = pnand %p20865_p9, %p20862_p8 }
  0x1b   :  { %20870 = shalt.err (!%p20867_p10)
}
  0x1c   :  { %s20871_s29 = scalar_lea.vmem %s58_s20, 18432  ;;  %p20876_p12 = scmp.lt.s32.totalorder %s58_s20, %s58_s20 }
  0x1d   :  { %p20872_p11 = scmp.ne.s32.totalorder %s58_s20, %s20871_s29  ;;  %p20877_p13 = scmp.lt.s32.totalorder %s20871_s29, %s20871_s29 }
  0x1f   :  { %p20878_p0 = por %p20877_p13, %p20876_p12 }
  0x21   :  { %p20879_p1 = pnand %p20878_p0, %p20872_p11 }
  0x23   :  { %20882 = shalt.err (!%p20879_p1)
}
  0x24   :  { %s21029_s1 = smov 384   ;;  %s21030_s28 = smov 24  }
  0x25   :  { %63 = dma.hbm_to_vmem [thread:$0]  %s21728_s3, 18432, %s58_s20, [#allocation9], %s21029_s1, %s21029_s1, %s21030_s28  }
  0x26   :  { %s21031_s10 = smov [#allocation11]   ;;  %s21032_s12 = smov [#allocation2]  }
  0x27   :  { %s82_s11 = sshll.u32 %s21031_s10, 4  ;;  %s23_s13 = sshll.u32 %s21032_s12, 4  ;;  %s83_s11 = int_to_ptr.vmem [resolvable:$true] %s82_s11  ;;  %s21112_s13 = int_to_ptr.vmem [resolvable:$true] %s23_s13 }
  0x28   :  { %s20883_s16 = scalar_lea.hbm %s21731_s6, 64 }
  0x29   :  { %p20884_p2 = scmp.ne.s32.totalorder %s21731_s6, %s20883_s16  ;;  %p20887_p3 = scmp.lt.u32.totalorder %s20883_s16, %s21731_s6 }
  0x2b   :  { %p20889_p4 = pnand %p20887_p3, %p20884_p2 }
  0x2d   :  { %20892 = shalt.err (!%p20889_p4)
}
  0x2e   :  { %s20893_s3 = scalar_lea.vmem %s83_s11, 64  ;;  %p20898_p6 = scmp.lt.s32.totalorder %s83_s11, %s83_s11 }
  0x2f   :  { %p20894_p5 = scmp.ne.s32.totalorder %s83_s11, %s20893_s3  ;;  %p20899_p7 = scmp.lt.s32.totalorder %s20893_s3, %s20893_s3 }
  0x31   :  { %p20900_p8 = por %p20899_p7, %p20898_p6 }
  0x33   :  { %p20901_p9 = pnand %p20900_p8, %p20894_p5 }
  0x35   :  { %20904 = shalt.err (!%p20901_p9)
}
  0x36   :  { %85 = dma.hbm_to_vmem [thread:$0]  %s21731_s6, 64, %s83_s11, [#allocation12]  }
  0x37   :  { %s20905_s25 = scalar_lea.hbm %s21725_s0, 18432 }
  0x38   :  { %p20906_p10 = scmp.ne.s32.totalorder %s21725_s0, %s20905_s25  ;;  %p20909_p11 = scmp.lt.u32.totalorder %s20905_s25, %s21725_s0 }
  0x3a   :  { %p20911_p12 = pnand %p20909_p11, %p20906_p10 }
  0x3c   :  { %20914 = shalt.err (!%p20911_p12)
}
  0x3d   :  { %s20915_s9 = scalar_lea.vmem %s21112_s13, 18432  ;;  %p20920_p0 = scmp.lt.s32.totalorder %s21112_s13, %s21112_s13 }
  0x3e   :  { %p20916_p13 = scmp.ne.s32.totalorder %s21112_s13, %s20915_s9  ;;  %p20921_p1 = scmp.lt.s32.totalorder %s20915_s9, %s20915_s9 }
  0x40   :  { %p20922_p2 = por %p20921_p1, %p20920_p0 }
  0x42   :  { %p20923_p3 = pnand %p20922_p2, %p20916_p13 }
  0x44   :  { %20926 = shalt.err (!%p20923_p3)
}
  0x45   :  { %s21033_s6 = smov 9216   ;;  %s21034_s10 = smov 576  }
  0x46   :  { %29 = dma.hbm_to_vmem [thread:$0]  %s21725_s0, 18432, %s21112_s13, [#allocation3], %s21033_s6, %s21033_s6, %s21034_s10  }
  0x47   :  { %s21035_s14 = smov [#allocation7]   ;;  %s21036_s16 = smov [#allocation10]  }
  0x48   :  { %s48_s15 = sshll.u32 %s21035_s14, 4  ;;  %s70_s17 = sshll.u32 %s21036_s16, 4  ;;  %s49_s15 = int_to_ptr.vmem [resolvable:$true] %s48_s15  ;;  %s71_s17 = int_to_ptr.vmem [resolvable:$true] %s70_s17 }
  0x49   :  { %s20927_s21 = scalar_lea.hbm %s21727_s2, 48 }
  0x4a   :  { %p20928_p4 = scmp.ne.s32.totalorder %s21727_s2, %s20927_s21  ;;  %p20931_p5 = scmp.lt.u32.totalorder %s20927_s21, %s21727_s2 }
  0x4c   :  { %p20933_p6 = pnand %p20931_p5, %p20928_p4 }
  0x4e   :  { %20936 = shalt.err (!%p20933_p6)
}
  0x4f   :  { %s20937_s0 = scalar_lea.vmem %s49_s15, 48  ;;  %s20941_s13 = scalar_lea.vmem %s49_s15, 64 }
  0x50   :  { %p20938_p7 = scmp.ne.s32.totalorder %s49_s15, %s20937_s0  ;;  %p20942_p8 = scmp.lt.s32.totalorder %s49_s15, %s49_s15 }
  0x51   :  { %p20943_p9 = scmp.lt.s32.totalorder %s20941_s13, %s20937_s0 }
  0x53   :  { %p20944_p10 = por %p20943_p9, %p20942_p8 }
  0x55   :  { %p20945_p11 = pnand %p20944_p10, %p20938_p7 }
  0x57   :  { %20948 = shalt.err (!%p20945_p11)
}
  0x58   :  { %51 = dma.hbm_to_vmem [thread:$0]  %s21727_s2, 48, %s49_s15, [#allocation6]  }
  0x59   :  { %s20949_s29 = scalar_lea.hbm %s21729_s4, 48 }
  0x5a   :  { %p20950_p12 = scmp.ne.s32.totalorder %s21729_s4, %s20949_s29  ;;  %p20953_p13 = scmp.lt.u32.totalorder %s20949_s29, %s21729_s4 }
  0x5c   :  { %p20955_p0 = pnand %p20953_p13, %p20950_p12 }
  0x5e   :  { %20958 = shalt.err (!%p20955_p0)
}
  0x5f   :  { %s20959_s11 = scalar_lea.vmem %s71_s17, 48  ;;  %s20963_s12 = scalar_lea.vmem %s71_s17, 64 }
  0x60   :  { %p20960_p1 = scmp.ne.s32.totalorder %s71_s17, %s20959_s11  ;;  %p20964_p2 = scmp.lt.s32.totalorder %s71_s17, %s71_s17 }
  0x61   :  { %p20965_p3 = scmp.lt.s32.totalorder %s20963_s12, %s20959_s11 }
  0x63   :  { %p20966_p4 = por %p20965_p3, %p20964_p2 }
  0x65   :  { %p20967_p5 = pnand %p20966_p4, %p20960_p1 }
  0x67   :  { %20970 = shalt.err (!%p20967_p5)
}
  0x68   :  { %73 = dma.hbm_to_vmem [thread:$0]  %s21729_s4, 48, %s71_s17, [#allocation9]  }
  0x69   :  { %s21037_s15 = smov [#allocation13]   ;;  %s20971_s21 = scalar_lea.hbm %s21732_s7, 64 }
  0x6a   :  { %s92_s16 = sshll.u32 %s21037_s15, 4  ;;  %p20972_p6 = scmp.ne.s32.totalorder %s21732_s7, %s20971_s21  ;;  %s93_s16 = int_to_ptr.vmem [resolvable:$true] %s92_s16 }
  0x6b   :  { %p20975_p7 = scmp.lt.u32.totalorder %s20971_s21, %s21732_s7 }
  0x6d   :  { %p20977_p8 = pnand %p20975_p7, %p20972_p6 }
  0x6f   :  { %20980 = shalt.err (!%p20977_p8)
}
  0x70   :  { %s20981_s0 = scalar_lea.vmem %s93_s16, 64  ;;  %p20986_p10 = scmp.lt.s32.totalorder %s93_s16, %s93_s16 }
  0x71   :  { %p20982_p9 = scmp.ne.s32.totalorder %s93_s16, %s20981_s0  ;;  %p20987_p11 = scmp.lt.s32.totalorder %s20981_s0, %s20981_s0 }
  0x73   :  { %p20988_p12 = por %p20987_p11, %p20986_p10 }
  0x75   :  { %p20989_p13 = pnand %p20988_p12, %p20982_p9 }
  0x77   :  { %20992 = shalt.err (!%p20989_p13)
}
  0x78   :  { %95 = dma.hbm_to_vmem [thread:$0]  %s21732_s7, 64, %s93_s16, [#allocation12]  }
  0x79   :  { %21015 = dma.done.wait [#allocation3], 18432  }
  0x7a   :  { %21016 = vsyncadd [#allocation3], 4294948864 }
  0x7b   :  { %21017 = dma.done.wait [#allocation6], 221232  }
  0x7c   :  { %21018 = vsyncadd [#allocation6], 4294746064 }
  0x7d   :  { %21019 = dma.done.wait [#allocation9], 18480  }
  0x7e   :  { %21020 = vsyncadd [#allocation9], 4294948816 }
  0x7f   :  { %21021 = dma.done.wait [#allocation12], 128  }
  0x80   :  { %21022 = vsyncadd [#allocation12], 4294967168  ;;  %v18534_v0 = vld [vmem:[#allocation5 + $0x4] ss:$12 sps:$4 sm:$0xff]   ;;  %v18538_v2 = vld [vmem:[#allocation5] ss:$12 sps:$4 sm:$0xff]  }
  0x81   :  { %v18536_v1 = vld [vmem:[#allocation5 + $0xc04] ss:$12 sps:$4 sm:$0xff]   ;;  %11871 = vmatprep.subr.bf16.mxu1 %v18534_v0  ;;  %v18539_v3 = vld [vmem:[#allocation5 + $0xc00] ss:$12 sps:$4 sm:$0xff]   ;;  %v18540_v4 = vld [vmem:[#allocation5 + $0x1c] ss:$12 sps:$4 sm:$0xff]  }
  0x82   :  { %12215 = vmatprep.subr.bf16.mxu0 %v18536_v1  ;;  %11872 = vmatpush1.bf16.msra.mxu1 %v18538_v2  ;;  %v18542_v5 = vld [vmem:[#allocation5 + $0xc1c] ss:$12 sps:$4 sm:$0xff]   ;;  %v18544_v6 = vld [vmem:[#allocation5 + $0x18] ss:$12 sps:$4 sm:$0xff]   ;;  %v18546_v8 = vld [vmem:[#allocation5 + $0x34] ss:$12 sps:$4 sm:$0xff]  }
  0x83   :  { %12216 = vmatpush1.bf16.msra.mxu0 %v18539_v3  ;;  %11873 = vmatprep.subr.bf16.mxu1 %v18540_v4  ;;  %v18545_v7 = vld [vmem:[#allocation5 + $0xc18] ss:$12 sps:$4 sm:$0xff]   ;;  %v18548_v9 = vld [vmem:[#allocation5 + $0xc34] ss:$12 sps:$4 sm:$0xff]   ;;  %v18550_v10 = vld [vmem:[#allocation5 + $0x30] ss:$12 sps:$4 sm:$0xff]  }
  0x84   :  { %12217 = vmatprep.subr.bf16.mxu0 %v18542_v5  ;;  %v18551_v11 = vld [vmem:[#allocation5 + $0xc30] ss:$12 sps:$4 sm:$0xff]   ;;  %v18552_v12 = vld [vmem:[#allocation5 + $0x4c] ss:$12 sps:$4 sm:$0xff]   ;;  %v18556_v14 = vld [vmem:[#allocation5 + $0x48] ss:$12 sps:$4 sm:$0xff]  }
  0x85   :  { %v18554_v13 = vld [vmem:[#allocation5 + $0xc4c] ss:$12 sps:$4 sm:$0xff]   ;;  %v18557_v15 = vld [vmem:[#allocation5 + $0xc48] ss:$12 sps:$4 sm:$0xff]   ;;  %v18558_v16 = vld [vmem:[#allocation5 + $0x64] ss:$12 sps:$4 sm:$0xff]  }
  0x86   :  { %11874 = vmatpush1.bf16.msra.mxu1 %v18544_v6  ;;  %v18560_v17 = vld [vmem:[#allocation5 + $0xc64] ss:$12 sps:$4 sm:$0xff]   ;;  %v18562_v18 = vld [vmem:[#allocation5 + $0x60] ss:$12 sps:$4 sm:$0xff]   ;;  %v18564_v20 = vld [vmem:[#allocation5 + $0x7c] ss:$12 sps:$4 sm:$0xff]  }
  0x87   :  { %12218 = vmatpush1.bf16.msra.mxu0 %v18545_v7  ;;  %11875 = vmatprep.subr.bf16.mxu1 %v18546_v8  ;;  %v18563_v19 = vld [vmem:[#allocation5 + $0xc60] ss:$12 sps:$4 sm:$0xff]   ;;  %v18566_v21 = vld [vmem:[#allocation5 + $0xc7c] ss:$12 sps:$4 sm:$0xff]   ;;  %v18568_v22 = vld [vmem:[#allocation5 + $0x78] ss:$12 sps:$4 sm:$0xff]  }
  0x88   :  { %12219 = vmatprep.subr.bf16.mxu0 %v18548_v9  ;;  %v18569_v23 = vld [vmem:[#allocation5 + $0xc78] ss:$12 sps:$4 sm:$0xff]   ;;  %v18570_v24 = vld [vmem:[#allocation5 + $0x94] ss:$12 sps:$4 sm:$0xff]   ;;  %v18574_v26 = vld [vmem:[#allocation5 + $0x90] ss:$12 sps:$4 sm:$0xff]  }
  0x89   :  { %v18572_v25 = vld [vmem:[#allocation5 + $0xc94] ss:$12 sps:$4 sm:$0xff]   ;;  %v18575_v27 = vld [vmem:[#allocation5 + $0xc90] ss:$12 sps:$4 sm:$0xff]   ;;  %v18576_v28 = vld [vmem:[#allocation5 + $0xac] ss:$12 sps:$4 sm:$0xff]  }
  0x8a   :  { %11876 = vmatpush1.bf16.msra.mxu1 %v18550_v10  ;;  %v18578_v29 = vld [vmem:[#allocation5 + $0xcac] ss:$12 sps:$4 sm:$0xff]   ;;  %v18580_v30 = vld [vmem:[#allocation5 + $0xa8] ss:$12 sps:$4 sm:$0xff]   ;;  %v18582_v32 = vld [vmem:[#allocation5 + $0xc4] ss:$12 sps:$4 sm:$0xff]  }
  0x8b   :  { %12220 = vmatpush1.bf16.msra.mxu0 %v18551_v11  ;;  %11877 = vmatprep.subr.bf16.mxu1 %v18552_v12  ;;  %v18581_v31 = vld [vmem:[#allocation5 + $0xca8] ss:$12 sps:$4 sm:$0xff]   ;;  %v18584_v33 = vld [vmem:[#allocation5 + $0xcc4] ss:$12 sps:$4 sm:$0xff]   ;;  %v18586_v34 = vld [vmem:[#allocation5 + $0xc0] ss:$12 sps:$4 sm:$0xff]  }
  0x8c   :  { %12221 = vmatprep.subr.bf16.mxu0 %v18554_v13  ;;  %v18587_v35 = vld [vmem:[#allocation5 + $0xcc0] ss:$12 sps:$4 sm:$0xff]   ;;  %v18588_v36 = vld [vmem:[#allocation5 + $0xdc] ss:$12 sps:$4 sm:$0xff]   ;;  %v18592_v38 = vld [vmem:[#allocation5 + $0xd8] ss:$12 sps:$4 sm:$0xff]  }
  0x8d   :  { %v18590_v37 = vld [vmem:[#allocation5 + $0xcdc] ss:$12 sps:$4 sm:$0xff]   ;;  %v18593_v39 = vld [vmem:[#allocation5 + $0xcd8] ss:$12 sps:$4 sm:$0xff]   ;;  %v18594_v40 = vld [vmem:[#allocation5 + $0xf4] ss:$12 sps:$4 sm:$0xff]  }
  0x8e   :  { %11878 = vmatpush1.bf16.msra.mxu1 %v18556_v14  ;;  %v18596_v41 = vld [vmem:[#allocation5 + $0xcf4] ss:$12 sps:$4 sm:$0xff]   ;;  %v18598_v42 = vld [vmem:[#allocation5 + $0xf0] ss:$12 sps:$4 sm:$0xff]   ;;  %v18600_v44 = vld [vmem:[#allocation5 + $0x10c] ss:$12 sps:$4 sm:$0xff]  }
  0x8f   :  { %12222 = vmatpush1.bf16.msra.mxu0 %v18557_v15  ;;  %11879 = vmatprep.subr.bf16.mxu1 %v18558_v16  ;;  %v18599_v43 = vld [vmem:[#allocation5 + $0xcf0] ss:$12 sps:$4 sm:$0xff]   ;;  %v18602_v45 = vld [vmem:[#allocation5 + $0xd0c] ss:$12 sps:$4 sm:$0xff]   ;;  %v18604_v46 = vld [vmem:[#allocation5 + $0x108] ss:$12 sps:$4 sm:$0xff]  }
  0x90   :  { %12223 = vmatprep.subr.bf16.mxu0 %v18560_v17  ;;  %v18605_v47 = vld [vmem:[#allocation5 + $0xd08] ss:$12 sps:$4 sm:$0xff]   ;;  %v18606_v50 = vld [vmem:[#allocation5 + $0x124] ss:$12 sps:$4 sm:$0xff]   ;;  %v18610_v56 = vld [vmem:[#allocation5 + $0x120] ss:$12 sps:$4 sm:$0xff]  }
  0x91   :  { %v119_v48 = vld [vmem:[#allocation2 + $0x8] sm:$0xff]  ;;  %v18608_v51 = vld [vmem:[#allocation5 + $0xd24] ss:$12 sps:$4 sm:$0xff]   ;;  %v18618_v62 = vld [vmem:[#allocation5 + $0x154] ss:$12 sps:$4 sm:$0xff]   ;;  %vm15376_vm0 = vcmask 1043456  }
  0x92   :  { %11880 = vmatpush1.bf16.msra.mxu1 %v18562_v18  ;;  %v191_v49 = vld [vmem:[#allocation2 + $0x248] sm:$0xf]  ;;  %v18611_v57 = vld [vmem:[#allocation5 + $0xd20] ss:$12 sps:$4 sm:$0xff]   ;;  %v18616_v60 = vld [vmem:[#allocation5 + $0x138] ss:$12 sps:$4 sm:$0xff]  }
  0x93   :  { %12224 = vmatpush1.bf16.msra.mxu0 %v18563_v19  ;;  %11881 = vmatprep.subr.bf16.mxu1 %v18564_v20  ;;  %v21179_v52 = vpack.c.bf16 %v191_v49, %v119_v48  ;;  %v135_v53 = vld [vmem:[#allocation2 + $0x88] sm:$0xff]  ;;  %v18617_v61 = vld [vmem:[#allocation5 + $0xd38] ss:$12 sps:$4 sm:$0xff]   ;;  %v18620_v63 = vld [vmem:[#allocation5 + $0xd54] ss:$12 sps:$4 sm:$0xff]   ;;  %vm15369_vm1 = vcmask 31744  }
  0x94   :  { %12225 = vmatprep.subr.bf16.mxu0 %v18566_v21  ;;  %v207_v54 = vld [vmem:[#allocation2 + $0x2c8] sm:$0xf]  ;;  %v18622_v0 = vld [vmem:[#allocation5 + $0x150] ss:$12 sps:$4 sm:$0xff]   ;;  %v18624_v2 = vld [vmem:[#allocation5 + $0x16c] ss:$12 sps:$4 sm:$0xff]  }
  0x95   :  { %11903 = vmatprep.mubr.bf16.mxu1 %v21179_v52  ;;  %v21182_v55 = vpack.c.bf16 %v207_v54, %v135_v53  ;;  %v18612_v58 = vld [vmem:[#allocation5 + $0x13c] ss:$12 sps:$4 sm:$0xff]   ;;  %v18626_v3 = vld [vmem:[#allocation5 + $0xd6c] ss:$12 sps:$4 sm:$0xff]   ;;  %v118_v6 = vld [vmem:[#allocation2] sm:$0xff] }
  0x96   :  { %11882 = vmatpush1.bf16.msra.mxu1 %v18568_v22  ;;  %v18614_v59 = vld [vmem:[#allocation5 + $0xd3c] ss:$12 sps:$4 sm:$0xff]   ;;  %v18632_v7 = vld [vmem:[#allocation5 + $0x184] ss:$12 sps:$4 sm:$0xff]   ;;  %v190_v8 = vld [vmem:[#allocation2 + $0x240] sm:$0xf] }
  0x97   :  { %12226 = vmatpush1.bf16.msra.mxu0 %v18569_v23  ;;  %11883 = vmatprep.subr.bf16.mxu1 %v18570_v24  ;;  %v18623_v1 = vld [vmem:[#allocation5 + $0xd50] ss:$12 sps:$4 sm:$0xff]   ;;  %v18628_v4 = vld [vmem:[#allocation5 + $0x168] ss:$12 sps:$4 sm:$0xff]   ;;  %v134_v9 = vld [vmem:[#allocation2 + $0x80] sm:$0xff]  ;;  %v21185_v14 = vpack.c.bf16 %v190_v8, %v118_v6 }
  0x98   :  { %12227 = vmatprep.subr.bf16.mxu0 %v18572_v25  ;;  %12247 = vmatprep.mubr.bf16.mxu0 %v21182_v55  ;;  %v18629_v5 = vld [vmem:[#allocation5 + $0xd68] ss:$12 sps:$4 sm:$0xff]   ;;  %v206_v10 = vld [vmem:[#allocation2 + $0x2c0] sm:$0xf]  ;;  %v18635_v11 = vld [vmem:[#allocation5 + $0xd84] ss:$12 sps:$4 sm:$0xff]  }
  0x99   :  { %v18630_v12 = vld [vmem:[#allocation5 + $0x180] ss:$12 sps:$4 sm:$0xff]   ;;  %v21187_v15 = vpack.c.bf16 %v206_v10, %v134_v9  ;;  %v18638_v16 = vld [vmem:[#allocation5 + $0x19c] ss:$12 sps:$4 sm:$0xff]   ;;  %v18636_v18 = vld [vmem:[#allocation5 + $0x198] ss:$12 sps:$4 sm:$0xff]  }
  0x9a   :  { %11884 = vmatpush1.bf16.msra.mxu1 %v18574_v26  ;;  %v18633_v13 = vld [vmem:[#allocation5 + $0xd80] ss:$12 sps:$4 sm:$0xff]   ;;  %v18641_v17 = vld [vmem:[#allocation5 + $0xd9c] ss:$12 sps:$4 sm:$0xff]   ;;  %v18639_v19 = vld [vmem:[#allocation5 + $0xd98] ss:$12 sps:$4 sm:$0xff]  }
  0x9b   :  { %12228 = vmatpush1.bf16.msra.mxu0 %v18575_v27  ;;  %11885 = vmatprep.subr.bf16.mxu1 %v18576_v28  ;;  %v18644_v20 = vld [vmem:[#allocation5 + $0x1b4] ss:$12 sps:$4 sm:$0xff]   ;;  %v18642_v22 = vld [vmem:[#allocation5 + $0x1b0] ss:$12 sps:$4 sm:$0xff]   ;;  %v18650_v24 = vld [vmem:[#allocation5 + $0x1cc] ss:$12 sps:$4 sm:$0xff]  }
  0x9c   :  { %12229 = vmatprep.subr.bf16.mxu0 %v18578_v29  ;;  %v18647_v21 = vld [vmem:[#allocation5 + $0xdb4] ss:$12 sps:$4 sm:$0xff]   ;;  %v18645_v23 = vld [vmem:[#allocation5 + $0xdb0] ss:$12 sps:$4 sm:$0xff]   ;;  %v18653_v25 = vld [vmem:[#allocation5 + $0xdcc] ss:$12 sps:$4 sm:$0xff]  }
  0x9d   :  { %v18648_v26 = vld [vmem:[#allocation5 + $0x1c8] ss:$12 sps:$4 sm:$0xff]   ;;  %v18656_v28 = vld [vmem:[#allocation5 + $0x1e4] ss:$12 sps:$4 sm:$0xff]   ;;  %v18678_v53 = vld [vmem:[#allocation5 + $0x240] ss:$12 sps:$4 sm:$0xff]  }
  0x9e   :  { %11886 = vmatpush1.bf16.msra.mxu1 %v18580_v30  ;;  %v18651_v27 = vld [vmem:[#allocation5 + $0xdc8] ss:$12 sps:$4 sm:$0xff]   ;;  %v18659_v29 = vld [vmem:[#allocation5 + $0xde4] ss:$12 sps:$4 sm:$0xff]   ;;  %v18654_v30 = vld [vmem:[#allocation5 + $0x1e0] ss:$12 sps:$4 sm:$0xff]  }
  0x9f   :  { %12230 = vmatpush1.bf16.msra.mxu0 %v18581_v31  ;;  %11887 = vmatprep.subr.bf16.mxu1 %v18582_v32  ;;  %v18657_v31 = vld [vmem:[#allocation5 + $0xde0] ss:$12 sps:$4 sm:$0xff]   ;;  %v18662_v32 = vld [vmem:[#allocation5 + $0x1fc] ss:$12 sps:$4 sm:$0xff]   ;;  %v18708_v10 = vld [vmem:[#allocation5 + $0x2b8] ss:$12 sps:$4 sm:$0xff]  }
  0xa0   :  { %12231 = vmatprep.subr.bf16.mxu0 %v18584_v33  ;;  %v18665_v33 = vld [vmem:[#allocation5 + $0xdfc] ss:$12 sps:$4 sm:$0xff]   ;;  %v18681_v54 = vld [vmem:[#allocation5 + $0xe40] ss:$12 sps:$4 sm:$0xff]  }
  0xa1   :  { %v18672_v48 = vld [vmem:[#allocation5 + $0x228] ss:$12 sps:$4 sm:$0xff]   ;;  %v18702_v6 = vld [vmem:[#allocation5 + $0x2a0] ss:$12 sps:$4 sm:$0xff]  }
  0xa2   :  { %11888 = vmatpush1.bf16.msra.mxu1 %v18586_v34  ;;  %v18660_v34 = vld [vmem:[#allocation5 + $0x1f8] ss:$12 sps:$4 sm:$0xff]   ;;  %v18675_v49 = vld [vmem:[#allocation5 + $0xe28] ss:$12 sps:$4 sm:$0xff]  }
  0xa3   :  { %12232 = vmatpush1.bf16.msra.mxu0 %v18587_v35  ;;  %11889 = vmatprep.subr.bf16.mxu1 %v18588_v36  ;;  %v18663_v35 = vld [vmem:[#allocation5 + $0xdf8] ss:$12 sps:$4 sm:$0xff]   ;;  %v18668_v36 = vld [vmem:[#allocation5 + $0x214] ss:$12 sps:$4 sm:$0xff]   ;;  %v18710_v8 = vld [vmem:[#allocation5 + $0x2bc] ss:$12 sps:$4 sm:$0xff]  }
  0xa4   :  { %12233 = vmatprep.subr.bf16.mxu0 %v18590_v37  ;;  %v18671_v37 = vld [vmem:[#allocation5 + $0xe14] ss:$12 sps:$4 sm:$0xff]   ;;  %v18713_v9 = vld [vmem:[#allocation5 + $0xebc] ss:$12 sps:$4 sm:$0xff]  }
  0xa6   :  { %11890 = vmatpush1.bf16.msra.mxu1 %v18592_v38  ;;  %v18666_v38 = vld [vmem:[#allocation5 + $0x210] ss:$12 sps:$4 sm:$0xff]  }
  0xa7   :  { %12234 = vmatpush1.bf16.msra.mxu0 %v18593_v39  ;;  %11891 = vmatprep.subr.bf16.mxu1 %v18594_v40  ;;  %v18669_v39 = vld [vmem:[#allocation5 + $0xe10] ss:$12 sps:$4 sm:$0xff]  }
  0xa8   :  { %12235 = vmatprep.subr.bf16.mxu0 %v18596_v41  ;;  %v121_v40 = vld [vmem:[#allocation2 + $0x18] sm:$0xff] }
  0xa9   :  { %v193_v41 = vld [vmem:[#allocation2 + $0x258] sm:$0xf] }
  0xaa   :  { %11892 = vmatpush1.bf16.msra.mxu1 %v18598_v42  ;;  %v18674_v42 = vld [vmem:[#allocation5 + $0x22c] ss:$12 sps:$4 sm:$0xff]  }
  0xab   :  { %12236 = vmatpush1.bf16.msra.mxu0 %v18599_v43  ;;  %11893 = vmatprep.subr.bf16.mxu1 %v18600_v44  ;;  %v18677_v43 = vld [vmem:[#allocation5 + $0xe2c] ss:$12 sps:$4 sm:$0xff]   ;;  %v21191_v44 = vpack.c.bf16 %v193_v41, %v121_v40  ;;  %v18738_v41 = vld [vmem:[#allocation5 + $0x330] ss:$12 sps:$4 sm:$0xff]  }
  0xac   :  { %12237 = vmatprep.subr.bf16.mxu0 %v18602_v45  ;;  %v137_v45 = vld [vmem:[#allocation2 + $0x98] sm:$0xff] }
  0xae   :  { %11894 = vmatpush1.bf16.msra.mxu1 %v18604_v46  ;;  %v209_v46 = vld [vmem:[#allocation2 + $0x2d8] sm:$0xf] }
  0xaf   :  { %12238 = vmatpush1.bf16.msra.mxu0 %v18605_v47  ;;  %11895 = vmatprep.subr.bf16.mxu1 %v18606_v50  ;;  %v21194_v47 = vpack.c.bf16 %v209_v46, %v137_v45  ;;  %v18680_v50 = vld [vmem:[#allocation5 + $0x244] ss:$12 sps:$4 sm:$0xff]  }
  0xb0   :  { %12239 = vmatprep.subr.bf16.mxu0 %v18608_v51  ;;  %v18683_v51 = vld [vmem:[#allocation5 + $0xe44] ss:$12 sps:$4 sm:$0xff]  }
  0xb1   :  { %v18741_v45 = vld [vmem:[#allocation5 + $0xf30] ss:$12 sps:$4 sm:$0xff]  }
  0xb2   :  { %11896 = vmatpush1.bf16.msra.mxu1 %v18610_v56  ;;  %v18686_v56 = vld [vmem:[#allocation5 + $0x25c] ss:$12 sps:$4 sm:$0xff]  }
  0xb3   :  { %12240 = vmatpush1.bf16.msra.mxu0 %v18611_v57  ;;  %11897 = vmatprep.subr.bf16.mxu1 %v18612_v58  ;;  %v18689_v57 = vld [vmem:[#allocation5 + $0xe5c] ss:$12 sps:$4 sm:$0xff]   ;;  %v18684_v58 = vld [vmem:[#allocation5 + $0x258] ss:$12 sps:$4 sm:$0xff]  }
  0xb4   :  { %12241 = vmatprep.subr.bf16.mxu0 %v18614_v59  ;;  %v18687_v59 = vld [vmem:[#allocation5 + $0xe58] ss:$12 sps:$4 sm:$0xff]  }
  0xb6   :  { %11898 = vmatpush1.bf16.msra.mxu1 %v18616_v60  ;;  %v18692_v60 = vld [vmem:[#allocation5 + $0x274] ss:$12 sps:$4 sm:$0xff]  }
  0xb7   :  { %12242 = vmatpush1.bf16.msra.mxu0 %v18617_v61  ;;  %11899 = vmatprep.subr.bf16.mxu1 %v18618_v62  ;;  %v18695_v61 = vld [vmem:[#allocation5 + $0xe74] ss:$12 sps:$4 sm:$0xff]   ;;  %v18690_v62 = vld [vmem:[#allocation5 + $0x270] ss:$12 sps:$4 sm:$0xff]  }
  0xb8   :  { %12243 = vmatprep.subr.bf16.mxu0 %v18620_v63  ;;  %v18693_v63 = vld [vmem:[#allocation5 + $0xe70] ss:$12 sps:$4 sm:$0xff]  }
  0xba   :  { %11900 = vmatpush1.bf16.msra.mxu1 %v18622_v0  ;;  %v18698_v0 = vld [vmem:[#allocation5 + $0x28c] ss:$12 sps:$4 sm:$0xff]  }
  0xbb   :  { %12244 = vmatpush1.bf16.msra.mxu0 %v18623_v1  ;;  %11901 = vmatprep.subr.bf16.mxu1 %v18624_v2  ;;  %v18701_v1 = vld [vmem:[#allocation5 + $0xe8c] ss:$12 sps:$4 sm:$0xff]   ;;  %v18696_v2 = vld [vmem:[#allocation5 + $0x288] ss:$12 sps:$4 sm:$0xff]  }
  0xbc   :  { %12245 = vmatprep.subr.bf16.mxu0 %v18626_v3  ;;  %v18699_v3 = vld [vmem:[#allocation5 + $0xe88] ss:$12 sps:$4 sm:$0xff]  }
  0xbe   :  { %11902 = vmatpush1.bf16.msra.mxu1 %v18628_v4  ;;  %v18704_v4 = vld [vmem:[#allocation5 + $0x2a4] ss:$12 sps:$4 sm:$0xff]  }
  0xbf   :  { %12246 = vmatpush1.bf16.msra.mxu0 %v18629_v5  ;;  %11914 = vmatprep.subr.bf16.mxu1 %v18632_v7  ;;  %v18707_v5 = vld [vmem:[#allocation5 + $0xea4] ss:$12 sps:$4 sm:$0xff]   ;;  %v18705_v7 = vld [vmem:[#allocation5 + $0xea0] ss:$12 sps:$4 sm:$0xff]  }
  0xc0   :  { %12258 = vmatprep.subr.bf16.mxu0 %v18635_v11  ;;  %v18711_v11 = vld [vmem:[#allocation5 + $0xeb8] ss:$12 sps:$4 sm:$0xff]  }
  0xc1   :  { %11904 = vmatmul.mubr.bf16.vlgmr.msra.gmra.mrb[0].mxu1 %v21185_v14 }
  0xc2   :  { %12248 = vmatmul.mubr.bf16.vlgmr.msra.gmra.mrb[0].mxu0 %v21187_v15  ;;  %11915 = vmatpush1.bf16.msra.mxu1 %v18630_v12  ;;  %v18716_v12 = vld [vmem:[#allocation5 + $0x2d4] ss:$12 sps:$4 sm:$0xff]  }
  0xc3   :  { %12259 = vmatpush1.bf16.msra.mxu0 %v18633_v13  ;;  %11916 = vmatprep.subr.bf16.mxu1 %v18638_v16  ;;  %v18719_v13 = vld [vmem:[#allocation5 + $0xed4] ss:$12 sps:$4 sm:$0xff]   ;;  %v18714_v16 = vld [vmem:[#allocation5 + $0x2d0] ss:$12 sps:$4 sm:$0xff]  }
  0xc4   :  { %12260 = vmatprep.subr.bf16.mxu0 %v18641_v17  ;;  %11946 = vmatprep.mubr.bf16.mxu1 %v21191_v44  ;;  %v18717_v17 = vld [vmem:[#allocation5 + $0xed0] ss:$12 sps:$4 sm:$0xff]  }
  0xc5   :  { %12290 = vmatprep.mubr.bf16.mxu0 %v21194_v47 }
  0xc6   :  { %11917 = vmatpush1.bf16.msra.mxu1 %v18636_v18  ;;  %v18722_v18 = vld [vmem:[#allocation5 + $0x2ec] ss:$12 sps:$4 sm:$0xff]  }
  0xc7   :  { %12261 = vmatpush1.bf16.msra.mxu0 %v18639_v19  ;;  %11918 = vmatprep.subr.bf16.mxu1 %v18644_v20  ;;  %v18725_v19 = vld [vmem:[#allocation5 + $0xeec] ss:$12 sps:$4 sm:$0xff]   ;;  %v18720_v20 = vld [vmem:[#allocation5 + $0x2e8] ss:$12 sps:$4 sm:$0xff]  }
  0xc8   :  { %12262 = vmatprep.subr.bf16.mxu0 %v18647_v21  ;;  %v18723_v21 = vld [vmem:[#allocation5 + $0xee8] ss:$12 sps:$4 sm:$0xff]  }
  0xca   :  { %11919 = vmatpush1.bf16.msra.mxu1 %v18642_v22  ;;  %v120_v22 = vld [vmem:[#allocation2 + $0x10] sm:$0xff] }
  0xcb   :  { %12263 = vmatpush1.bf16.msra.mxu0 %v18645_v23  ;;  %11920 = vmatprep.subr.bf16.mxu1 %v18650_v24  ;;  %v18728_v23 = vld [vmem:[#allocation5 + $0x304] ss:$12 sps:$4 sm:$0xff]  }
  0xcc   :  { %12264 = vmatprep.subr.bf16.mxu0 %v18653_v25  ;;  %v192_v24 = vld [vmem:[#allocation2 + $0x250] sm:$0xf] }
  0xcd   :  { %v136_v25 = vld [vmem:[#allocation2 + $0x90] sm:$0xff] }
  0xce   :  { %11921 = vmatpush1.bf16.msra.mxu1 %v18648_v26  ;;  %v208_v26 = vld [vmem:[#allocation2 + $0x2d0] sm:$0xf] }
  0xcf   :  { %12265 = vmatpush1.bf16.msra.mxu0 %v18651_v27  ;;  %11922 = vmatprep.subr.bf16.mxu1 %v18656_v28  ;;  %v18731_v27 = vld [vmem:[#allocation5 + $0xf04] ss:$12 sps:$4 sm:$0xff]   ;;  %v18726_v28 = vld [vmem:[#allocation5 + $0x300] ss:$12 sps:$4 sm:$0xff]  }
  0xd0   :  { %12266 = vmatprep.subr.bf16.mxu0 %v18659_v29  ;;  %v18729_v29 = vld [vmem:[#allocation5 + $0xf00] ss:$12 sps:$4 sm:$0xff]  }
  0xd2   :  { %11923 = vmatpush1.bf16.msra.mxu1 %v18654_v30  ;;  %v21197_v30 = vpack.c.bf16 %v192_v24, %v120_v22  ;;  %v18792_v22 = vld [vmem:[#allocation5 + $0x408] ss:$12 sps:$4 sm:$0xff]   ;;  %v18800_v24 = vld [vmem:[#allocation5 + $0x424] ss:$12 sps:$4 sm:$0xff]  }
  0xd3   :  { %12267 = vmatpush1.bf16.msra.mxu0 %v18657_v31  ;;  %11924 = vmatprep.subr.bf16.mxu1 %v18662_v32  ;;  %v21199_v31 = vpack.c.bf16 %v208_v26, %v136_v25  ;;  %v18734_v32 = vld [vmem:[#allocation5 + $0x31c] ss:$12 sps:$4 sm:$0xff]   ;;  %v18803_v25 = vld [vmem:[#allocation5 + $0x1024] ss:$12 sps:$4 sm:$0xff]   ;;  %v18798_v26 = vld [vmem:[#allocation5 + $0x420] ss:$12 sps:$4 sm:$0xff]  }
  0xd4   :  { %12268 = vmatprep.subr.bf16.mxu0 %v18665_v33  ;;  %v18737_v33 = vld [vmem:[#allocation5 + $0xf1c] ss:$12 sps:$4 sm:$0xff]  }
  0xd6   :  { %11925 = vmatpush1.bf16.msra.mxu1 %v18660_v34  ;;  %v18732_v34 = vld [vmem:[#allocation5 + $0x318] ss:$12 sps:$4 sm:$0xff]  }
  0xd7   :  { %12269 = vmatpush1.bf16.msra.mxu0 %v18663_v35  ;;  %11926 = vmatprep.subr.bf16.mxu1 %v18668_v36  ;;  %v18735_v35 = vld [vmem:[#allocation5 + $0xf18] ss:$12 sps:$4 sm:$0xff]   ;;  %v18740_v36 = vld [vmem:[#allocation5 + $0x334] ss:$12 sps:$4 sm:$0xff]  }
  0xd8   :  { %12270 = vmatprep.subr.bf16.mxu0 %v18671_v37  ;;  %v18743_v37 = vld [vmem:[#allocation5 + $0xf34] ss:$12 sps:$4 sm:$0xff]  }
  0xda   :  { %11927 = vmatpush1.bf16.msra.mxu1 %v18666_v38  ;;  %v123_v38 = vld [vmem:[#allocation2 + $0x28] sm:$0xff] }
  0xdb   :  { %12271 = vmatpush1.bf16.msra.mxu0 %v18669_v39  ;;  %11928 = vmatprep.subr.bf16.mxu1 %v18674_v42  ;;  %v195_v39 = vld [vmem:[#allocation2 + $0x268] sm:$0xf] }
  0xdc   :  { %12272 = vmatprep.subr.bf16.mxu0 %v18677_v43  ;;  %v21203_v40 = vpack.c.bf16 %v195_v39, %v123_v38  ;;  %v139_v42 = vld [vmem:[#allocation2 + $0xa8] sm:$0xff] }
  0xdd   :  { %v211_v43 = vld [vmem:[#allocation2 + $0x2e8] sm:$0xf]  ;;  %v18818_v38 = vld [vmem:[#allocation5 + $0x46c] ss:$12 sps:$4 sm:$0xff]  }
  0xde   :  { %11929 = vmatpush1.bf16.msra.mxu1 %v18672_v48  ;;  %v21205_v46 = vpack.c.bf16 %v211_v43, %v139_v42  ;;  %v18746_v48 = vld [vmem:[#allocation5 + $0x34c] ss:$12 sps:$4 sm:$0xff]   ;;  %v18819_v42 = vld [vmem:[#allocation5 + $0x1068] ss:$12 sps:$4 sm:$0xff]   ;;  %v122_v43 = vld [vmem:[#allocation2 + $0x20] sm:$0xff] }
  0xdf   :  { %12273 = vmatpush1.bf16.msra.mxu0 %v18675_v49  ;;  %11930 = vmatprep.subr.bf16.mxu1 %v18680_v50  ;;  %v18749_v49 = vld [vmem:[#allocation5 + $0xf4c] ss:$12 sps:$4 sm:$0xff]   ;;  %v18744_v50 = vld [vmem:[#allocation5 + $0x348] ss:$12 sps:$4 sm:$0xff]  }
  0xe0   :  { %12274 = vmatprep.subr.bf16.mxu0 %v18683_v51  ;;  %v18747_v51 = vld [vmem:[#allocation5 + $0xf48] ss:$12 sps:$4 sm:$0xff]   ;;  %v18821_v39 = vld [vmem:[#allocation5 + $0x106c] ss:$12 sps:$4 sm:$0xff]  }
  0xe2   :  { %11931 = vmatpush1.bf16.msra.mxu1 %v18678_v53  ;;  %v18752_v53 = vld [vmem:[#allocation5 + $0x364] ss:$12 sps:$4 sm:$0xff]  }
  0xe3   :  { %12275 = vmatpush1.bf16.msra.mxu0 %v18681_v54  ;;  %11932 = vmatprep.subr.bf16.mxu1 %v18686_v56  ;;  %v18755_v54 = vld [vmem:[#allocation5 + $0xf64] ss:$12 sps:$4 sm:$0xff]   ;;  %v18750_v56 = vld [vmem:[#allocation5 + $0x360] ss:$12 sps:$4 sm:$0xff]  }
  0xe4   :  { %12276 = vmatprep.subr.bf16.mxu0 %v18689_v57  ;;  %v18753_v57 = vld [vmem:[#allocation5 + $0xf60] ss:$12 sps:$4 sm:$0xff]  }
  0xe6   :  { %11933 = vmatpush1.bf16.msra.mxu1 %v18684_v58  ;;  %v18758_v58 = vld [vmem:[#allocation5 + $0x37c] ss:$12 sps:$4 sm:$0xff]  }
  0xe7   :  { %12277 = vmatpush1.bf16.msra.mxu0 %v18687_v59  ;;  %11934 = vmatprep.subr.bf16.mxu1 %v18692_v60  ;;  %v18761_v59 = vld [vmem:[#allocation5 + $0xf7c] ss:$12 sps:$4 sm:$0xff]   ;;  %v18756_v60 = vld [vmem:[#allocation5 + $0x378] ss:$12 sps:$4 sm:$0xff]  }
  0xe8   :  { %12278 = vmatprep.subr.bf16.mxu0 %v18695_v61  ;;  %v18759_v61 = vld [vmem:[#allocation5 + $0xf78] ss:$12 sps:$4 sm:$0xff]  }
  0xea   :  { %11935 = vmatpush1.bf16.msra.mxu1 %v18690_v62  ;;  %v18764_v62 = vld [vmem:[#allocation5 + $0x394] ss:$12 sps:$4 sm:$0xff]  }
  0xeb   :  { %12279 = vmatpush1.bf16.msra.mxu0 %v18693_v63  ;;  %11936 = vmatprep.subr.bf16.mxu1 %v18698_v0  ;;  %v18767_v63 = vld [vmem:[#allocation5 + $0xf94] ss:$12 sps:$4 sm:$0xff]   ;;  %v18762_v0 = vld [vmem:[#allocation5 + $0x390] ss:$12 sps:$4 sm:$0xff]  }
  0xec   :  { %12280 = vmatprep.subr.bf16.mxu0 %v18701_v1  ;;  %v18765_v1 = vld [vmem:[#allocation5 + $0xf90] ss:$12 sps:$4 sm:$0xff]  }
  0xee   :  { %11937 = vmatpush1.bf16.msra.mxu1 %v18696_v2  ;;  %v18770_v2 = vld [vmem:[#allocation5 + $0x3ac] ss:$12 sps:$4 sm:$0xff]  }
  0xef   :  { %12281 = vmatpush1.bf16.msra.mxu0 %v18699_v3  ;;  %11938 = vmatprep.subr.bf16.mxu1 %v18704_v4  ;;  %v18773_v3 = vld [vmem:[#allocation5 + $0xfac] ss:$12 sps:$4 sm:$0xff]   ;;  %v18768_v4 = vld [vmem:[#allocation5 + $0x3a8] ss:$12 sps:$4 sm:$0xff]  }
  0xf0   :  { %12282 = vmatprep.subr.bf16.mxu0 %v18707_v5  ;;  %v18771_v5 = vld [vmem:[#allocation5 + $0xfa8] ss:$12 sps:$4 sm:$0xff]  }
  0xf2   :  { %11939 = vmatpush1.bf16.msra.mxu1 %v18702_v6  ;;  %v18776_v6 = vld [vmem:[#allocation5 + $0x3c4] ss:$12 sps:$4 sm:$0xff]  }
  0xf3   :  { %12283 = vmatpush1.bf16.msra.mxu0 %v18705_v7  ;;  %11940 = vmatprep.subr.bf16.mxu1 %v18710_v8  ;;  %v18779_v7 = vld [vmem:[#allocation5 + $0xfc4] ss:$12 sps:$4 sm:$0xff]   ;;  %v18774_v8 = vld [vmem:[#allocation5 + $0x3c0] ss:$12 sps:$4 sm:$0xff]  }
  0xf4   :  { %12284 = vmatprep.subr.bf16.mxu0 %v18713_v9  ;;  %v18777_v9 = vld [vmem:[#allocation5 + $0xfc0] ss:$12 sps:$4 sm:$0xff]  }
  0xf6   :  { %11941 = vmatpush1.bf16.msra.mxu1 %v18708_v10  ;;  %v18782_v10 = vld [vmem:[#allocation5 + $0x3dc] ss:$12 sps:$4 sm:$0xff]  }
  0xf7   :  { %12285 = vmatpush1.bf16.msra.mxu0 %v18711_v11  ;;  %11942 = vmatprep.subr.bf16.mxu1 %v18716_v12  ;;  %v18785_v11 = vld [vmem:[#allocation5 + $0xfdc] ss:$12 sps:$4 sm:$0xff]   ;;  %v18780_v12 = vld [vmem:[#allocation5 + $0x3d8] ss:$12 sps:$4 sm:$0xff]  }
  0xf8   :  { %12286 = vmatprep.subr.bf16.mxu0 %v18719_v13  ;;  %v18783_v13 = vld [vmem:[#allocation5 + $0xfd8] ss:$12 sps:$4 sm:$0xff]  }
  0xfa   :  { %11943 = vmatpush1.bf16.msra.mxu1 %v18714_v16  ;;  %v18788_v16 = vld [vmem:[#allocation5 + $0x3f4] ss:$12 sps:$4 sm:$0xff]  }
  0xfb   :  { %12287 = vmatpush1.bf16.msra.mxu0 %v18717_v17  ;;  %11944 = vmatprep.subr.bf16.mxu1 %v18722_v18  ;;  %v18791_v17 = vld [vmem:[#allocation5 + $0xff4] ss:$12 sps:$4 sm:$0xff]   ;;  %v18786_v18 = vld [vmem:[#allocation5 + $0x3f0] ss:$12 sps:$4 sm:$0xff]  }
  0xfc   :  { %12288 = vmatprep.subr.bf16.mxu0 %v18725_v19  ;;  %v18789_v19 = vld [vmem:[#allocation5 + $0xff0] ss:$12 sps:$4 sm:$0xff]  }
  0xfe   :  { %11945 = vmatpush1.bf16.msra.mxu1 %v18720_v20  ;;  %v18794_v20 = vld [vmem:[#allocation5 + $0x40c] ss:$12 sps:$4 sm:$0xff]  }
  0xff   :  { %12289 = vmatpush1.bf16.msra.mxu0 %v18723_v21  ;;  %11957 = vmatprep.subr.bf16.mxu1 %v18728_v23  ;;  %v18797_v21 = vld [vmem:[#allocation5 + $0x100c] ss:$12 sps:$4 sm:$0xff]   ;;  %v18795_v23 = vld [vmem:[#allocation5 + $0x1008] ss:$12 sps:$4 sm:$0xff]  }
 0x100   :  { %12301 = vmatprep.subr.bf16.mxu0 %v18731_v27  ;;  %v18801_v27 = vld [vmem:[#allocation5 + $0x1020] ss:$12 sps:$4 sm:$0xff]  }
 0x101   :  { %11947 = vmatmul.mubr.bf16.vlgmr.msra.gmra.mrb[0].mxu1 %v21197_v30 }
 0x102   :  { %12291 = vmatmul.mubr.bf16.vlgmr.msra.gmra.mrb[0].mxu0 %v21199_v31  ;;  %11958 = vmatpush1.bf16.msra.mxu1 %v18726_v28  ;;  %v18806_v28 = vld [vmem:[#allocation5 + $0x43c] ss:$12 sps:$4 sm:$0xff]  }
 0x103   :  { %12302 = vmatpush1.bf16.msra.mxu0 %v18729_v29  ;;  %11959 = vmatprep.subr.bf16.mxu1 %v18734_v32  ;;  %v18809_v29 = vld [vmem:[#allocation5 + $0x103c] ss:$12 sps:$4 sm:$0xff]   ;;  %v18804_v32 = vld [vmem:[#allocation5 + $0x438] ss:$12 sps:$4 sm:$0xff]  }
 0x104   :  { %12303 = vmatprep.subr.bf16.mxu0 %v18737_v33  ;;  %11989 = vmatprep.mubr.bf16.mxu1 %v21203_v40  ;;  %v18807_v33 = vld [vmem:[#allocation5 + $0x1038] ss:$12 sps:$4 sm:$0xff]  }
 0x105   :  { %12333 = vmatprep.mubr.bf16.mxu0 %v21205_v46 }
 0x106   :  { %11960 = vmatpush1.bf16.msra.mxu1 %v18732_v34  ;;  %v18812_v34 = vld [vmem:[#allocation5 + $0x454] ss:$12 sps:$4 sm:$0xff]  }
 0x107   :  { %12304 = vmatpush1.bf16.msra.mxu0 %v18735_v35  ;;  %11961 = vmatprep.subr.bf16.mxu1 %v18740_v36  ;;  %v18815_v35 = vld [vmem:[#allocation5 + $0x1054] ss:$12 sps:$4 sm:$0xff]   ;;  %v18810_v36 = vld [vmem:[#allocation5 + $0x450] ss:$12 sps:$4 sm:$0xff]  }
 0x108   :  { %12305 = vmatprep.subr.bf16.mxu0 %v18743_v37  ;;  %v18813_v37 = vld [vmem:[#allocation5 + $0x1050] ss:$12 sps:$4 sm:$0xff]  }
 0x10a   :  { %11962 = vmatpush1.bf16.msra.mxu1 %v18738_v41  ;;  %v18816_v41 = vld [vmem:[#allocation5 + $0x468] ss:$12 sps:$4 sm:$0xff]  }
 0x10b   :  { %12306 = vmatpush1.bf16.msra.mxu0 %v18741_v45  ;;  %11963 = vmatprep.subr.bf16.mxu1 %v18746_v48  ;;  %v18824_v45 = vld [vmem:[#allocation5 + $0x484] ss:$12 sps:$4 sm:$0xff]   ;;  %v194_v48 = vld [vmem:[#allocation2 + $0x260] sm:$0xf] }
 0x10c   :  { %12307 = vmatprep.subr.bf16.mxu0 %v18749_v49  ;;  %v138_v49 = vld [vmem:[#allocation2 + $0xa0] sm:$0xff] }
 0x10e   :  { %11964 = vmatpush1.bf16.msra.mxu1 %v18744_v50  ;;  %v210_v50 = vld [vmem:[#allocation2 + $0x2e0] sm:$0xf] }
 0x10f   :  { %12308 = vmatpush1.bf16.msra.mxu0 %v18747_v51  ;;  %11965 = vmatprep.subr.bf16.mxu1 %v18752_v53  ;;  %v18827_v51 = vld [vmem:[#allocation5 + $0x1084] ss:$12 sps:$4 sm:$0xff]   ;;  %v18822_v53 = vld [vmem:[#allocation5 + $0x480] ss:$12 sps:$4 sm:$0xff]  }
 0x110   :  { %12309 = vmatprep.subr.bf16.mxu0 %v18755_v54  ;;  %v18825_v54 = vld [vmem:[#allocation5 + $0x1080] ss:$12 sps:$4 sm:$0xff]  }
 0x112   :  { %11966 = vmatpush1.bf16.msra.mxu1 %v18750_v56  ;;  %v125_v56 = vld [vmem:[#allocation2 + $0x38] sm:$0xff] }
 0x113   :  { %12310 = vmatpush1.bf16.msra.mxu0 %v18753_v57  ;;  %11967 = vmatprep.subr.bf16.mxu1 %v18758_v58  ;;  %v197_v57 = vld [vmem:[#allocation2 + $0x278] sm:$0xf]  ;;  %v21209_v58 = vpack.c.bf16 %v194_v48, %v122_v43  ;;  %v18882_v43 = vld [vmem:[#allocation5 + $0x570] ss:$12 sps:$4 sm:$0xff]  }
 0x114   :  { %12311 = vmatprep.subr.bf16.mxu0 %v18761_v59  ;;  %v21211_v59 = vpack.c.bf16 %v210_v50, %v138_v49  ;;  %v18890_v48 = vld [vmem:[#allocation5 + $0x58c] ss:$12 sps:$4 sm:$0xff]   ;;  %v18888_v50 = vld [vmem:[#allocation5 + $0x588] ss:$12 sps:$4 sm:$0xff]  }
 0x115   :  { %v18893_v49 = vld [vmem:[#allocation5 + $0x118c] ss:$12 sps:$4 sm:$0xff]  }
 0x116   :  { %11968 = vmatpush1.bf16.msra.mxu1 %v18756_v60  ;;  %v141_v60 = vld [vmem:[#allocation2 + $0xb8] sm:$0xff] }
 0x117   :  { %12312 = vmatpush1.bf16.msra.mxu0 %v18759_v61  ;;  %11969 = vmatprep.subr.bf16.mxu1 %v18764_v62  ;;  %v213_v61 = vld [vmem:[#allocation2 + $0x2f8] sm:$0xf]  ;;  %v18830_v62 = vld [vmem:[#allocation5 + $0x49c] ss:$12 sps:$4 sm:$0xff]  }
 0x118   :  { %12313 = vmatprep.subr.bf16.mxu0 %v18767_v63  ;;  %v18833_v63 = vld [vmem:[#allocation5 + $0x109c] ss:$12 sps:$4 sm:$0xff]  }
 0x11a   :  { %11970 = vmatpush1.bf16.msra.mxu1 %v18762_v0  ;;  %v21213_v0 = vpack.c.bf16 %v197_v57, %v125_v56  ;;  %v18894_v56 = vld [vmem:[#allocation5 + $0x5a0] ss:$12 sps:$4 sm:$0xff]  }
 0x11b   :  { %12314 = vmatpush1.bf16.msra.mxu0 %v18765_v1  ;;  %11971 = vmatprep.subr.bf16.mxu1 %v18770_v2  ;;  %v21215_v1 = vpack.c.bf16 %v213_v61, %v141_v60  ;;  %v18828_v2 = vld [vmem:[#allocation5 + $0x498] ss:$12 sps:$4 sm:$0xff]   ;;  %v18897_v57 = vld [vmem:[#allocation5 + $0x11a0] ss:$12 sps:$4 sm:$0xff]   ;;  %v18902_v60 = vld [vmem:[#allocation5 + $0x5bc] ss:$12 sps:$4 sm:$0xff]  }
 0x11c   :  { %12315 = vmatprep.subr.bf16.mxu0 %v18773_v3  ;;  %v18831_v3 = vld [vmem:[#allocation5 + $0x1098] ss:$12 sps:$4 sm:$0xff]   ;;  %v18905_v61 = vld [vmem:[#allocation5 + $0x11bc] ss:$12 sps:$4 sm:$0xff]  }
 0x11e   :  { %11972 = vmatpush1.bf16.msra.mxu1 %v18768_v4  ;;  %v18836_v4 = vld [vmem:[#allocation5 + $0x4b4] ss:$12 sps:$4 sm:$0xff]  }
 0x11f   :  { %12316 = vmatpush1.bf16.msra.mxu0 %v18771_v5  ;;  %11973 = vmatprep.subr.bf16.mxu1 %v18776_v6  ;;  %v18839_v5 = vld [vmem:[#allocation5 + $0x10b4] ss:$12 sps:$4 sm:$0xff]   ;;  %v18834_v6 = vld [vmem:[#allocation5 + $0x4b0] ss:$12 sps:$4 sm:$0xff]  }
 0x120   :  { %12317 = vmatprep.subr.bf16.mxu0 %v18779_v7  ;;  %v18837_v7 = vld [vmem:[#allocation5 + $0x10b0] ss:$12 sps:$4 sm:$0xff]  }
 0x122   :  { %11974 = vmatpush1.bf16.msra.mxu1 %v18774_v8  ;;  %v18842_v8 = vld [vmem:[#allocation5 + $0x4cc] ss:$12 sps:$4 sm:$0xff]  }
 0x123   :  { %12318 = vmatpush1.bf16.msra.mxu0 %v18777_v9  ;;  %11975 = vmatprep.subr.bf16.mxu1 %v18782_v10  ;;  %v18845_v9 = vld [vmem:[#allocation5 + $0x10cc] ss:$12 sps:$4 sm:$0xff]   ;;  %v18840_v10 = vld [vmem:[#allocation5 + $0x4c8] ss:$12 sps:$4 sm:$0xff]  }
 0x124   :  { %12319 = vmatprep.subr.bf16.mxu0 %v18785_v11  ;;  %v18843_v11 = vld [vmem:[#allocation5 + $0x10c8] ss:$12 sps:$4 sm:$0xff]  }
 0x126   :  { %11976 = vmatpush1.bf16.msra.mxu1 %v18780_v12  ;;  %v18848_v12 = vld [vmem:[#allocation5 + $0x4e4] ss:$12 sps:$4 sm:$0xff]  }
 0x127   :  { %12320 = vmatpush1.bf16.msra.mxu0 %v18783_v13  ;;  %11977 = vmatprep.subr.bf16.mxu1 %v18788_v16  ;;  %v18851_v13 = vld [vmem:[#allocation5 + $0x10e4] ss:$12 sps:$4 sm:$0xff]   ;;  %v18846_v16 = vld [vmem:[#allocation5 + $0x4e0] ss:$12 sps:$4 sm:$0xff]  }
 0x128   :  { %12321 = vmatprep.subr.bf16.mxu0 %v18791_v17  ;;  %v18849_v17 = vld [vmem:[#allocation5 + $0x10e0] ss:$12 sps:$4 sm:$0xff]  }
 0x12a   :  { %11978 = vmatpush1.bf16.msra.mxu1 %v18786_v18  ;;  %v18854_v18 = vld [vmem:[#allocation5 + $0x4fc] ss:$12 sps:$4 sm:$0xff]  }
 0x12b   :  { %12322 = vmatpush1.bf16.msra.mxu0 %v18789_v19  ;;  %11979 = vmatprep.subr.bf16.mxu1 %v18794_v20  ;;  %v18857_v19 = vld [vmem:[#allocation5 + $0x10fc] ss:$12 sps:$4 sm:$0xff]   ;;  %v18852_v20 = vld [vmem:[#allocation5 + $0x4f8] ss:$12 sps:$4 sm:$0xff]  }
 0x12c   :  { %12323 = vmatprep.subr.bf16.mxu0 %v18797_v21  ;;  %v18855_v21 = vld [vmem:[#allocation5 + $0x10f8] ss:$12 sps:$4 sm:$0xff]  }
 0x12e   :  { %11980 = vmatpush1.bf16.msra.mxu1 %v18792_v22  ;;  %v18860_v22 = vld [vmem:[#allocation5 + $0x514] ss:$12 sps:$4 sm:$0xff]  }
 0x12f   :  { %12324 = vmatpush1.bf16.msra.mxu0 %v18795_v23  ;;  %11981 = vmatprep.subr.bf16.mxu1 %v18800_v24  ;;  %v18863_v23 = vld [vmem:[#allocation5 + $0x1114] ss:$12 sps:$4 sm:$0xff]   ;;  %v18858_v24 = vld [vmem:[#allocation5 + $0x510] ss:$12 sps:$4 sm:$0xff]  }
 0x130   :  { %12325 = vmatprep.subr.bf16.mxu0 %v18803_v25  ;;  %v18861_v25 = vld [vmem:[#allocation5 + $0x1110] ss:$12 sps:$4 sm:$0xff]  }
 0x132   :  { %11982 = vmatpush1.bf16.msra.mxu1 %v18798_v26  ;;  %v18866_v26 = vld [vmem:[#allocation5 + $0x52c] ss:$12 sps:$4 sm:$0xff]  }
 0x133   :  { %12326 = vmatpush1.bf16.msra.mxu0 %v18801_v27  ;;  %11983 = vmatprep.subr.bf16.mxu1 %v18806_v28  ;;  %v18869_v27 = vld [vmem:[#allocation5 + $0x112c] ss:$12 sps:$4 sm:$0xff]   ;;  %v18864_v28 = vld [vmem:[#allocation5 + $0x528] ss:$12 sps:$4 sm:$0xff]  }
 0x134   :  { %12327 = vmatprep.subr.bf16.mxu0 %v18809_v29  ;;  %v18867_v29 = vld [vmem:[#allocation5 + $0x1128] ss:$12 sps:$4 sm:$0xff]  }
 0x136   :  { %11984 = vmatpush1.bf16.msra.mxu1 %v18804_v32  ;;  %v18872_v32 = vld [vmem:[#allocation5 + $0x544] ss:$12 sps:$4 sm:$0xff]  }
 0x137   :  { %12328 = vmatpush1.bf16.msra.mxu0 %v18807_v33  ;;  %11985 = vmatprep.subr.bf16.mxu1 %v18812_v34  ;;  %v18875_v33 = vld [vmem:[#allocation5 + $0x1144] ss:$12 sps:$4 sm:$0xff]   ;;  %v18870_v34 = vld [vmem:[#allocation5 + $0x540] ss:$12 sps:$4 sm:$0xff]  }
 0x138   :  { %12329 = vmatprep.subr.bf16.mxu0 %v18815_v35  ;;  %v18873_v35 = vld [vmem:[#allocation5 + $0x1140] ss:$12 sps:$4 sm:$0xff]  }
 0x13a   :  { %11986 = vmatpush1.bf16.msra.mxu1 %v18810_v36  ;;  %v18878_v36 = vld [vmem:[#allocation5 + $0x55c] ss:$12 sps:$4 sm:$0xff]  }
 0x13b   :  { %12330 = vmatpush1.bf16.msra.mxu0 %v18813_v37  ;;  %11987 = vmatprep.subr.bf16.mxu1 %v18818_v38  ;;  %v18881_v37 = vld [vmem:[#allocation5 + $0x115c] ss:$12 sps:$4 sm:$0xff]   ;;  %v18876_v38 = vld [vmem:[#allocation5 + $0x558] ss:$12 sps:$4 sm:$0xff]  }
 0x13c   :  { %12331 = vmatprep.subr.bf16.mxu0 %v18821_v39  ;;  %v18879_v39 = vld [vmem:[#allocation5 + $0x1158] ss:$12 sps:$4 sm:$0xff]  }
 0x13e   :  { %11988 = vmatpush1.bf16.msra.mxu1 %v18816_v41  ;;  %v18884_v41 = vld [vmem:[#allocation5 + $0x574] ss:$12 sps:$4 sm:$0xff]  }
 0x13f   :  { %12332 = vmatpush1.bf16.msra.mxu0 %v18819_v42  ;;  %12000 = vmatprep.subr.bf16.mxu1 %v18824_v45  ;;  %v18887_v42 = vld [vmem:[#allocation5 + $0x1174] ss:$12 sps:$4 sm:$0xff]   ;;  %v18885_v45 = vld [vmem:[#allocation5 + $0x1170] ss:$12 sps:$4 sm:$0xff]  }
 0x140   :  { %12344 = vmatprep.subr.bf16.mxu0 %v18827_v51  ;;  %v18891_v51 = vld [vmem:[#allocation5 + $0x1188] ss:$12 sps:$4 sm:$0xff]  }
 0x141   :  { %11990 = vmatmul.mubr.bf16.vlgmr.msra.gmra.mrb[0].mxu1 %v21209_v58 }
 0x142   :  { %12334 = vmatmul.mubr.bf16.vlgmr.msra.gmra.mrb[0].mxu0 %v21211_v59  ;;  %12001 = vmatpush1.bf16.msra.mxu1 %v18822_v53  ;;  %v18896_v53 = vld [vmem:[#allocation5 + $0x5a4] ss:$12 sps:$4 sm:$0xff]  }
 0x143   :  { %12345 = vmatpush1.bf16.msra.mxu0 %v18825_v54  ;;  %12002 = vmatprep.subr.bf16.mxu1 %v18830_v62  ;;  %v18899_v54 = vld [vmem:[#allocation5 + $0x11a4] ss:$12 sps:$4 sm:$0xff]  }
 0x144   :  { %12346 = vmatprep.subr.bf16.mxu0 %v18833_v63  ;;  %12032 = vmatprep.mubr.bf16.mxu1 %v21213_v0  ;;  %v18900_v62 = vld [vmem:[#allocation5 + $0x5b8] ss:$12 sps:$4 sm:$0xff]  }
 0x145   :  { %12376 = vmatprep.mubr.bf16.mxu0 %v21215_v1  ;;  %v18903_v63 = vld [vmem:[#allocation5 + $0x11b8] ss:$12 sps:$4 sm:$0xff]  }
 0x146   :  { %12003 = vmatpush1.bf16.msra.mxu1 %v18828_v2  ;;  %v18908_v2 = vld [vmem:[#allocation5 + $0x5d4] ss:$12 sps:$4 sm:$0xff]  }
 0x147   :  { %12347 = vmatpush1.bf16.msra.mxu0 %v18831_v3  ;;  %12004 = vmatprep.subr.bf16.mxu1 %v18836_v4  ;;  %v18911_v3 = vld [vmem:[#allocation5 + $0x11d4] ss:$12 sps:$4 sm:$0xff]   ;;  %v18906_v4 = vld [vmem:[#allocation5 + $0x5d0] ss:$12 sps:$4 sm:$0xff]  }
 0x148   :  { %12348 = vmatprep.subr.bf16.mxu0 %v18839_v5  ;;  %v18909_v5 = vld [vmem:[#allocation5 + $0x11d0] ss:$12 sps:$4 sm:$0xff]  }
 0x14a   :  { %12005 = vmatpush1.bf16.msra.mxu1 %v18834_v6  ;;  %v18914_v6 = vld [vmem:[#allocation5 + $0x5ec] ss:$12 sps:$4 sm:$0xff]  }
 0x14b   :  { %12349 = vmatpush1.bf16.msra.mxu0 %v18837_v7  ;;  %12006 = vmatprep.subr.bf16.mxu1 %v18842_v8  ;;  %v18917_v7 = vld [vmem:[#allocation5 + $0x11ec] ss:$12 sps:$4 sm:$0xff]   ;;  %v18912_v8 = vld [vmem:[#allocation5 + $0x5e8] ss:$12 sps:$4 sm:$0xff]  }
 0x14c   :  { %12350 = vmatprep.subr.bf16.mxu0 %v18845_v9  ;;  %v18915_v9 = vld [vmem:[#allocation5 + $0x11e8] ss:$12 sps:$4 sm:$0xff]  }
 0x14e   :  { %12007 = vmatpush1.bf16.msra.mxu1 %v18840_v10  ;;  %v124_v10 = vld [vmem:[#allocation2 + $0x30] sm:$0xff] }
 0x14f   :  { %12351 = vmatpush1.bf16.msra.mxu0 %v18843_v11  ;;  %12008 = vmatprep.subr.bf16.mxu1 %v18848_v12  ;;  %v18920_v11 = vld [vmem:[#allocation5 + $0x604] ss:$12 sps:$4 sm:$0xff]  }
 0x150   :  { %12352 = vmatprep.subr.bf16.mxu0 %v18851_v13  ;;  %v196_v12 = vld [vmem:[#allocation2 + $0x270] sm:$0xf] }
 0x151   :  { %v140_v13 = vld [vmem:[#allocation2 + $0xb0] sm:$0xff] }
 0x152   :  { %12009 = vmatpush1.bf16.msra.mxu1 %v18846_v16  ;;  %v212_v16 = vld [vmem:[#allocation2 + $0x2f0] sm:$0xf] }
 0x153   :  { %12353 = vmatpush1.bf16.msra.mxu0 %v18849_v17  ;;  %12010 = vmatprep.subr.bf16.mxu1 %v18854_v18  ;;  %v18923_v17 = vld [vmem:[#allocation5 + $0x1204] ss:$12 sps:$4 sm:$0xff]   ;;  %v18918_v18 = vld [vmem:[#allocation5 + $0x600] ss:$12 sps:$4 sm:$0xff]  }
 0x154   :  { %12354 = vmatprep.subr.bf16.mxu0 %v18857_v19  ;;  %v18921_v19 = vld [vmem:[#allocation5 + $0x1200] ss:$12 sps:$4 sm:$0xff]  }
 0x156   :  { %12011 = vmatpush1.bf16.msra.mxu1 %v18852_v20  ;;  %v127_v20 = vld [vmem:[#allocation2 + $0x48] sm:$0xff] }
 0x157   :  { %12355 = vmatpush1.bf16.msra.mxu0 %v18855_v21  ;;  %12012 = vmatprep.subr.bf16.mxu1 %v18860_v22  ;;  %v199_v21 = vld [vmem:[#allocation2 + $0x288] sm:$0xf]  ;;  %v21221_v22 = vpack.c.bf16 %v196_v12, %v124_v10  ;;  %v18972_v10 = vld [vmem:[#allocation5 + $0x6d8] ss:$12 sps:$4 sm:$0xff]   ;;  %v18980_v12 = vld [vmem:[#allocation5 + $0x6f4] ss:$12 sps:$4 sm:$0xff]  }
 0x158   :  { %12356 = vmatprep.subr.bf16.mxu0 %v18863_v23  ;;  %v21223_v23 = vpack.c.bf16 %v212_v16, %v140_v13  ;;  %v18983_v13 = vld [vmem:[#allocation5 + $0x12f4] ss:$12 sps:$4 sm:$0xff]   ;;  %v18978_v16 = vld [vmem:[#allocation5 + $0x6f0] ss:$12 sps:$4 sm:$0xff]  }
 0x15a   :  { %12013 = vmatpush1.bf16.msra.mxu1 %v18858_v24  ;;  %v143_v24 = vld [vmem:[#allocation2 + $0xc8] sm:$0xff] }
 0x15b   :  { %12357 = vmatpush1.bf16.msra.mxu0 %v18861_v25  ;;  %12014 = vmatprep.subr.bf16.mxu1 %v18866_v26  ;;  %v215_v25 = vld [vmem:[#allocation2 + $0x308] sm:$0xf] }
 0x15c   :  { %12358 = vmatprep.subr.bf16.mxu0 %v18869_v27  ;;  %v18926_v26 = vld [vmem:[#allocation5 + $0x61c] ss:$12 sps:$4 sm:$0xff]  }
 0x15d   :  { %v18929_v27 = vld [vmem:[#allocation5 + $0x121c] ss:$12 sps:$4 sm:$0xff]  }
 0x15e   :  { %12015 = vmatpush1.bf16.msra.mxu1 %v18864_v28  ;;  %v21225_v28 = vpack.c.bf16 %v199_v21, %v127_v20  ;;  %v18984_v20 = vld [vmem:[#allocation5 + $0x708] ss:$12 sps:$4 sm:$0xff]  }
 0x15f   :  { %12359 = vmatpush1.bf16.msra.mxu0 %v18867_v29  ;;  %12016 = vmatprep.subr.bf16.mxu1 %v18872_v32  ;;  %v21227_v29 = vpack.c.bf16 %v215_v25, %v143_v24  ;;  %v18924_v32 = vld [vmem:[#allocation5 + $0x618] ss:$12 sps:$4 sm:$0xff]   ;;  %v18987_v21 = vld [vmem:[#allocation5 + $0x1308] ss:$12 sps:$4 sm:$0xff]  }
 0x160   :  { %12360 = vmatprep.subr.bf16.mxu0 %v18875_v33  ;;  %v18927_v33 = vld [vmem:[#allocation5 + $0x1218] ss:$12 sps:$4 sm:$0xff]  }
 0x161   :  { %v18992_v24 = vld [vmem:[#allocation5 + $0x724] ss:$12 sps:$4 sm:$0xff]  }
 0x162   :  { %12017 = vmatpush1.bf16.msra.mxu1 %v18870_v34  ;;  %v18932_v34 = vld [vmem:[#allocation5 + $0x634] ss:$12 sps:$4 sm:$0xff]   ;;  %v18995_v25 = vld [vmem:[#allocation5 + $0x1324] ss:$12 sps:$4 sm:$0xff]  }
 0x163   :  { %12361 = vmatpush1.bf16.msra.mxu0 %v18873_v35  ;;  %12018 = vmatprep.subr.bf16.mxu1 %v18878_v36  ;;  %v18935_v35 = vld [vmem:[#allocation5 + $0x1234] ss:$12 sps:$4 sm:$0xff]   ;;  %v18930_v36 = vld [vmem:[#allocation5 + $0x630] ss:$12 sps:$4 sm:$0xff]  }
 0x164   :  { %12362 = vmatprep.subr.bf16.mxu0 %v18881_v37  ;;  %v18933_v37 = vld [vmem:[#allocation5 + $0x1230] ss:$12 sps:$4 sm:$0xff]  }
 0x166   :  { %12019 = vmatpush1.bf16.msra.mxu1 %v18876_v38  ;;  %v18938_v38 = vld [vmem:[#allocation5 + $0x64c] ss:$12 sps:$4 sm:$0xff]  }
 0x167   :  { %12363 = vmatpush1.bf16.msra.mxu0 %v18879_v39  ;;  %12020 = vmatprep.subr.bf16.mxu1 %v18884_v41  ;;  %v18941_v39 = vld [vmem:[#allocation5 + $0x124c] ss:$12 sps:$4 sm:$0xff]   ;;  %v18936_v41 = vld [vmem:[#allocation5 + $0x648] ss:$12 sps:$4 sm:$0xff]  }
 0x168   :  { %12364 = vmatprep.subr.bf16.mxu0 %v18887_v42  ;;  %v18939_v42 = vld [vmem:[#allocation5 + $0x1248] ss:$12 sps:$4 sm:$0xff]  }
 0x16a   :  { %12021 = vmatpush1.bf16.msra.mxu1 %v18882_v43  ;;  %v18944_v43 = vld [vmem:[#allocation5 + $0x664] ss:$12 sps:$4 sm:$0xff]  }
 0x16b   :  { %12365 = vmatpush1.bf16.msra.mxu0 %v18885_v45  ;;  %12022 = vmatprep.subr.bf16.mxu1 %v18890_v48  ;;  %v18947_v45 = vld [vmem:[#allocation5 + $0x1264] ss:$12 sps:$4 sm:$0xff]   ;;  %v18942_v48 = vld [vmem:[#allocation5 + $0x660] ss:$12 sps:$4 sm:$0xff]  }
 0x16c   :  { %12366 = vmatprep.subr.bf16.mxu0 %v18893_v49  ;;  %v18945_v49 = vld [vmem:[#allocation5 + $0x1260] ss:$12 sps:$4 sm:$0xff]  }
 0x16e   :  { %12023 = vmatpush1.bf16.msra.mxu1 %v18888_v50  ;;  %v18950_v50 = vld [vmem:[#allocation5 + $0x67c] ss:$12 sps:$4 sm:$0xff]  }
 0x16f   :  { %12367 = vmatpush1.bf16.msra.mxu0 %v18891_v51  ;;  %12024 = vmatprep.subr.bf16.mxu1 %v18896_v53  ;;  %v18953_v51 = vld [vmem:[#allocation5 + $0x127c] ss:$12 sps:$4 sm:$0xff]   ;;  %v18948_v53 = vld [vmem:[#allocation5 + $0x678] ss:$12 sps:$4 sm:$0xff]  }
 0x170   :  { %12368 = vmatprep.subr.bf16.mxu0 %v18899_v54  ;;  %v18951_v54 = vld [vmem:[#allocation5 + $0x1278] ss:$12 sps:$4 sm:$0xff]  }
 0x172   :  { %12025 = vmatpush1.bf16.msra.mxu1 %v18894_v56  ;;  %v18956_v56 = vld [vmem:[#allocation5 + $0x694] ss:$12 sps:$4 sm:$0xff]  }
 0x173   :  { %12369 = vmatpush1.bf16.msra.mxu0 %v18897_v57  ;;  %12026 = vmatprep.subr.bf16.mxu1 %v18902_v60  ;;  %v18959_v57 = vld [vmem:[#allocation5 + $0x1294] ss:$12 sps:$4 sm:$0xff]   ;;  %v18954_v60 = vld [vmem:[#allocation5 + $0x690] ss:$12 sps:$4 sm:$0xff]  }
 0x174   :  { %12370 = vmatprep.subr.bf16.mxu0 %v18905_v61  ;;  %v18957_v61 = vld [vmem:[#allocation5 + $0x1290] ss:$12 sps:$4 sm:$0xff]  }
 0x176   :  { %12027 = vmatpush1.bf16.msra.mxu1 %v18900_v62  ;;  %v18962_v62 = vld [vmem:[#allocation5 + $0x6ac] ss:$12 sps:$4 sm:$0xff]  }
 0x177   :  { %12371 = vmatpush1.bf16.msra.mxu0 %v18903_v63  ;;  %12028 = vmatprep.subr.bf16.mxu1 %v18908_v2  ;;  %v18965_v63 = vld [vmem:[#allocation5 + $0x12ac] ss:$12 sps:$4 sm:$0xff]   ;;  %v18960_v2 = vld [vmem:[#allocation5 + $0x6a8] ss:$12 sps:$4 sm:$0xff]  }
 0x178   :  { %12372 = vmatprep.subr.bf16.mxu0 %v18911_v3  ;;  %v18963_v3 = vld [vmem:[#allocation5 + $0x12a8] ss:$12 sps:$4 sm:$0xff]  }
 0x17a   :  { %12029 = vmatpush1.bf16.msra.mxu1 %v18906_v4  ;;  %v18968_v4 = vld [vmem:[#allocation5 + $0x6c4] ss:$12 sps:$4 sm:$0xff]  }
 0x17b   :  { %12373 = vmatpush1.bf16.msra.mxu0 %v18909_v5  ;;  %12030 = vmatprep.subr.bf16.mxu1 %v18914_v6  ;;  %v18971_v5 = vld [vmem:[#allocation5 + $0x12c4] ss:$12 sps:$4 sm:$0xff]   ;;  %v18966_v6 = vld [vmem:[#allocation5 + $0x6c0] ss:$12 sps:$4 sm:$0xff]  }
 0x17c   :  { %12374 = vmatprep.subr.bf16.mxu0 %v18917_v7  ;;  %v18969_v7 = vld [vmem:[#allocation5 + $0x12c0] ss:$12 sps:$4 sm:$0xff]  }
 0x17e   :  { %12031 = vmatpush1.bf16.msra.mxu1 %v18912_v8  ;;  %v18974_v8 = vld [vmem:[#allocation5 + $0x6dc] ss:$12 sps:$4 sm:$0xff]  }
 0x17f   :  { %12375 = vmatpush1.bf16.msra.mxu0 %v18915_v9  ;;  %12043 = vmatprep.subr.bf16.mxu1 %v18920_v11  ;;  %v18977_v9 = vld [vmem:[#allocation5 + $0x12dc] ss:$12 sps:$4 sm:$0xff]   ;;  %v18975_v11 = vld [vmem:[#allocation5 + $0x12d8] ss:$12 sps:$4 sm:$0xff]  }
 0x180   :  { %12387 = vmatprep.subr.bf16.mxu0 %v18923_v17  ;;  %v18981_v17 = vld [vmem:[#allocation5 + $0x12f0] ss:$12 sps:$4 sm:$0xff]  }
 0x181   :  { %12033 = vmatmul.mubr.bf16.vlgmr.msra.gmra.mrb[0].mxu1 %v21221_v22 }
 0x182   :  { %12377 = vmatmul.mubr.bf16.vlgmr.msra.gmra.mrb[0].mxu0 %v21223_v23  ;;  %12044 = vmatpush1.bf16.msra.mxu1 %v18918_v18  ;;  %v18986_v18 = vld [vmem:[#allocation5 + $0x70c] ss:$12 sps:$4 sm:$0xff]  }
 0x183   :  { %12388 = vmatpush1.bf16.msra.mxu0 %v18921_v19  ;;  %12045 = vmatprep.subr.bf16.mxu1 %v18926_v26  ;;  %v18989_v19 = vld [vmem:[#allocation5 + $0x130c] ss:$12 sps:$4 sm:$0xff]  }
 0x184   :  { %12389 = vmatprep.subr.bf16.mxu0 %v18929_v27  ;;  %12075 = vmatprep.mubr.bf16.mxu1 %v21225_v28  ;;  %v18990_v26 = vld [vmem:[#allocation5 + $0x720] ss:$12 sps:$4 sm:$0xff]  }
 0x185   :  { %12419 = vmatprep.mubr.bf16.mxu0 %v21227_v29  ;;  %v18993_v27 = vld [vmem:[#allocation5 + $0x1320] ss:$12 sps:$4 sm:$0xff]  }
 0x186   :  { %12046 = vmatpush1.bf16.msra.mxu1 %v18924_v32  ;;  %v18998_v32 = vld [vmem:[#allocation5 + $0x73c] ss:$12 sps:$4 sm:$0xff]  }
 0x187   :  { %12390 = vmatpush1.bf16.msra.mxu0 %v18927_v33  ;;  %12047 = vmatprep.subr.bf16.mxu1 %v18932_v34  ;;  %v19001_v33 = vld [vmem:[#allocation5 + $0x133c] ss:$12 sps:$4 sm:$0xff]   ;;  %v18996_v34 = vld [vmem:[#allocation5 + $0x738] ss:$12 sps:$4 sm:$0xff]  }
 0x188   :  { %12391 = vmatprep.subr.bf16.mxu0 %v18935_v35  ;;  %v18999_v35 = vld [vmem:[#allocation5 + $0x1338] ss:$12 sps:$4 sm:$0xff]  }
 0x18a   :  { %12048 = vmatpush1.bf16.msra.mxu1 %v18930_v36  ;;  %v19004_v36 = vld [vmem:[#allocation5 + $0x754] ss:$12 sps:$4 sm:$0xff]  }
 0x18b   :  { %12392 = vmatpush1.bf16.msra.mxu0 %v18933_v37  ;;  %12049 = vmatprep.subr.bf16.mxu1 %v18938_v38  ;;  %v19007_v37 = vld [vmem:[#allocation5 + $0x1354] ss:$12 sps:$4 sm:$0xff]   ;;  %v19002_v38 = vld [vmem:[#allocation5 + $0x750] ss:$12 sps:$4 sm:$0xff]  }
 0x18c   :  { %12393 = vmatprep.subr.bf16.mxu0 %v18941_v39  ;;  %v19005_v39 = vld [vmem:[#allocation5 + $0x1350] ss:$12 sps:$4 sm:$0xff]  }
 0x18e   :  { %12050 = vmatpush1.bf16.msra.mxu1 %v18936_v41  ;;  %v19010_v41 = vld [vmem:[#allocation5 + $0x76c] ss:$12 sps:$4 sm:$0xff]  }
 0x18f   :  { %12394 = vmatpush1.bf16.msra.mxu0 %v18939_v42  ;;  %12051 = vmatprep.subr.bf16.mxu1 %v18944_v43  ;;  %v19013_v42 = vld [vmem:[#allocation5 + $0x136c] ss:$12 sps:$4 sm:$0xff]   ;;  %v19008_v43 = vld [vmem:[#allocation5 + $0x768] ss:$12 sps:$4 sm:$0xff]  }
 0x190   :  { %12395 = vmatprep.subr.bf16.mxu0 %v18947_v45  ;;  %v19011_v45 = vld [vmem:[#allocation5 + $0x1368] ss:$12 sps:$4 sm:$0xff]  }
 0x192   :  { %12052 = vmatpush1.bf16.msra.mxu1 %v18942_v48  ;;  %v126_v48 = vld [vmem:[#allocation2 + $0x40] sm:$0xff] }
 0x193   :  { %12396 = vmatpush1.bf16.msra.mxu0 %v18945_v49  ;;  %12053 = vmatprep.subr.bf16.mxu1 %v18950_v50  ;;  %v198_v49 = vld [vmem:[#allocation2 + $0x280] sm:$0xf]  ;;  %v19016_v50 = vld [vmem:[#allocation5 + $0x784] ss:$12 sps:$4 sm:$0xff]  }
 0x194   :  { %12397 = vmatprep.subr.bf16.mxu0 %v18953_v51  ;;  %v19019_v51 = vld [vmem:[#allocation5 + $0x1384] ss:$12 sps:$4 sm:$0xff]  }
 0x196   :  { %12054 = vmatpush1.bf16.msra.mxu1 %v18948_v53  ;;  %v142_v53 = vld [vmem:[#allocation2 + $0xc0] sm:$0xff] }
 0x197   :  { %12398 = vmatpush1.bf16.msra.mxu0 %v18951_v54  ;;  %12055 = vmatprep.subr.bf16.mxu1 %v18956_v56  ;;  %v214_v54 = vld [vmem:[#allocation2 + $0x300] sm:$0xf]  ;;  %v129_v56 = vld [vmem:[#allocation2 + $0x58] sm:$0xff] }
 0x198   :  { %12399 = vmatprep.subr.bf16.mxu0 %v18959_v57  ;;  %v201_v57 = vld [vmem:[#allocation2 + $0x298] sm:$0xf] }
 0x19a   :  { %12056 = vmatpush1.bf16.msra.mxu1 %v18954_v60  ;;  %v145_v60 = vld [vmem:[#allocation2 + $0xd8] sm:$0xff] }
 0x19b   :  { %12400 = vmatpush1.bf16.msra.mxu0 %v18957_v61  ;;  %12057 = vmatprep.subr.bf16.mxu1 %v18962_v62  ;;  %v217_v61 = vld [vmem:[#allocation2 + $0x318] sm:$0xf]  ;;  %v21233_v62 = vpack.c.bf16 %v198_v49, %v126_v48  ;;  %v19062_v48 = vld [vmem:[#allocation5 + $0x840] ss:$12 sps:$4 sm:$0xff]  }
 0x19c   :  { %12401 = vmatprep.subr.bf16.mxu0 %v18965_v63  ;;  %v21235_v63 = vpack.c.bf16 %v214_v54, %v142_v53  ;;  %v19065_v49 = vld [vmem:[#allocation5 + $0x1440] ss:$12 sps:$4 sm:$0xff]   ;;  %v19068_v53 = vld [vmem:[#allocation5 + $0x858] ss:$12 sps:$4 sm:$0xff]  }
 0x19d   :  { %v19071_v54 = vld [vmem:[#allocation5 + $0x1458] ss:$12 sps:$4 sm:$0xff]  }
 0x19e   :  { %12058 = vmatpush1.bf16.msra.mxu1 %v18960_v2  ;;  %v19014_v2 = vld [vmem:[#allocation5 + $0x780] ss:$12 sps:$4 sm:$0xff]  }
 0x19f   :  { %12402 = vmatpush1.bf16.msra.mxu0 %v18963_v3  ;;  %12059 = vmatprep.subr.bf16.mxu1 %v18968_v4  ;;  %v19017_v3 = vld [vmem:[#allocation5 + $0x1380] ss:$12 sps:$4 sm:$0xff]   ;;  %v19022_v4 = vld [vmem:[#allocation5 + $0x79c] ss:$12 sps:$4 sm:$0xff]  }
 0x1a0   :  { %12403 = vmatprep.subr.bf16.mxu0 %v18971_v5  ;;  %v19025_v5 = vld [vmem:[#allocation5 + $0x139c] ss:$12 sps:$4 sm:$0xff]  }
 0x1a2   :  { %12060 = vmatpush1.bf16.msra.mxu1 %v18966_v6  ;;  %v21237_v6 = vpack.c.bf16 %v201_v57, %v129_v56  ;;  %v19076_v56 = vld [vmem:[#allocation5 + $0x874] ss:$12 sps:$4 sm:$0xff]  }
 0x1a3   :  { %12404 = vmatpush1.bf16.msra.mxu0 %v18969_v7  ;;  %12061 = vmatprep.subr.bf16.mxu1 %v18974_v8  ;;  %v21239_v7 = vpack.c.bf16 %v217_v61, %v145_v60  ;;  %v19020_v8 = vld [vmem:[#allocation5 + $0x798] ss:$12 sps:$4 sm:$0xff]   ;;  %v19079_v57 = vld [vmem:[#allocation5 + $0x1474] ss:$12 sps:$4 sm:$0xff]   ;;  %v19074_v60 = vld [vmem:[#allocation5 + $0x870] ss:$12 sps:$4 sm:$0xff]  }
 0x1a4   :  { %12405 = vmatprep.subr.bf16.mxu0 %v18977_v9  ;;  %v19023_v9 = vld [vmem:[#allocation5 + $0x1398] ss:$12 sps:$4 sm:$0xff]   ;;  %v19077_v61 = vld [vmem:[#allocation5 + $0x1470] ss:$12 sps:$4 sm:$0xff]  }
 0x1a6   :  { %12062 = vmatpush1.bf16.msra.mxu1 %v18972_v10  ;;  %v19028_v10 = vld [vmem:[#allocation5 + $0x7b4] ss:$12 sps:$4 sm:$0xff]  }
 0x1a7   :  { %12406 = vmatpush1.bf16.msra.mxu0 %v18975_v11  ;;  %12063 = vmatprep.subr.bf16.mxu1 %v18980_v12  ;;  %v19031_v11 = vld [vmem:[#allocation5 + $0x13b4] ss:$12 sps:$4 sm:$0xff]   ;;  %v19026_v12 = vld [vmem:[#allocation5 + $0x7b0] ss:$12 sps:$4 sm:$0xff]  }
 0x1a8   :  { %12407 = vmatprep.subr.bf16.mxu0 %v18983_v13  ;;  %v19029_v13 = vld [vmem:[#allocation5 + $0x13b0] ss:$12 sps:$4 sm:$0xff]  }
 0x1aa   :  { %12064 = vmatpush1.bf16.msra.mxu1 %v18978_v16  ;;  %v19034_v16 = vld [vmem:[#allocation5 + $0x7cc] ss:$12 sps:$4 sm:$0xff]  }
 0x1ab   :  { %12408 = vmatpush1.bf16.msra.mxu0 %v18981_v17  ;;  %12065 = vmatprep.subr.bf16.mxu1 %v18986_v18  ;;  %v19037_v17 = vld [vmem:[#allocation5 + $0x13cc] ss:$12 sps:$4 sm:$0xff]   ;;  %v19032_v18 = vld [vmem:[#allocation5 + $0x7c8] ss:$12 sps:$4 sm:$0xff]  }
 0x1ac   :  { %12409 = vmatprep.subr.bf16.mxu0 %v18989_v19  ;;  %v19035_v19 = vld [vmem:[#allocation5 + $0x13c8] ss:$12 sps:$4 sm:$0xff]  }
 0x1ae   :  { %12066 = vmatpush1.bf16.msra.mxu1 %v18984_v20  ;;  %v19040_v20 = vld [vmem:[#allocation5 + $0x7e4] ss:$12 sps:$4 sm:$0xff]  }
 0x1af   :  { %12410 = vmatpush1.bf16.msra.mxu0 %v18987_v21  ;;  %12067 = vmatprep.subr.bf16.mxu1 %v18992_v24  ;;  %v19043_v21 = vld [vmem:[#allocation5 + $0x13e4] ss:$12 sps:$4 sm:$0xff]   ;;  %v19038_v24 = vld [vmem:[#allocation5 + $0x7e0] ss:$12 sps:$4 sm:$0xff]  }
 0x1b0   :  { %12411 = vmatprep.subr.bf16.mxu0 %v18995_v25  ;;  %v19041_v25 = vld [vmem:[#allocation5 + $0x13e0] ss:$12 sps:$4 sm:$0xff]  }
 0x1b2   :  { %12068 = vmatpush1.bf16.msra.mxu1 %v18990_v26  ;;  %v19046_v26 = vld [vmem:[#allocation5 + $0x7fc] ss:$12 sps:$4 sm:$0xff]  }
 0x1b3   :  { %12412 = vmatpush1.bf16.msra.mxu0 %v18993_v27  ;;  %12069 = vmatprep.subr.bf16.mxu1 %v18998_v32  ;;  %v19049_v27 = vld [vmem:[#allocation5 + $0x13fc] ss:$12 sps:$4 sm:$0xff]   ;;  %v19044_v32 = vld [vmem:[#allocation5 + $0x7f8] ss:$12 sps:$4 sm:$0xff]  }
 0x1b4   :  { %12413 = vmatprep.subr.bf16.mxu0 %v19001_v33  ;;  %v19047_v33 = vld [vmem:[#allocation5 + $0x13f8] ss:$12 sps:$4 sm:$0xff]  }
 0x1b6   :  { %12070 = vmatpush1.bf16.msra.mxu1 %v18996_v34  ;;  %v19052_v34 = vld [vmem:[#allocation5 + $0x814] ss:$12 sps:$4 sm:$0xff]  }
 0x1b7   :  { %12414 = vmatpush1.bf16.msra.mxu0 %v18999_v35  ;;  %12071 = vmatprep.subr.bf16.mxu1 %v19004_v36  ;;  %v19055_v35 = vld [vmem:[#allocation5 + $0x1414] ss:$12 sps:$4 sm:$0xff]   ;;  %v19050_v36 = vld [vmem:[#allocation5 + $0x810] ss:$12 sps:$4 sm:$0xff]  }
 0x1b8   :  { %12415 = vmatprep.subr.bf16.mxu0 %v19007_v37  ;;  %v19053_v37 = vld [vmem:[#allocation5 + $0x1410] ss:$12 sps:$4 sm:$0xff]  }
 0x1ba   :  { %12072 = vmatpush1.bf16.msra.mxu1 %v19002_v38  ;;  %v19058_v38 = vld [vmem:[#allocation5 + $0x82c] ss:$12 sps:$4 sm:$0xff]  }
 0x1bb   :  { %12416 = vmatpush1.bf16.msra.mxu0 %v19005_v39  ;;  %12073 = vmatprep.subr.bf16.mxu1 %v19010_v41  ;;  %v19061_v39 = vld [vmem:[#allocation5 + $0x142c] ss:$12 sps:$4 sm:$0xff]   ;;  %v19056_v41 = vld [vmem:[#allocation5 + $0x828] ss:$12 sps:$4 sm:$0xff]  }
 0x1bc   :  { %12417 = vmatprep.subr.bf16.mxu0 %v19013_v42  ;;  %v19059_v42 = vld [vmem:[#allocation5 + $0x1428] ss:$12 sps:$4 sm:$0xff]  }
 0x1be   :  { %12074 = vmatpush1.bf16.msra.mxu1 %v19008_v43  ;;  %v19064_v43 = vld [vmem:[#allocation5 + $0x844] ss:$12 sps:$4 sm:$0xff]  }
 0x1bf   :  { %12418 = vmatpush1.bf16.msra.mxu0 %v19011_v45  ;;  %12086 = vmatprep.subr.bf16.mxu1 %v19016_v50  ;;  %v19067_v45 = vld [vmem:[#allocation5 + $0x1444] ss:$12 sps:$4 sm:$0xff]   ;;  %v19070_v50 = vld [vmem:[#allocation5 + $0x85c] ss:$12 sps:$4 sm:$0xff]  }
 0x1c0   :  { %12430 = vmatprep.subr.bf16.mxu0 %v19019_v51  ;;  %v19073_v51 = vld [vmem:[#allocation5 + $0x145c] ss:$12 sps:$4 sm:$0xff]  }
 0x1c1   :  { %12076 = vmatmul.mubr.bf16.vlgmr.msra.gmra.mrb[0].mxu1 %v21233_v62 }
 0x1c2   :  { %12420 = vmatmul.mubr.bf16.vlgmr.msra.gmra.mrb[0].mxu0 %v21235_v63  ;;  %12087 = vmatpush1.bf16.msra.mxu1 %v19014_v2  ;;  %v19082_v2 = vld [vmem:[#allocation5 + $0x88c] ss:$12 sps:$4 sm:$0xff]  }
 0x1c3   :  { %12431 = vmatpush1.bf16.msra.mxu0 %v19017_v3  ;;  %12088 = vmatprep.subr.bf16.mxu1 %v19022_v4  ;;  %v19085_v3 = vld [vmem:[#allocation5 + $0x148c] ss:$12 sps:$4 sm:$0xff]   ;;  %v19080_v4 = vld [vmem:[#allocation5 + $0x888] ss:$12 sps:$4 sm:$0xff]  }
 0x1c4   :  { %12432 = vmatprep.subr.bf16.mxu0 %v19025_v5  ;;  %12118 = vmatprep.mubr.bf16.mxu1 %v21237_v6  ;;  %v19083_v5 = vld [vmem:[#allocation5 + $0x1488] ss:$12 sps:$4 sm:$0xff]  }
 0x1c5   :  { %12462 = vmatprep.mubr.bf16.mxu0 %v21239_v7 }
 0x1c6   :  { %12089 = vmatpush1.bf16.msra.mxu1 %v19020_v8  ;;  %v19088_v8 = vld [vmem:[#allocation5 + $0x8a4] ss:$12 sps:$4 sm:$0xff]  }
 0x1c7   :  { %12433 = vmatpush1.bf16.msra.mxu0 %v19023_v9  ;;  %12090 = vmatprep.subr.bf16.mxu1 %v19028_v10  ;;  %v19091_v9 = vld [vmem:[#allocation5 + $0x14a4] ss:$12 sps:$4 sm:$0xff]   ;;  %v19086_v10 = vld [vmem:[#allocation5 + $0x8a0] ss:$12 sps:$4 sm:$0xff]  }
 0x1c8   :  { %12434 = vmatprep.subr.bf16.mxu0 %v19031_v11  ;;  %v19089_v11 = vld [vmem:[#allocation5 + $0x14a0] ss:$12 sps:$4 sm:$0xff]  }
 0x1ca   :  { %12091 = vmatpush1.bf16.msra.mxu1 %v19026_v12  ;;  %v19094_v12 = vld [vmem:[#allocation5 + $0x8bc] ss:$12 sps:$4 sm:$0xff]  }
 0x1cb   :  { %12435 = vmatpush1.bf16.msra.mxu0 %v19029_v13  ;;  %12092 = vmatprep.subr.bf16.mxu1 %v19034_v16  ;;  %v19097_v13 = vld [vmem:[#allocation5 + $0x14bc] ss:$12 sps:$4 sm:$0xff]   ;;  %v19092_v16 = vld [vmem:[#allocation5 + $0x8b8] ss:$12 sps:$4 sm:$0xff]  }
 0x1cc   :  { %12436 = vmatprep.subr.bf16.mxu0 %v19037_v17  ;;  %v19095_v17 = vld [vmem:[#allocation5 + $0x14b8] ss:$12 sps:$4 sm:$0xff]  }
 0x1ce   :  { %12093 = vmatpush1.bf16.msra.mxu1 %v19032_v18  ;;  %v19100_v18 = vld [vmem:[#allocation5 + $0x8d4] ss:$12 sps:$4 sm:$0xff]  }
 0x1cf   :  { %12437 = vmatpush1.bf16.msra.mxu0 %v19035_v19  ;;  %12094 = vmatprep.subr.bf16.mxu1 %v19040_v20  ;;  %v19103_v19 = vld [vmem:[#allocation5 + $0x14d4] ss:$12 sps:$4 sm:$0xff]   ;;  %v19098_v20 = vld [vmem:[#allocation5 + $0x8d0] ss:$12 sps:$4 sm:$0xff]  }
 0x1d0   :  { %12438 = vmatprep.subr.bf16.mxu0 %v19043_v21  ;;  %v19101_v21 = vld [vmem:[#allocation5 + $0x14d0] ss:$12 sps:$4 sm:$0xff]  }
 0x1d2   :  { %12095 = vmatpush1.bf16.msra.mxu1 %v19038_v24  ;;  %v19106_v24 = vld [vmem:[#allocation5 + $0x8ec] ss:$12 sps:$4 sm:$0xff]  }
 0x1d3   :  { %12439 = vmatpush1.bf16.msra.mxu0 %v19041_v25  ;;  %12096 = vmatprep.subr.bf16.mxu1 %v19046_v26  ;;  %v19109_v25 = vld [vmem:[#allocation5 + $0x14ec] ss:$12 sps:$4 sm:$0xff]   ;;  %v19104_v26 = vld [vmem:[#allocation5 + $0x8e8] ss:$12 sps:$4 sm:$0xff]  }
 0x1d4   :  { %12440 = vmatprep.subr.bf16.mxu0 %v19049_v27  ;;  %v19107_v27 = vld [vmem:[#allocation5 + $0x14e8] ss:$12 sps:$4 sm:$0xff]  }
 0x1d6   :  { %12097 = vmatpush1.bf16.msra.mxu1 %v19044_v32  ;;  %v128_v32 = vld [vmem:[#allocation2 + $0x50] sm:$0xff] }
 0x1d7   :  { %12441 = vmatpush1.bf16.msra.mxu0 %v19047_v33  ;;  %12098 = vmatprep.subr.bf16.mxu1 %v19052_v34  ;;  %v200_v33 = vld [vmem:[#allocation2 + $0x290] sm:$0xf] }
 0x1d8   :  { %12442 = vmatprep.subr.bf16.mxu0 %v19055_v35  ;;  %v19112_v34 = vld [vmem:[#allocation5 + $0x904] ss:$12 sps:$4 sm:$0xff]  }
 0x1d9   :  { %v19115_v35 = vld [vmem:[#allocation5 + $0x1504] ss:$12 sps:$4 sm:$0xff]  }
 0x1da   :  { %12099 = vmatpush1.bf16.msra.mxu1 %v19050_v36  ;;  %v144_v36 = vld [vmem:[#allocation2 + $0xd0] sm:$0xff] }
 0x1db   :  { %12443 = vmatpush1.bf16.msra.mxu0 %v19053_v37  ;;  %12100 = vmatprep.subr.bf16.mxu1 %v19058_v38  ;;  %v216_v37 = vld [vmem:[#allocation2 + $0x310] sm:$0xf]  ;;  %v131_v38 = vld [vmem:[#allocation2 + $0x68] sm:$0xff] }
 0x1dc   :  { %12444 = vmatprep.subr.bf16.mxu0 %v19061_v39  ;;  %v203_v39 = vld [vmem:[#allocation2 + $0x2a8] sm:$0xf] }
 0x1de   :  { %12101 = vmatpush1.bf16.msra.mxu1 %v19056_v41  ;;  %v21245_v41 = vpack.c.bf16 %v200_v33, %v128_v32  ;;  %v19152_v32 = vld [vmem:[#allocation5 + $0x9a8] ss:$12 sps:$4 sm:$0xff]  }
 0x1df   :  { %12445 = vmatpush1.bf16.msra.mxu0 %v19059_v42  ;;  %12102 = vmatprep.subr.bf16.mxu1 %v19064_v43  ;;  %v21247_v42 = vpack.c.bf16 %v216_v37, %v144_v36  ;;  %v147_v43 = vld [vmem:[#allocation2 + $0xe8] sm:$0xff] }
 0x1e0   :  { %12446 = vmatprep.subr.bf16.mxu0 %v19067_v45  ;;  %v219_v45 = vld [vmem:[#allocation2 + $0x328] sm:$0xf]  ;;  %v19158_v36 = vld [vmem:[#allocation5 + $0x9c0] ss:$12 sps:$4 sm:$0xff]  }
 0x1e1   :  { %v19155_v33 = vld [vmem:[#allocation5 + $0x15a8] ss:$12 sps:$4 sm:$0xff]   ;;  %v19161_v37 = vld [vmem:[#allocation5 + $0x15c0] ss:$12 sps:$4 sm:$0xff]  }
 0x1e2   :  { %12103 = vmatpush1.bf16.msra.mxu1 %v19062_v48  ;;  %v19110_v48 = vld [vmem:[#allocation5 + $0x900] ss:$12 sps:$4 sm:$0xff]  }
 0x1e3   :  { %12447 = vmatpush1.bf16.msra.mxu0 %v19065_v49  ;;  %12104 = vmatprep.subr.bf16.mxu1 %v19070_v50  ;;  %v19113_v49 = vld [vmem:[#allocation5 + $0x1500] ss:$12 sps:$4 sm:$0xff]   ;;  %v19118_v50 = vld [vmem:[#allocation5 + $0x91c] ss:$12 sps:$4 sm:$0xff]  }
 0x1e4   :  { %12448 = vmatprep.subr.bf16.mxu0 %v19073_v51  ;;  %v19121_v51 = vld [vmem:[#allocation5 + $0x151c] ss:$12 sps:$4 sm:$0xff]  }
 0x1e6   :  { %12105 = vmatpush1.bf16.msra.mxu1 %v19068_v53  ;;  %v21249_v53 = vpack.c.bf16 %v203_v39, %v131_v38  ;;  %v19166_v38 = vld [vmem:[#allocation5 + $0x9dc] ss:$12 sps:$4 sm:$0xff]  }
 0x1e7   :  { %12449 = vmatpush1.bf16.msra.mxu0 %v19071_v54  ;;  %12106 = vmatprep.subr.bf16.mxu1 %v19076_v56  ;;  %v21251_v54 = vpack.c.bf16 %v219_v45, %v147_v43  ;;  %v19116_v56 = vld [vmem:[#allocation5 + $0x918] ss:$12 sps:$4 sm:$0xff]   ;;  %v19169_v39 = vld [vmem:[#allocation5 + $0x15dc] ss:$12 sps:$4 sm:$0xff]  }
 0x1e8   :  { %12450 = vmatprep.subr.bf16.mxu0 %v19079_v57  ;;  %v19119_v57 = vld [vmem:[#allocation5 + $0x1518] ss:$12 sps:$4 sm:$0xff]  }
 0x1e9   :  { %v19164_v43 = vld [vmem:[#allocation5 + $0x9d8] ss:$12 sps:$4 sm:$0xff]  }
 0x1ea   :  { %12107 = vmatpush1.bf16.msra.mxu1 %v19074_v60  ;;  %v19124_v60 = vld [vmem:[#allocation5 + $0x934] ss:$12 sps:$4 sm:$0xff]   ;;  %v19167_v45 = vld [vmem:[#allocation5 + $0x15d8] ss:$12 sps:$4 sm:$0xff]  }
 0x1eb   :  { %12451 = vmatpush1.bf16.msra.mxu0 %v19077_v61  ;;  %12108 = vmatprep.subr.bf16.mxu1 %v19082_v2  ;;  %v19127_v61 = vld [vmem:[#allocation5 + $0x1534] ss:$12 sps:$4 sm:$0xff]   ;;  %v19122_v2 = vld [vmem:[#allocation5 + $0x930] ss:$12 sps:$4 sm:$0xff]  }
 0x1ec   :  { %12452 = vmatprep.subr.bf16.mxu0 %v19085_v3  ;;  %v19125_v3 = vld [vmem:[#allocation5 + $0x1530] ss:$12 sps:$4 sm:$0xff]  }
 0x1ee   :  { %12109 = vmatpush1.bf16.msra.mxu1 %v19080_v4  ;;  %v19130_v4 = vld [vmem:[#allocation5 + $0x94c] ss:$12 sps:$4 sm:$0xff]  }
 0x1ef   :  { %12453 = vmatpush1.bf16.msra.mxu0 %v19083_v5  ;;  %12110 = vmatprep.subr.bf16.mxu1 %v19088_v8  ;;  %v19133_v5 = vld [vmem:[#allocation5 + $0x154c] ss:$12 sps:$4 sm:$0xff]   ;;  %v19128_v8 = vld [vmem:[#allocation5 + $0x948] ss:$12 sps:$4 sm:$0xff]  }
 0x1f0   :  { %12454 = vmatprep.subr.bf16.mxu0 %v19091_v9  ;;  %v19131_v9 = vld [vmem:[#allocation5 + $0x1548] ss:$12 sps:$4 sm:$0xff]  }
 0x1f2   :  { %12111 = vmatpush1.bf16.msra.mxu1 %v19086_v10  ;;  %v19136_v10 = vld [vmem:[#allocation5 + $0x964] ss:$12 sps:$4 sm:$0xff]  }
 0x1f3   :  { %12455 = vmatpush1.bf16.msra.mxu0 %v19089_v11  ;;  %12112 = vmatprep.subr.bf16.mxu1 %v19094_v12  ;;  %v19139_v11 = vld [vmem:[#allocation5 + $0x1564] ss:$12 sps:$4 sm:$0xff]   ;;  %v19134_v12 = vld [vmem:[#allocation5 + $0x960] ss:$12 sps:$4 sm:$0xff]  }
 0x1f4   :  { %12456 = vmatprep.subr.bf16.mxu0 %v19097_v13  ;;  %v19137_v13 = vld [vmem:[#allocation5 + $0x1560] ss:$12 sps:$4 sm:$0xff]  }
 0x1f6   :  { %12113 = vmatpush1.bf16.msra.mxu1 %v19092_v16  ;;  %v19142_v16 = vld [vmem:[#allocation5 + $0x97c] ss:$12 sps:$4 sm:$0xff]  }
 0x1f7   :  { %12457 = vmatpush1.bf16.msra.mxu0 %v19095_v17  ;;  %12114 = vmatprep.subr.bf16.mxu1 %v19100_v18  ;;  %v19145_v17 = vld [vmem:[#allocation5 + $0x157c] ss:$12 sps:$4 sm:$0xff]   ;;  %v19140_v18 = vld [vmem:[#allocation5 + $0x978] ss:$12 sps:$4 sm:$0xff]  }
 0x1f8   :  { %12458 = vmatprep.subr.bf16.mxu0 %v19103_v19  ;;  %v19143_v19 = vld [vmem:[#allocation5 + $0x1578] ss:$12 sps:$4 sm:$0xff]  }
 0x1fa   :  { %12115 = vmatpush1.bf16.msra.mxu1 %v19098_v20  ;;  %v19148_v20 = vld [vmem:[#allocation5 + $0x994] ss:$12 sps:$4 sm:$0xff]  }
 0x1fb   :  { %12459 = vmatpush1.bf16.msra.mxu0 %v19101_v21  ;;  %12116 = vmatprep.subr.bf16.mxu1 %v19106_v24  ;;  %v19151_v21 = vld [vmem:[#allocation5 + $0x1594] ss:$12 sps:$4 sm:$0xff]   ;;  %v19146_v24 = vld [vmem:[#allocation5 + $0x990] ss:$12 sps:$4 sm:$0xff]  }
 0x1fc   :  { %12460 = vmatprep.subr.bf16.mxu0 %v19109_v25  ;;  %v19149_v25 = vld [vmem:[#allocation5 + $0x1590] ss:$12 sps:$4 sm:$0xff]  }
 0x1fe   :  { %12117 = vmatpush1.bf16.msra.mxu1 %v19104_v26  ;;  %v19154_v26 = vld [vmem:[#allocation5 + $0x9ac] ss:$12 sps:$4 sm:$0xff]  }
 0x1ff   :  { %12461 = vmatpush1.bf16.msra.mxu0 %v19107_v27  ;;  %12129 = vmatprep.subr.bf16.mxu1 %v19112_v34  ;;  %v19157_v27 = vld [vmem:[#allocation5 + $0x15ac] ss:$12 sps:$4 sm:$0xff]   ;;  %v19160_v34 = vld [vmem:[#allocation5 + $0x9c4] ss:$12 sps:$4 sm:$0xff]  }
 0x200   :  { %12473 = vmatprep.subr.bf16.mxu0 %v19115_v35  ;;  %v19163_v35 = vld [vmem:[#allocation5 + $0x15c4] ss:$12 sps:$4 sm:$0xff]  }
 0x201   :  { %12119 = vmatmul.mubr.bf16.vlgmr.msra.gmra.mrb[0].mxu1 %v21245_v41 }
 0x202   :  { %12463 = vmatmul.mubr.bf16.vlgmr.msra.gmra.mrb[0].mxu0 %v21247_v42  ;;  %12130 = vmatpush1.bf16.msra.mxu1 %v19110_v48  ;;  %v19172_v48 = vld [vmem:[#allocation5 + $0x9f4] ss:$12 sps:$4 sm:$0xff]  }
 0x203   :  { %12474 = vmatpush1.bf16.msra.mxu0 %v19113_v49  ;;  %12131 = vmatprep.subr.bf16.mxu1 %v19118_v50  ;;  %v19175_v49 = vld [vmem:[#allocation5 + $0x15f4] ss:$12 sps:$4 sm:$0xff]   ;;  %v19170_v50 = vld [vmem:[#allocation5 + $0x9f0] ss:$12 sps:$4 sm:$0xff]  }
 0x204   :  { %12475 = vmatprep.subr.bf16.mxu0 %v19121_v51  ;;  %12161 = vmatprep.mubr.bf16.mxu1 %v21249_v53  ;;  %v19173_v51 = vld [vmem:[#allocation5 + $0x15f0] ss:$12 sps:$4 sm:$0xff]  }
 0x205   :  { %12505 = vmatprep.mubr.bf16.mxu0 %v21251_v54 }
 0x206   :  { %12132 = vmatpush1.bf16.msra.mxu1 %v19116_v56  ;;  %v19178_v56 = vld [vmem:[#allocation5 + $0xa0c] ss:$12 sps:$4 sm:$0xff]  }
 0x207   :  { %12476 = vmatpush1.bf16.msra.mxu0 %v19119_v57  ;;  %12133 = vmatprep.subr.bf16.mxu1 %v19124_v60  ;;  %v19181_v57 = vld [vmem:[#allocation5 + $0x160c] ss:$12 sps:$4 sm:$0xff]   ;;  %v19176_v60 = vld [vmem:[#allocation5 + $0xa08] ss:$12 sps:$4 sm:$0xff]  }
 0x208   :  { %12477 = vmatprep.subr.bf16.mxu0 %v19127_v61  ;;  %v19179_v61 = vld [vmem:[#allocation5 + $0x1608] ss:$12 sps:$4 sm:$0xff]  }
 0x20a   :  { %12134 = vmatpush1.bf16.msra.mxu1 %v19122_v2  ;;  %v19184_v2 = vld [vmem:[#allocation5 + $0xa24] ss:$12 sps:$4 sm:$0xff]  }
 0x20b   :  { %12478 = vmatpush1.bf16.msra.mxu0 %v19125_v3  ;;  %12135 = vmatprep.subr.bf16.mxu1 %v19130_v4  ;;  %v19187_v3 = vld [vmem:[#allocation5 + $0x1624] ss:$12 sps:$4 sm:$0xff]   ;;  %v19182_v4 = vld [vmem:[#allocation5 + $0xa20] ss:$12 sps:$4 sm:$0xff]  }
 0x20c   :  { %12479 = vmatprep.subr.bf16.mxu0 %v19133_v5  ;;  %v19185_v5 = vld [vmem:[#allocation5 + $0x1620] ss:$12 sps:$4 sm:$0xff]  }
 0x20e   :  { %12136 = vmatpush1.bf16.msra.mxu1 %v19128_v8  ;;  %v19190_v8 = vld [vmem:[#allocation5 + $0xa3c] ss:$12 sps:$4 sm:$0xff]  }
 0x20f   :  { %12480 = vmatpush1.bf16.msra.mxu0 %v19131_v9  ;;  %12137 = vmatprep.subr.bf16.mxu1 %v19136_v10  ;;  %v19193_v9 = vld [vmem:[#allocation5 + $0x163c] ss:$12 sps:$4 sm:$0xff]   ;;  %v19188_v10 = vld [vmem:[#allocation5 + $0xa38] ss:$12 sps:$4 sm:$0xff]  }
 0x210   :  { %12481 = vmatprep.subr.bf16.mxu0 %v19139_v11  ;;  %v19191_v11 = vld [vmem:[#allocation5 + $0x1638] ss:$12 sps:$4 sm:$0xff]  }
 0x212   :  { %12138 = vmatpush1.bf16.msra.mxu1 %v19134_v12  ;;  %v19196_v12 = vld [vmem:[#allocation5 + $0xa54] ss:$12 sps:$4 sm:$0xff]  }
 0x213   :  { %12482 = vmatpush1.bf16.msra.mxu0 %v19137_v13  ;;  %12139 = vmatprep.subr.bf16.mxu1 %v19142_v16  ;;  %v19199_v13 = vld [vmem:[#allocation5 + $0x1654] ss:$12 sps:$4 sm:$0xff]   ;;  %v19194_v16 = vld [vmem:[#allocation5 + $0xa50] ss:$12 sps:$4 sm:$0xff]  }
 0x214   :  { %12483 = vmatprep.subr.bf16.mxu0 %v19145_v17  ;;  %v19197_v17 = vld [vmem:[#allocation5 + $0x1650] ss:$12 sps:$4 sm:$0xff]  }
 0x216   :  { %12140 = vmatpush1.bf16.msra.mxu1 %v19140_v18  ;;  %v19202_v18 = vld [vmem:[#allocation5 + $0xa6c] ss:$12 sps:$4 sm:$0xff]  }
 0x217   :  { %12484 = vmatpush1.bf16.msra.mxu0 %v19143_v19  ;;  %12141 = vmatprep.subr.bf16.mxu1 %v19148_v20  ;;  %v19205_v19 = vld [vmem:[#allocation5 + $0x166c] ss:$12 sps:$4 sm:$0xff]   ;;  %v19200_v20 = vld [vmem:[#allocation5 + $0xa68] ss:$12 sps:$4 sm:$0xff]  }
 0x218   :  { %12485 = vmatprep.subr.bf16.mxu0 %v19151_v21  ;;  %v19203_v21 = vld [vmem:[#allocation5 + $0x1668] ss:$12 sps:$4 sm:$0xff]  }
 0x21a   :  { %12142 = vmatpush1.bf16.msra.mxu1 %v19146_v24  ;;  %v130_v24 = vld [vmem:[#allocation2 + $0x60] sm:$0xff] }
 0x21b   :  { %12486 = vmatpush1.bf16.msra.mxu0 %v19149_v25  ;;  %12143 = vmatprep.subr.bf16.mxu1 %v19154_v26  ;;  %v202_v25 = vld [vmem:[#allocation2 + $0x2a0] sm:$0xf]  ;;  %v19208_v26 = vld [vmem:[#allocation5 + $0xa84] ss:$12 sps:$4 sm:$0xff]  }
 0x21c   :  { %12487 = vmatprep.subr.bf16.mxu0 %v19157_v27  ;;  %v19211_v27 = vld [vmem:[#allocation5 + $0x1684] ss:$12 sps:$4 sm:$0xff]  }
 0x21e   :  { %12144 = vmatpush1.bf16.msra.mxu1 %v19152_v32  ;;  %v146_v32 = vld [vmem:[#allocation2 + $0xe0] sm:$0xff] }
 0x21f   :  { %12488 = vmatpush1.bf16.msra.mxu0 %v19155_v33  ;;  %12145 = vmatprep.subr.bf16.mxu1 %v19160_v34  ;;  %v218_v33 = vld [vmem:[#allocation2 + $0x320] sm:$0xf]  ;;  %v133_v34 = vld [vmem:[#allocation2 + $0x78] sm:$0xff] }
 0x220   :  { %12489 = vmatprep.subr.bf16.mxu0 %v19163_v35  ;;  %v205_v35 = vld [vmem:[#allocation2 + $0x2b8] sm:$0xf] }
 0x222   :  { %12146 = vmatpush1.bf16.msra.mxu1 %v19158_v36  ;;  %v149_v36 = vld [vmem:[#allocation2 + $0xf8] sm:$0xff] }
 0x223   :  { %12490 = vmatpush1.bf16.msra.mxu0 %v19161_v37  ;;  %12147 = vmatprep.subr.bf16.mxu1 %v19166_v38  ;;  %v221_v37 = vld [vmem:[#allocation2 + $0x338] sm:$0xf]  ;;  %v21257_v38 = vpack.c.bf16 %v202_v25, %v130_v24  ;;  %v19242_v24 = vld [vmem:[#allocation5 + $0xb10] ss:$12 sps:$4 sm:$0xff]  }
 0x224   :  { %12491 = vmatprep.subr.bf16.mxu0 %v19169_v39  ;;  %v21259_v39 = vpack.c.bf16 %v218_v33, %v146_v32  ;;  %v19245_v25 = vld [vmem:[#allocation5 + $0x1710] ss:$12 sps:$4 sm:$0xff]   ;;  %v19248_v32 = vld [vmem:[#allocation5 + $0xb28] ss:$12 sps:$4 sm:$0xff]  }
 0x225   :  { %v19251_v33 = vld [vmem:[#allocation5 + $0x1728] ss:$12 sps:$4 sm:$0xff]  }
 0x226   :  { %12148 = vmatpush1.bf16.msra.mxu1 %v19164_v43  ;;  %v19206_v43 = vld [vmem:[#allocation5 + $0xa80] ss:$12 sps:$4 sm:$0xff]  }
 0x227   :  { %12492 = vmatpush1.bf16.msra.mxu0 %v19167_v45  ;;  %12149 = vmatprep.subr.bf16.mxu1 %v19172_v48  ;;  %v19209_v45 = vld [vmem:[#allocation5 + $0x1680] ss:$12 sps:$4 sm:$0xff]   ;;  %v19214_v48 = vld [vmem:[#allocation5 + $0xa9c] ss:$12 sps:$4 sm:$0xff]  }
 0x228   :  { %12493 = vmatprep.subr.bf16.mxu0 %v19175_v49  ;;  %v19217_v49 = vld [vmem:[#allocation5 + $0x169c] ss:$12 sps:$4 sm:$0xff]  }
 0x22a   :  { %12150 = vmatpush1.bf16.msra.mxu1 %v19170_v50  ;;  %v19212_v50 = vld [vmem:[#allocation5 + $0xa98] ss:$12 sps:$4 sm:$0xff]  }
 0x22b   :  { %12494 = vmatpush1.bf16.msra.mxu0 %v19173_v51  ;;  %12151 = vmatprep.subr.bf16.mxu1 %v19178_v56  ;;  %v21261_v51 = vpack.c.bf16 %v205_v35, %v133_v34  ;;  %v21263_v56 = vpack.c.bf16 %v221_v37, %v149_v36  ;;  %v19256_v34 = vld [vmem:[#allocation5 + $0xb44] ss:$12 sps:$4 sm:$0xff]   ;;  %v19254_v36 = vld [vmem:[#allocation5 + $0xb40] ss:$12 sps:$4 sm:$0xff]  }
 0x22c   :  { %12495 = vmatprep.subr.bf16.mxu0 %v19181_v57  ;;  %v19215_v57 = vld [vmem:[#allocation5 + $0x1698] ss:$12 sps:$4 sm:$0xff]   ;;  %v19257_v37 = vld [vmem:[#allocation5 + $0x1740] ss:$12 sps:$4 sm:$0xff]  }
 0x22d   :  { %v19259_v35 = vld [vmem:[#allocation5 + $0x1744] ss:$12 sps:$4 sm:$0xff]  }
 0x22e   :  { %12152 = vmatpush1.bf16.msra.mxu1 %v19176_v60  ;;  %v19220_v60 = vld [vmem:[#allocation5 + $0xab4] ss:$12 sps:$4 sm:$0xff]  }
 0x22f   :  { %12496 = vmatpush1.bf16.msra.mxu0 %v19179_v61  ;;  %12153 = vmatprep.subr.bf16.mxu1 %v19184_v2  ;;  %v19223_v61 = vld [vmem:[#allocation5 + $0x16b4] ss:$12 sps:$4 sm:$0xff]   ;;  %v19218_v2 = vld [vmem:[#allocation5 + $0xab0] ss:$12 sps:$4 sm:$0xff]  }
 0x230   :  { %12497 = vmatprep.subr.bf16.mxu0 %v19187_v3  ;;  %v19221_v3 = vld [vmem:[#allocation5 + $0x16b0] ss:$12 sps:$4 sm:$0xff]  }
 0x232   :  { %12154 = vmatpush1.bf16.msra.mxu1 %v19182_v4  ;;  %v19226_v4 = vld [vmem:[#allocation5 + $0xacc] ss:$12 sps:$4 sm:$0xff]  }
 0x233   :  { %12498 = vmatpush1.bf16.msra.mxu0 %v19185_v5  ;;  %12155 = vmatprep.subr.bf16.mxu1 %v19190_v8  ;;  %v19229_v5 = vld [vmem:[#allocation5 + $0x16cc] ss:$12 sps:$4 sm:$0xff]   ;;  %v19224_v8 = vld [vmem:[#allocation5 + $0xac8] ss:$12 sps:$4 sm:$0xff]  }
 0x234   :  { %12499 = vmatprep.subr.bf16.mxu0 %v19193_v9  ;;  %v19227_v9 = vld [vmem:[#allocation5 + $0x16c8] ss:$12 sps:$4 sm:$0xff]  }
 0x236   :  { %12156 = vmatpush1.bf16.msra.mxu1 %v19188_v10  ;;  %v19232_v10 = vld [vmem:[#allocation5 + $0xae4] ss:$12 sps:$4 sm:$0xff]  }
 0x237   :  { %12500 = vmatpush1.bf16.msra.mxu0 %v19191_v11  ;;  %12157 = vmatprep.subr.bf16.mxu1 %v19196_v12  ;;  %v19235_v11 = vld [vmem:[#allocation5 + $0x16e4] ss:$12 sps:$4 sm:$0xff]   ;;  %v19230_v12 = vld [vmem:[#allocation5 + $0xae0] ss:$12 sps:$4 sm:$0xff]  }
 0x238   :  { %12501 = vmatprep.subr.bf16.mxu0 %v19199_v13  ;;  %v19233_v13 = vld [vmem:[#allocation5 + $0x16e0] ss:$12 sps:$4 sm:$0xff]  }
 0x23a   :  { %12158 = vmatpush1.bf16.msra.mxu1 %v19194_v16  ;;  %v19238_v16 = vld [vmem:[#allocation5 + $0xafc] ss:$12 sps:$4 sm:$0xff]  }
 0x23b   :  { %12502 = vmatpush1.bf16.msra.mxu0 %v19197_v17  ;;  %12159 = vmatprep.subr.bf16.mxu1 %v19202_v18  ;;  %v19241_v17 = vld [vmem:[#allocation5 + $0x16fc] ss:$12 sps:$4 sm:$0xff]   ;;  %v19236_v18 = vld [vmem:[#allocation5 + $0xaf8] ss:$12 sps:$4 sm:$0xff]  }
 0x23c   :  { %12503 = vmatprep.subr.bf16.mxu0 %v19205_v19  ;;  %v19239_v19 = vld [vmem:[#allocation5 + $0x16f8] ss:$12 sps:$4 sm:$0xff]  }
 0x23e   :  { %12160 = vmatpush1.bf16.msra.mxu1 %v19200_v20  ;;  %v19244_v20 = vld [vmem:[#allocation5 + $0xb14] ss:$12 sps:$4 sm:$0xff]  }
 0x23f   :  { %12504 = vmatpush1.bf16.msra.mxu0 %v19203_v21  ;;  %12172 = vmatprep.subr.bf16.mxu1 %v19208_v26  ;;  %v19247_v21 = vld [vmem:[#allocation5 + $0x1714] ss:$12 sps:$4 sm:$0xff]   ;;  %v19250_v26 = vld [vmem:[#allocation5 + $0xb2c] ss:$12 sps:$4 sm:$0xff]  }
 0x240   :  { %12516 = vmatprep.subr.bf16.mxu0 %v19211_v27  ;;  %v19253_v27 = vld [vmem:[#allocation5 + $0x172c] ss:$12 sps:$4 sm:$0xff]  }
 0x241   :  { %12162 = vmatmul.mubr.bf16.vlgmr.msra.gmra.mrb[0].mxu1 %v21257_v38 }
 0x242   :  { %12506 = vmatmul.mubr.bf16.vlgmr.msra.gmra.mrb[0].mxu0 %v21259_v39  ;;  %12173 = vmatpush1.bf16.msra.mxu1 %v19206_v43  ;;  %v19262_v43 = vld [vmem:[#allocation5 + $0xb5c] ss:$12 sps:$4 sm:$0xff]  }
 0x243   :  { %12517 = vmatpush1.bf16.msra.mxu0 %v19209_v45  ;;  %12174 = vmatprep.subr.bf16.mxu1 %v19214_v48  ;;  %v19265_v45 = vld [vmem:[#allocation5 + $0x175c] ss:$12 sps:$4 sm:$0xff]   ;;  %v19260_v48 = vld [vmem:[#allocation5 + $0xb58] ss:$12 sps:$4 sm:$0xff]  }
 0x244   :  { %12518 = vmatprep.subr.bf16.mxu0 %v19217_v49  ;;  %12204 = vmatprep.mubr.bf16.mxu1 %v21261_v51  ;;  %v19263_v49 = vld [vmem:[#allocation5 + $0x1758] ss:$12 sps:$4 sm:$0xff]  }
 0x245   :  { %12548 = vmatprep.mubr.bf16.mxu0 %v21263_v56 }
 0x246   :  { %12175 = vmatpush1.bf16.msra.mxu1 %v19212_v50  ;;  %v19268_v50 = vld [vmem:[#allocation5 + $0xb74] ss:$12 sps:$4 sm:$0xff]  }
 0x247   :  { %12519 = vmatpush1.bf16.msra.mxu0 %v19215_v57  ;;  %12176 = vmatprep.subr.bf16.mxu1 %v19220_v60  ;;  %v19271_v57 = vld [vmem:[#allocation5 + $0x1774] ss:$12 sps:$4 sm:$0xff]   ;;  %v19266_v60 = vld [vmem:[#allocation5 + $0xb70] ss:$12 sps:$4 sm:$0xff]  }
 0x248   :  { %12520 = vmatprep.subr.bf16.mxu0 %v19223_v61  ;;  %v19269_v61 = vld [vmem:[#allocation5 + $0x1770] ss:$12 sps:$4 sm:$0xff]  }
 0x24a   :  { %12177 = vmatpush1.bf16.msra.mxu1 %v19218_v2  ;;  %v19274_v2 = vld [vmem:[#allocation5 + $0xb8c] ss:$12 sps:$4 sm:$0xff]  }
 0x24b   :  { %12521 = vmatpush1.bf16.msra.mxu0 %v19221_v3  ;;  %12178 = vmatprep.subr.bf16.mxu1 %v19226_v4  ;;  %v19277_v3 = vld [vmem:[#allocation5 + $0x178c] ss:$12 sps:$4 sm:$0xff]   ;;  %v19272_v4 = vld [vmem:[#allocation5 + $0xb88] ss:$12 sps:$4 sm:$0xff]  }
 0x24c   :  { %12522 = vmatprep.subr.bf16.mxu0 %v19229_v5  ;;  %v19275_v5 = vld [vmem:[#allocation5 + $0x1788] ss:$12 sps:$4 sm:$0xff]  }
 0x24e   :  { %12179 = vmatpush1.bf16.msra.mxu1 %v19224_v8  ;;  %v19280_v8 = vld [vmem:[#allocation5 + $0xba4] ss:$12 sps:$4 sm:$0xff]  }
 0x24f   :  { %12523 = vmatpush1.bf16.msra.mxu0 %v19227_v9  ;;  %12180 = vmatprep.subr.bf16.mxu1 %v19232_v10  ;;  %v19283_v9 = vld [vmem:[#allocation5 + $0x17a4] ss:$12 sps:$4 sm:$0xff]   ;;  %v19278_v10 = vld [vmem:[#allocation5 + $0xba0] ss:$12 sps:$4 sm:$0xff]  }
 0x250   :  { %12524 = vmatprep.subr.bf16.mxu0 %v19235_v11  ;;  %v19281_v11 = vld [vmem:[#allocation5 + $0x17a0] ss:$12 sps:$4 sm:$0xff]  }
 0x252   :  { %12181 = vmatpush1.bf16.msra.mxu1 %v19230_v12  ;;  %v19286_v12 = vld [vmem:[#allocation5 + $0xbbc] ss:$12 sps:$4 sm:$0xff]  }
 0x253   :  { %12525 = vmatpush1.bf16.msra.mxu0 %v19233_v13  ;;  %12182 = vmatprep.subr.bf16.mxu1 %v19238_v16  ;;  %v19289_v13 = vld [vmem:[#allocation5 + $0x17bc] ss:$12 sps:$4 sm:$0xff]   ;;  %v19284_v16 = vld [vmem:[#allocation5 + $0xbb8] ss:$12 sps:$4 sm:$0xff]  }
 0x254   :  { %12526 = vmatprep.subr.bf16.mxu0 %v19241_v17  ;;  %v19287_v17 = vld [vmem:[#allocation5 + $0x17b8] ss:$12 sps:$4 sm:$0xff]  }
 0x256   :  { %12183 = vmatpush1.bf16.msra.mxu1 %v19236_v18  ;;  %v19292_v18 = vld [vmem:[#allocation5 + $0xbd4] ss:$12 sps:$4 sm:$0xff]  }
 0x257   :  { %12527 = vmatpush1.bf16.msra.mxu0 %v19239_v19  ;;  %12184 = vmatprep.subr.bf16.mxu1 %v19244_v20  ;;  %v19295_v19 = vld [vmem:[#allocation5 + $0x17d4] ss:$12 sps:$4 sm:$0xff]   ;;  %v19290_v20 = vld [vmem:[#allocation5 + $0xbd0] ss:$12 sps:$4 sm:$0xff]  }
 0x258   :  { %12528 = vmatprep.subr.bf16.mxu0 %v19247_v21  ;;  %v19293_v21 = vld [vmem:[#allocation5 + $0x17d0] ss:$12 sps:$4 sm:$0xff]  }
 0x25a   :  { %12185 = vmatpush1.bf16.msra.mxu1 %v19242_v24  ;;  %v19298_v24 = vld [vmem:[#allocation5 + $0xbec] ss:$12 sps:$4 sm:$0xff]  }
 0x25b   :  { %12529 = vmatpush1.bf16.msra.mxu0 %v19245_v25  ;;  %12186 = vmatprep.subr.bf16.mxu1 %v19250_v26  ;;  %v19301_v25 = vld [vmem:[#allocation5 + $0x17ec] ss:$12 sps:$4 sm:$0xff]   ;;  %v19296_v26 = vld [vmem:[#allocation5 + $0xbe8] ss:$12 sps:$4 sm:$0xff]  }
 0x25c   :  { %12530 = vmatprep.subr.bf16.mxu0 %v19253_v27  ;;  %v19299_v27 = vld [vmem:[#allocation5 + $0x17e8] ss:$12 sps:$4 sm:$0xff]  }
 0x25e   :  { %12187 = vmatpush1.bf16.msra.mxu1 %v19248_v32  ;;  %v132_v32 = vld [vmem:[#allocation2 + $0x70] sm:$0xff] }
 0x25f   :  { %12531 = vmatpush1.bf16.msra.mxu0 %v19251_v33  ;;  %12188 = vmatprep.subr.bf16.mxu1 %v19256_v34  ;;  %v204_v33 = vld [vmem:[#allocation2 + $0x2b0] sm:$0xf] }
 0x260   :  { %12532 = vmatprep.subr.bf16.mxu0 %v19259_v35  ;;  %v19304_v34 = vld [vmem:[#allocation5 + $0x1804] ss:$12 sps:$4 sm:$0xff]   ;;  %v19305_v35 = vld [vmem:[#allocation5 + $0xc8] ss:$12 sps:$4 sm:$0xff]  }
 0x262   :  { %12189 = vmatpush1.bf16.msra.mxu1 %v19254_v36  ;;  %v148_v36 = vld [vmem:[#allocation2 + $0xf0] sm:$0xff] }
 0x263   :  { %12533 = vmatpush1.bf16.msra.mxu0 %v19257_v37  ;;  %12190 = vmatprep.subr.bf16.mxu1 %v19262_v43  ;;  %v220_v37 = vld [vmem:[#allocation2 + $0x330] sm:$0xf]  ;;  %v151_v43 = vld [vmem:[#allocation2 + $0x108] sm:$0xff] }
 0x264   :  { %12534 = vmatprep.subr.bf16.mxu0 %v19265_v45  ;;  %v223_v45 = vld [vmem:[#allocation2 + $0x348] sm:$0xf] }
 0x266   :  { %12191 = vmatpush1.bf16.msra.mxu1 %v19260_v48  ;;  %v21269_v48 = vpack.c.bf16 %v204_v33, %v132_v32  ;;  %v19332_v32 = vld [vmem:[#allocation5 + $0x1890] ss:$12 sps:$4 sm:$0xff]   ;;  %v19336_v33 = vld [vmem:[#allocation5 + $0x98] ss:$12 sps:$4 sm:$0xff]  }
 0x267   :  { %12535 = vmatpush1.bf16.msra.mxu0 %v19263_v49  ;;  %12192 = vmatprep.subr.bf16.mxu1 %v19268_v50  ;;  %v21271_v49 = vpack.c.bf16 %v220_v37, %v148_v36  ;;  %v19302_v50 = vld [vmem:[#allocation5 + $0x1800] ss:$12 sps:$4 sm:$0xff]   ;;  %v19337_v36 = vld [vmem:[#allocation5 + $0x18a8] ss:$12 sps:$4 sm:$0xff]   ;;  %v19341_v37 = vld [vmem:[#allocation5 + $0xb0] ss:$12 sps:$4 sm:$0xff]  }
 0x268   :  { %12536 = vmatprep.subr.bf16.mxu0 %v19271_v57  ;;  %v19306_v57 = vld [vmem:[#allocation5 + $0x8] ss:$12 sps:$4 sm:$0xff]  }
 0x26a   :  { %12193 = vmatpush1.bf16.msra.mxu1 %v19266_v60  ;;  %v19309_v60 = vld [vmem:[#allocation5 + $0x181c] ss:$12 sps:$4 sm:$0xff]  }
 0x26b   :  { %12537 = vmatpush1.bf16.msra.mxu0 %v19269_v61  ;;  %12194 = vmatprep.subr.bf16.mxu1 %v19274_v2  ;;  %v19310_v61 = vld [vmem:[#allocation5 + $0xe0] ss:$12 sps:$4 sm:$0xff]   ;;  %v19307_v2 = vld [vmem:[#allocation5 + $0x1818] ss:$12 sps:$4 sm:$0xff]  }
 0x26c   :  { %12538 = vmatprep.subr.bf16.mxu0 %v19277_v3  ;;  %v21273_v3 = vpack.c.bf16 %v223_v45, %v151_v43  ;;  %v19344_v43 = vld [vmem:[#allocation5 + $0x18c4] ss:$12 sps:$4 sm:$0xff]   ;;  %v19345_v45 = vld [vmem:[#allocation5 + $0x248] ss:$12 sps:$4 sm:$0xff]  }
 0x26e   :  { %12195 = vmatpush1.bf16.msra.mxu1 %v19272_v4  ;;  %v19311_v4 = vld [vmem:[#allocation5 + $0x20] ss:$12 sps:$4 sm:$0xff]  }
 0x26f   :  { %12539 = vmatpush1.bf16.msra.mxu0 %v19275_v5  ;;  %12196 = vmatprep.subr.bf16.mxu1 %v19280_v8  ;;  %v19314_v5 = vld [vmem:[#allocation5 + $0x1834] ss:$12 sps:$4 sm:$0xff]   ;;  %v19315_v8 = vld [vmem:[#allocation5 + $0xf8] ss:$12 sps:$4 sm:$0xff]  }
 0x270   :  { %12540 = vmatprep.subr.bf16.mxu0 %v19283_v9  ;;  %v19312_v9 = vld [vmem:[#allocation5 + $0x1830] ss:$12 sps:$4 sm:$0xff]  }
 0x272   :  { %12197 = vmatpush1.bf16.msra.mxu1 %v19278_v10  ;;  %v19316_v10 = vld [vmem:[#allocation5 + $0x38] ss:$12 sps:$4 sm:$0xff]  }
 0x273   :  { %12541 = vmatpush1.bf16.msra.mxu0 %v19281_v11  ;;  %12198 = vmatprep.subr.bf16.mxu1 %v19286_v12  ;;  %v19319_v11 = vld [vmem:[#allocation5 + $0x184c] ss:$12 sps:$4 sm:$0xff]   ;;  %v19320_v12 = vld [vmem:[#allocation5 + $0x110] ss:$12 sps:$4 sm:$0xff]  }
 0x274   :  { %12542 = vmatprep.subr.bf16.mxu0 %v19289_v13  ;;  %v19317_v13 = vld [vmem:[#allocation5 + $0x1848] ss:$12 sps:$4 sm:$0xff]  }
 0x276   :  { %12199 = vmatpush1.bf16.msra.mxu1 %v19284_v16  ;;  %v19321_v16 = vld [vmem:[#allocation5 + $0x50] ss:$12 sps:$4 sm:$0xff]  }
 0x277   :  { %12543 = vmatpush1.bf16.msra.mxu0 %v19287_v17  ;;  %12200 = vmatprep.subr.bf16.mxu1 %v19292_v18  ;;  %v19324_v17 = vld [vmem:[#allocation5 + $0x1864] ss:$12 sps:$4 sm:$0xff]   ;;  %v19325_v18 = vld [vmem:[#allocation5 + $0x128] ss:$12 sps:$4 sm:$0xff]  }
 0x278   :  { %12544 = vmatprep.subr.bf16.mxu0 %v19295_v19  ;;  %v19322_v19 = vld [vmem:[#allocation5 + $0x1860] ss:$12 sps:$4 sm:$0xff]  }
 0x27a   :  { %12201 = vmatpush1.bf16.msra.mxu1 %v19290_v20  ;;  %v19329_v20 = vld [vmem:[#allocation5 + $0x187c] ss:$12 sps:$4 sm:$0xff]  }
 0x27b   :  { %12545 = vmatpush1.bf16.msra.mxu0 %v19293_v21  ;;  %12202 = vmatprep.subr.bf16.mxu1 %v19298_v24  ;;  %v19330_v21 = vld [vmem:[#allocation5 + $0x140] ss:$12 sps:$4 sm:$0xff]   ;;  %v19327_v24 = vld [vmem:[#allocation5 + $0x1878] ss:$12 sps:$4 sm:$0xff]  }
 0x27c   :  { %12546 = vmatprep.subr.bf16.mxu0 %v19301_v25  ;;  %v19331_v25 = vld [vmem:[#allocation5 + $0x80] ss:$12 sps:$4 sm:$0xff]  }
 0x27e   :  { %12203 = vmatpush1.bf16.msra.mxu1 %v19296_v26  ;;  %v19334_v26 = vld [vmem:[#allocation5 + $0x1894] ss:$12 sps:$4 sm:$0xff]  }
 0x27f   :  { %12547 = vmatpush1.bf16.msra.mxu0 %v19299_v27  ;;  %17308 = vmatprep.subr.bf16.mxu1 %v19305_v35  ;;  %v19335_v27 = vld [vmem:[#allocation5 + $0x158] ss:$12 sps:$4 sm:$0xff]   ;;  %v19340_v35 = vld [vmem:[#allocation5 + $0x170] ss:$12 sps:$4 sm:$0xff]  }
 0x280   :  { %12559 = vmatprep.subr.bf16.mxu0 %v19304_v34  ;;  %v19339_v34 = vld [vmem:[#allocation5 + $0x18ac] ss:$12 sps:$4 sm:$0xff]  }
 0x281   :  { %12205 = vmatmul.mubr.bf16.vlgmr.msra.gmra.mrb[0].mxu1 %v21269_v48 }
 0x282   :  { %12549 = vmatmul.mubr.bf16.vlgmr.msra.gmra.mrb[0].mxu0 %v21271_v49  ;;  %17309 = vmatpush3.bf16.msra.mxu1 %v19306_v57  ;;  %v19346_v57 = vld [vmem:[#allocation5 + $0x188] ss:$12 sps:$4 sm:$0xff]  }
 0x283   :  { %12560 = vmatpush1.bf16.msra.mxu0 %v19302_v50  ;;  %17310 = vmatprep.subr.bf16.mxu1 %v19310_v61  ;;  %v19342_v50 = vld [vmem:[#allocation5 + $0x18c0] ss:$12 sps:$4 sm:$0xff]  }
 0x284   :  { %12561 = vmatprep.subr.bf16.mxu0 %v19309_v60  ;;  %13451 = vmatprep.mubr.bf16.mxu1 %v21179_v52  ;;  %v19326_v52 = vld [vmem:[#allocation5 + $0x68] ss:$12 sps:$4 sm:$0xff]   ;;  %v19350_v61 = vld [vmem:[#allocation5 + $0x260] ss:$12 sps:$4 sm:$0xff]  }
 0x285   :  { %12591 = vmatprep.mubr.bf16.mxu0 %v21273_v3  ;;  %v19349_v60 = vld [vmem:[#allocation5 + $0x18dc] ss:$12 sps:$4 sm:$0xff]  }
 0x286   :  { %17311 = vmatpush3.bf16.msra.mxu1 %v19311_v4  ;;  %v19351_v4 = vld [vmem:[#allocation5 + $0x1a0] ss:$12 sps:$4 sm:$0xff]  }
 0x287   :  { %12562 = vmatpush1.bf16.msra.mxu0 %v19307_v2  ;;  %17312 = vmatprep.subr.bf16.mxu1 %v19315_v8  ;;  %v19347_v2 = vld [vmem:[#allocation5 + $0x18d8] ss:$12 sps:$4 sm:$0xff]  }
 0x288   :  { %12563 = vmatprep.subr.bf16.mxu0 %v19314_v5  ;;  %v19354_v5 = vld [vmem:[#allocation5 + $0x18f4] ss:$12 sps:$4 sm:$0xff]   ;;  %v19355_v8 = vld [vmem:[#allocation5 + $0x278] ss:$12 sps:$4 sm:$0xff]  }
 0x28a   :  { %17313 = vmatpush3.bf16.msra.mxu1 %v19316_v10  ;;  %v19356_v10 = vld [vmem:[#allocation5 + $0x1b8] ss:$12 sps:$4 sm:$0xff]  }
 0x28b   :  { %12564 = vmatpush1.bf16.msra.mxu0 %v19312_v9  ;;  %17314 = vmatprep.subr.bf16.mxu1 %v19320_v12  ;;  %v19352_v9 = vld [vmem:[#allocation5 + $0x18f0] ss:$12 sps:$4 sm:$0xff]  }
 0x28c   :  { %12565 = vmatprep.subr.bf16.mxu0 %v19319_v11  ;;  %v19359_v11 = vld [vmem:[#allocation5 + $0x190c] ss:$12 sps:$4 sm:$0xff]   ;;  %v19360_v12 = vld [vmem:[#allocation5 + $0x290] ss:$12 sps:$4 sm:$0xff]  }
 0x28e   :  { %17315 = vmatpush3.bf16.msra.mxu1 %v19321_v16  ;;  %v19364_v16 = vld [vmem:[#allocation5 + $0x1924] ss:$12 sps:$4 sm:$0xff]  }
 0x28f   :  { %12566 = vmatpush1.bf16.msra.mxu0 %v19317_v13  ;;  %17316 = vmatprep.subr.bf16.mxu1 %v19325_v18  ;;  %v19357_v13 = vld [vmem:[#allocation5 + $0x1908] ss:$12 sps:$4 sm:$0xff]   ;;  %v19362_v18 = vld [vmem:[#allocation5 + $0x1920] ss:$12 sps:$4 sm:$0xff]  }
 0x290   :  { %12567 = vmatprep.subr.bf16.mxu0 %v19324_v17  ;;  %v19365_v17 = vld [vmem:[#allocation5 + $0x2a8] ss:$12 sps:$4 sm:$0xff]  }
 0x292   :  { %17317 = vmatpush3.bf16.msra.mxu1 %v19326_v52  ;;  %v19370_v52 = vld [vmem:[#allocation5 + $0x2c0] ss:$12 sps:$4 sm:$0xff]  }
 0x293   :  { %12568 = vmatpush1.bf16.msra.mxu0 %v19322_v19  ;;  %17318 = vmatprep.subr.bf16.mxu1 %v19330_v21  ;;  %v19366_v19 = vld [vmem:[#allocation5 + $0x1e8] ss:$12 sps:$4 sm:$0xff]   ;;  %v19371_v21 = vld [vmem:[#allocation5 + $0x200] ss:$12 sps:$4 sm:$0xff]  }
 0x294   :  { %12569 = vmatprep.subr.bf16.mxu0 %v19329_v20  ;;  %v19367_v20 = vld [vmem:[#allocation5 + $0x1938] ss:$12 sps:$4 sm:$0xff]  }
 0x296   :  { %17319 = vmatpush3.bf16.msra.mxu1 %v19331_v25  ;;  %v19375_v25 = vld [vmem:[#allocation5 + $0x2d8] ss:$12 sps:$4 sm:$0xff]  }
 0x297   :  { %12570 = vmatpush1.bf16.msra.mxu0 %v19327_v24  ;;  %17320 = vmatprep.subr.bf16.mxu1 %v19335_v27  ;;  %v19374_v24 = vld [vmem:[#allocation5 + $0x1954] ss:$12 sps:$4 sm:$0xff]   ;;  %v19376_v27 = vld [vmem:[#allocation5 + $0x218] ss:$12 sps:$4 sm:$0xff]  }
 0x298   :  { %12571 = vmatprep.subr.bf16.mxu0 %v19334_v26  ;;  %v19372_v26 = vld [vmem:[#allocation5 + $0x1950] ss:$12 sps:$4 sm:$0xff]  }
 0x29a   :  { %17321 = vmatpush3.bf16.msra.mxu1 %v19336_v33  ;;  %v19380_v33 = vld [vmem:[#allocation5 + $0x2f0] ss:$12 sps:$4 sm:$0xff]  }
 0x29b   :  { %12572 = vmatpush1.bf16.msra.mxu0 %v19332_v32  ;;  %17322 = vmatprep.subr.bf16.mxu1 %v19340_v35  ;;  %v19379_v32 = vld [vmem:[#allocation5 + $0x196c] ss:$12 sps:$4 sm:$0xff]   ;;  %v19381_v35 = vld [vmem:[#allocation5 + $0x230] ss:$12 sps:$4 sm:$0xff]  }
 0x29c   :  { %12573 = vmatprep.subr.bf16.mxu0 %v19339_v34  ;;  %v19377_v34 = vld [vmem:[#allocation5 + $0x1968] ss:$12 sps:$4 sm:$0xff]  }
 0x29e   :  { %17323 = vmatpush3.bf16.msra.mxu1 %v19341_v37  ;;  %v19385_v37 = vld [vmem:[#allocation5 + $0x3c8] ss:$12 sps:$4 sm:$0xff]  }
 0x29f   :  { %12574 = vmatpush1.bf16.msra.mxu0 %v19337_v36  ;;  %17330 = vmatprep.subr.bf16.mxu1 %v19345_v45  ;;  %v19384_v36 = vld [vmem:[#allocation5 + $0x1984] ss:$12 sps:$4 sm:$0xff]   ;;  %v222_v45 = vld [vmem:[#allocation2 + $0x340] sm:$0xf] }
 0x2a0   :  { %12575 = vmatprep.subr.bf16.mxu0 %v19344_v43  ;;  %v150_v43 = vld [vmem:[#allocation2 + $0x100] sm:$0xff] }
 0x2a1   :  { %13452 = vmatmul.mubr.bf16.vlgmr.msra.gmra.mrb[4].mxu1 %v21185_v14  ;;  %v19361_v14 = vld [vmem:[#allocation5 + $0x1d0] ss:$12 sps:$4 sm:$0xff]  }
 0x2a2   :  { %17331 = vmatpush3.bf16.msra.mxu1 %v19346_v57  ;;  %13492 = vmatprep.mubr.bf16.mxu1 %v21191_v44  ;;  %v19369_v44 = vld [vmem:[#allocation5 + $0x193c] ss:$12 sps:$4 sm:$0xff]   ;;  %v225_v57 = vld [vmem:[#allocation2 + $0x358] sm:$0xf] }
 0x2a3   :  { %12576 = vmatpush1.bf16.msra.mxu0 %v19342_v50  ;;  %17332 = vmatprep.subr.bf16.mxu1 %v19350_v61  ;;  %v153_v50 = vld [vmem:[#allocation2 + $0x118] sm:$0xff]  ;;  %v19382_v61 = vld [vmem:[#allocation5 + $0x1980] ss:$12 sps:$4 sm:$0xff]  }
 0x2a4   :  { %12577 = vmatprep.subr.bf16.mxu0 %v19349_v60  ;;  %v21281_v60 = vpack.c.bf16 %v222_v45, %v150_v43  ;;  %v19424_v43 = vld [vmem:[#allocation5 + $0x1a44] ss:$12 sps:$4 sm:$0xff]   ;;  %v19425_v45 = vld [vmem:[#allocation5 + $0x548] ss:$12 sps:$4 sm:$0xff]  }
 0x2a6   :  { %17333 = vmatpush3.bf16.msra.mxu1 %v19351_v4  ;;  %v19389_v4 = vld [vmem:[#allocation5 + $0x199c] ss:$12 sps:$4 sm:$0xff]  }
 0x2a7   :  { %12578 = vmatpush1.bf16.msra.mxu0 %v19347_v2  ;;  %17334 = vmatprep.subr.bf16.mxu1 %v19355_v8  ;;  %v19386_v2 = vld [vmem:[#allocation5 + $0x308] ss:$12 sps:$4 sm:$0xff]   ;;  %v19387_v8 = vld [vmem:[#allocation5 + $0x1998] ss:$12 sps:$4 sm:$0xff]  }
 0x2a8   :  { %12579 = vmatprep.subr.bf16.mxu0 %v19354_v5  ;;  %v19390_v5 = vld [vmem:[#allocation5 + $0x3e0] ss:$12 sps:$4 sm:$0xff]  }
 0x2aa   :  { %17335 = vmatpush3.bf16.msra.mxu1 %v19356_v10  ;;  %v19391_v10 = vld [vmem:[#allocation5 + $0x320] ss:$12 sps:$4 sm:$0xff]  }
 0x2ab   :  { %12580 = vmatpush1.bf16.msra.mxu0 %v19352_v9  ;;  %17336 = vmatprep.subr.bf16.mxu1 %v19360_v12  ;;  %v21283_v9 = vpack.c.bf16 %v225_v57, %v153_v50  ;;  %v19395_v12 = vld [vmem:[#allocation5 + $0x3f8] ss:$12 sps:$4 sm:$0xff]   ;;  %v19422_v50 = vld [vmem:[#allocation5 + $0x1a40] ss:$12 sps:$4 sm:$0xff]   ;;  %v19426_v57 = vld [vmem:[#allocation5 + $0x488] ss:$12 sps:$4 sm:$0xff]  }
 0x2ac   :  { %12581 = vmatprep.subr.bf16.mxu0 %v19359_v11  ;;  %v19394_v11 = vld [vmem:[#allocation5 + $0x19b4] ss:$12 sps:$4 sm:$0xff]  }
 0x2ae   :  { %17337 = vmatpush3.bf16.msra.mxu1 %v19361_v14  ;;  %v19396_v14 = vld [vmem:[#allocation5 + $0x338] ss:$12 sps:$4 sm:$0xff]  }
 0x2af   :  { %12582 = vmatpush1.bf16.msra.mxu0 %v19357_v13  ;;  %17338 = vmatprep.subr.bf16.mxu1 %v19365_v17  ;;  %v19392_v13 = vld [vmem:[#allocation5 + $0x19b0] ss:$12 sps:$4 sm:$0xff]  }
 0x2b0   :  { %12583 = vmatprep.subr.bf16.mxu0 %v19364_v16  ;;  %v19399_v16 = vld [vmem:[#allocation5 + $0x19cc] ss:$12 sps:$4 sm:$0xff]   ;;  %v19400_v17 = vld [vmem:[#allocation5 + $0x410] ss:$12 sps:$4 sm:$0xff]  }
 0x2b2   :  { %17339 = vmatpush3.bf16.msra.mxu1 %v19366_v19  ;;  %v19404_v19 = vld [vmem:[#allocation5 + $0x19e4] ss:$12 sps:$4 sm:$0xff]  }
 0x2b3   :  { %12584 = vmatpush1.bf16.msra.mxu0 %v19362_v18  ;;  %17340 = vmatprep.subr.bf16.mxu1 %v19370_v52  ;;  %v19401_v18 = vld [vmem:[#allocation5 + $0x350] ss:$12 sps:$4 sm:$0xff]   ;;  %v19402_v52 = vld [vmem:[#allocation5 + $0x19e0] ss:$12 sps:$4 sm:$0xff]  }
 0x2b4   :  { %12585 = vmatprep.subr.bf16.mxu0 %v19369_v44  ;;  %v19405_v44 = vld [vmem:[#allocation5 + $0x428] ss:$12 sps:$4 sm:$0xff]  }
 0x2b6   :  { %17341 = vmatpush3.bf16.msra.mxu1 %v19371_v21  ;;  %v19410_v21 = vld [vmem:[#allocation5 + $0x440] ss:$12 sps:$4 sm:$0xff]  }
 0x2b7   :  { %12586 = vmatpush1.bf16.msra.mxu0 %v19367_v20  ;;  %17342 = vmatprep.subr.bf16.mxu1 %v19375_v25  ;;  %v19409_v20 = vld [vmem:[#allocation5 + $0x19fc] ss:$12 sps:$4 sm:$0xff]   ;;  %v19411_v25 = vld [vmem:[#allocation5 + $0x380] ss:$12 sps:$4 sm:$0xff]  }
 0x2b8   :  { %12587 = vmatprep.subr.bf16.mxu0 %v19374_v24  ;;  %v19407_v24 = vld [vmem:[#allocation5 + $0x19f8] ss:$12 sps:$4 sm:$0xff]  }
 0x2ba   :  { %17343 = vmatpush3.bf16.msra.mxu1 %v19376_v27  ;;  %v19415_v27 = vld [vmem:[#allocation5 + $0x458] ss:$12 sps:$4 sm:$0xff]  }
 0x2bb   :  { %12588 = vmatpush1.bf16.msra.mxu0 %v19372_v26  ;;  %17344 = vmatprep.subr.bf16.mxu1 %v19380_v33  ;;  %v19414_v26 = vld [vmem:[#allocation5 + $0x1a14] ss:$12 sps:$4 sm:$0xff]   ;;  %v19416_v33 = vld [vmem:[#allocation5 + $0x398] ss:$12 sps:$4 sm:$0xff]  }
 0x2bc   :  { %12589 = vmatprep.subr.bf16.mxu0 %v19379_v32  ;;  %v19412_v32 = vld [vmem:[#allocation5 + $0x1a10] ss:$12 sps:$4 sm:$0xff]  }
 0x2be   :  { %17345 = vmatpush3.bf16.msra.mxu1 %v19381_v35  ;;  %v19420_v35 = vld [vmem:[#allocation5 + $0x470] ss:$12 sps:$4 sm:$0xff]  }
 0x2bf   :  { %12590 = vmatpush1.bf16.msra.mxu0 %v19377_v34  ;;  %17352 = vmatprep.subr.bf16.mxu1 %v19385_v37  ;;  %v19419_v34 = vld [vmem:[#allocation5 + $0x1a2c] ss:$12 sps:$4 sm:$0xff]   ;;  %v19421_v37 = vld [vmem:[#allocation5 + $0x3b0] ss:$12 sps:$4 sm:$0xff]  }
 0x2c0   :  { %12602 = vmatprep.subr.bf16.mxu0 %v19384_v36  ;;  %v19417_v36 = vld [vmem:[#allocation5 + $0x1a28] ss:$12 sps:$4 sm:$0xff]  }
 0x2c1   :  { %13493 = vmatmul.mubr.bf16.vlgmr.msra.gmra.mrb[8].mxu1 %v21197_v30  ;;  %v19397_v30 = vld [vmem:[#allocation5 + $0x19c8] ss:$12 sps:$4 sm:$0xff]  }
 0x2c2   :  { %12592 = vmatmul.mubr.bf16.vlgmr.msra.gmra.mrb[0].mxu0 %v21281_v60  ;;  %17353 = vmatpush3.bf16.msra.mxu1 %v19386_v2  ;;  %v19430_v2 = vld [vmem:[#allocation5 + $0x560] ss:$12 sps:$4 sm:$0xff]  }
 0x2c3   :  { %12603 = vmatpush1.bf16.msra.mxu0 %v19382_v61  ;;  %17354 = vmatprep.subr.bf16.mxu1 %v19390_v5  ;;  %v19429_v61 = vld [vmem:[#allocation5 + $0x1a5c] ss:$12 sps:$4 sm:$0xff]   ;;  %v19431_v5 = vld [vmem:[#allocation5 + $0x4a0] ss:$12 sps:$4 sm:$0xff]  }
 0x2c4   :  { %12604 = vmatprep.subr.bf16.mxu0 %v19389_v4  ;;  %13533 = vmatprep.mubr.bf16.mxu1 %v21203_v40  ;;  %v19406_v40 = vld [vmem:[#allocation5 + $0x368] ss:$12 sps:$4 sm:$0xff]   ;;  %v19427_v4 = vld [vmem:[#allocation5 + $0x1a58] ss:$12 sps:$4 sm:$0xff]  }
 0x2c5   :  { %12634 = vmatprep.mubr.bf16.mxu0 %v21283_v9 }
 0x2c6   :  { %17355 = vmatpush3.bf16.msra.mxu1 %v19391_v10  ;;  %v19435_v10 = vld [vmem:[#allocation5 + $0x578] ss:$12 sps:$4 sm:$0xff]  }
 0x2c7   :  { %12605 = vmatpush1.bf16.msra.mxu0 %v19387_v8  ;;  %17356 = vmatprep.subr.bf16.mxu1 %v19395_v12  ;;  %v19434_v8 = vld [vmem:[#allocation5 + $0x1a74] ss:$12 sps:$4 sm:$0xff]   ;;  %v19436_v12 = vld [vmem:[#allocation5 + $0x4b8] ss:$12 sps:$4 sm:$0xff]  }
 0x2c8   :  { %12606 = vmatprep.subr.bf16.mxu0 %v19394_v11  ;;  %v19432_v11 = vld [vmem:[#allocation5 + $0x1a70] ss:$12 sps:$4 sm:$0xff]  }
 0x2ca   :  { %17357 = vmatpush3.bf16.msra.mxu1 %v19396_v14  ;;  %v19440_v14 = vld [vmem:[#allocation5 + $0x590] ss:$12 sps:$4 sm:$0xff]  }
 0x2cb   :  { %12607 = vmatpush1.bf16.msra.mxu0 %v19392_v13  ;;  %17358 = vmatprep.subr.bf16.mxu1 %v19400_v17  ;;  %v19439_v13 = vld [vmem:[#allocation5 + $0x1a8c] ss:$12 sps:$4 sm:$0xff]   ;;  %v19444_v17 = vld [vmem:[#allocation5 + $0x1aa4] ss:$12 sps:$4 sm:$0xff]  }
 0x2cc   :  { %12608 = vmatprep.subr.bf16.mxu0 %v19399_v16  ;;  %v19437_v16 = vld [vmem:[#allocation5 + $0x1a88] ss:$12 sps:$4 sm:$0xff]  }
 0x2ce   :  { %17359 = vmatpush3.bf16.msra.mxu1 %v19401_v18  ;;  %v19442_v18 = vld [vmem:[#allocation5 + $0x1aa0] ss:$12 sps:$4 sm:$0xff]  }
 0x2cf   :  { %12609 = vmatpush1.bf16.msra.mxu0 %v19397_v30  ;;  %17360 = vmatprep.subr.bf16.mxu1 %v19405_v44  ;;  %v19445_v30 = vld [vmem:[#allocation5 + $0x5a8] ss:$12 sps:$4 sm:$0xff]   ;;  %v19450_v44 = vld [vmem:[#allocation5 + $0x5c0] ss:$12 sps:$4 sm:$0xff]  }
 0x2d0   :  { %12610 = vmatprep.subr.bf16.mxu0 %v19404_v19  ;;  %v19446_v19 = vld [vmem:[#allocation5 + $0x4e8] ss:$12 sps:$4 sm:$0xff]  }
 0x2d2   :  { %17361 = vmatpush3.bf16.msra.mxu1 %v19406_v40  ;;  %v19451_v40 = vld [vmem:[#allocation5 + $0x500] ss:$12 sps:$4 sm:$0xff]  }
 0x2d3   :  { %12611 = vmatpush1.bf16.msra.mxu0 %v19402_v52  ;;  %17362 = vmatprep.subr.bf16.mxu1 %v19410_v21  ;;  %v19447_v52 = vld [vmem:[#allocation5 + $0x1ab8] ss:$12 sps:$4 sm:$0xff]  }
 0x2d4   :  { %12612 = vmatprep.subr.bf16.mxu0 %v19409_v20  ;;  %v19454_v20 = vld [vmem:[#allocation5 + $0x1ad4] ss:$12 sps:$4 sm:$0xff]   ;;  %v19455_v21 = vld [vmem:[#allocation5 + $0x5d8] ss:$12 sps:$4 sm:$0xff]  }
 0x2d6   :  { %17363 = vmatpush3.bf16.msra.mxu1 %v19411_v25  ;;  %v19456_v25 = vld [vmem:[#allocation5 + $0x518] ss:$12 sps:$4 sm:$0xff]  }
 0x2d7   :  { %12613 = vmatpush1.bf16.msra.mxu0 %v19407_v24  ;;  %17364 = vmatprep.subr.bf16.mxu1 %v19415_v27  ;;  %v19452_v24 = vld [vmem:[#allocation5 + $0x1ad0] ss:$12 sps:$4 sm:$0xff]  }
 0x2d8   :  { %12614 = vmatprep.subr.bf16.mxu0 %v19414_v26  ;;  %v19459_v26 = vld [vmem:[#allocation5 + $0x1aec] ss:$12 sps:$4 sm:$0xff]   ;;  %v19460_v27 = vld [vmem:[#allocation5 + $0x5f0] ss:$12 sps:$4 sm:$0xff]  }
 0x2da   :  { %17365 = vmatpush3.bf16.msra.mxu1 %v19416_v33  ;;  %v19461_v33 = vld [vmem:[#allocation5 + $0x530] ss:$12 sps:$4 sm:$0xff]  }
 0x2db   :  { %12615 = vmatpush1.bf16.msra.mxu0 %v19412_v32  ;;  %17366 = vmatprep.subr.bf16.mxu1 %v19420_v35  ;;  %v19457_v32 = vld [vmem:[#allocation5 + $0x1ae8] ss:$12 sps:$4 sm:$0xff]  }
 0x2dc   :  { %12616 = vmatprep.subr.bf16.mxu0 %v19419_v34  ;;  %v19464_v34 = vld [vmem:[#allocation5 + $0x1b04] ss:$12 sps:$4 sm:$0xff]   ;;  %v19465_v35 = vld [vmem:[#allocation5 + $0x6c8] ss:$12 sps:$4 sm:$0xff]  }
 0x2de   :  { %17367 = vmatpush3.bf16.msra.mxu1 %v19421_v37  ;;  %v224_v37 = vld [vmem:[#allocation2 + $0x350] sm:$0xf] }
 0x2df   :  { %12617 = vmatpush1.bf16.msra.mxu0 %v19417_v36  ;;  %17374 = vmatprep.subr.bf16.mxu1 %v19425_v45  ;;  %v152_v36 = vld [vmem:[#allocation2 + $0x110] sm:$0xff]  ;;  %v227_v45 = vld [vmem:[#allocation2 + $0x368] sm:$0xf] }
 0x2e0   :  { %12618 = vmatprep.subr.bf16.mxu0 %v19424_v43  ;;  %v155_v43 = vld [vmem:[#allocation2 + $0x128] sm:$0xff] }
 0x2e1   :  { %13534 = vmatmul.mubr.bf16.vlgmr.msra.gmra.mrb[12].mxu1 %v21209_v58  ;;  %v19441_v58 = vld [vmem:[#allocation5 + $0x4d0] ss:$12 sps:$4 sm:$0xff]  }
 0x2e2   :  { %17375 = vmatpush3.bf16.msra.mxu1 %v19426_v57  ;;  %13574 = vmatprep.mubr.bf16.mxu1 %v21213_v0  ;;  %v19449_v0 = vld [vmem:[#allocation5 + $0x1abc] ss:$12 sps:$4 sm:$0xff]   ;;  %v19462_v57 = vld [vmem:[#allocation5 + $0x1b00] ss:$12 sps:$4 sm:$0xff]  }
 0x2e3   :  { %12619 = vmatpush1.bf16.msra.mxu0 %v19422_v50  ;;  %17376 = vmatprep.subr.bf16.mxu1 %v19430_v2  ;;  %v21291_v50 = vpack.c.bf16 %v224_v37, %v152_v36  ;;  %v19469_v2 = vld [vmem:[#allocation5 + $0x1b1c] ss:$12 sps:$4 sm:$0xff]   ;;  %v19502_v36 = vld [vmem:[#allocation5 + $0x1bc0] ss:$12 sps:$4 sm:$0xff]  }
 0x2e4   :  { %12620 = vmatprep.subr.bf16.mxu0 %v19429_v61  ;;  %v19466_v61 = vld [vmem:[#allocation5 + $0x608] ss:$12 sps:$4 sm:$0xff]  }
 0x2e5   :  { %v19506_v37 = vld [vmem:[#allocation5 + $0x788] ss:$12 sps:$4 sm:$0xff]  }
 0x2e6   :  { %17377 = vmatpush3.bf16.msra.mxu1 %v19431_v5  ;;  %v19467_v5 = vld [vmem:[#allocation5 + $0x1b18] ss:$12 sps:$4 sm:$0xff]  }
 0x2e7   :  { %12621 = vmatpush1.bf16.msra.mxu0 %v19427_v4  ;;  %17378 = vmatprep.subr.bf16.mxu1 %v19435_v10  ;;  %v19470_v4 = vld [vmem:[#allocation5 + $0x6e0] ss:$12 sps:$4 sm:$0xff]  }
 0x2e8   :  { %12622 = vmatprep.subr.bf16.mxu0 %v19434_v8  ;;  %v21293_v8 = vpack.c.bf16 %v227_v45, %v155_v43  ;;  %v19471_v10 = vld [vmem:[#allocation5 + $0x620] ss:$12 sps:$4 sm:$0xff]   ;;  %v19509_v43 = vld [vmem:[#allocation5 + $0x1bdc] ss:$12 sps:$4 sm:$0xff]  }
 0x2e9   :  { %v19510_v45 = vld [vmem:[#allocation5 + $0x860] ss:$12 sps:$4 sm:$0xff]  }
 0x2ea   :  { %17379 = vmatpush3.bf16.msra.mxu1 %v19436_v12  ;;  %v19475_v12 = vld [vmem:[#allocation5 + $0x6f8] ss:$12 sps:$4 sm:$0xff]  }
 0x2eb   :  { %12623 = vmatpush1.bf16.msra.mxu0 %v19432_v11  ;;  %17380 = vmatprep.subr.bf16.mxu1 %v19440_v14  ;;  %v19474_v11 = vld [vmem:[#allocation5 + $0x1b34] ss:$12 sps:$4 sm:$0xff]   ;;  %v19476_v14 = vld [vmem:[#allocation5 + $0x638] ss:$12 sps:$4 sm:$0xff]  }
 0x2ec   :  { %12624 = vmatprep.subr.bf16.mxu0 %v19439_v13  ;;  %v19472_v13 = vld [vmem:[#allocation5 + $0x1b30] ss:$12 sps:$4 sm:$0xff]  }
 0x2ee   :  { %17381 = vmatpush3.bf16.msra.mxu1 %v19441_v58  ;;  %v19480_v58 = vld [vmem:[#allocation5 + $0x710] ss:$12 sps:$4 sm:$0xff]  }
 0x2ef   :  { %12625 = vmatpush1.bf16.msra.mxu0 %v19437_v16  ;;  %17382 = vmatprep.subr.bf16.mxu1 %v19445_v30  ;;  %v19479_v16 = vld [vmem:[#allocation5 + $0x1b4c] ss:$12 sps:$4 sm:$0xff]   ;;  %v19484_v30 = vld [vmem:[#allocation5 + $0x1b64] ss:$12 sps:$4 sm:$0xff]  }
 0x2f0   :  { %12626 = vmatprep.subr.bf16.mxu0 %v19444_v17  ;;  %v19481_v17 = vld [vmem:[#allocation5 + $0x650] ss:$12 sps:$4 sm:$0xff]  }
 0x2f2   :  { %17383 = vmatpush3.bf16.msra.mxu1 %v19446_v19  ;;  %v19482_v19 = vld [vmem:[#allocation5 + $0x1b60] ss:$12 sps:$4 sm:$0xff]  }
 0x2f3   :  { %12627 = vmatpush1.bf16.msra.mxu0 %v19442_v18  ;;  %17384 = vmatprep.subr.bf16.mxu1 %v19450_v44  ;;  %v19485_v18 = vld [vmem:[#allocation5 + $0x728] ss:$12 sps:$4 sm:$0xff]   ;;  %v19490_v44 = vld [vmem:[#allocation5 + $0x740] ss:$12 sps:$4 sm:$0xff]  }
 0x2f4   :  { %12628 = vmatprep.subr.bf16.mxu0 %v19449_v0  ;;  %v19489_v0 = vld [vmem:[#allocation5 + $0x1b7c] ss:$12 sps:$4 sm:$0xff]  }
 0x2f6   :  { %17385 = vmatpush3.bf16.msra.mxu1 %v19451_v40  ;;  %v19491_v40 = vld [vmem:[#allocation5 + $0x680] ss:$12 sps:$4 sm:$0xff]  }
 0x2f7   :  { %12629 = vmatpush1.bf16.msra.mxu0 %v19447_v52  ;;  %17386 = vmatprep.subr.bf16.mxu1 %v19455_v21  ;;  %v19487_v52 = vld [vmem:[#allocation5 + $0x1b78] ss:$12 sps:$4 sm:$0xff]  }
 0x2f8   :  { %12630 = vmatprep.subr.bf16.mxu0 %v19454_v20  ;;  %v19494_v20 = vld [vmem:[#allocation5 + $0x1b94] ss:$12 sps:$4 sm:$0xff]   ;;  %v19495_v21 = vld [vmem:[#allocation5 + $0x758] ss:$12 sps:$4 sm:$0xff]  }
 0x2fa   :  { %17387 = vmatpush3.bf16.msra.mxu1 %v19456_v25  ;;  %v19496_v25 = vld [vmem:[#allocation5 + $0x698] ss:$12 sps:$4 sm:$0xff]  }
 0x2fb   :  { %12631 = vmatpush1.bf16.msra.mxu0 %v19452_v24  ;;  %17388 = vmatprep.subr.bf16.mxu1 %v19460_v27  ;;  %v19492_v24 = vld [vmem:[#allocation5 + $0x1b90] ss:$12 sps:$4 sm:$0xff]  }
 0x2fc   :  { %12632 = vmatprep.subr.bf16.mxu0 %v19459_v26  ;;  %v19499_v26 = vld [vmem:[#allocation5 + $0x1bac] ss:$12 sps:$4 sm:$0xff]   ;;  %v19500_v27 = vld [vmem:[#allocation5 + $0x770] ss:$12 sps:$4 sm:$0xff]  }
 0x2fe   :  { %17389 = vmatpush3.bf16.msra.mxu1 %v19461_v33  ;;  %v19501_v33 = vld [vmem:[#allocation5 + $0x6b0] ss:$12 sps:$4 sm:$0xff]  }
 0x2ff   :  { %12633 = vmatpush1.bf16.msra.mxu0 %v19457_v32  ;;  %17396 = vmatprep.subr.bf16.mxu1 %v19465_v35  ;;  %v19497_v32 = vld [vmem:[#allocation5 + $0x1ba8] ss:$12 sps:$4 sm:$0xff]  }
 0x300   :  { %12645 = vmatprep.subr.bf16.mxu0 %v19464_v34  ;;  %v19504_v34 = vld [vmem:[#allocation5 + $0x1bc4] ss:$12 sps:$4 sm:$0xff]   ;;  %v19505_v35 = vld [vmem:[#allocation5 + $0x848] ss:$12 sps:$4 sm:$0xff]  }
 0x301   :  { %13575 = vmatmul.mubr.bf16.vlgmr.msra.gmra.mrb[16].mxu1 %v21221_v22  ;;  %v19477_v22 = vld [vmem:[#allocation5 + $0x1b48] ss:$12 sps:$4 sm:$0xff]  }
 0x302   :  { %12635 = vmatmul.mubr.bf16.vlgmr.msra.gmra.mrb[0].mxu0 %v21291_v50  ;;  %17397 = vmatpush3.bf16.msra.mxu1 %v19466_v61  ;;  %v19511_v61 = vld [vmem:[#allocation5 + $0x7a0] ss:$12 sps:$4 sm:$0xff]  }
 0x303   :  { %12646 = vmatpush1.bf16.msra.mxu0 %v19462_v57  ;;  %17398 = vmatprep.subr.bf16.mxu1 %v19470_v4  ;;  %v19507_v57 = vld [vmem:[#allocation5 + $0x1bd8] ss:$12 sps:$4 sm:$0xff]  }
 0x304   :  { %12647 = vmatprep.subr.bf16.mxu0 %v19469_v2  ;;  %13615 = vmatprep.mubr.bf16.mxu1 %v21225_v28  ;;  %v19486_v28 = vld [vmem:[#allocation5 + $0x668] ss:$12 sps:$4 sm:$0xff]   ;;  %v19515_v4 = vld [vmem:[#allocation5 + $0x878] ss:$12 sps:$4 sm:$0xff]  }
 0x305   :  { %12677 = vmatprep.mubr.bf16.mxu0 %v21293_v8  ;;  %v19514_v2 = vld [vmem:[#allocation5 + $0x1bf4] ss:$12 sps:$4 sm:$0xff]  }
 0x306   :  { %17399 = vmatpush3.bf16.msra.mxu1 %v19471_v10  ;;  %v19516_v10 = vld [vmem:[#allocation5 + $0x7b8] ss:$12 sps:$4 sm:$0xff]  }
 0x307   :  { %12648 = vmatpush1.bf16.msra.mxu0 %v19467_v5  ;;  %17400 = vmatprep.subr.bf16.mxu1 %v19475_v12  ;;  %v19512_v5 = vld [vmem:[#allocation5 + $0x1bf0] ss:$12 sps:$4 sm:$0xff]  }
 0x308   :  { %12649 = vmatprep.subr.bf16.mxu0 %v19474_v11  ;;  %v19519_v11 = vld [vmem:[#allocation5 + $0x1c0c] ss:$12 sps:$4 sm:$0xff]   ;;  %v19520_v12 = vld [vmem:[#allocation5 + $0x890] ss:$12 sps:$4 sm:$0xff]  }
 0x30a   :  { %17401 = vmatpush3.bf16.msra.mxu1 %v19476_v14  ;;  %v19524_v14 = vld [vmem:[#allocation5 + $0x1c24] ss:$12 sps:$4 sm:$0xff]  }
 0x30b   :  { %12650 = vmatpush1.bf16.msra.mxu0 %v19472_v13  ;;  %17402 = vmatprep.subr.bf16.mxu1 %v19480_v58  ;;  %v19517_v13 = vld [vmem:[#allocation5 + $0x1c08] ss:$12 sps:$4 sm:$0xff]   ;;  %v19522_v58 = vld [vmem:[#allocation5 + $0x1c20] ss:$12 sps:$4 sm:$0xff]  }
 0x30c   :  { %12651 = vmatprep.subr.bf16.mxu0 %v19479_v16  ;;  %v19525_v16 = vld [vmem:[#allocation5 + $0x8a8] ss:$12 sps:$4 sm:$0xff]  }
 0x30e   :  { %17403 = vmatpush3.bf16.msra.mxu1 %v19481_v17  ;;  %v19530_v17 = vld [vmem:[#allocation5 + $0x8c0] ss:$12 sps:$4 sm:$0xff]  }
 0x30f   :  { %12652 = vmatpush1.bf16.msra.mxu0 %v19477_v22  ;;  %17404 = vmatprep.subr.bf16.mxu1 %v19485_v18  ;;  %v19526_v22 = vld [vmem:[#allocation5 + $0x7e8] ss:$12 sps:$4 sm:$0xff]   ;;  %v19531_v18 = vld [vmem:[#allocation5 + $0x800] ss:$12 sps:$4 sm:$0xff]  }
 0x310   :  { %12653 = vmatprep.subr.bf16.mxu0 %v19484_v30  ;;  %v19527_v30 = vld [vmem:[#allocation5 + $0x1c38] ss:$12 sps:$4 sm:$0xff]  }
 0x312   :  { %17405 = vmatpush3.bf16.msra.mxu1 %v19486_v28  ;;  %v19535_v28 = vld [vmem:[#allocation5 + $0x8d8] ss:$12 sps:$4 sm:$0xff]  }
 0x313   :  { %12654 = vmatpush1.bf16.msra.mxu0 %v19482_v19  ;;  %17406 = vmatprep.subr.bf16.mxu1 %v19490_v44  ;;  %v19534_v19 = vld [vmem:[#allocation5 + $0x1c54] ss:$12 sps:$4 sm:$0xff]   ;;  %v19536_v44 = vld [vmem:[#allocation5 + $0x818] ss:$12 sps:$4 sm:$0xff]  }
 0x314   :  { %12655 = vmatprep.subr.bf16.mxu0 %v19489_v0  ;;  %v19532_v0 = vld [vmem:[#allocation5 + $0x1c50] ss:$12 sps:$4 sm:$0xff]  }
 0x316   :  { %17407 = vmatpush3.bf16.msra.mxu1 %v19491_v40  ;;  %v19540_v40 = vld [vmem:[#allocation5 + $0x8f0] ss:$12 sps:$4 sm:$0xff]  }
 0x317   :  { %12656 = vmatpush1.bf16.msra.mxu0 %v19487_v52  ;;  %17408 = vmatprep.subr.bf16.mxu1 %v19495_v21  ;;  %v19539_v52 = vld [vmem:[#allocation5 + $0x1c6c] ss:$12 sps:$4 sm:$0xff]   ;;  %v19541_v21 = vld [vmem:[#allocation5 + $0x830] ss:$12 sps:$4 sm:$0xff]  }
 0x318   :  { %12657 = vmatprep.subr.bf16.mxu0 %v19494_v20  ;;  %v19537_v20 = vld [vmem:[#allocation5 + $0x1c68] ss:$12 sps:$4 sm:$0xff]  }
 0x31a   :  { %17409 = vmatpush3.bf16.msra.mxu1 %v19496_v25  ;;  %v19545_v25 = vld [vmem:[#allocation5 + $0x9c8] ss:$12 sps:$4 sm:$0xff]  }
 0x31b   :  { %12658 = vmatpush1.bf16.msra.mxu0 %v19492_v24  ;;  %17410 = vmatprep.subr.bf16.mxu1 %v19500_v27  ;;  %v19544_v24 = vld [vmem:[#allocation5 + $0x1c84] ss:$12 sps:$4 sm:$0xff]   ;;  %v226_v27 = vld [vmem:[#allocation2 + $0x360] sm:$0xf] }
 0x31c   :  { %12659 = vmatprep.subr.bf16.mxu0 %v19499_v26  ;;  %v154_v26 = vld [vmem:[#allocation2 + $0x120] sm:$0xff] }
 0x31e   :  { %17411 = vmatpush3.bf16.msra.mxu1 %v19501_v33  ;;  %v229_v33 = vld [vmem:[#allocation2 + $0x378] sm:$0xf] }
 0x31f   :  { %12660 = vmatpush1.bf16.msra.mxu0 %v19497_v32  ;;  %17418 = vmatprep.subr.bf16.mxu1 %v19505_v35  ;;  %v157_v32 = vld [vmem:[#allocation2 + $0x138] sm:$0xff]  ;;  %v19542_v35 = vld [vmem:[#allocation5 + $0x1c80] ss:$12 sps:$4 sm:$0xff]  }
 0x320   :  { %12661 = vmatprep.subr.bf16.mxu0 %v19504_v34  ;;  %v21301_v34 = vpack.c.bf16 %v226_v27, %v154_v26  ;;  %v19584_v26 = vld [vmem:[#allocation5 + $0x1d44] ss:$12 sps:$4 sm:$0xff]   ;;  %v19585_v27 = vld [vmem:[#allocation5 + $0xb48] ss:$12 sps:$4 sm:$0xff]  }
 0x321   :  { %13616 = vmatmul.mubr.bf16.vlgmr.msra.gmra.mrb[20].mxu1 %v21233_v62  ;;  %v19521_v62 = vld [vmem:[#allocation5 + $0x7d0] ss:$12 sps:$4 sm:$0xff]  }
 0x322   :  { %17419 = vmatpush3.bf16.msra.mxu1 %v19506_v37  ;;  %13656 = vmatprep.mubr.bf16.mxu1 %v21237_v6  ;;  %v19529_v6 = vld [vmem:[#allocation5 + $0x1c3c] ss:$12 sps:$4 sm:$0xff]  }
 0x323   :  { %12662 = vmatpush1.bf16.msra.mxu0 %v19502_v36  ;;  %17420 = vmatprep.subr.bf16.mxu1 %v19510_v45  ;;  %v19546_v36 = vld [vmem:[#allocation5 + $0x908] ss:$12 sps:$4 sm:$0xff]   ;;  %v19547_v45 = vld [vmem:[#allocation5 + $0x1c98] ss:$12 sps:$4 sm:$0xff]  }
 0x324   :  { %12663 = vmatprep.subr.bf16.mxu0 %v19509_v43  ;;  %v19549_v37 = vld [vmem:[#allocation5 + $0x1c9c] ss:$12 sps:$4 sm:$0xff]   ;;  %v19550_v43 = vld [vmem:[#allocation5 + $0x9e0] ss:$12 sps:$4 sm:$0xff]  }
 0x326   :  { %17421 = vmatpush3.bf16.msra.mxu1 %v19511_v61  ;;  %v19551_v61 = vld [vmem:[#allocation5 + $0x920] ss:$12 sps:$4 sm:$0xff]  }
 0x327   :  { %12664 = vmatpush1.bf16.msra.mxu0 %v19507_v57  ;;  %17422 = vmatprep.subr.bf16.mxu1 %v19515_v4  ;;  %v21303_v57 = vpack.c.bf16 %v229_v33, %v157_v32  ;;  %v19555_v4 = vld [vmem:[#allocation5 + $0x9f8] ss:$12 sps:$4 sm:$0xff]   ;;  %v19582_v32 = vld [vmem:[#allocation5 + $0x1d40] ss:$12 sps:$4 sm:$0xff]   ;;  %v19586_v33 = vld [vmem:[#allocation5 + $0xa88] ss:$12 sps:$4 sm:$0xff]  }
 0x328   :  { %12665 = vmatprep.subr.bf16.mxu0 %v19514_v2  ;;  %v19554_v2 = vld [vmem:[#allocation5 + $0x1cb4] ss:$12 sps:$4 sm:$0xff]  }
 0x32a   :  { %17423 = vmatpush3.bf16.msra.mxu1 %v19516_v10  ;;  %v19556_v10 = vld [vmem:[#allocation5 + $0x938] ss:$12 sps:$4 sm:$0xff]  }
 0x32b   :  { %12666 = vmatpush1.bf16.msra.mxu0 %v19512_v5  ;;  %17424 = vmatprep.subr.bf16.mxu1 %v19520_v12  ;;  %v19552_v5 = vld [vmem:[#allocation5 + $0x1cb0] ss:$12 sps:$4 sm:$0xff]  }
 0x32c   :  { %12667 = vmatprep.subr.bf16.mxu0 %v19519_v11  ;;  %v19559_v11 = vld [vmem:[#allocation5 + $0x1ccc] ss:$12 sps:$4 sm:$0xff]   ;;  %v19560_v12 = vld [vmem:[#allocation5 + $0xa10] ss:$12 sps:$4 sm:$0xff]  }
 0x32e   :  { %17425 = vmatpush3.bf16.msra.mxu1 %v19521_v62  ;;  %v19564_v62 = vld [vmem:[#allocation5 + $0x1ce4] ss:$12 sps:$4 sm:$0xff]  }
 0x32f   :  { %12668 = vmatpush1.bf16.msra.mxu0 %v19517_v13  ;;  %17426 = vmatprep.subr.bf16.mxu1 %v19525_v16  ;;  %v19561_v13 = vld [vmem:[#allocation5 + $0x950] ss:$12 sps:$4 sm:$0xff]   ;;  %v19562_v16 = vld [vmem:[#allocation5 + $0x1ce0] ss:$12 sps:$4 sm:$0xff]  }
 0x330   :  { %12669 = vmatprep.subr.bf16.mxu0 %v19524_v14  ;;  %v19565_v14 = vld [vmem:[#allocation5 + $0xa28] ss:$12 sps:$4 sm:$0xff]  }
 0x332   :  { %17427 = vmatpush3.bf16.msra.mxu1 %v19526_v22  ;;  %v19570_v22 = vld [vmem:[#allocation5 + $0xa40] ss:$12 sps:$4 sm:$0xff]  }
 0x333   :  { %12670 = vmatpush1.bf16.msra.mxu0 %v19522_v58  ;;  %17428 = vmatprep.subr.bf16.mxu1 %v19530_v17  ;;  %v19569_v58 = vld [vmem:[#allocation5 + $0x1cfc] ss:$12 sps:$4 sm:$0xff]   ;;  %v19571_v17 = vld [vmem:[#allocation5 + $0x980] ss:$12 sps:$4 sm:$0xff]  }
 0x334   :  { %12671 = vmatprep.subr.bf16.mxu0 %v19529_v6  ;;  %v19567_v6 = vld [vmem:[#allocation5 + $0x1cf8] ss:$12 sps:$4 sm:$0xff]  }
 0x336   :  { %17429 = vmatpush3.bf16.msra.mxu1 %v19531_v18  ;;  %v19575_v18 = vld [vmem:[#allocation5 + $0xa58] ss:$12 sps:$4 sm:$0xff]  }
 0x337   :  { %12672 = vmatpush1.bf16.msra.mxu0 %v19527_v30  ;;  %17430 = vmatprep.subr.bf16.mxu1 %v19535_v28  ;;  %v19574_v30 = vld [vmem:[#allocation5 + $0x1d14] ss:$12 sps:$4 sm:$0xff]   ;;  %v19572_v28 = vld [vmem:[#allocation5 + $0x1d10] ss:$12 sps:$4 sm:$0xff]  }
 0x338   :  { %12673 = vmatprep.subr.bf16.mxu0 %v19534_v19 }
 0x33a   :  { %17431 = vmatpush3.bf16.msra.mxu1 %v19536_v44 }
 0x33b   :  { %12674 = vmatpush1.bf16.msra.mxu0 %v19532_v0  ;;  %17432 = vmatprep.subr.bf16.mxu1 %v19540_v40  ;;  %v19579_v40 = vld [vmem:[#allocation5 + $0x1d2c] ss:$12 sps:$4 sm:$0xff]  }
 0x33c   :  { %12675 = vmatprep.subr.bf16.mxu0 %v19539_v52  ;;  %v19576_v52 = vld [vmem:[#allocation5 + $0x998] ss:$12 sps:$4 sm:$0xff]  }
 0x33e   :  { %17433 = vmatpush3.bf16.msra.mxu1 %v19541_v21  ;;  %v19580_v21 = vld [vmem:[#allocation5 + $0xa70] ss:$12 sps:$4 sm:$0xff]  }
 0x33f   :  { %12676 = vmatpush1.bf16.msra.mxu0 %v19537_v20  ;;  %17440 = vmatprep.subr.bf16.mxu1 %v19545_v25  ;;  %v19581_v25 = vld [vmem:[#allocation5 + $0x9b0] ss:$12 sps:$4 sm:$0xff]  }
 0x340   :  { %12688 = vmatprep.subr.bf16.mxu0 %v19544_v24  ;;  %v19577_v24 = vld [vmem:[#allocation5 + $0x1d28] ss:$12 sps:$4 sm:$0xff]  }
 0x341   :  { %13657 = vmatmul.mubr.bf16.vlgmr.msra.gmra.mrb[24].mxu1 %v21245_v41  ;;  %v19557_v41 = vld [vmem:[#allocation5 + $0x1cc8] ss:$12 sps:$4 sm:$0xff]  }
 0x342   :  { %12678 = vmatmul.mubr.bf16.vlgmr.msra.gmra.mrb[0].mxu0 %v21301_v34  ;;  %17441 = vmatpush3.bf16.msra.mxu1 %v19546_v36  ;;  %v19590_v36 = vld [vmem:[#allocation5 + $0xb60] ss:$12 sps:$4 sm:$0xff]  }
 0x343   :  { %12689 = vmatpush1.bf16.msra.mxu0 %v19542_v35  ;;  %17442 = vmatprep.subr.bf16.mxu1 %v19550_v43  ;;  %v19589_v35 = vld [vmem:[#allocation5 + $0x1d5c] ss:$12 sps:$4 sm:$0xff]   ;;  %v19591_v43 = vld [vmem:[#allocation5 + $0xaa0] ss:$12 sps:$4 sm:$0xff]  }
 0x344   :  { %12690 = vmatprep.subr.bf16.mxu0 %v19549_v37  ;;  %13697 = vmatprep.mubr.bf16.mxu1 %v21249_v53  ;;  %v19566_v53 = vld [vmem:[#allocation5 + $0x968] ss:$12 sps:$4 sm:$0xff]   ;;  %v19587_v37 = vld [vmem:[#allocation5 + $0x1d58] ss:$12 sps:$4 sm:$0xff]  }
 0x345   :  { %12720 = vmatprep.mubr.bf16.mxu0 %v21303_v57 }
 0x346   :  { %17443 = vmatpush3.bf16.msra.mxu1 %v19551_v61  ;;  %v19595_v61 = vld [vmem:[#allocation5 + $0xb78] ss:$12 sps:$4 sm:$0xff]  }
 0x347   :  { %12691 = vmatpush1.bf16.msra.mxu0 %v19547_v45  ;;  %17444 = vmatprep.subr.bf16.mxu1 %v19555_v4  ;;  %v19594_v45 = vld [vmem:[#allocation5 + $0x1d74] ss:$12 sps:$4 sm:$0xff]   ;;  %v19596_v4 = vld [vmem:[#allocation5 + $0xab8] ss:$12 sps:$4 sm:$0xff]  }
 0x348   :  { %12692 = vmatprep.subr.bf16.mxu0 %v19554_v2  ;;  %v19592_v2 = vld [vmem:[#allocation5 + $0x1d70] ss:$12 sps:$4 sm:$0xff]  }
 0x34a   :  { %17445 = vmatpush3.bf16.msra.mxu1 %v19556_v10  ;;  %v19600_v10 = vld [vmem:[#allocation5 + $0xb90] ss:$12 sps:$4 sm:$0xff]  }
 0x34b   :  { %12693 = vmatpush1.bf16.msra.mxu0 %v19552_v5  ;;  %17446 = vmatprep.subr.bf16.mxu1 %v19560_v12  ;;  %v19599_v5 = vld [vmem:[#allocation5 + $0x1d8c] ss:$12 sps:$4 sm:$0xff]   ;;  %v19604_v12 = vld [vmem:[#allocation5 + $0x1da4] ss:$12 sps:$4 sm:$0xff]  }
 0x34c   :  { %12694 = vmatprep.subr.bf16.mxu0 %v19559_v11  ;;  %v19597_v11 = vld [vmem:[#allocation5 + $0x1d88] ss:$12 sps:$4 sm:$0xff]  }
 0x34e   :  { %17447 = vmatpush3.bf16.msra.mxu1 %v19561_v13  ;;  %v19602_v13 = vld [vmem:[#allocation5 + $0x1da0] ss:$12 sps:$4 sm:$0xff]  }
 0x34f   :  { %12695 = vmatpush1.bf16.msra.mxu0 %v19557_v41  ;;  %17448 = vmatprep.subr.bf16.mxu1 %v19565_v14  ;;  %v19605_v41 = vld [vmem:[#allocation5 + $0xba8] ss:$12 sps:$4 sm:$0xff]   ;;  %v19610_v14 = vld [vmem:[#allocation5 + $0xbc0] ss:$12 sps:$4 sm:$0xff]  }
 0x350   :  { %12696 = vmatprep.subr.bf16.mxu0 %v19564_v62  ;;  %v19606_v62 = vld [vmem:[#allocation5 + $0xae8] ss:$12 sps:$4 sm:$0xff]  }
 0x352   :  { %17449 = vmatpush3.bf16.msra.mxu1 %v19566_v53  ;;  %v19611_v53 = vld [vmem:[#allocation5 + $0xb00] ss:$12 sps:$4 sm:$0xff]  }
 0x353   :  { %12697 = vmatpush1.bf16.msra.mxu0 %v19562_v16  ;;  %17450 = vmatprep.subr.bf16.mxu1 %v19570_v22  ;;  %v19607_v16 = vld [vmem:[#allocation5 + $0x1db8] ss:$12 sps:$4 sm:$0xff]  }
 0x354   :  { %12698 = vmatprep.subr.bf16.mxu0 %v19569_v58  ;;  %v21309_v19 = vpop.f32.mrb[0].mxu1  ;;  %v19614_v58 = vld [vmem:[#allocation5 + $0x1dd4] ss:$12 sps:$4 sm:$0xff]   ;;  %v19615_v22 = vld [vmem:[#allocation5 + $0xbd8] ss:$12 sps:$4 sm:$0xff]  }
 0x355   :  { %v21311_v0 = vpop.f32.mrb[1].mxu1 }
 0x356   :  { %v21313_v44 = vpop.f32.mrb[2].mxu1  ;;  %17451 = vmatpush3.bf16.msra.mxu1 %v19571_v17  ;;  %v19616_v17 = vld [vmem:[#allocation5 + $0xb18] ss:$12 sps:$4 sm:$0xff]  }
 0x357   :  { %12699 = vmatpush1.bf16.msra.mxu0 %v19567_v6  ;;  %v21315_v20 = vpop.f32.mrb[3].mxu1  ;;  %17452 = vmatprep.subr.bf16.mxu1 %v19575_v18  ;;  %v19612_v6 = vld [vmem:[#allocation5 + $0x1dd0] ss:$12 sps:$4 sm:$0xff]  }
 0x358   :  { %12700 = vmatprep.subr.bf16.mxu0 %v19574_v30  ;;  %v19619_v30 = vld [vmem:[#allocation5 + $0x1dec] ss:$12 sps:$4 sm:$0xff]   ;;  %v19620_v18 = vld [vmem:[#allocation5 + $0xbf0] ss:$12 sps:$4 sm:$0xff]  }
 0x35a   :  { %17453 = vmatpush3.bf16.msra.mxu1 %v19576_v52  ;;  %v19621_v52 = vld [vmem:[#allocation5 + $0xb30] ss:$12 sps:$4 sm:$0xff]  }
 0x35b   :  { %12701 = vmatpush1.bf16.msra.mxu0 %v19572_v28  ;;  %17454 = vmatprep.subr.bf16.mxu1 %v19580_v21  ;;  %v19617_v28 = vld [vmem:[#allocation5 + $0x1de8] ss:$12 sps:$4 sm:$0xff]  }
 0x35c   :  { %12702 = vmatprep.subr.bf16.mxu0 %v19579_v40  ;;  %v19624_v40 = vld [vmem:[#allocation5 + $0x1e04] ss:$12 sps:$4 sm:$0xff]   ;;  %v19625_v21 = vld [vmem:[#allocation5 + $0xcc8] ss:$12 sps:$4 sm:$0xff]  }
 0x35e   :  { %17455 = vmatpush3.bf16.msra.mxu1 %v19581_v25  ;;  %v228_v25 = vld [vmem:[#allocation2 + $0x370] sm:$0xf] }
 0x35f   :  { %12703 = vmatpush1.bf16.msra.mxu0 %v19577_v24  ;;  %17462 = vmatprep.subr.bf16.mxu1 %v19585_v27  ;;  %v156_v24 = vld [vmem:[#allocation2 + $0x130] sm:$0xff]  ;;  %v231_v27 = vld [vmem:[#allocation2 + $0x388] sm:$0xf] }
 0x360   :  { %12704 = vmatprep.subr.bf16.mxu0 %v19584_v26  ;;  %v159_v26 = vld [vmem:[#allocation2 + $0x148] sm:$0xff] }
 0x361   :  { %13698 = vmatmul.mubr.bf16.vlgmr.msra.gmra.mrb[28].mxu1 %v21257_v38  ;;  %v19601_v38 = vld [vmem:[#allocation5 + $0xad0] ss:$12 sps:$4 sm:$0xff]  }
 0x362   :  { %17463 = vmatpush3.bf16.msra.mxu1 %v19586_v33  ;;  %13738 = vmatprep.mubr.bf16.mxu1 %v21261_v51  ;;  %v19609_v51 = vld [vmem:[#allocation5 + $0x1dbc] ss:$12 sps:$4 sm:$0xff]   ;;  %v19622_v33 = vld [vmem:[#allocation5 + $0x1e00] ss:$12 sps:$4 sm:$0xff]  }
 0x363   :  { %12705 = vmatpush1.bf16.msra.mxu0 %v19582_v32  ;;  %17464 = vmatprep.subr.bf16.mxu1 %v19590_v36  ;;  %v21319_v32 = vpack.c.bf16 %v228_v25, %v156_v24  ;;  %v19629_v36 = vld [vmem:[#allocation5 + $0x1e1c] ss:$12 sps:$4 sm:$0xff]   ;;  %v19651_v24 = vld [vmem:[#allocation5 + $0xc80] ss:$12 sps:$4 sm:$0xff]  }
 0x364   :  { %12706 = vmatprep.subr.bf16.mxu0 %v19589_v35  ;;  %v19626_v35 = vld [vmem:[#allocation5 + $0xc08] ss:$12 sps:$4 sm:$0xff]  }
 0x365   :  { %v19654_v25 = vld [vmem:[#allocation5 + $0x1e94] ss:$12 sps:$4 sm:$0xff]  }
 0x366   :  { %17465 = vmatpush3.bf16.msra.mxu1 %v19591_v43  ;;  %v19627_v43 = vld [vmem:[#allocation5 + $0x1e18] ss:$12 sps:$4 sm:$0xff]  }
 0x367   :  { %12707 = vmatpush1.bf16.msra.mxu0 %v19587_v37  ;;  %17466 = vmatprep.subr.bf16.mxu1 %v19595_v61  ;;  %v19630_v37 = vld [vmem:[#allocation5 + $0xce0] ss:$12 sps:$4 sm:$0xff]  }
 0x368   :  { %12708 = vmatprep.subr.bf16.mxu0 %v19594_v45  ;;  %v21321_v45 = vpack.c.bf16 %v231_v27, %v159_v26  ;;  %v19631_v61 = vld [vmem:[#allocation5 + $0xc20] ss:$12 sps:$4 sm:$0xff]   ;;  %v19655_v26 = vld [vmem:[#allocation5 + $0xd58] ss:$12 sps:$4 sm:$0xff]   ;;  %v19652_v27 = vld [vmem:[#allocation5 + $0x1e90] ss:$12 sps:$4 sm:$0xff]  }
 0x36a   :  { %17467 = vmatpush3.bf16.msra.mxu1 %v19596_v4  ;;  %v19635_v4 = vld [vmem:[#allocation5 + $0xcf8] ss:$12 sps:$4 sm:$0xff]  }
 0x36b   :  { %12709 = vmatpush1.bf16.msra.mxu0 %v19592_v2  ;;  %17468 = vmatprep.subr.bf16.mxu1 %v19600_v10  ;;  %v19634_v2 = vld [vmem:[#allocation5 + $0x1e34] ss:$12 sps:$4 sm:$0xff]   ;;  %v2640_v10 = vlaneseq }
 0x36c   :  { %12710 = vmatprep.subr.bf16.mxu0 %v19599_v5  ;;  %v19632_v5 = vld [vmem:[#allocation5 + $0x1e30] ss:$12 sps:$4 sm:$0xff]  }
 0x36e   :  { %17469 = vmatpush3.bf16.msra.mxu1 %v19601_v38  ;;  %v19639_v38 = vld [vmem:[#allocation5 + $0x1e4c] ss:$12 sps:$4 sm:$0xff]  }
 0x36f   :  { %12711 = vmatpush1.bf16.msra.mxu0 %v19597_v11  ;;  %17470 = vmatprep.subr.bf16.mxu1 %v19605_v41  ;;  %v19636_v11 = vld [vmem:[#allocation5 + $0xc38] ss:$12 sps:$4 sm:$0xff]  }
 0x370   :  { %12712 = vmatprep.subr.bf16.mxu0 %v19604_v12  ;;  %v19640_v12 = vld [vmem:[#allocation5 + $0xd10] ss:$12 sps:$4 sm:$0xff]  }
 0x372   :  { %17471 = vmatpush3.bf16.msra.mxu1 %v19606_v62 }
 0x373   :  { %12713 = vmatpush1.bf16.msra.mxu0 %v19602_v13  ;;  %17472 = vmatprep.subr.bf16.mxu1 %v19610_v14  ;;  %v19637_v13 = vld [vmem:[#allocation5 + $0x1e48] ss:$12 sps:$4 sm:$0xff]   ;;  %v21327_v14 = vshrl.u32 %v2640_v10, 7 }
 0x374   :  { %12714 = vmatprep.subr.bf16.mxu0 %v19609_v51 }
 0x376   :  { %17473 = vmatpush3.bf16.msra.mxu1 %v19611_v53 }
 0x377   :  { %12715 = vmatpush1.bf16.msra.mxu0 %v19607_v16  ;;  %17474 = vmatprep.subr.bf16.mxu1 %v19615_v22  ;;  %v19644_v16 = vld [vmem:[#allocation5 + $0x1e64] ss:$12 sps:$4 sm:$0xff]  }
 0x378   :  { %12716 = vmatprep.subr.bf16.mxu0 %v19614_v58  ;;  %v19645_v58 = vld [vmem:[#allocation5 + $0xd28] ss:$12 sps:$4 sm:$0xff]  }
 0x37a   :  { %17475 = vmatpush3.bf16.msra.mxu1 %v19616_v17  ;;  %v2650_v17 = vsub.s32 2, %v21327_v14 }
 0x37b   :  { %12717 = vmatpush1.bf16.msra.mxu0 %v19612_v6  ;;  %17476 = vmatprep.subr.bf16.mxu1 %v19620_v18  ;;  %v19642_v6 = vld [vmem:[#allocation5 + $0x1e60] ss:$12 sps:$4 sm:$0xff]   ;;  %v19646_v18 = vld [vmem:[#allocation5 + $0xc68] ss:$12 sps:$4 sm:$0xff]  }
 0x37c   :  { %12718 = vmatprep.subr.bf16.mxu0 %v19619_v30  ;;  %v2638_v30 = vld [vmem:[#allocation7] sm:$0x7] }
 0x37e   :  { %17477 = vmatpush3.bf16.msra.mxu1 %v19621_v52  ;;  %v19650_v52 = vld [vmem:[#allocation5 + $0xd40] ss:$12 sps:$4 sm:$0xff]  }
 0x37f   :  { %12719 = vmatpush1.bf16.msra.mxu0 %v19617_v28  ;;  %17484 = vmatprep.subr.bf16.mxu1 %v19625_v21  ;;  %v19649_v28 = vld [vmem:[#allocation5 + $0x1e7c] ss:$12 sps:$4 sm:$0xff]   ;;  %v2651_v21 = vrot.slane %v2638_v30, %v2650_v17  ;;  %v19675_v30 = vld [vmem:[#allocation5 + $0xe78] ss:$12 sps:$4 sm:$0xff]  }
 0x380   :  { %12731 = vmatprep.subr.bf16.mxu0 %v19624_v40  ;;  %v19647_v40 = vld [vmem:[#allocation5 + $0x1e78] ss:$12 sps:$4 sm:$0xff]  }
 0x381   :  { %13739 = vmatmul.mubr.bf16.vlgmr.msra.gmra.mrb[32].mxu1 %v21269_v48  ;;  %v17324_v48 = vpop.f32.mrb[4].mxu1 }
 0x382   :  { %12721 = vmatmul.mubr.bf16.vlgmr.msra.gmra.mrb[0].mxu0 %v21319_v32  ;;  %17485 = vmatpush3.bf16.msra.mxu1 %v19626_v35  ;;  %v17325_v41 = vpop.f32.mrb[5].mxu1 }
 0x383   :  { %12732 = vmatpush1.bf16.msra.mxu0 %v19622_v33  ;;  %17486 = vmatprep.subr.bf16.mxu1 %v19630_v37  ;;  %v17326_v62 = vadd.f32 %v17325_v41, %v17324_v48  ;;  %v17327_v51 = vpop.f32.mrb[6].mxu1  ;;  %v19656_v37 = vld [vmem:[#allocation5 + $0xc98] ss:$12 sps:$4 sm:$0xff]  }
 0x384   :  { %12733 = vmatprep.subr.bf16.mxu0 %v19629_v36  ;;  %13779 = vmatprep.mubr.bf16.mxu1 %v21182_v55  ;;  %v19641_v55 = vld [vmem:[#allocation5 + $0xc50] ss:$12 sps:$4 sm:$0xff]   ;;  %v17328_v53 = vpop.f32.mrb[7].mxu1 }
 0x385   :  { %12763 = vmatprep.mubr.bf16.mxu0 %v21321_v45  ;;  %v17329_v22 = vadd.f32 %v17328_v53, %v17327_v51  ;;  %v13454_v33 = vadd.f32 %v17326_v62, %v2651_v21  ;;  %v19664_v41 = vld [vmem:[#allocation5 + $0x1ec4] ss:$12 sps:$4 sm:$0xff]   ;;  %v19665_v62 = vld [vmem:[#allocation5 + $0xe48] ss:$12 sps:$4 sm:$0xff]   ;;  %v19662_v51 = vld [vmem:[#allocation5 + $0x1ec0] ss:$12 sps:$4 sm:$0xff]  }
 0x386   :  { %17487 = vmatpush3.bf16.msra.mxu1 %v19631_v61  ;;  %v19670_v53 = vld [vmem:[#allocation5 + $0xe60] ss:$12 sps:$4 sm:$0xff]  }
 0x387   :  { %12734 = vmatpush1.bf16.msra.mxu0 %v19627_v43  ;;  %17488 = vmatprep.subr.bf16.mxu1 %v19635_v4  ;;  %v19659_v43 = vld [vmem:[#allocation5 + $0x1eac] ss:$12 sps:$4 sm:$0xff]   ;;  %v13457_v61 = vadd.f32 %v17329_v22, %v2651_v21  ;;  %v19677_v21 = vld [vmem:[#allocation5 + $0x1f08] ss:$12 sps:$4 sm:$0xff]  }
 0x388   :  { %12735 = vmatprep.subr.bf16.mxu0 %v19634_v2  ;;  %v19671_v22 = vld [vmem:[#allocation5 + $0xda0] ss:$12 sps:$4 sm:$0xff]  }
 0x38a   :  { %17489 = vmatpush3.bf16.msra.mxu1 %v19636_v11  ;;  %v19657_v11 = vld [vmem:[#allocation5 + $0x1ea8] ss:$12 sps:$4 sm:$0xff]  }
 0x38b   :  { %12736 = vmatpush1.bf16.msra.mxu0 %v19632_v5  ;;  %17490 = vmatprep.subr.bf16.mxu1 %v19640_v12  ;;  %v19660_v5 = vld [vmem:[#allocation5 + $0xd70] ss:$12 sps:$4 sm:$0xff]  }
 0x38c   :  { %12737 = vmatprep.subr.bf16.mxu0 %v19639_v38  ;;  %v19661_v12 = vld [vmem:[#allocation5 + $0xcb0] ss:$12 sps:$4 sm:$0xff]  }
 0x38e   :  { %17491 = vmatpush3.bf16.msra.mxu1 %v19641_v55  ;;  %v19666_v55 = vld [vmem:[#allocation5 + $0xd88] ss:$12 sps:$4 sm:$0xff]  }
 0x38f   :  { %12738 = vmatpush1.bf16.msra.mxu0 %v19637_v13  ;;  %17492 = vmatprep.subr.bf16.mxu1 %v19645_v58  ;;  %v19667_v58 = vld [vmem:[#allocation5 + $0x1ed8] ss:$12 sps:$4 sm:$0xff]  }
 0x390   :  { %12739 = vmatprep.subr.bf16.mxu0 %v19644_v16  ;;  %v19669_v16 = vld [vmem:[#allocation5 + $0x1edc] ss:$12 sps:$4 sm:$0xff]  }
 0x392   :  { %17493 = vmatpush3.bf16.msra.mxu1 %v19646_v18  ;;  %v19672_v18 = vld [vmem:[#allocation5 + $0x1ef0] ss:$12 sps:$4 sm:$0xff]  }
 0x393   :  { %12740 = vmatpush1.bf16.msra.mxu0 %v19642_v6  ;;  %17494 = vmatprep.subr.bf16.mxu1 %v19650_v52  ;;  %v19674_v6 = vld [vmem:[#allocation5 + $0x1ef4] ss:$12 sps:$4 sm:$0xff]   ;;  %v19679_v52 = vld [vmem:[#allocation5 + $0x1f0c] ss:$12 sps:$4 sm:$0xff]  }
 0x394   :  { %12741 = vmatprep.subr.bf16.mxu0 %v19649_v28  ;;  %v17346_v35 = vpop.f32.mrb[8].mxu1  ;;  %v19676_v28 = vld [vmem:[#allocation5 + $0xdb8] ss:$12 sps:$4 sm:$0xff]  }
 0x395   :  { %v17347_v36 = vpop.f32.mrb[9].mxu1 }
 0x396   :  { %17495 = vmatpush3.bf16.msra.mxu1 %v19651_v24  ;;  %v17348_v2 = vadd.f32 %v17347_v36, %v17346_v35  ;;  %v17349_v4 = vpop.f32.mrb[10].mxu1  ;;  %v19684_v24 = vld [vmem:[#allocation5 + $0x1f24] ss:$12 sps:$4 sm:$0xff]   ;;  %v19691_v36 = vld [vmem:[#allocation5 + $0xe00] ss:$12 sps:$4 sm:$0xff]  }
 0x397   :  { %12742 = vmatpush1.bf16.msra.mxu0 %v19647_v40  ;;  %17496 = vmatprep.subr.bf16.mxu1 %v19655_v26  ;;  %v17350_v10 = vpop.f32.mrb[11].mxu1  ;;  %v19680_v40 = vld [vmem:[#allocation5 + $0xe90] ss:$12 sps:$4 sm:$0xff]   ;;  %v19682_v26 = vld [vmem:[#allocation5 + $0x1f20] ss:$12 sps:$4 sm:$0xff]  }
 0x398   :  { %12743 = vmatprep.subr.bf16.mxu0 %v19654_v25  ;;  %v21332_v38 = vadd.f32 %v17348_v2, %v13454_v33  ;;  %v17351_v48 = vadd.f32 %v17350_v10, %v17349_v4  ;;  %v19685_v25 = vld [vmem:[#allocation5 + $0xea8] ss:$12 sps:$4 sm:$0xff]   ;;  %v19690_v33 = vld [vmem:[#allocation5 + $0xec0] ss:$12 sps:$4 sm:$0xff]   ;;  %v19687_v35 = vld [vmem:[#allocation5 + $0x1f38] ss:$12 sps:$4 sm:$0xff]  }
 0x399   :  { %v19696_v2 = vld [vmem:[#allocation5 + $0xe18] ss:$12 sps:$4 sm:$0xff]  }
 0x39a   :  { %17497 = vmatpush3.bf16.msra.mxu1 %v19656_v37  ;;  %v21334_v13 = vadd.f32 %v17351_v48, %v13457_v61  ;;  %v19694_v37 = vld [vmem:[#allocation5 + $0x1f54] ss:$12 sps:$4 sm:$0xff]   ;;  %v19692_v61 = vld [vmem:[#allocation5 + $0x1f50] ss:$12 sps:$4 sm:$0xff]   ;;  %v19699_v48 = vld [vmem:[#allocation5 + $0x1f6c] ss:$12 sps:$4 sm:$0xff]  }
 0x39b   :  { %12744 = vmatpush1.bf16.msra.mxu0 %v19652_v27  ;;  %17498 = vmatprep.subr.bf16.mxu1 %v19660_v5  ;;  %v19686_v27 = vld [vmem:[#allocation5 + $0xde8] ss:$12 sps:$4 sm:$0xff]  }
 0x39c   :  { %12745 = vmatprep.subr.bf16.mxu0 %v19659_v43  ;;  %v19695_v43 = vld [vmem:[#allocation5 + $0xed8] ss:$12 sps:$4 sm:$0xff]  }
 0x39e   :  { %17499 = vmatpush3.bf16.msra.mxu1 %v19661_v12  ;;  %v19700_v12 = vld [vmem:[#allocation5 + $0xef0] ss:$12 sps:$4 sm:$0xff]  }
 0x39f   :  { %12746 = vmatpush1.bf16.msra.mxu0 %v19657_v11  ;;  %17506 = vmatprep.subr.bf16.mxu1 %v19665_v62  ;;  %v19697_v62 = vld [vmem:[#allocation5 + $0x1f68] ss:$12 sps:$4 sm:$0xff]  }
 0x3a0   :  { %12747 = vmatprep.subr.bf16.mxu0 %v19664_v41 }
 0x3a1   :  { %13780 = vmatmul.mubr.bf16.vlgmr.msra.gmra.mrb[36].mxu1 %v21187_v15  ;;  %v19681_v15 = vld [vmem:[#allocation5 + $0xdd0] ss:$12 sps:$4 sm:$0xff]  }
 0x3a2   :  { %17507 = vmatpush3.bf16.msra.mxu1 %v19666_v55  ;;  %13820 = vmatprep.mubr.bf16.mxu1 %v21194_v47  ;;  %v19689_v47 = vld [vmem:[#allocation5 + $0x1f3c] ss:$12 sps:$4 sm:$0xff]  }
 0x3a3   :  { %12748 = vmatpush1.bf16.msra.mxu0 %v19662_v51  ;;  %17508 = vmatprep.subr.bf16.mxu1 %v19670_v53  ;;  %v19701_v51 = vld [vmem:[#allocation5 + $0xe30] ss:$12 sps:$4 sm:$0xff]  }
 0x3a4   :  { %12749 = vmatprep.subr.bf16.mxu0 %v19669_v16  ;;  %v19704_v53 = vld [vmem:[#allocation5 + $0x1f84] ss:$12 sps:$4 sm:$0xff]  }
 0x3a6   :  { %17509 = vmatpush3.bf16.msra.mxu1 %v19671_v22  ;;  %v158_v22 = vld [vmem:[#allocation2 + $0x140] sm:$0xff] }
 0x3a7   :  { %12750 = vmatpush1.bf16.msra.mxu0 %v19667_v58  ;;  %17510 = vmatprep.subr.bf16.mxu1 %v19675_v30  ;;  %v19705_v58 = vld [vmem:[#allocation5 + $0xfc8] ss:$12 sps:$4 sm:$0xff]  }
 0x3a8   :  { %12751 = vmatprep.subr.bf16.mxu0 %v19674_v6  ;;  %v230_v6 = vld [vmem:[#allocation2 + $0x380] sm:$0xf] }
 0x3aa   :  { %17511 = vmatpush3.bf16.msra.mxu1 %v19676_v28  ;;  %v233_v28 = vld [vmem:[#allocation2 + $0x398] sm:$0xf] }
 0x3ab   :  { %12752 = vmatpush1.bf16.msra.mxu0 %v19672_v18  ;;  %17512 = vmatprep.subr.bf16.mxu1 %v19680_v40  ;;  %v161_v18 = vld [vmem:[#allocation2 + $0x158] sm:$0xff]  ;;  %v19706_v40 = vld [vmem:[#allocation5 + $0xf08] ss:$12 sps:$4 sm:$0xff]  }
 0x3ac   :  { %12753 = vmatprep.subr.bf16.mxu0 %v19679_v52  ;;  %v21344_v52 = vpack.c.bf16 %v230_v6, %v158_v22  ;;  %v19739_v22 = vld [vmem:[#allocation5 + $0x202c] ss:$12 sps:$4 sm:$0xff]   ;;  %v19740_v6 = vld [vmem:[#allocation5 + $0x1070] ss:$12 sps:$4 sm:$0xff]  }
 0x3ae   :  { %17513 = vmatpush3.bf16.msra.mxu1 %v19681_v15  ;;  %v19710_v15 = vld [vmem:[#allocation5 + $0xfe0] ss:$12 sps:$4 sm:$0xff]  }
 0x3af   :  { %12754 = vmatpush1.bf16.msra.mxu0 %v19677_v21  ;;  %17514 = vmatprep.subr.bf16.mxu1 %v19685_v25  ;;  %v19709_v21 = vld [vmem:[#allocation5 + $0x1f9c] ss:$12 sps:$4 sm:$0xff]   ;;  %v21346_v25 = vpack.c.bf16 %v233_v28, %v161_v18 }
 0x3b0   :  { %12755 = vmatprep.subr.bf16.mxu0 %v19684_v24  ;;  %v19707_v24 = vld [vmem:[#allocation5 + $0x1f98] ss:$12 sps:$4 sm:$0xff]   ;;  %v19737_v28 = vld [vmem:[#allocation5 + $0x2028] ss:$12 sps:$4 sm:$0xff]  }
 0x3b2   :  { %17515 = vmatpush3.bf16.msra.mxu1 %v19686_v27  ;;  %v19715_v27 = vld [vmem:[#allocation5 + $0xff8] ss:$12 sps:$4 sm:$0xff]  }
 0x3b3   :  { %12756 = vmatpush1.bf16.msra.mxu0 %v19682_v26  ;;  %17516 = vmatprep.subr.bf16.mxu1 %v19690_v33  ;;  %v19714_v26 = vld [vmem:[#allocation5 + $0x1fb4] ss:$12 sps:$4 sm:$0xff]   ;;  %v19716_v33 = vld [vmem:[#allocation5 + $0xf38] ss:$12 sps:$4 sm:$0xff]  }
 0x3b4   :  { %12757 = vmatprep.subr.bf16.mxu0 %v19689_v47  ;;  %v17368_v4 = vpop.f32.mrb[12].mxu1  ;;  %v19712_v47 = vld [vmem:[#allocation5 + $0x1fb0] ss:$12 sps:$4 sm:$0xff]  }
 0x3b5   :  { %v17369_v5 = vpop.f32.mrb[13].mxu1 }
 0x3b6   :  { %17517 = vmatpush3.bf16.msra.mxu1 %v19691_v36  ;;  %v17370_v10 = vadd.f32 %v17369_v5, %v17368_v4  ;;  %v17371_v11 = vpop.f32.mrb[14].mxu1  ;;  %v19717_v36 = vld [vmem:[#allocation5 + $0x1fc8] ss:$12 sps:$4 sm:$0xff]   ;;  %v19730_v5 = vld [vmem:[#allocation5 + $0x1040] ss:$12 sps:$4 sm:$0xff]  }
 0x3b7   :  { %12758 = vmatpush1.bf16.msra.mxu0 %v19687_v35  ;;  %17518 = vmatprep.subr.bf16.mxu1 %v19695_v43  ;;  %v17372_v41 = vpop.f32.mrb[15].mxu1  ;;  %v19719_v35 = vld [vmem:[#allocation5 + $0x1fcc] ss:$12 sps:$4 sm:$0xff]   ;;  %v19724_v43 = vld [vmem:[#allocation5 + $0x1fe4] ss:$12 sps:$4 sm:$0xff]  }
 0x3b8   :  { %12759 = vmatprep.subr.bf16.mxu0 %v19694_v37  ;;  %v21339_v55 = vadd.f32 %v17370_v10, %v21332_v38  ;;  %v17373_v16 = vadd.f32 %v17372_v41, %v17371_v11  ;;  %v19702_v38 = vld [vmem:[#allocation5 + $0x1f80] ss:$12 sps:$4 sm:$0xff]   ;;  %v19721_v37 = vld [vmem:[#allocation5 + $0xf50] ss:$12 sps:$4 sm:$0xff]   ;;  %v19727_v10 = vld [vmem:[#allocation5 + $0x1ff8] ss:$12 sps:$4 sm:$0xff]  }
 0x3b9   :  { %v19729_v4 = vld [vmem:[#allocation5 + $0x1ffc] ss:$12 sps:$4 sm:$0xff]   ;;  %v19731_v11 = vld [vmem:[#allocation5 + $0xf80] ss:$12 sps:$4 sm:$0xff]  }
 0x3ba   :  { %17519 = vmatpush3.bf16.msra.mxu1 %v19696_v2  ;;  %v21342_v30 = vadd.f32 %v17373_v16, %v21334_v13  ;;  %v19711_v13 = vld [vmem:[#allocation5 + $0xf20] ss:$12 sps:$4 sm:$0xff]   ;;  %v19732_v41 = vld [vmem:[#allocation5 + $0x2010] ss:$12 sps:$4 sm:$0xff]  }
 0x3bb   :  { %12760 = vmatpush1.bf16.msra.mxu0 %v19692_v61  ;;  %17520 = vmatprep.subr.bf16.mxu1 %v19700_v12  ;;  %v19725_v61 = vld [vmem:[#allocation5 + $0x1028] ss:$12 sps:$4 sm:$0xff]   ;;  %v19722_v2 = vld [vmem:[#allocation5 + $0x1fe0] ss:$12 sps:$4 sm:$0xff]   ;;  %v19735_v12 = vld [vmem:[#allocation5 + $0x1058] ss:$12 sps:$4 sm:$0xff]  }
 0x3bc   :  { %12761 = vmatprep.subr.bf16.mxu0 %v19699_v48  ;;  %v19734_v48 = vld [vmem:[#allocation5 + $0x2014] ss:$12 sps:$4 sm:$0xff]  }
 0x3be   :  { %17521 = vmatpush3.bf16.msra.mxu1 %v19701_v51 }
 0x3bf   :  { %12762 = vmatpush1.bf16.msra.mxu0 %v19697_v62  ;;  %17528 = vmatprep.subr.bf16.mxu1 %v19705_v58  ;;  %v19736_v62 = vld [vmem:[#allocation5 + $0xf98] ss:$12 sps:$4 sm:$0xff]  }
 0x3c0   :  { %12774 = vmatprep.subr.bf16.mxu0 %v19704_v53 }
 0x3c1   :  { %13821 = vmatmul.mubr.bf16.vlgmr.msra.gmra.mrb[40].mxu1 %v21199_v31  ;;  %v19720_v31 = vld [vmem:[#allocation5 + $0x1010] ss:$12 sps:$4 sm:$0xff]  }
 0x3c2   :  { %12764 = vmatmul.mubr.bf16.vlgmr.msra.gmra.mrb[0].mxu0 %v21344_v52  ;;  %17529 = vmatpush3.bf16.msra.mxu1 %v19706_v40 }
 0x3c3   :  { %12775 = vmatpush1.bf16.msra.mxu0 %v19702_v38  ;;  %17530 = vmatprep.subr.bf16.mxu1 %v19710_v15  ;;  %v19744_v15 = vld [vmem:[#allocation5 + $0x2044] ss:$12 sps:$4 sm:$0xff]  }
 0x3c4   :  { %12776 = vmatprep.subr.bf16.mxu0 %v19709_v21  ;;  %13861 = vmatprep.mubr.bf16.mxu1 %v21205_v46  ;;  %v19726_v46 = vld [vmem:[#allocation5 + $0xf68] ss:$12 sps:$4 sm:$0xff]   ;;  %v19741_v21 = vld [vmem:[#allocation5 + $0xfb0] ss:$12 sps:$4 sm:$0xff]  }
 0x3c5   :  { %12806 = vmatprep.mubr.bf16.mxu0 %v21346_v25 }
 0x3c6   :  { %17531 = vmatpush3.bf16.msra.mxu1 %v19711_v13  ;;  %v19745_v13 = vld [vmem:[#allocation5 + $0x1148] ss:$12 sps:$4 sm:$0xff]  }
 0x3c7   :  { %12777 = vmatpush1.bf16.msra.mxu0 %v19707_v24  ;;  %17532 = vmatprep.subr.bf16.mxu1 %v19715_v27  ;;  %v19746_v27 = vld [vmem:[#allocation5 + $0x1088] ss:$12 sps:$4 sm:$0xff]  }
 0x3c8   :  { %12778 = vmatprep.subr.bf16.mxu0 %v19714_v26  ;;  %v19742_v26 = vld [vmem:[#allocation5 + $0x2040] ss:$12 sps:$4 sm:$0xff]  }
 0x3ca   :  { %17533 = vmatpush3.bf16.msra.mxu1 %v19716_v33  ;;  %v19747_v33 = vld [vmem:[#allocation5 + $0x2058] ss:$12 sps:$4 sm:$0xff]  }
 0x3cb   :  { %12779 = vmatpush1.bf16.msra.mxu0 %v19712_v47  ;;  %17534 = vmatprep.subr.bf16.mxu1 %v19720_v31  ;;  %v19749_v47 = vld [vmem:[#allocation5 + $0x205c] ss:$12 sps:$4 sm:$0xff]   ;;  %v19754_v31 = vld [vmem:[#allocation5 + $0x2074] ss:$12 sps:$4 sm:$0xff]  }
 0x3cc   :  { %12780 = vmatprep.subr.bf16.mxu0 %v19719_v35  ;;  %v19751_v35 = vld [vmem:[#allocation5 + $0x10a0] ss:$12 sps:$4 sm:$0xff]  }
 0x3ce   :  { %17535 = vmatpush3.bf16.msra.mxu1 %v19721_v37  ;;  %v19756_v37 = vld [vmem:[#allocation5 + $0x10b8] ss:$12 sps:$4 sm:$0xff]  }
 0x3cf   :  { %12781 = vmatpush1.bf16.msra.mxu0 %v19717_v36  ;;  %17536 = vmatprep.subr.bf16.mxu1 %v19725_v61  ;;  %v19752_v36 = vld [vmem:[#allocation5 + $0x2070] ss:$12 sps:$4 sm:$0xff]  }
 0x3d0   :  { %12782 = vmatprep.subr.bf16.mxu0 %v19724_v43  ;;  %v19759_v43 = vld [vmem:[#allocation5 + $0x208c] ss:$12 sps:$4 sm:$0xff]   ;;  %v19760_v61 = vld [vmem:[#allocation5 + $0x1190] ss:$12 sps:$4 sm:$0xff]  }
 0x3d2   :  { %17537 = vmatpush3.bf16.msra.mxu1 %v19726_v46  ;;  %v19764_v46 = vld [vmem:[#allocation5 + $0x20a4] ss:$12 sps:$4 sm:$0xff]  }
 0x3d3   :  { %12783 = vmatpush1.bf16.msra.mxu0 %v19722_v2  ;;  %17538 = vmatprep.subr.bf16.mxu1 %v19730_v5  ;;  %v19757_v2 = vld [vmem:[#allocation5 + $0x2088] ss:$12 sps:$4 sm:$0xff]   ;;  %v19762_v5 = vld [vmem:[#allocation5 + $0x20a0] ss:$12 sps:$4 sm:$0xff]  }
 0x3d4   :  { %12784 = vmatprep.subr.bf16.mxu0 %v19729_v4  ;;  %v17390_v51 = vpop.f32.mrb[16].mxu1  ;;  %v19765_v4 = vld [vmem:[#allocation5 + $0x11a8] ss:$12 sps:$4 sm:$0xff]  }
 0x3d5   :  { %v17391_v16 = vpop.f32.mrb[17].mxu1 }
 0x3d6   :  { %17539 = vmatpush3.bf16.msra.mxu1 %v19731_v11  ;;  %v17392_v53 = vadd.f32 %v17391_v16, %v17390_v51  ;;  %v17393_v58 = vpop.f32.mrb[18].mxu1  ;;  %v19770_v11 = vld [vmem:[#allocation5 + $0x11c0] ss:$12 sps:$4 sm:$0xff]   ;;  %v19772_v51 = vld [vmem:[#allocation5 + $0x20d0] ss:$12 sps:$4 sm:$0xff]  }
 0x3d7   :  { %12785 = vmatpush1.bf16.msra.mxu0 %v19727_v10  ;;  %17540 = vmatprep.subr.bf16.mxu1 %v19735_v12  ;;  %v17394_v18 = vpop.f32.mrb[19].mxu1  ;;  %v19766_v10 = vld [vmem:[#allocation5 + $0x10e8] ss:$12 sps:$4 sm:$0xff]   ;;  %v19771_v12 = vld [vmem:[#allocation5 + $0x1100] ss:$12 sps:$4 sm:$0xff]  }
 0x3d8   :  { %12786 = vmatprep.subr.bf16.mxu0 %v19734_v48  ;;  %v21353_v38 = vadd.f32 %v17392_v53, %v21339_v55  ;;  %v17395_v40 = vadd.f32 %v17394_v18, %v17393_v58  ;;  %v19750_v55 = vld [vmem:[#allocation5 + $0x1160] ss:$12 sps:$4 sm:$0xff]   ;;  %v19767_v48 = vld [vmem:[#allocation5 + $0x20b8] ss:$12 sps:$4 sm:$0xff]  }
 0x3d9   :  { %v19776_v16 = vld [vmem:[#allocation5 + $0x1118] ss:$12 sps:$4 sm:$0xff]  }
 0x3da   :  { %17541 = vmatpush3.bf16.msra.mxu1 %v19736_v62  ;;  %v21356_v24 = vadd.f32 %v17395_v40, %v21342_v30  ;;  %v19755_v30 = vld [vmem:[#allocation5 + $0x1178] ss:$12 sps:$4 sm:$0xff]  }
 0x3db   :  { %12787 = vmatpush1.bf16.msra.mxu0 %v19732_v41  ;;  %17542 = vmatprep.subr.bf16.mxu1 %v19740_v6  ;;  %v19774_v41 = vld [vmem:[#allocation5 + $0x20d4] ss:$12 sps:$4 sm:$0xff]   ;;  %v19775_v62 = vld [vmem:[#allocation5 + $0x11d8] ss:$12 sps:$4 sm:$0xff]  }
 0x3dc   :  { %12788 = vmatprep.subr.bf16.mxu0 %v19739_v22  ;;  %v19779_v18 = vld [vmem:[#allocation5 + $0x20ec] ss:$12 sps:$4 sm:$0xff]  }
 0x3de   :  { %17543 = vmatpush3.bf16.msra.mxu1 %v19741_v21  ;;  %v19777_v21 = vld [vmem:[#allocation5 + $0x20e8] ss:$12 sps:$4 sm:$0xff]  }
 0x3df   :  { %12789 = vmatpush1.bf16.msra.mxu0 %v19737_v28  ;;  %17550 = vmatprep.subr.bf16.mxu1 %v19745_v13  ;;  %v19780_v28 = vld [vmem:[#allocation5 + $0x11f0] ss:$12 sps:$4 sm:$0xff]  }
 0x3e0   :  { %12790 = vmatprep.subr.bf16.mxu0 %v19744_v15  ;;  %v19781_v15 = vld [vmem:[#allocation5 + $0x1130] ss:$12 sps:$4 sm:$0xff]  }
 0x3e1   :  { %13862 = vmatmul.mubr.bf16.vlgmr.msra.gmra.mrb[44].mxu1 %v21211_v59  ;;  %v19761_v59 = vld [vmem:[#allocation5 + $0x10d0] ss:$12 sps:$4 sm:$0xff]  }
 0x3e2   :  { %17551 = vmatpush3.bf16.msra.mxu1 %v19746_v27  ;;  %13902 = vmatprep.mubr.bf16.mxu1 %v21215_v1  ;;  %v19769_v1 = vld [vmem:[#allocation5 + $0x20bc] ss:$12 sps:$4 sm:$0xff]   ;;  %v19784_v27 = vld [vmem:[#allocation5 + $0x2104] ss:$12 sps:$4 sm:$0xff]  }
 0x3e3   :  { %12791 = vmatpush1.bf16.msra.mxu0 %v19742_v26  ;;  %17552 = vmatprep.subr.bf16.mxu1 %v19750_v55  ;;  %v160_v55 = vld [vmem:[#allocation2 + $0x150] sm:$0xff] }
 0x3e4   :  { %12792 = vmatprep.subr.bf16.mxu0 %v19749_v47  ;;  %v19785_v47 = vld [vmem:[#allocation5 + $0x12c8] ss:$12 sps:$4 sm:$0xff]  }
 0x3e6   :  { %17553 = vmatpush3.bf16.msra.mxu1 %v19751_v35 }
 0x3e7   :  { %12793 = vmatpush1.bf16.msra.mxu0 %v19747_v33  ;;  %17554 = vmatprep.subr.bf16.mxu1 %v19755_v30  ;;  %v232_v33 = vld [vmem:[#allocation2 + $0x390] sm:$0xf]  ;;  %v235_v30 = vld [vmem:[#allocation2 + $0x3a8] sm:$0xf] }
 0x3e8   :  { %12794 = vmatprep.subr.bf16.mxu0 %v19754_v31  ;;  %v163_v31 = vld [vmem:[#allocation2 + $0x168] sm:$0xff] }
 0x3ea   :  { %17555 = vmatpush3.bf16.msra.mxu1 %v19756_v37  ;;  %v19786_v37 = vld [vmem:[#allocation5 + $0x1208] ss:$12 sps:$4 sm:$0xff]  }
 0x3eb   :  { %12795 = vmatpush1.bf16.msra.mxu0 %v19752_v36  ;;  %17556 = vmatprep.subr.bf16.mxu1 %v19760_v61  ;;  %v21366_v36 = vpack.c.bf16 %v232_v33, %v160_v55  ;;  %v19790_v61 = vld [vmem:[#allocation5 + $0x12e0] ss:$12 sps:$4 sm:$0xff]  }
 0x3ec   :  { %12796 = vmatprep.subr.bf16.mxu0 %v19759_v43  ;;  %v19789_v43 = vld [vmem:[#allocation5 + $0x211c] ss:$12 sps:$4 sm:$0xff]  }
 0x3ee   :  { %17557 = vmatpush3.bf16.msra.mxu1 %v19761_v59  ;;  %v21368_v59 = vpack.c.bf16 %v235_v30, %v163_v31  ;;  %v19817_v31 = vld [vmem:[#allocation5 + $0x21a8] ss:$12 sps:$4 sm:$0xff]  }
 0x3ef   :  { %12797 = vmatpush1.bf16.msra.mxu0 %v19757_v2  ;;  %17558 = vmatprep.subr.bf16.mxu1 %v19765_v4  ;;  %v19787_v2 = vld [vmem:[#allocation5 + $0x2118] ss:$12 sps:$4 sm:$0xff]  }
 0x3f0   :  { %12798 = vmatprep.subr.bf16.mxu0 %v19764_v46  ;;  %v19794_v46 = vld [vmem:[#allocation5 + $0x2134] ss:$12 sps:$4 sm:$0xff]   ;;  %v19795_v4 = vld [vmem:[#allocation5 + $0x12f8] ss:$12 sps:$4 sm:$0xff]  }
 0x3f2   :  { %17559 = vmatpush3.bf16.msra.mxu1 %v19766_v10  ;;  %v19796_v10 = vld [vmem:[#allocation5 + $0x1238] ss:$12 sps:$4 sm:$0xff]  }
 0x3f3   :  { %12799 = vmatpush1.bf16.msra.mxu0 %v19762_v5  ;;  %17560 = vmatprep.subr.bf16.mxu1 %v19770_v11  ;;  %v19792_v5 = vld [vmem:[#allocation5 + $0x2130] ss:$12 sps:$4 sm:$0xff]   ;;  %v19797_v11 = vld [vmem:[#allocation5 + $0x2148] ss:$12 sps:$4 sm:$0xff]  }
 0x3f4   :  { %12800 = vmatprep.subr.bf16.mxu0 %v19769_v1  ;;  %v17412_v53 = vpop.f32.mrb[20].mxu1  ;;  %v19799_v1 = vld [vmem:[#allocation5 + $0x214c] ss:$12 sps:$4 sm:$0xff]  }
 0x3f5   :  { %v17413_v58 = vpop.f32.mrb[21].mxu1 }
 0x3f6   :  { %17561 = vmatpush3.bf16.msra.mxu1 %v19771_v12  ;;  %v17414_v22 = vadd.f32 %v17413_v58, %v17412_v53  ;;  %v17415_v6 = vpop.f32.mrb[22].mxu1  ;;  %v19804_v12 = vld [vmem:[#allocation5 + $0x2164] ss:$12 sps:$4 sm:$0xff]   ;;  %v19811_v58 = vld [vmem:[#allocation5 + $0x1280] ss:$12 sps:$4 sm:$0xff]  }
 0x3f7   :  { %12801 = vmatpush1.bf16.msra.mxu0 %v19767_v48  ;;  %17562 = vmatprep.subr.bf16.mxu1 %v19775_v62  ;;  %v17416_v40 = vpop.f32.mrb[23].mxu1  ;;  %v19801_v48 = vld [vmem:[#allocation5 + $0x1250] ss:$12 sps:$4 sm:$0xff]   ;;  %v19802_v62 = vld [vmem:[#allocation5 + $0x2160] ss:$12 sps:$4 sm:$0xff]  }
 0x3f8   :  { %12802 = vmatprep.subr.bf16.mxu0 %v19774_v41  ;;  %v21361_v13 = vadd.f32 %v17414_v22, %v21353_v38  ;;  %v17417_v26 = vadd.f32 %v17416_v40, %v17415_v6  ;;  %v19782_v38 = vld [vmem:[#allocation5 + $0x2100] ss:$12 sps:$4 sm:$0xff]   ;;  %v19805_v41 = vld [vmem:[#allocation5 + $0x1328] ss:$12 sps:$4 sm:$0xff]   ;;  %v19807_v53 = vld [vmem:[#allocation5 + $0x2178] ss:$12 sps:$4 sm:$0xff]  }
 0x3f9   :  { %v19814_v22 = vld [vmem:[#allocation5 + $0x2194] ss:$12 sps:$4 sm:$0xff]   ;;  %v19815_v6 = vld [vmem:[#allocation5 + $0x1358] ss:$12 sps:$4 sm:$0xff]  }
 0x3fa   :  { %17563 = vmatpush3.bf16.msra.mxu1 %v19776_v16  ;;  %v21364_v35 = vadd.f32 %v17417_v26, %v21356_v24  ;;  %v19791_v24 = vld [vmem:[#allocation5 + $0x1220] ss:$12 sps:$4 sm:$0xff]  }
 0x3fb   :  { %12803 = vmatpush1.bf16.msra.mxu0 %v19772_v51  ;;  %17564 = vmatprep.subr.bf16.mxu1 %v19780_v28  ;;  %v19809_v51 = vld [vmem:[#allocation5 + $0x217c] ss:$12 sps:$4 sm:$0xff]   ;;  %v19810_v16 = vld [vmem:[#allocation5 + $0x1340] ss:$12 sps:$4 sm:$0xff]   ;;  %v19816_v28 = vld [vmem:[#allocation5 + $0x1298] ss:$12 sps:$4 sm:$0xff]  }
 0x3fc   :  { %12804 = vmatprep.subr.bf16.mxu0 %v19779_v18  ;;  %v19812_v18 = vld [vmem:[#allocation5 + $0x2190] ss:$12 sps:$4 sm:$0xff]  }
 0x3fe   :  { %17565 = vmatpush3.bf16.msra.mxu1 %v19781_v15 }
 0x3ff   :  { %12805 = vmatpush1.bf16.msra.mxu0 %v19777_v21  ;;  %17572 = vmatprep.subr.bf16.mxu1 %v19785_v47  ;;  %v19820_v47 = vld [vmem:[#allocation5 + $0x1370] ss:$12 sps:$4 sm:$0xff]  }
 0x400   :  { %12817 = vmatprep.subr.bf16.mxu0 %v19784_v27  ;;  %v19819_v27 = vld [vmem:[#allocation5 + $0x21ac] ss:$12 sps:$4 sm:$0xff]  }
 0x401   :  { %13903 = vmatmul.mubr.bf16.vlgmr.msra.gmra.mrb[48].mxu1 %v21223_v23  ;;  %v19800_v23 = vld [vmem:[#allocation5 + $0x1310] ss:$12 sps:$4 sm:$0xff]  }
 0x402   :  { %12807 = vmatmul.mubr.bf16.vlgmr.msra.gmra.mrb[0].mxu0 %v21366_v36  ;;  %17573 = vmatpush3.bf16.msra.mxu1 %v19786_v37  ;;  %v19821_v37 = vld [vmem:[#allocation5 + $0x12b0] ss:$12 sps:$4 sm:$0xff]  }
 0x403   :  { %12818 = vmatpush1.bf16.msra.mxu0 %v19782_v38  ;;  %17574 = vmatprep.subr.bf16.mxu1 %v19790_v61  ;;  %v19825_v61 = vld [vmem:[#allocation5 + $0x1448] ss:$12 sps:$4 sm:$0xff]  }
 0x404   :  { %12819 = vmatprep.subr.bf16.mxu0 %v19789_v43  ;;  %13943 = vmatprep.mubr.bf16.mxu1 %v21227_v29  ;;  %v19806_v29 = vld [vmem:[#allocation5 + $0x1268] ss:$12 sps:$4 sm:$0xff]   ;;  %v19824_v43 = vld [vmem:[#allocation5 + $0x21c4] ss:$12 sps:$4 sm:$0xff]  }
 0x405   :  { %12849 = vmatprep.mubr.bf16.mxu0 %v21368_v59 }
 0x406   :  { %17575 = vmatpush3.bf16.msra.mxu1 %v19791_v24  ;;  %v19826_v24 = vld [vmem:[#allocation5 + $0x1388] ss:$12 sps:$4 sm:$0xff]  }
 0x407   :  { %12820 = vmatpush1.bf16.msra.mxu0 %v19787_v2  ;;  %17576 = vmatprep.subr.bf16.mxu1 %v19795_v4  ;;  %v19822_v2 = vld [vmem:[#allocation5 + $0x21c0] ss:$12 sps:$4 sm:$0xff]   ;;  %v19827_v4 = vld [vmem:[#allocation5 + $0x21d8] ss:$12 sps:$4 sm:$0xff]  }
 0x408   :  { %12821 = vmatprep.subr.bf16.mxu0 %v19794_v46  ;;  %v19829_v46 = vld [vmem:[#allocation5 + $0x21dc] ss:$12 sps:$4 sm:$0xff]  }
 0x40a   :  { %17577 = vmatpush3.bf16.msra.mxu1 %v19796_v10  ;;  %v19835_v10 = vld [vmem:[#allocation5 + $0x1478] ss:$12 sps:$4 sm:$0xff]  }
 0x40b   :  { %12822 = vmatpush1.bf16.msra.mxu0 %v19792_v5  ;;  %17578 = vmatprep.subr.bf16.mxu1 %v19800_v23  ;;  %v19834_v5 = vld [vmem:[#allocation5 + $0x21f4] ss:$12 sps:$4 sm:$0xff]   ;;  %v19836_v23 = vld [vmem:[#allocation5 + $0x13b8] ss:$12 sps:$4 sm:$0xff]  }
 0x40c   :  { %12823 = vmatprep.subr.bf16.mxu0 %v19799_v1  ;;  %v19832_v1 = vld [vmem:[#allocation5 + $0x21f0] ss:$12 sps:$4 sm:$0xff]  }
 0x40e   :  { %17579 = vmatpush3.bf16.msra.mxu1 %v19801_v48  ;;  %v19840_v48 = vld [vmem:[#allocation5 + $0x1490] ss:$12 sps:$4 sm:$0xff]  }
 0x40f   :  { %12824 = vmatpush1.bf16.msra.mxu0 %v19797_v11  ;;  %17580 = vmatprep.subr.bf16.mxu1 %v19805_v41  ;;  %v19839_v11 = vld [vmem:[#allocation5 + $0x220c] ss:$12 sps:$4 sm:$0xff]   ;;  %v19844_v41 = vld [vmem:[#allocation5 + $0x2224] ss:$12 sps:$4 sm:$0xff]  }
 0x410   :  { %12825 = vmatprep.subr.bf16.mxu0 %v19804_v12  ;;  %v19837_v12 = vld [vmem:[#allocation5 + $0x2208] ss:$12 sps:$4 sm:$0xff]  }
 0x412   :  { %17581 = vmatpush3.bf16.msra.mxu1 %v19806_v29  ;;  %v19842_v29 = vld [vmem:[#allocation5 + $0x2220] ss:$12 sps:$4 sm:$0xff]  }
 0x413   :  { %12826 = vmatpush1.bf16.msra.mxu0 %v19802_v62  ;;  %17582 = vmatprep.subr.bf16.mxu1 %v19810_v16  ;;  %v19845_v62 = vld [vmem:[#allocation5 + $0x14a8] ss:$12 sps:$4 sm:$0xff]   ;;  %v19850_v16 = vld [vmem:[#allocation5 + $0x14c0] ss:$12 sps:$4 sm:$0xff]  }
 0x414   :  { %12827 = vmatprep.subr.bf16.mxu0 %v19809_v51  ;;  %v17434_v40 = vpop.f32.mrb[24].mxu1  ;;  %v19846_v51 = vld [vmem:[#allocation5 + $0x13e8] ss:$12 sps:$4 sm:$0xff]  }
 0x415   :  { %v17435_v21 = vpop.f32.mrb[25].mxu1 }
 0x416   :  { %17583 = vmatpush3.bf16.msra.mxu1 %v19811_v58  ;;  %v17436_v15 = vadd.f32 %v17435_v21, %v17434_v40  ;;  %v17437_v26 = vpop.f32.mrb[26].mxu1  ;;  %v19851_v58 = vld [vmem:[#allocation5 + $0x1400] ss:$12 sps:$4 sm:$0xff]   ;;  %v19856_v40 = vld [vmem:[#allocation5 + $0x1418] ss:$12 sps:$4 sm:$0xff]  }
 0x417   :  { %12828 = vmatpush1.bf16.msra.mxu0 %v19807_v53  ;;  %17584 = vmatprep.subr.bf16.mxu1 %v19815_v6  ;;  %v17438_v55 = vpop.f32.mrb[27].mxu1  ;;  %v19847_v53 = vld [vmem:[#allocation5 + $0x2238] ss:$12 sps:$4 sm:$0xff]  }
 0x418   :  { %12829 = vmatprep.subr.bf16.mxu0 %v19814_v22  ;;  %v21375_v33 = vadd.f32 %v17436_v15, %v21361_v13  ;;  %v17439_v30 = vadd.f32 %v17438_v55, %v17437_v26  ;;  %v19830_v13 = vld [vmem:[#allocation5 + $0x1460] ss:$12 sps:$4 sm:$0xff]   ;;  %v19855_v6 = vld [vmem:[#allocation5 + $0x14d8] ss:$12 sps:$4 sm:$0xff]   ;;  %v19860_v55 = vld [vmem:[#allocation5 + $0x14f0] ss:$12 sps:$4 sm:$0xff]  }
 0x419   :  { %v19854_v22 = vld [vmem:[#allocation5 + $0x2254] ss:$12 sps:$4 sm:$0xff]  }
 0x41a   :  { %17585 = vmatpush3.bf16.msra.mxu1 %v19816_v28  ;;  %v21378_v38 = vadd.f32 %v17439_v30, %v21364_v35  ;;  %v19831_v35 = vld [vmem:[#allocation5 + $0x13a0] ss:$12 sps:$4 sm:$0xff]   ;;  %v19852_v28 = vld [vmem:[#allocation5 + $0x2250] ss:$12 sps:$4 sm:$0xff]  }
 0x41b   :  { %12830 = vmatpush1.bf16.msra.mxu0 %v19812_v18  ;;  %17586 = vmatprep.subr.bf16.mxu1 %v19820_v47  ;;  %v19859_v47 = vld [vmem:[#allocation5 + $0x226c] ss:$12 sps:$4 sm:$0xff]  }
 0x41c   :  { %12831 = vmatprep.subr.bf16.mxu0 %v19819_v27 }
 0x41e   :  { %17587 = vmatpush3.bf16.msra.mxu1 %v19821_v37  ;;  %v19857_v37 = vld [vmem:[#allocation5 + $0x2268] ss:$12 sps:$4 sm:$0xff]  }
 0x41f   :  { %12832 = vmatpush1.bf16.msra.mxu0 %v19817_v31  ;;  %17594 = vmatprep.subr.bf16.mxu1 %v19825_v61  ;;  %v19864_v61 = vld [vmem:[#allocation5 + $0x2284] ss:$12 sps:$4 sm:$0xff]  }
 0x420   :  { %12833 = vmatprep.subr.bf16.mxu0 %v19824_v43  ;;  %v19861_v43 = vld [vmem:[#allocation5 + $0x1430] ss:$12 sps:$4 sm:$0xff]  }
 0x421   :  { %13944 = vmatmul.mubr.bf16.vlgmr.msra.gmra.mrb[52].mxu1 %v21235_v63  ;;  %v19841_v63 = vld [vmem:[#allocation5 + $0x13d0] ss:$12 sps:$4 sm:$0xff]  }
 0x422   :  { %17595 = vmatpush3.bf16.msra.mxu1 %v19826_v24  ;;  %13984 = vmatprep.mubr.bf16.mxu1 %v21239_v7  ;;  %v19849_v7 = vld [vmem:[#allocation5 + $0x223c] ss:$12 sps:$4 sm:$0xff]  }
 0x423   :  { %12834 = vmatpush1.bf16.msra.mxu0 %v19822_v2  ;;  %17596 = vmatprep.subr.bf16.mxu1 %v19830_v13  ;;  %v19865_v2 = vld [vmem:[#allocation5 + $0x15c8] ss:$12 sps:$4 sm:$0xff]   ;;  %v234_v13 = vld [vmem:[#allocation2 + $0x3a0] sm:$0xf] }
 0x424   :  { %12835 = vmatprep.subr.bf16.mxu0 %v19829_v46  ;;  %v162_v46 = vld [vmem:[#allocation2 + $0x160] sm:$0xff] }
 0x426   :  { %17597 = vmatpush3.bf16.msra.mxu1 %v19831_v35  ;;  %v237_v35 = vld [vmem:[#allocation2 + $0x3b8] sm:$0xf] }
 0x427   :  { %12836 = vmatpush1.bf16.msra.mxu0 %v19827_v4  ;;  %17598 = vmatprep.subr.bf16.mxu1 %v19835_v10  ;;  %v165_v4 = vld [vmem:[#allocation2 + $0x178] sm:$0xff]  ;;  %v19866_v10 = vld [vmem:[#allocation5 + $0x1508] ss:$12 sps:$4 sm:$0xff]  }
 0x428   :  { %12837 = vmatprep.subr.bf16.mxu0 %v19834_v5  ;;  %v21388_v5 = vpack.c.bf16 %v234_v13, %v162_v46  ;;  %v19897_v13 = vld [vmem:[#allocation5 + $0x2328] ss:$12 sps:$4 sm:$0xff]  }
 0x42a   :  { %17599 = vmatpush3.bf16.msra.mxu1 %v19836_v23  ;;  %v19870_v23 = vld [vmem:[#allocation5 + $0x15e0] ss:$12 sps:$4 sm:$0xff]  }
 0x42b   :  { %12838 = vmatpush1.bf16.msra.mxu0 %v19832_v1  ;;  %17600 = vmatprep.subr.bf16.mxu1 %v19840_v48  ;;  %v19869_v1 = vld [vmem:[#allocation5 + $0x229c] ss:$12 sps:$4 sm:$0xff]   ;;  %v19871_v48 = vld [vmem:[#allocation5 + $0x1520] ss:$12 sps:$4 sm:$0xff]  }
 0x42c   :  { %12839 = vmatprep.subr.bf16.mxu0 %v19839_v11  ;;  %v21390_v11 = vpack.c.bf16 %v237_v35, %v165_v4  ;;  %v19901_v35 = vld [vmem:[#allocation5 + $0x15b0] ss:$12 sps:$4 sm:$0xff]  }
 0x42e   :  { %17601 = vmatpush3.bf16.msra.mxu1 %v19841_v63  ;;  %v19875_v63 = vld [vmem:[#allocation5 + $0x15f8] ss:$12 sps:$4 sm:$0xff]  }
 0x42f   :  { %12840 = vmatpush1.bf16.msra.mxu0 %v19837_v12  ;;  %17602 = vmatprep.subr.bf16.mxu1 %v19845_v62  ;;  %v19874_v12 = vld [vmem:[#allocation5 + $0x22b4] ss:$12 sps:$4 sm:$0xff]   ;;  %v19876_v62 = vld [vmem:[#allocation5 + $0x1538] ss:$12 sps:$4 sm:$0xff]  }
 0x430   :  { %12841 = vmatprep.subr.bf16.mxu0 %v19844_v41  ;;  %v19872_v41 = vld [vmem:[#allocation5 + $0x22b0] ss:$12 sps:$4 sm:$0xff]  }
 0x432   :  { %17603 = vmatpush3.bf16.msra.mxu1 %v19846_v51  ;;  %v19877_v51 = vld [vmem:[#allocation5 + $0x22c8] ss:$12 sps:$4 sm:$0xff]  }
 0x433   :  { %12842 = vmatpush1.bf16.msra.mxu0 %v19842_v29  ;;  %17604 = vmatprep.subr.bf16.mxu1 %v19850_v16  ;;  %v19879_v29 = vld [vmem:[#allocation5 + $0x22cc] ss:$12 sps:$4 sm:$0xff]   ;;  %v19884_v16 = vld [vmem:[#allocation5 + $0x22e4] ss:$12 sps:$4 sm:$0xff]  }
 0x434   :  { %12843 = vmatprep.subr.bf16.mxu0 %v19849_v7  ;;  %v17456_v18 = vpop.f32.mrb[28].mxu1  ;;  %v19881_v7 = vld [vmem:[#allocation5 + $0x1550] ss:$12 sps:$4 sm:$0xff]  }
 0x435   :  { %v17457_v21 = vpop.f32.mrb[29].mxu1 }
 0x436   :  { %v17458_v15 = vadd.f32 %v17457_v21, %v17456_v18  ;;  %v17459_v26 = vpop.f32.mrb[30].mxu1  ;;  %17605 = vmatpush3.bf16.msra.mxu1 %v19851_v58  ;;  %v19882_v58 = vld [vmem:[#allocation5 + $0x22e0] ss:$12 sps:$4 sm:$0xff]   ;;  %v19887_v18 = vld [vmem:[#allocation5 + $0x22f8] ss:$12 sps:$4 sm:$0xff]  }
 0x437   :  { %12844 = vmatpush1.bf16.msra.mxu0 %v19847_v53  ;;  %v17460_v27 = vpop.f32.mrb[31].mxu1  ;;  %17606 = vmatprep.subr.bf16.mxu1 %v19855_v6  ;;  %v19885_v53 = vld [vmem:[#allocation5 + $0x1628] ss:$12 sps:$4 sm:$0xff]   ;;  %v19890_v6 = vld [vmem:[#allocation5 + $0x1640] ss:$12 sps:$4 sm:$0xff]  }
 0x438   :  { %12845 = vmatprep.subr.bf16.mxu0 %v19854_v22  ;;  %v21383_v31 = vadd.f32 %v17458_v15, %v21375_v33  ;;  %v17461_v30 = vadd.f32 %v17460_v27, %v17459_v26  ;;  %v19862_v33 = vld [vmem:[#allocation5 + $0x2280] ss:$12 sps:$4 sm:$0xff]   ;;  %v19889_v22 = vld [vmem:[#allocation5 + $0x22fc] ss:$12 sps:$4 sm:$0xff]   ;;  %v19895_v21 = vld [vmem:[#allocation5 + $0x1658] ss:$12 sps:$4 sm:$0xff]  }
 0x439   :  { %v19892_v26 = vld [vmem:[#allocation5 + $0x2310] ss:$12 sps:$4 sm:$0xff]   ;;  %v19896_v27 = vld [vmem:[#allocation5 + $0x1598] ss:$12 sps:$4 sm:$0xff]  }
 0x43a   :  { %v21386_v24 = vadd.f32 %v17461_v30, %v21378_v38  ;;  %17607 = vmatpush3.bf16.msra.mxu1 %v19856_v40  ;;  %v19867_v38 = vld [vmem:[#allocation5 + $0x2298] ss:$12 sps:$4 sm:$0xff]   ;;  %v19894_v40 = vld [vmem:[#allocation5 + $0x2314] ss:$12 sps:$4 sm:$0xff]  }
 0x43b   :  { %12846 = vmatpush1.bf16.msra.mxu0 %v19852_v28  ;;  %17608 = vmatprep.subr.bf16.mxu1 %v19860_v55  ;;  %v19891_v28 = vld [vmem:[#allocation5 + $0x1580] ss:$12 sps:$4 sm:$0xff]  }
 0x43c   :  { %12847 = vmatprep.subr.bf16.mxu0 %v19859_v47 }
 0x43e   :  { %17609 = vmatpush3.bf16.msra.mxu1 %v19861_v43  ;;  %v19899_v43 = vld [vmem:[#allocation5 + $0x232c] ss:$12 sps:$4 sm:$0xff]  }
 0x43f   :  { %12848 = vmatpush1.bf16.msra.mxu0 %v19857_v37  ;;  %17616 = vmatprep.subr.bf16.mxu1 %v19865_v2 }
 0x440   :  { %12860 = vmatprep.subr.bf16.mxu0 %v19864_v61  ;;  %v19900_v61 = vld [vmem:[#allocation5 + $0x1670] ss:$12 sps:$4 sm:$0xff]  }
 0x441   :  { %13985 = vmatmul.mubr.bf16.vlgmr.msra.gmra.mrb[56].mxu1 %v21247_v42  ;;  %v19880_v42 = vld [vmem:[#allocation5 + $0x1610] ss:$12 sps:$4 sm:$0xff]  }
 0x442   :  { %12850 = vmatmul.mubr.bf16.vlgmr.msra.gmra.mrb[0].mxu0 %v21388_v5  ;;  %17617 = vmatpush3.bf16.msra.mxu1 %v19866_v10  ;;  %v19905_v10 = vld [vmem:[#allocation5 + $0x1748] ss:$12 sps:$4 sm:$0xff]  }
 0x443   :  { %12861 = vmatpush1.bf16.msra.mxu0 %v19862_v33  ;;  %17618 = vmatprep.subr.bf16.mxu1 %v19870_v23  ;;  %v19904_v33 = vld [vmem:[#allocation5 + $0x2344] ss:$12 sps:$4 sm:$0xff]   ;;  %v19906_v23 = vld [vmem:[#allocation5 + $0x1688] ss:$12 sps:$4 sm:$0xff]  }
 0x444   :  { %12862 = vmatprep.subr.bf16.mxu0 %v19869_v1  ;;  %14025 = vmatprep.mubr.bf16.mxu1 %v21251_v54  ;;  %v19886_v54 = vld [vmem:[#allocation5 + $0x1568] ss:$12 sps:$4 sm:$0xff]   ;;  %v19902_v1 = vld [vmem:[#allocation5 + $0x2340] ss:$12 sps:$4 sm:$0xff]  }
 0x445   :  { %12892 = vmatprep.mubr.bf16.mxu0 %v21390_v11 }
 0x446   :  { %17619 = vmatpush3.bf16.msra.mxu1 %v19871_v48  ;;  %v19907_v48 = vld [vmem:[#allocation5 + $0x2358] ss:$12 sps:$4 sm:$0xff]  }
 0x447   :  { %12863 = vmatpush1.bf16.msra.mxu0 %v19867_v38  ;;  %17620 = vmatprep.subr.bf16.mxu1 %v19875_v63  ;;  %v19909_v38 = vld [vmem:[#allocation5 + $0x235c] ss:$12 sps:$4 sm:$0xff]   ;;  %v19915_v63 = vld [vmem:[#allocation5 + $0x1778] ss:$12 sps:$4 sm:$0xff]  }
 0x448   :  { %12864 = vmatprep.subr.bf16.mxu0 %v19874_v12  ;;  %v19914_v12 = vld [vmem:[#allocation5 + $0x2374] ss:$12 sps:$4 sm:$0xff]  }
 0x44a   :  { %17621 = vmatpush3.bf16.msra.mxu1 %v19876_v62  ;;  %v19916_v62 = vld [vmem:[#allocation5 + $0x16b8] ss:$12 sps:$4 sm:$0xff]  }
 0x44b   :  { %12865 = vmatpush1.bf16.msra.mxu0 %v19872_v41  ;;  %17622 = vmatprep.subr.bf16.mxu1 %v19880_v42  ;;  %v19912_v41 = vld [vmem:[#allocation5 + $0x2370] ss:$12 sps:$4 sm:$0xff]  }
 0x44c   :  { %12866 = vmatprep.subr.bf16.mxu0 %v19879_v29  ;;  %v19919_v29 = vld [vmem:[#allocation5 + $0x238c] ss:$12 sps:$4 sm:$0xff]   ;;  %v19920_v42 = vld [vmem:[#allocation5 + $0x1790] ss:$12 sps:$4 sm:$0xff]  }
 0x44e   :  { %17623 = vmatpush3.bf16.msra.mxu1 %v19881_v7  ;;  %v19924_v7 = vld [vmem:[#allocation5 + $0x23a4] ss:$12 sps:$4 sm:$0xff]  }
 0x44f   :  { %12867 = vmatpush1.bf16.msra.mxu0 %v19877_v51  ;;  %17624 = vmatprep.subr.bf16.mxu1 %v19885_v53  ;;  %v19917_v51 = vld [vmem:[#allocation5 + $0x2388] ss:$12 sps:$4 sm:$0xff]   ;;  %v19922_v53 = vld [vmem:[#allocation5 + $0x23a0] ss:$12 sps:$4 sm:$0xff]  }
 0x450   :  { %12868 = vmatprep.subr.bf16.mxu0 %v19884_v16  ;;  %v19925_v16 = vld [vmem:[#allocation5 + $0x17a8] ss:$12 sps:$4 sm:$0xff]  }
 0x452   :  { %17625 = vmatpush3.bf16.msra.mxu1 %v19886_v54  ;;  %v19930_v54 = vld [vmem:[#allocation5 + $0x17c0] ss:$12 sps:$4 sm:$0xff]  }
 0x453   :  { %12869 = vmatpush1.bf16.msra.mxu0 %v19882_v58  ;;  %17626 = vmatprep.subr.bf16.mxu1 %v19890_v6  ;;  %v19926_v58 = vld [vmem:[#allocation5 + $0x16e8] ss:$12 sps:$4 sm:$0xff]   ;;  %v19931_v6 = vld [vmem:[#allocation5 + $0x1700] ss:$12 sps:$4 sm:$0xff]  }
 0x454   :  { %12870 = vmatprep.subr.bf16.mxu0 %v19889_v22  ;;  %v17478_v15 = vpop.f32.mrb[32].mxu1  ;;  %v19927_v22 = vld [vmem:[#allocation5 + $0x23b8] ss:$12 sps:$4 sm:$0xff]  }
 0x455   :  { %v17479_v47 = vpop.f32.mrb[33].mxu1 }
 0x456   :  { %v17480_v55 = vadd.f32 %v17479_v47, %v17478_v15  ;;  %v17481_v30 = vpop.f32.mrb[34].mxu1  ;;  %17627 = vmatpush3.bf16.msra.mxu1 %v19891_v28  ;;  %v19935_v28 = vld [vmem:[#allocation5 + $0x17d8] ss:$12 sps:$4 sm:$0xff]  }
 0x457   :  { %12871 = vmatpush1.bf16.msra.mxu0 %v19887_v18  ;;  %v17482_v37 = vpop.f32.mrb[35].mxu1  ;;  %17628 = vmatprep.subr.bf16.mxu1 %v19895_v21  ;;  %v19934_v18 = vld [vmem:[#allocation5 + $0x23d4] ss:$12 sps:$4 sm:$0xff]   ;;  %v19932_v21 = vld [vmem:[#allocation5 + $0x23d0] ss:$12 sps:$4 sm:$0xff]  }
 0x458   :  { %12872 = vmatprep.subr.bf16.mxu0 %v19894_v40  ;;  %v21397_v2 = vadd.f32 %v17480_v55, %v21383_v31  ;;  %v17483_v46 = vadd.f32 %v17482_v37, %v17481_v30  ;;  %v19910_v31 = vld [vmem:[#allocation5 + $0x1760] ss:$12 sps:$4 sm:$0xff]   ;;  %v19936_v15 = vld [vmem:[#allocation5 + $0x1718] ss:$12 sps:$4 sm:$0xff]   ;;  %v19940_v37 = vld [vmem:[#allocation5 + $0x17f0] ss:$12 sps:$4 sm:$0xff]  }
 0x459   :  { %v19939_v30 = vld [vmem:[#allocation5 + $0x23ec] ss:$12 sps:$4 sm:$0xff]  }
 0x45a   :  { %v21400_v4 = vadd.f32 %v17483_v46, %v21386_v24  ;;  %17629 = vmatpush3.bf16.msra.mxu1 %v19896_v27  ;;  %v19911_v24 = vld [vmem:[#allocation5 + $0x16a0] ss:$12 sps:$4 sm:$0xff]   ;;  %v19937_v46 = vld [vmem:[#allocation5 + $0x23e8] ss:$12 sps:$4 sm:$0xff]  }
 0x45b   :  { %12873 = vmatpush1.bf16.msra.mxu0 %v19892_v26  ;;  %17630 = vmatprep.subr.bf16.mxu1 %v19900_v61 }
 0x45c   :  { %12874 = vmatprep.subr.bf16.mxu0 %v19899_v43 }
 0x45e   :  { %17631 = vmatpush3.bf16.msra.mxu1 %v19901_v35  ;;  %v19944_v35 = vld [vmem:[#allocation5 + $0x2404] ss:$12 sps:$4 sm:$0xff]  }
 0x45f   :  { %12875 = vmatpush1.bf16.msra.mxu0 %v19897_v13  ;;  %17638 = vmatprep.subr.bf16.mxu1 %v19905_v10  ;;  %v19941_v13 = vld [vmem:[#allocation5 + $0x1730] ss:$12 sps:$4 sm:$0xff]  }
 0x460   :  { %12876 = vmatprep.subr.bf16.mxu0 %v19904_v33  ;;  %v19945_v33 = vld [vmem:[#allocation5 + $0x18c8] ss:$12 sps:$4 sm:$0xff]  }
 0x461   :  { %14026 = vmatmul.mubr.bf16.vlgmr.msra.gmra.mrb[60].mxu1 %v21259_v39  ;;  %v19921_v39 = vld [vmem:[#allocation5 + $0x16d0] ss:$12 sps:$4 sm:$0xff]  }
 0x462   :  { %17639 = vmatpush3.bf16.msra.mxu1 %v19906_v23  ;;  %14066 = vmatprep.mubr.bf16.mxu1 %v21263_v56  ;;  %v19929_v56 = vld [vmem:[#allocation5 + $0x23bc] ss:$12 sps:$4 sm:$0xff]   ;;  %v236_v23 = vld [vmem:[#allocation2 + $0x3b0] sm:$0xf] }
 0x463   :  { %12877 = vmatpush1.bf16.msra.mxu0 %v19902_v1  ;;  %17640 = vmatprep.subr.bf16.mxu1 %v19910_v31  ;;  %v164_v1 = vld [vmem:[#allocation2 + $0x170] sm:$0xff]  ;;  %v239_v31 = vld [vmem:[#allocation2 + $0x3c8] sm:$0xf] }
 0x464   :  { %12878 = vmatprep.subr.bf16.mxu0 %v19909_v38  ;;  %v167_v38 = vld [vmem:[#allocation2 + $0x188] sm:$0xff] }
 0x466   :  { %17641 = vmatpush3.bf16.msra.mxu1 %v19911_v24  ;;  %v19946_v24 = vld [vmem:[#allocation5 + $0x1808] ss:$12 sps:$4 sm:$0xff]  }
 0x467   :  { %12879 = vmatpush1.bf16.msra.mxu0 %v19907_v48  ;;  %17642 = vmatprep.subr.bf16.mxu1 %v19915_v63  ;;  %v21410_v48 = vpack.c.bf16 %v236_v23, %v164_v1  ;;  %v19950_v63 = vld [vmem:[#allocation5 + $0x18e0] ss:$12 sps:$4 sm:$0xff]   ;;  %v19981_v23 = vld [vmem:[#allocation5 + $0x18b0] ss:$12 sps:$4 sm:$0xff]  }
 0x468   :  { %12880 = vmatprep.subr.bf16.mxu0 %v19914_v12  ;;  %v19949_v12 = vld [vmem:[#allocation5 + $0x241c] ss:$12 sps:$4 sm:$0xff]  }
 0x46a   :  { %17643 = vmatpush3.bf16.msra.mxu1 %v19916_v62  ;;  %v19951_v62 = vld [vmem:[#allocation5 + $0x1820] ss:$12 sps:$4 sm:$0xff]  }
 0x46b   :  { %12881 = vmatpush1.bf16.msra.mxu0 %v19912_v41  ;;  %17644 = vmatprep.subr.bf16.mxu1 %v19920_v42  ;;  %v21412_v41 = vpack.c.bf16 %v239_v31, %v167_v38  ;;  %v19955_v42 = vld [vmem:[#allocation5 + $0x18f8] ss:$12 sps:$4 sm:$0xff]   ;;  %v19985_v31 = vld [vmem:[#allocation5 + $0x1a48] ss:$12 sps:$4 sm:$0xff]  }
 0x46c   :  { %12882 = vmatprep.subr.bf16.mxu0 %v19919_v29  ;;  %v19954_v29 = vld [vmem:[#allocation5 + $0x2434] ss:$12 sps:$4 sm:$0xff]   ;;  %v19984_v38 = vld [vmem:[#allocation5 + $0x24c4] ss:$12 sps:$4 sm:$0xff]  }
 0x46e   :  { %17645 = vmatpush3.bf16.msra.mxu1 %v19921_v39  ;;  %v19956_v39 = vld [vmem:[#allocation5 + $0x1838] ss:$12 sps:$4 sm:$0xff]  }
 0x46f   :  { %12883 = vmatpush1.bf16.msra.mxu0 %v19917_v51  ;;  %17646 = vmatprep.subr.bf16.mxu1 %v19925_v16  ;;  %v19952_v51 = vld [vmem:[#allocation5 + $0x2430] ss:$12 sps:$4 sm:$0xff]   ;;  %v19957_v16 = vld [vmem:[#allocation5 + $0x2448] ss:$12 sps:$4 sm:$0xff]  }
 0x470   :  { %12884 = vmatprep.subr.bf16.mxu0 %v19924_v7  ;;  %v19959_v7 = vld [vmem:[#allocation5 + $0x244c] ss:$12 sps:$4 sm:$0xff]  }
 0x472   :  { %17647 = vmatpush3.bf16.msra.mxu1 %v19926_v58  ;;  %v19964_v58 = vld [vmem:[#allocation5 + $0x2464] ss:$12 sps:$4 sm:$0xff]  }
 0x473   :  { %12885 = vmatpush1.bf16.msra.mxu0 %v19922_v53  ;;  %17648 = vmatprep.subr.bf16.mxu1 %v19930_v54  ;;  %v19961_v53 = vld [vmem:[#allocation5 + $0x1850] ss:$12 sps:$4 sm:$0xff]   ;;  %v19962_v54 = vld [vmem:[#allocation5 + $0x2460] ss:$12 sps:$4 sm:$0xff]  }
 0x474   :  { %12886 = vmatprep.subr.bf16.mxu0 %v19929_v56  ;;  %v17500_v40 = vpop.f32.mrb[36].mxu1  ;;  %v19965_v56 = vld [vmem:[#allocation5 + $0x1928] ss:$12 sps:$4 sm:$0xff]  }
 0x475   :  { %v17501_v26 = vpop.f32.mrb[37].mxu1 }
 0x476   :  { %v17502_v27 = vadd.f32 %v17501_v26, %v17500_v40  ;;  %v17503_v47 = vpop.f32.mrb[38].mxu1  ;;  %17649 = vmatpush3.bf16.msra.mxu1 %v19931_v6  ;;  %v19970_v6 = vld [vmem:[#allocation5 + $0x1940] ss:$12 sps:$4 sm:$0xff]   ;;  %v19972_v26 = vld [vmem:[#allocation5 + $0x2490] ss:$12 sps:$4 sm:$0xff]  }
 0x477   :  { %12887 = vmatpush1.bf16.msra.mxu0 %v19927_v22  ;;  %v17504_v55 = vpop.f32.mrb[39].mxu1  ;;  %17650 = vmatprep.subr.bf16.mxu1 %v19935_v28  ;;  %v19969_v22 = vld [vmem:[#allocation5 + $0x247c] ss:$12 sps:$4 sm:$0xff]   ;;  %v19971_v28 = vld [vmem:[#allocation5 + $0x1880] ss:$12 sps:$4 sm:$0xff]  }
 0x478   :  { %12888 = vmatprep.subr.bf16.mxu0 %v19934_v18  ;;  %v21405_v43 = vadd.f32 %v17502_v27, %v21397_v2  ;;  %v17505_v61 = vadd.f32 %v17504_v55, %v17503_v47  ;;  %v19942_v2 = vld [vmem:[#allocation5 + $0x2400] ss:$12 sps:$4 sm:$0xff]   ;;  %v19967_v18 = vld [vmem:[#allocation5 + $0x2478] ss:$12 sps:$4 sm:$0xff]  }
 0x479   :  { %v19974_v40 = vld [vmem:[#allocation5 + $0x2494] ss:$12 sps:$4 sm:$0xff]   ;;  %v19976_v27 = vld [vmem:[#allocation5 + $0x1898] ss:$12 sps:$4 sm:$0xff]  }
 0x47a   :  { %v21408_v10 = vadd.f32 %v17505_v61, %v21400_v4  ;;  %17651 = vmatpush3.bf16.msra.mxu1 %v19936_v15  ;;  %v19947_v4 = vld [vmem:[#allocation5 + $0x2418] ss:$12 sps:$4 sm:$0xff]  }
 0x47b   :  { %12889 = vmatpush1.bf16.msra.mxu0 %v19932_v21  ;;  %17652 = vmatprep.subr.bf16.mxu1 %v19940_v37  ;;  %v19975_v21 = vld [vmem:[#allocation5 + $0x1958] ss:$12 sps:$4 sm:$0xff]  }
 0x47c   :  { %12890 = vmatprep.subr.bf16.mxu0 %v19939_v30  ;;  %v19979_v61 = vld [vmem:[#allocation5 + $0x24ac] ss:$12 sps:$4 sm:$0xff]  }
 0x47e   :  { %17653 = vmatpush3.bf16.msra.mxu1 %v19941_v13 }
 0x47f   :  { %12891 = vmatpush1.bf16.msra.mxu0 %v19937_v46  ;;  %17660 = vmatprep.subr.bf16.mxu1 %v19945_v33  ;;  %v19980_v46 = vld [vmem:[#allocation5 + $0x1970] ss:$12 sps:$4 sm:$0xff]   ;;  %v19977_v33 = vld [vmem:[#allocation5 + $0x24a8] ss:$12 sps:$4 sm:$0xff]  }
 0x480   :  { %12903 = vmatprep.subr.bf16.mxu0 %v19944_v35 }
 0x481   :  { %14067 = vmatmul.mubr.bf16.vlgmr.msra.gmra.mrb[64].mxu1 %v21271_v49  ;;  %v19960_v49 = vld [vmem:[#allocation5 + $0x1910] ss:$12 sps:$4 sm:$0xff]  }
 0x482   :  { %12893 = vmatmul.mubr.bf16.vlgmr.msra.gmra.mrb[0].mxu0 %v21410_v48  ;;  %17661 = vmatpush3.bf16.msra.mxu1 %v19946_v24  ;;  %v19986_v24 = vld [vmem:[#allocation5 + $0x1988] ss:$12 sps:$4 sm:$0xff]  }
 0x483   :  { %12904 = vmatpush1.bf16.msra.mxu0 %v19942_v2  ;;  %17662 = vmatprep.subr.bf16.mxu1 %v19950_v63  ;;  %v19982_v2 = vld [vmem:[#allocation5 + $0x24c0] ss:$12 sps:$4 sm:$0xff]   ;;  %v19987_v63 = vld [vmem:[#allocation5 + $0x24d8] ss:$12 sps:$4 sm:$0xff]  }
 0x484   :  { %12905 = vmatprep.subr.bf16.mxu0 %v19949_v12  ;;  %14107 = vmatprep.mubr.bf16.mxu1 %v21273_v3  ;;  %v19966_v3 = vld [vmem:[#allocation5 + $0x1868] ss:$12 sps:$4 sm:$0xff]  }
 0x485   :  { %12935 = vmatprep.mubr.bf16.mxu0 %v21412_v41  ;;  %v19989_v12 = vld [vmem:[#allocation5 + $0x24dc] ss:$12 sps:$4 sm:$0xff]  }
 0x486   :  { %17663 = vmatpush3.bf16.msra.mxu1 %v19951_v62  ;;  %v19995_v62 = vld [vmem:[#allocation5 + $0x1a78] ss:$12 sps:$4 sm:$0xff]  }
 0x487   :  { %12906 = vmatpush1.bf16.msra.mxu0 %v19947_v4  ;;  %17664 = vmatprep.subr.bf16.mxu1 %v19955_v42  ;;  %v19994_v4 = vld [vmem:[#allocation5 + $0x24f4] ss:$12 sps:$4 sm:$0xff]   ;;  %v19996_v42 = vld [vmem:[#allocation5 + $0x19b8] ss:$12 sps:$4 sm:$0xff]  }
 0x488   :  { %12907 = vmatprep.subr.bf16.mxu0 %v19954_v29  ;;  %v19992_v29 = vld [vmem:[#allocation5 + $0x24f0] ss:$12 sps:$4 sm:$0xff]  }
 0x48a   :  { %17665 = vmatpush3.bf16.msra.mxu1 %v19956_v39  ;;  %v20000_v39 = vld [vmem:[#allocation5 + $0x1a90] ss:$12 sps:$4 sm:$0xff]  }
 0x48b   :  { %12908 = vmatpush1.bf16.msra.mxu0 %v19952_v51  ;;  %17666 = vmatprep.subr.bf16.mxu1 %v19960_v49  ;;  %v19999_v51 = vld [vmem:[#allocation5 + $0x250c] ss:$12 sps:$4 sm:$0xff]   ;;  %v20004_v49 = vld [vmem:[#allocation5 + $0x2524] ss:$12 sps:$4 sm:$0xff]  }
 0x48c   :  { %12909 = vmatprep.subr.bf16.mxu0 %v19959_v7  ;;  %v19997_v7 = vld [vmem:[#allocation5 + $0x2508] ss:$12 sps:$4 sm:$0xff]  }
 0x48e   :  { %17667 = vmatpush3.bf16.msra.mxu1 %v19961_v53  ;;  %v20002_v53 = vld [vmem:[#allocation5 + $0x2520] ss:$12 sps:$4 sm:$0xff]  }
 0x48f   :  { %12910 = vmatpush1.bf16.msra.mxu0 %v19957_v16  ;;  %17668 = vmatprep.subr.bf16.mxu1 %v19965_v56  ;;  %v20005_v16 = vld [vmem:[#allocation5 + $0x1aa8] ss:$12 sps:$4 sm:$0xff]   ;;  %v20010_v56 = vld [vmem:[#allocation5 + $0x1ac0] ss:$12 sps:$4 sm:$0xff]  }
 0x490   :  { %12911 = vmatprep.subr.bf16.mxu0 %v19964_v58  ;;  %v20006_v58 = vld [vmem:[#allocation5 + $0x19e8] ss:$12 sps:$4 sm:$0xff]  }
 0x492   :  { %17669 = vmatpush3.bf16.msra.mxu1 %v19966_v3  ;;  %v20011_v3 = vld [vmem:[#allocation5 + $0x1a00] ss:$12 sps:$4 sm:$0xff]  }
 0x493   :  { %12912 = vmatpush1.bf16.msra.mxu0 %v19962_v54  ;;  %17670 = vmatprep.subr.bf16.mxu1 %v19970_v6  ;;  %v20007_v54 = vld [vmem:[#allocation5 + $0x2538] ss:$12 sps:$4 sm:$0xff]  }
 0x494   :  { %12913 = vmatprep.subr.bf16.mxu0 %v19969_v22  ;;  %v17522_v15 = vpop.f32.mrb[40].mxu1  ;;  %v20014_v22 = vld [vmem:[#allocation5 + $0x2554] ss:$12 sps:$4 sm:$0xff]   ;;  %v20015_v6 = vld [vmem:[#allocation5 + $0x1ad8] ss:$12 sps:$4 sm:$0xff]  }
 0x495   :  { %v17523_v47 = vpop.f32.mrb[41].mxu1 }
 0x496   :  { %v17524_v55 = vadd.f32 %v17523_v47, %v17522_v15  ;;  %v17525_v30 = vpop.f32.mrb[42].mxu1  ;;  %17671 = vmatpush3.bf16.msra.mxu1 %v19971_v28  ;;  %v20012_v28 = vld [vmem:[#allocation5 + $0x2550] ss:$12 sps:$4 sm:$0xff]   ;;  %v20019_v47 = vld [vmem:[#allocation5 + $0x256c] ss:$12 sps:$4 sm:$0xff]  }
 0x497   :  { %12914 = vmatpush1.bf16.msra.mxu0 %v19967_v18  ;;  %v17526_v37 = vpop.f32.mrb[43].mxu1  ;;  %17672 = vmatprep.subr.bf16.mxu1 %v19975_v21 }
 0x498   :  { %12915 = vmatprep.subr.bf16.mxu0 %v19974_v40  ;;  %v21419_v13 = vadd.f32 %v17524_v55, %v21405_v43  ;;  %v17527_v35 = vadd.f32 %v17526_v37, %v17525_v30  ;;  %v19990_v43 = vld [vmem:[#allocation5 + $0x1a60] ss:$12 sps:$4 sm:$0xff]   ;;  %v20016_v40 = vld [vmem:[#allocation5 + $0x1a18] ss:$12 sps:$4 sm:$0xff]   ;;  %v20020_v55 = vld [vmem:[#allocation5 + $0x1af0] ss:$12 sps:$4 sm:$0xff]  }
 0x49a   :  { %v21422_v1 = vadd.f32 %v17527_v35, %v21408_v10  ;;  %17673 = vmatpush3.bf16.msra.mxu1 %v19976_v27  ;;  %v19991_v10 = vld [vmem:[#allocation5 + $0x19a0] ss:$12 sps:$4 sm:$0xff]   ;;  %v20024_v35 = vld [vmem:[#allocation5 + $0x2584] ss:$12 sps:$4 sm:$0xff]  }
 0x49b   :  { %12916 = vmatpush1.bf16.msra.mxu0 %v19972_v26  ;;  %17674 = vmatprep.subr.bf16.mxu1 %v19980_v46  ;;  %v20021_v46 = vld [vmem:[#allocation5 + $0x1a30] ss:$12 sps:$4 sm:$0xff]  }
 0x49c   :  { %12917 = vmatprep.subr.bf16.mxu0 %v19979_v61  ;;  %v20017_v61 = vld [vmem:[#allocation5 + $0x2568] ss:$12 sps:$4 sm:$0xff]  }
 0x49e   :  { %17675 = vmatpush3.bf16.msra.mxu1 %v19981_v23 }
 0x49f   :  { %12918 = vmatpush1.bf16.msra.mxu0 %v19977_v33  ;;  %17682 = vmatprep.subr.bf16.mxu1 %v19985_v31  ;;  %v20025_v33 = vld [vmem:[#allocation5 + $0x1bc8] ss:$12 sps:$4 sm:$0xff]   ;;  %v238_v31 = vld [vmem:[#allocation2 + $0x3c0] sm:$0xf] }
 0x4a0   :  { %12919 = vmatprep.subr.bf16.mxu0 %v19984_v38  ;;  %v166_v38 = vld [vmem:[#allocation2 + $0x180] sm:$0xff] }
 0x4a1   :  { %14108 = vmatmul.mubr.bf16.vlgmr.msra.gmra.mrb[68].mxu1 %v21281_v60  ;;  %v20001_v60 = vld [vmem:[#allocation5 + $0x19d0] ss:$12 sps:$4 sm:$0xff]  }
 0x4a2   :  { %17683 = vmatpush3.bf16.msra.mxu1 %v19986_v24  ;;  %14148 = vmatprep.mubr.bf16.mxu1 %v21283_v9  ;;  %v20009_v9 = vld [vmem:[#allocation5 + $0x253c] ss:$12 sps:$4 sm:$0xff]   ;;  %v241_v24 = vld [vmem:[#allocation2 + $0x3d8] sm:$0xf] }
 0x4a3   :  { %12920 = vmatpush1.bf16.msra.mxu0 %v19982_v2  ;;  %17684 = vmatprep.subr.bf16.mxu1 %v19990_v43  ;;  %v169_v2 = vld [vmem:[#allocation2 + $0x198] sm:$0xff]  ;;  %v20026_v43 = vld [vmem:[#allocation5 + $0x1b08] ss:$12 sps:$4 sm:$0xff]  }
 0x4a4   :  { %12921 = vmatprep.subr.bf16.mxu0 %v19989_v12  ;;  %v21432_v12 = vpack.c.bf16 %v238_v31, %v166_v38  ;;  %v20064_v38 = vld [vmem:[#allocation5 + $0x2644] ss:$12 sps:$4 sm:$0xff]   ;;  %v20065_v31 = vld [vmem:[#allocation5 + $0x1d48] ss:$12 sps:$4 sm:$0xff]  }
 0x4a6   :  { %17685 = vmatpush3.bf16.msra.mxu1 %v19991_v10  ;;  %v20030_v10 = vld [vmem:[#allocation5 + $0x1be0] ss:$12 sps:$4 sm:$0xff]  }
 0x4a7   :  { %12922 = vmatpush1.bf16.msra.mxu0 %v19987_v63  ;;  %17686 = vmatprep.subr.bf16.mxu1 %v19995_v62  ;;  %v20029_v63 = vld [vmem:[#allocation5 + $0x259c] ss:$12 sps:$4 sm:$0xff]   ;;  %v20031_v62 = vld [vmem:[#allocation5 + $0x1b20] ss:$12 sps:$4 sm:$0xff]  }
 0x4a8   :  { %12923 = vmatprep.subr.bf16.mxu0 %v19994_v4  ;;  %v21434_v4 = vpack.c.bf16 %v241_v24, %v169_v2  ;;  %v20062_v2 = vld [vmem:[#allocation5 + $0x2640] ss:$12 sps:$4 sm:$0xff]   ;;  %v20066_v24 = vld [vmem:[#allocation5 + $0x1c88] ss:$12 sps:$4 sm:$0xff]  }
 0x4aa   :  { %17687 = vmatpush3.bf16.msra.mxu1 %v19996_v42  ;;  %v20035_v42 = vld [vmem:[#allocation5 + $0x1bf8] ss:$12 sps:$4 sm:$0xff]  }
 0x4ab   :  { %12924 = vmatpush1.bf16.msra.mxu0 %v19992_v29  ;;  %17688 = vmatprep.subr.bf16.mxu1 %v20000_v39  ;;  %v20034_v29 = vld [vmem:[#allocation5 + $0x25b4] ss:$12 sps:$4 sm:$0xff]   ;;  %v20036_v39 = vld [vmem:[#allocation5 + $0x1b38] ss:$12 sps:$4 sm:$0xff]  }
 0x4ac   :  { %12925 = vmatprep.subr.bf16.mxu0 %v19999_v51  ;;  %v20032_v51 = vld [vmem:[#allocation5 + $0x25b0] ss:$12 sps:$4 sm:$0xff]  }
 0x4ae   :  { %17689 = vmatpush3.bf16.msra.mxu1 %v20001_v60  ;;  %v20037_v60 = vld [vmem:[#allocation5 + $0x25c8] ss:$12 sps:$4 sm:$0xff]  }
 0x4af   :  { %12926 = vmatpush1.bf16.msra.mxu0 %v19997_v7  ;;  %17690 = vmatprep.subr.bf16.mxu1 %v20005_v16  ;;  %v20039_v7 = vld [vmem:[#allocation5 + $0x25cc] ss:$12 sps:$4 sm:$0xff]   ;;  %v20044_v16 = vld [vmem:[#allocation5 + $0x25e4] ss:$12 sps:$4 sm:$0xff]  }
 0x4b0   :  { %12927 = vmatprep.subr.bf16.mxu0 %v20004_v49  ;;  %v20041_v49 = vld [vmem:[#allocation5 + $0x1b50] ss:$12 sps:$4 sm:$0xff]  }
 0x4b2   :  { %17691 = vmatpush3.bf16.msra.mxu1 %v20006_v58  ;;  %v20042_v58 = vld [vmem:[#allocation5 + $0x25e0] ss:$12 sps:$4 sm:$0xff]  }
 0x4b3   :  { %12928 = vmatpush1.bf16.msra.mxu0 %v20002_v53  ;;  %17692 = vmatprep.subr.bf16.mxu1 %v20010_v56  ;;  %v20045_v53 = vld [vmem:[#allocation5 + $0x1c28] ss:$12 sps:$4 sm:$0xff]   ;;  %v20050_v56 = vld [vmem:[#allocation5 + $0x1c40] ss:$12 sps:$4 sm:$0xff]  }
 0x4b4   :  { %12929 = vmatprep.subr.bf16.mxu0 %v20009_v9  ;;  %v17544_v18 = vpop.f32.mrb[44].mxu1  ;;  %v20049_v9 = vld [vmem:[#allocation5 + $0x25fc] ss:$12 sps:$4 sm:$0xff]  }
 0x4b5   :  { %v17545_v21 = vpop.f32.mrb[45].mxu1 }
 0x4b6   :  { %v17546_v15 = vadd.f32 %v17545_v21, %v17544_v18  ;;  %v17547_v26 = vpop.f32.mrb[46].mxu1  ;;  %17693 = vmatpush3.bf16.msra.mxu1 %v20011_v3  ;;  %v20051_v3 = vld [vmem:[#allocation5 + $0x1b80] ss:$12 sps:$4 sm:$0xff]  }
 0x4b7   :  { %12930 = vmatpush1.bf16.msra.mxu0 %v20007_v54  ;;  %v17548_v27 = vpop.f32.mrb[47].mxu1  ;;  %17694 = vmatprep.subr.bf16.mxu1 %v20015_v6  ;;  %v20047_v54 = vld [vmem:[#allocation5 + $0x25f8] ss:$12 sps:$4 sm:$0xff]  }
 0x4b8   :  { %12931 = vmatprep.subr.bf16.mxu0 %v20014_v22  ;;  %v21427_v30 = vadd.f32 %v17546_v15, %v21419_v13  ;;  %v17549_v37 = vadd.f32 %v17548_v27, %v17547_v26  ;;  %v20022_v13 = vld [vmem:[#allocation5 + $0x2580] ss:$12 sps:$4 sm:$0xff]   ;;  %v20055_v6 = vld [vmem:[#allocation5 + $0x1c58] ss:$12 sps:$4 sm:$0xff]  }
 0x4b9   :  { %v20054_v22 = vld [vmem:[#allocation5 + $0x2614] ss:$12 sps:$4 sm:$0xff]  }
 0x4ba   :  { %v21430_v23 = vadd.f32 %v17549_v37, %v21422_v1  ;;  %17695 = vmatpush3.bf16.msra.mxu1 %v20016_v40  ;;  %v20027_v1 = vld [vmem:[#allocation5 + $0x2598] ss:$12 sps:$4 sm:$0xff]  }
 0x4bb   :  { %12932 = vmatpush1.bf16.msra.mxu0 %v20012_v28  ;;  %17696 = vmatprep.subr.bf16.mxu1 %v20020_v55  ;;  %v20052_v28 = vld [vmem:[#allocation5 + $0x2610] ss:$12 sps:$4 sm:$0xff]   ;;  %v20056_v40 = vld [vmem:[#allocation5 + $0x1b98] ss:$12 sps:$4 sm:$0xff]  }
 0x4bc   :  { %12933 = vmatprep.subr.bf16.mxu0 %v20019_v47  ;;  %v20059_v47 = vld [vmem:[#allocation5 + $0x262c] ss:$12 sps:$4 sm:$0xff]   ;;  %v20060_v55 = vld [vmem:[#allocation5 + $0x1c70] ss:$12 sps:$4 sm:$0xff]  }
 0x4be   :  { %17697 = vmatpush3.bf16.msra.mxu1 %v20021_v46  ;;  %v20057_v46 = vld [vmem:[#allocation5 + $0x2628] ss:$12 sps:$4 sm:$0xff]  }
 0x4bf   :  { %12934 = vmatpush1.bf16.msra.mxu0 %v20017_v61  ;;  %17704 = vmatprep.subr.bf16.mxu1 %v20025_v33  ;;  %v20061_v33 = vld [vmem:[#allocation5 + $0x1bb0] ss:$12 sps:$4 sm:$0xff]  }
 0x4c0   :  { %12946 = vmatprep.subr.bf16.mxu0 %v20024_v35 }
 0x4c1   :  { %14149 = vmatmul.mubr.bf16.vlgmr.msra.gmra.mrb[72].mxu1 %v21291_v50  ;;  %v20040_v50 = vld [vmem:[#allocation5 + $0x1c10] ss:$12 sps:$4 sm:$0xff]  }
 0x4c2   :  { %12936 = vmatmul.mubr.bf16.vlgmr.msra.gmra.mrb[0].mxu0 %v21432_v12  ;;  %17705 = vmatpush3.bf16.msra.mxu1 %v20026_v43  ;;  %v20067_v43 = vld [vmem:[#allocation5 + $0x2658] ss:$12 sps:$4 sm:$0xff]  }
 0x4c3   :  { %12947 = vmatpush1.bf16.msra.mxu0 %v20022_v13  ;;  %17706 = vmatprep.subr.bf16.mxu1 %v20030_v10  ;;  %v20069_v13 = vld [vmem:[#allocation5 + $0x265c] ss:$12 sps:$4 sm:$0xff]   ;;  %v20075_v10 = vld [vmem:[#allocation5 + $0x1d78] ss:$12 sps:$4 sm:$0xff]  }
 0x4c4   :  { %12948 = vmatprep.subr.bf16.mxu0 %v20029_v63  ;;  %14189 = vmatprep.mubr.bf16.mxu1 %v21293_v8  ;;  %v20046_v8 = vld [vmem:[#allocation5 + $0x1b68] ss:$12 sps:$4 sm:$0xff]  }
 0x4c5   :  { %12978 = vmatprep.mubr.bf16.mxu0 %v21434_v4  ;;  %v20074_v63 = vld [vmem:[#allocation5 + $0x2674] ss:$12 sps:$4 sm:$0xff]  }
 0x4c6   :  { %17707 = vmatpush3.bf16.msra.mxu1 %v20031_v62  ;;  %v20076_v62 = vld [vmem:[#allocation5 + $0x1cb8] ss:$12 sps:$4 sm:$0xff]  }
 0x4c7   :  { %12949 = vmatpush1.bf16.msra.mxu0 %v20027_v1  ;;  %17708 = vmatprep.subr.bf16.mxu1 %v20035_v42  ;;  %v20072_v1 = vld [vmem:[#allocation5 + $0x2670] ss:$12 sps:$4 sm:$0xff]  }
 0x4c8   :  { %12950 = vmatprep.subr.bf16.mxu0 %v20034_v29  ;;  %v20079_v29 = vld [vmem:[#allocation5 + $0x268c] ss:$12 sps:$4 sm:$0xff]   ;;  %v20080_v42 = vld [vmem:[#allocation5 + $0x1d90] ss:$12 sps:$4 sm:$0xff]  }
 0x4ca   :  { %17709 = vmatpush3.bf16.msra.mxu1 %v20036_v39  ;;  %v20084_v39 = vld [vmem:[#allocation5 + $0x26a4] ss:$12 sps:$4 sm:$0xff]  }
 0x4cb   :  { %12951 = vmatpush1.bf16.msra.mxu0 %v20032_v51  ;;  %17710 = vmatprep.subr.bf16.mxu1 %v20040_v50  ;;  %v20077_v51 = vld [vmem:[#allocation5 + $0x2688] ss:$12 sps:$4 sm:$0xff]   ;;  %v20082_v50 = vld [vmem:[#allocation5 + $0x26a0] ss:$12 sps:$4 sm:$0xff]  }
 0x4cc   :  { %12952 = vmatprep.subr.bf16.mxu0 %v20039_v7  ;;  %v20085_v7 = vld [vmem:[#allocation5 + $0x1da8] ss:$12 sps:$4 sm:$0xff]  }
 0x4ce   :  { %17711 = vmatpush3.bf16.msra.mxu1 %v20041_v49  ;;  %v20090_v49 = vld [vmem:[#allocation5 + $0x1dc0] ss:$12 sps:$4 sm:$0xff]  }
 0x4cf   :  { %12953 = vmatpush1.bf16.msra.mxu0 %v20037_v60  ;;  %17712 = vmatprep.subr.bf16.mxu1 %v20045_v53  ;;  %v20086_v60 = vld [vmem:[#allocation5 + $0x1ce8] ss:$12 sps:$4 sm:$0xff]   ;;  %v20091_v53 = vld [vmem:[#allocation5 + $0x1d00] ss:$12 sps:$4 sm:$0xff]  }
 0x4d0   :  { %12954 = vmatprep.subr.bf16.mxu0 %v20044_v16  ;;  %v20087_v16 = vld [vmem:[#allocation5 + $0x26b8] ss:$12 sps:$4 sm:$0xff]  }
 0x4d2   :  { %17713 = vmatpush3.bf16.msra.mxu1 %v20046_v8  ;;  %v20095_v8 = vld [vmem:[#allocation5 + $0x1dd8] ss:$12 sps:$4 sm:$0xff]  }
 0x4d3   :  { %12955 = vmatpush1.bf16.msra.mxu0 %v20042_v58  ;;  %17714 = vmatprep.subr.bf16.mxu1 %v20050_v56  ;;  %v20094_v58 = vld [vmem:[#allocation5 + $0x26d4] ss:$12 sps:$4 sm:$0xff]   ;;  %v20092_v56 = vld [vmem:[#allocation5 + $0x26d0] ss:$12 sps:$4 sm:$0xff]  }
 0x4d4   :  { %12956 = vmatprep.subr.bf16.mxu0 %v20049_v9  ;;  %v17566_v18 = vpop.f32.mrb[48].mxu1 }
 0x4d5   :  { %v17567_v21 = vpop.f32.mrb[49].mxu1 }
 0x4d6   :  { %v17568_v15 = vadd.f32 %v17567_v21, %v17566_v18  ;;  %v17569_v26 = vpop.f32.mrb[50].mxu1  ;;  %17715 = vmatpush3.bf16.msra.mxu1 %v20051_v3 }
 0x4d7   :  { %12957 = vmatpush1.bf16.msra.mxu0 %v20047_v54  ;;  %v17570_v27 = vpop.f32.mrb[51].mxu1  ;;  %17716 = vmatprep.subr.bf16.mxu1 %v20055_v6  ;;  %v20096_v54 = vld [vmem:[#allocation5 + $0x1d18] ss:$12 sps:$4 sm:$0xff]  }
 0x4d8   :  { %12958 = vmatprep.subr.bf16.mxu0 %v20054_v22  ;;  %v21441_v37 = vadd.f32 %v17568_v15, %v21427_v30  ;;  %v17571_v61 = vadd.f32 %v17570_v27, %v17569_v26  ;;  %v20070_v30 = vld [vmem:[#allocation5 + $0x1d60] ss:$12 sps:$4 sm:$0xff]   ;;  %v20097_v26 = vld [vmem:[#allocation5 + $0x26e8] ss:$12 sps:$4 sm:$0xff]   ;;  %v20101_v27 = vld [vmem:[#allocation5 + $0x1d30] ss:$12 sps:$4 sm:$0xff]  }
 0x4da   :  { %v21444_v35 = vadd.f32 %v17571_v61, %v21430_v23  ;;  %17717 = vmatpush3.bf16.msra.mxu1 %v20056_v40  ;;  %v20071_v23 = vld [vmem:[#allocation5 + $0x1ca0] ss:$12 sps:$4 sm:$0xff]   ;;  %v20100_v40 = vld [vmem:[#allocation5 + $0x1df0] ss:$12 sps:$4 sm:$0xff]  }
 0x4db   :  { %12959 = vmatpush1.bf16.msra.mxu0 %v20052_v28  ;;  %17718 = vmatprep.subr.bf16.mxu1 %v20060_v55  ;;  %v20099_v28 = vld [vmem:[#allocation5 + $0x26ec] ss:$12 sps:$4 sm:$0xff]   ;;  %v20105_v55 = vld [vmem:[#allocation5 + $0x1ec8] ss:$12 sps:$4 sm:$0xff]  }
 0x4dc   :  { %12960 = vmatprep.subr.bf16.mxu0 %v20059_v47  ;;  %v20104_v47 = vld [vmem:[#allocation5 + $0x2704] ss:$12 sps:$4 sm:$0xff]  }
 0x4de   :  { %17719 = vmatpush3.bf16.msra.mxu1 %v20061_v33  ;;  %v240_v33 = vld [vmem:[#allocation2 + $0x3d0] sm:$0xf] }
 0x4df   :  { %12961 = vmatpush1.bf16.msra.mxu0 %v20057_v46  ;;  %17726 = vmatprep.subr.bf16.mxu1 %v20065_v31  ;;  %v168_v46 = vld [vmem:[#allocation2 + $0x190] sm:$0xff]  ;;  %v243_v31 = vld [vmem:[#allocation2 + $0x3e8] sm:$0xf] }
 0x4e0   :  { %12962 = vmatprep.subr.bf16.mxu0 %v20064_v38  ;;  %v171_v38 = vld [vmem:[#allocation2 + $0x1a8] sm:$0xff] }
 0x4e1   :  { %14190 = vmatmul.mubr.bf16.vlgmr.msra.gmra.mrb[76].mxu1 %v21301_v34  ;;  %v20081_v34 = vld [vmem:[#allocation5 + $0x1cd0] ss:$12 sps:$4 sm:$0xff]  }
 0x4e2   :  { %17727 = vmatpush3.bf16.msra.mxu1 %v20066_v24  ;;  %14230 = vmatprep.mubr.bf16.mxu1 %v21303_v57  ;;  %v20089_v57 = vld [vmem:[#allocation5 + $0x26bc] ss:$12 sps:$4 sm:$0xff]  }
 0x4e3   :  { %12963 = vmatpush1.bf16.msra.mxu0 %v20062_v2  ;;  %17728 = vmatprep.subr.bf16.mxu1 %v20070_v30  ;;  %v21454_v2 = vpack.c.bf16 %v240_v33, %v168_v46  ;;  %v20106_v24 = vld [vmem:[#allocation5 + $0x1e08] ss:$12 sps:$4 sm:$0xff]   ;;  %v20110_v30 = vld [vmem:[#allocation5 + $0x1ee0] ss:$12 sps:$4 sm:$0xff]  }
 0x4e4   :  { %12964 = vmatprep.subr.bf16.mxu0 %v20069_v13  ;;  %v20109_v13 = vld [vmem:[#allocation5 + $0x271c] ss:$12 sps:$4 sm:$0xff]   ;;  %v20142_v46 = vld [vmem:[#allocation5 + $0x27c0] ss:$12 sps:$4 sm:$0xff]  }
 0x4e5   :  { %v20146_v33 = vld [vmem:[#allocation5 + $0x1f88] ss:$12 sps:$4 sm:$0xff]  }
 0x4e6   :  { %17729 = vmatpush3.bf16.msra.mxu1 %v20071_v23  ;;  %v20111_v23 = vld [vmem:[#allocation5 + $0x1e20] ss:$12 sps:$4 sm:$0xff]  }
 0x4e7   :  { %12965 = vmatpush1.bf16.msra.mxu0 %v20067_v43  ;;  %17730 = vmatprep.subr.bf16.mxu1 %v20075_v10  ;;  %v21456_v43 = vpack.c.bf16 %v243_v31, %v171_v38  ;;  %v20115_v10 = vld [vmem:[#allocation5 + $0x1ef8] ss:$12 sps:$4 sm:$0xff]   ;;  %v20149_v38 = vld [vmem:[#allocation5 + $0x27dc] ss:$12 sps:$4 sm:$0xff]  }
 0x4e8   :  { %12966 = vmatprep.subr.bf16.mxu0 %v20074_v63  ;;  %v20114_v63 = vld [vmem:[#allocation5 + $0x2734] ss:$12 sps:$4 sm:$0xff]   ;;  %v20147_v31 = vld [vmem:[#allocation5 + $0x27d8] ss:$12 sps:$4 sm:$0xff]  }
 0x4ea   :  { %17731 = vmatpush3.bf16.msra.mxu1 %v20076_v62  ;;  %v20116_v62 = vld [vmem:[#allocation5 + $0x1e38] ss:$12 sps:$4 sm:$0xff]  }
 0x4eb   :  { %12967 = vmatpush1.bf16.msra.mxu0 %v20072_v1  ;;  %17732 = vmatprep.subr.bf16.mxu1 %v20080_v42  ;;  %v20112_v1 = vld [vmem:[#allocation5 + $0x2730] ss:$12 sps:$4 sm:$0xff]   ;;  %v20117_v42 = vld [vmem:[#allocation5 + $0x2748] ss:$12 sps:$4 sm:$0xff]  }
 0x4ec   :  { %12968 = vmatprep.subr.bf16.mxu0 %v20079_v29  ;;  %v20119_v29 = vld [vmem:[#allocation5 + $0x274c] ss:$12 sps:$4 sm:$0xff]  }
 0x4ee   :  { %17733 = vmatpush3.bf16.msra.mxu1 %v20081_v34  ;;  %v20124_v34 = vld [vmem:[#allocation5 + $0x2764] ss:$12 sps:$4 sm:$0xff]  }
 0x4ef   :  { %12969 = vmatpush1.bf16.msra.mxu0 %v20077_v51  ;;  %17734 = vmatprep.subr.bf16.mxu1 %v20085_v7  ;;  %v20121_v51 = vld [vmem:[#allocation5 + $0x1e50] ss:$12 sps:$4 sm:$0xff]   ;;  %v20122_v7 = vld [vmem:[#allocation5 + $0x2760] ss:$12 sps:$4 sm:$0xff]  }
 0x4f0   :  { %12970 = vmatprep.subr.bf16.mxu0 %v20084_v39  ;;  %v20125_v39 = vld [vmem:[#allocation5 + $0x1f28] ss:$12 sps:$4 sm:$0xff]  }
 0x4f2   :  { %17735 = vmatpush3.bf16.msra.mxu1 %v20086_v60  ;;  %v20130_v60 = vld [vmem:[#allocation5 + $0x1f40] ss:$12 sps:$4 sm:$0xff]  }
 0x4f3   :  { %12971 = vmatpush1.bf16.msra.mxu0 %v20082_v50  ;;  %17736 = vmatprep.subr.bf16.mxu1 %v20090_v49  ;;  %v20129_v50 = vld [vmem:[#allocation5 + $0x277c] ss:$12 sps:$4 sm:$0xff]   ;;  %v20131_v49 = vld [vmem:[#allocation5 + $0x1e80] ss:$12 sps:$4 sm:$0xff]  }
 0x4f4   :  { %12972 = vmatprep.subr.bf16.mxu0 %v20089_v57  ;;  %v17588_v9 = vpop.f32.mrb[52].mxu1  ;;  %v20127_v57 = vld [vmem:[#allocation5 + $0x2778] ss:$12 sps:$4 sm:$0xff]  }
 0x4f5   :  { %v17589_v3 = vpop.f32.mrb[53].mxu1 }
 0x4f6   :  { %v17590_v22 = vadd.f32 %v17589_v3, %v17588_v9  ;;  %v17591_v6 = vpop.f32.mrb[54].mxu1  ;;  %17737 = vmatpush3.bf16.msra.mxu1 %v20091_v53  ;;  %v20135_v53 = vld [vmem:[#allocation5 + $0x1f58] ss:$12 sps:$4 sm:$0xff]  }
 0x4f7   :  { %12973 = vmatpush1.bf16.msra.mxu0 %v20087_v16  ;;  %v17592_v18 = vpop.f32.mrb[55].mxu1  ;;  %17738 = vmatprep.subr.bf16.mxu1 %v20095_v8  ;;  %v20134_v16 = vld [vmem:[#allocation5 + $0x2794] ss:$12 sps:$4 sm:$0xff]   ;;  %v20132_v8 = vld [vmem:[#allocation5 + $0x2790] ss:$12 sps:$4 sm:$0xff]  }
 0x4f8   :  { %12974 = vmatprep.subr.bf16.mxu0 %v20094_v58  ;;  %v21449_v21 = vadd.f32 %v17590_v22, %v21441_v37  ;;  %v17593_v15 = vadd.f32 %v17592_v18, %v17591_v6  ;;  %v20102_v37 = vld [vmem:[#allocation5 + $0x2700] ss:$12 sps:$4 sm:$0xff]   ;;  %v20136_v9 = vld [vmem:[#allocation5 + $0x1e98] ss:$12 sps:$4 sm:$0xff]   ;;  %v20140_v18 = vld [vmem:[#allocation5 + $0x1f70] ss:$12 sps:$4 sm:$0xff]  }
 0x4f9   :  { %v20139_v6 = vld [vmem:[#allocation5 + $0x27ac] ss:$12 sps:$4 sm:$0xff]  }
 0x4fa   :  { %v21452_v61 = vadd.f32 %v17593_v15, %v21444_v35  ;;  %17739 = vmatpush3.bf16.msra.mxu1 %v20096_v54  ;;  %v20107_v35 = vld [vmem:[#allocation5 + $0x2718] ss:$12 sps:$4 sm:$0xff]   ;;  %v20137_v15 = vld [vmem:[#allocation5 + $0x27a8] ss:$12 sps:$4 sm:$0xff]  }
 0x4fb   :  { %12975 = vmatpush1.bf16.msra.mxu0 %v20092_v56  ;;  %17740 = vmatprep.subr.bf16.mxu1 %v20100_v40 }
 0x4fc   :  { %12976 = vmatprep.subr.bf16.mxu0 %v20099_v28 }
 0x4fe   :  { %17741 = vmatpush3.bf16.msra.mxu1 %v20101_v27  ;;  %v20141_v27 = vld [vmem:[#allocation5 + $0x1eb0] ss:$12 sps:$4 sm:$0xff]  }
 0x4ff   :  { %12977 = vmatpush1.bf16.msra.mxu0 %v20097_v26  ;;  %17748 = vmatprep.subr.bf16.mxu1 %v20105_v55  ;;  %v20145_v55 = vld [vmem:[#allocation5 + $0x2048] ss:$12 sps:$4 sm:$0xff]  }
 0x500   :  { %12989 = vmatprep.subr.bf16.mxu0 %v20104_v47  ;;  %v20144_v47 = vld [vmem:[#allocation5 + $0x27c4] ss:$12 sps:$4 sm:$0xff]  }
 0x501   :  { %14231 = vmatmul.mubr.bf16.vlgmr.msra.gmra.mrb[80].mxu1 %v21319_v32  ;;  %v20120_v32 = vld [vmem:[#allocation5 + $0x1f10] ss:$12 sps:$4 sm:$0xff]  }
 0x502   :  { %12979 = vmatmul.mubr.bf16.vlgmr.msra.gmra.mrb[0].mxu0 %v21454_v2  ;;  %17749 = vmatpush3.bf16.msra.mxu1 %v20106_v24  ;;  %v20155_v24 = vld [vmem:[#allocation5 + $0x2078] ss:$12 sps:$4 sm:$0xff]  }
 0x503   :  { %12990 = vmatpush1.bf16.msra.mxu0 %v20102_v37  ;;  %17750 = vmatprep.subr.bf16.mxu1 %v20110_v30  ;;  %v20154_v37 = vld [vmem:[#allocation5 + $0x27f4] ss:$12 sps:$4 sm:$0xff]   ;;  %v20156_v30 = vld [vmem:[#allocation5 + $0x1fb8] ss:$12 sps:$4 sm:$0xff]  }
 0x504   :  { %12991 = vmatprep.subr.bf16.mxu0 %v20109_v13  ;;  %14271 = vmatprep.mubr.bf16.mxu1 %v21321_v45  ;;  %v20126_v45 = vld [vmem:[#allocation5 + $0x1e68] ss:$12 sps:$4 sm:$0xff]   ;;  %v20152_v13 = vld [vmem:[#allocation5 + $0x27f0] ss:$12 sps:$4 sm:$0xff]  }
 0x505   :  { %13021 = vmatprep.mubr.bf16.mxu0 %v21456_v43 }
 0x506   :  { %17751 = vmatpush3.bf16.msra.mxu1 %v20111_v23  ;;  %v20160_v23 = vld [vmem:[#allocation5 + $0x2090] ss:$12 sps:$4 sm:$0xff]  }
 0x507   :  { %12992 = vmatpush1.bf16.msra.mxu0 %v20107_v35  ;;  %17752 = vmatprep.subr.bf16.mxu1 %v20115_v10  ;;  %v20159_v35 = vld [vmem:[#allocation5 + $0x280c] ss:$12 sps:$4 sm:$0xff]   ;;  %v20164_v10 = vld [vmem:[#allocation5 + $0x2824] ss:$12 sps:$4 sm:$0xff]  }
 0x508   :  { %12993 = vmatprep.subr.bf16.mxu0 %v20114_v63  ;;  %v20157_v63 = vld [vmem:[#allocation5 + $0x2808] ss:$12 sps:$4 sm:$0xff]  }
 0x50a   :  { %17753 = vmatpush3.bf16.msra.mxu1 %v20116_v62  ;;  %v20162_v62 = vld [vmem:[#allocation5 + $0x2820] ss:$12 sps:$4 sm:$0xff]  }
 0x50b   :  { %12994 = vmatpush1.bf16.msra.mxu0 %v20112_v1  ;;  %17754 = vmatprep.subr.bf16.mxu1 %v20120_v32  ;;  %v20165_v1 = vld [vmem:[#allocation5 + $0x20a8] ss:$12 sps:$4 sm:$0xff]   ;;  %v20170_v32 = vld [vmem:[#allocation5 + $0x20c0] ss:$12 sps:$4 sm:$0xff]  }
 0x50c   :  { %12995 = vmatprep.subr.bf16.mxu0 %v20119_v29  ;;  %v20166_v29 = vld [vmem:[#allocation5 + $0x1fe8] ss:$12 sps:$4 sm:$0xff]  }
 0x50e   :  { %17755 = vmatpush3.bf16.msra.mxu1 %v20121_v51  ;;  %v20171_v51 = vld [vmem:[#allocation5 + $0x2000] ss:$12 sps:$4 sm:$0xff]  }
 0x50f   :  { %12996 = vmatpush1.bf16.msra.mxu0 %v20117_v42  ;;  %17756 = vmatprep.subr.bf16.mxu1 %v20125_v39  ;;  %v20167_v42 = vld [vmem:[#allocation5 + $0x2838] ss:$12 sps:$4 sm:$0xff]  }
 0x510   :  { %12997 = vmatprep.subr.bf16.mxu0 %v20124_v34  ;;  %v20174_v34 = vld [vmem:[#allocation5 + $0x2854] ss:$12 sps:$4 sm:$0xff]   ;;  %v20175_v39 = vld [vmem:[#allocation5 + $0x20d8] ss:$12 sps:$4 sm:$0xff]  }
 0x512   :  { %17757 = vmatpush3.bf16.msra.mxu1 %v20126_v45  ;;  %v20172_v45 = vld [vmem:[#allocation5 + $0x2850] ss:$12 sps:$4 sm:$0xff]  }
 0x513   :  { %12998 = vmatpush1.bf16.msra.mxu0 %v20122_v7  ;;  %17758 = vmatprep.subr.bf16.mxu1 %v20130_v60 }
 0x514   :  { %12999 = vmatprep.subr.bf16.mxu0 %v20129_v50  ;;  %v17610_v58 = vpop.f32.mrb[56].mxu1  ;;  %v20176_v50 = vld [vmem:[#allocation5 + $0x2018] ss:$12 sps:$4 sm:$0xff]  }
 0x515   :  { %v17611_v56 = vpop.f32.mrb[57].mxu1 }
 0x516   :  { %v17612_v54 = vadd.f32 %v17611_v56, %v17610_v58  ;;  %v17613_v3 = vpop.f32.mrb[58].mxu1  ;;  %17759 = vmatpush3.bf16.msra.mxu1 %v20131_v49  ;;  %v20180_v58 = vld [vmem:[#allocation5 + $0x20f0] ss:$12 sps:$4 sm:$0xff]   ;;  %v20177_v56 = vld [vmem:[#allocation5 + $0x2868] ss:$12 sps:$4 sm:$0xff]  }
 0x517   :  { %13000 = vmatpush1.bf16.msra.mxu0 %v20127_v57  ;;  %v17614_v22 = vpop.f32.mrb[59].mxu1  ;;  %17760 = vmatprep.subr.bf16.mxu1 %v20135_v53  ;;  %v20179_v53 = vld [vmem:[#allocation5 + $0x286c] ss:$12 sps:$4 sm:$0xff]  }
 0x518   :  { %13001 = vmatprep.subr.bf16.mxu0 %v20134_v16  ;;  %v21463_v28 = vadd.f32 %v17612_v54, %v21449_v21  ;;  %v17615_v40 = vadd.f32 %v17614_v22, %v17613_v3  ;;  %v20150_v21 = vld [vmem:[#allocation5 + $0x2060] ss:$12 sps:$4 sm:$0xff]   ;;  %v20181_v54 = vld [vmem:[#allocation5 + $0x2030] ss:$12 sps:$4 sm:$0xff]   ;;  %v20185_v22 = vld [vmem:[#allocation5 + $0x21c8] ss:$12 sps:$4 sm:$0xff]  }
 0x519   :  { %v20184_v3 = vld [vmem:[#allocation5 + $0x2884] ss:$12 sps:$4 sm:$0xff]  }
 0x51a   :  { %v21466_v26 = vadd.f32 %v17615_v40, %v21452_v61  ;;  %17761 = vmatpush3.bf16.msra.mxu1 %v20136_v9  ;;  %v20151_v61 = vld [vmem:[#allocation5 + $0x1fa0] ss:$12 sps:$4 sm:$0xff]  }
 0x51b   :  { %13002 = vmatpush1.bf16.msra.mxu0 %v20132_v8  ;;  %17762 = vmatprep.subr.bf16.mxu1 %v20140_v18  ;;  %v170_v18 = vld [vmem:[#allocation2 + $0x1a0] sm:$0xff] }
 0x51c   :  { %13003 = vmatprep.subr.bf16.mxu0 %v20139_v6  ;;  %v242_v40 = vld [vmem:[#allocation2 + $0x3e0] sm:$0xf] }
 0x51e   :  { %17763 = vmatpush3.bf16.msra.mxu1 %v20141_v27  ;;  %v245_v27 = vld [vmem:[#allocation2 + $0x3f8] sm:$0xf] }
 0x51f   :  { %13004 = vmatpush1.bf16.msra.mxu0 %v20137_v15  ;;  %17770 = vmatprep.subr.bf16.mxu1 %v20145_v55  ;;  %v173_v15 = vld [vmem:[#allocation2 + $0x1b8] sm:$0xff]  ;;  %v20186_v55 = vld [vmem:[#allocation5 + $0x2108] ss:$12 sps:$4 sm:$0xff]  }
 0x520   :  { %13005 = vmatprep.subr.bf16.mxu0 %v20144_v47  ;;  %v21476_v47 = vpack.c.bf16 %v242_v40, %v170_v18  ;;  %v20229_v18 = vld [vmem:[#allocation5 + $0x295c] ss:$12 sps:$4 sm:$0xff]   ;;  %v20227_v40 = vld [vmem:[#allocation5 + $0x2958] ss:$12 sps:$4 sm:$0xff]  }
 0x521   :  { %14272 = vmatmul.mubr.bf16.vlgmr.msra.gmra.mrb[84].mxu1 %v21344_v52  ;;  %v20161_v52 = vld [vmem:[#allocation5 + $0x1fd0] ss:$12 sps:$4 sm:$0xff]  }
 0x522   :  { %17771 = vmatpush3.bf16.msra.mxu1 %v20146_v33  ;;  %14312 = vmatprep.mubr.bf16.mxu1 %v21346_v25  ;;  %v20169_v25 = vld [vmem:[#allocation5 + $0x283c] ss:$12 sps:$4 sm:$0xff]   ;;  %v20190_v33 = vld [vmem:[#allocation5 + $0x21e0] ss:$12 sps:$4 sm:$0xff]  }
 0x523   :  { %13006 = vmatpush1.bf16.msra.mxu0 %v20142_v46  ;;  %17772 = vmatprep.subr.bf16.mxu1 %v20150_v21  ;;  %v20189_v46 = vld [vmem:[#allocation5 + $0x289c] ss:$12 sps:$4 sm:$0xff]   ;;  %v20191_v21 = vld [vmem:[#allocation5 + $0x2120] ss:$12 sps:$4 sm:$0xff]  }
 0x524   :  { %13007 = vmatprep.subr.bf16.mxu0 %v20149_v38  ;;  %v21478_v38 = vpack.c.bf16 %v245_v27, %v173_v15  ;;  %v20234_v15 = vld [vmem:[#allocation5 + $0x2974] ss:$12 sps:$4 sm:$0xff]   ;;  %v20235_v27 = vld [vmem:[#allocation5 + $0x2378] ss:$12 sps:$4 sm:$0xff]  }
 0x526   :  { %17773 = vmatpush3.bf16.msra.mxu1 %v20151_v61  ;;  %v20195_v61 = vld [vmem:[#allocation5 + $0x21f8] ss:$12 sps:$4 sm:$0xff]  }
 0x527   :  { %13008 = vmatpush1.bf16.msra.mxu0 %v20147_v31  ;;  %17774 = vmatprep.subr.bf16.mxu1 %v20155_v24  ;;  %v20194_v31 = vld [vmem:[#allocation5 + $0x28b4] ss:$12 sps:$4 sm:$0xff]   ;;  %v20196_v24 = vld [vmem:[#allocation5 + $0x2138] ss:$12 sps:$4 sm:$0xff]  }
 0x528   :  { %13009 = vmatprep.subr.bf16.mxu0 %v20154_v37  ;;  %v20192_v37 = vld [vmem:[#allocation5 + $0x28b0] ss:$12 sps:$4 sm:$0xff]  }
 0x52a   :  { %17775 = vmatpush3.bf16.msra.mxu1 %v20156_v30  ;;  %v20197_v30 = vld [vmem:[#allocation5 + $0x28c8] ss:$12 sps:$4 sm:$0xff]  }
 0x52b   :  { %13010 = vmatpush1.bf16.msra.mxu0 %v20152_v13  ;;  %17776 = vmatprep.subr.bf16.mxu1 %v20160_v23  ;;  %v20199_v13 = vld [vmem:[#allocation5 + $0x28cc] ss:$12 sps:$4 sm:$0xff]   ;;  %v20204_v23 = vld [vmem:[#allocation5 + $0x28e4] ss:$12 sps:$4 sm:$0xff]  }
 0x52c   :  { %13011 = vmatprep.subr.bf16.mxu0 %v20159_v35  ;;  %v20201_v35 = vld [vmem:[#allocation5 + $0x2150] ss:$12 sps:$4 sm:$0xff]  }
 0x52e   :  { %17777 = vmatpush3.bf16.msra.mxu1 %v20161_v52  ;;  %v20202_v52 = vld [vmem:[#allocation5 + $0x28e0] ss:$12 sps:$4 sm:$0xff]  }
 0x52f   :  { %13012 = vmatpush1.bf16.msra.mxu0 %v20157_v63  ;;  %17778 = vmatprep.subr.bf16.mxu1 %v20165_v1  ;;  %v20205_v63 = vld [vmem:[#allocation5 + $0x2228] ss:$12 sps:$4 sm:$0xff]   ;;  %v20210_v1 = vld [vmem:[#allocation5 + $0x2240] ss:$12 sps:$4 sm:$0xff]  }
 0x530   :  { %13013 = vmatprep.subr.bf16.mxu0 %v20164_v10  ;;  %v20209_v10 = vld [vmem:[#allocation5 + $0x28fc] ss:$12 sps:$4 sm:$0xff]  }
 0x532   :  { %17779 = vmatpush3.bf16.msra.mxu1 %v20166_v29  ;;  %v20211_v29 = vld [vmem:[#allocation5 + $0x2180] ss:$12 sps:$4 sm:$0xff]  }
 0x533   :  { %13014 = vmatpush1.bf16.msra.mxu0 %v20162_v62  ;;  %17780 = vmatprep.subr.bf16.mxu1 %v20170_v32  ;;  %v20207_v62 = vld [vmem:[#allocation5 + $0x28f8] ss:$12 sps:$4 sm:$0xff]  }
 0x534   :  { %13015 = vmatprep.subr.bf16.mxu0 %v20169_v25  ;;  %v17632_v7 = vpop.f32.mrb[60].mxu1  ;;  %v20214_v25 = vld [vmem:[#allocation5 + $0x2914] ss:$12 sps:$4 sm:$0xff]   ;;  %v20215_v32 = vld [vmem:[#allocation5 + $0x2258] ss:$12 sps:$4 sm:$0xff]  }
 0x535   :  { %v17633_v60 = vpop.f32.mrb[61].mxu1 }
 0x536   :  { %v17634_v57 = vadd.f32 %v17633_v60, %v17632_v7  ;;  %v17635_v49 = vpop.f32.mrb[62].mxu1  ;;  %17781 = vmatpush3.bf16.msra.mxu1 %v20171_v51  ;;  %v20212_v51 = vld [vmem:[#allocation5 + $0x2910] ss:$12 sps:$4 sm:$0xff]   ;;  %v20219_v60 = vld [vmem:[#allocation5 + $0x292c] ss:$12 sps:$4 sm:$0xff]  }
 0x537   :  { %13016 = vmatpush1.bf16.msra.mxu0 %v20167_v42  ;;  %v17636_v16 = vpop.f32.mrb[63].mxu1  ;;  %17782 = vmatprep.subr.bf16.mxu1 %v20175_v39 }
 0x538   :  { %13017 = vmatprep.subr.bf16.mxu0 %v20174_v34  ;;  %v21471_v8 = vadd.f32 %v17634_v57, %v21463_v28  ;;  %v17637_v9 = vadd.f32 %v17636_v16, %v17635_v49  ;;  %v20182_v28 = vld [vmem:[#allocation5 + $0x2880] ss:$12 sps:$4 sm:$0xff]   ;;  %v20216_v34 = vld [vmem:[#allocation5 + $0x2198] ss:$12 sps:$4 sm:$0xff]   ;;  %v20220_v57 = vld [vmem:[#allocation5 + $0x2270] ss:$12 sps:$4 sm:$0xff]  }
 0x53a   :  { %v21474_v6 = vadd.f32 %v17637_v9, %v21466_v26  ;;  %17783 = vmatpush3.bf16.msra.mxu1 %v20176_v50  ;;  %v20187_v26 = vld [vmem:[#allocation5 + $0x2898] ss:$12 sps:$4 sm:$0xff]   ;;  %v20221_v9 = vld [vmem:[#allocation5 + $0x21b0] ss:$12 sps:$4 sm:$0xff]  }
 0x53b   :  { %13018 = vmatpush1.bf16.msra.mxu0 %v20172_v45  ;;  %17784 = vmatprep.subr.bf16.mxu1 %v20180_v58 }
 0x53c   :  { %13019 = vmatprep.subr.bf16.mxu0 %v20179_v53  ;;  %v20217_v53 = vld [vmem:[#allocation5 + $0x2928] ss:$12 sps:$4 sm:$0xff]  }
 0x53e   :  { %17785 = vmatpush3.bf16.msra.mxu1 %v20181_v54  ;;  %v20225_v54 = vld [vmem:[#allocation5 + $0x2348] ss:$12 sps:$4 sm:$0xff]  }
 0x53f   :  { %13020 = vmatpush1.bf16.msra.mxu0 %v20177_v56  ;;  %17792 = vmatprep.subr.bf16.mxu1 %v20185_v22  ;;  %v20224_v56 = vld [vmem:[#allocation5 + $0x2944] ss:$12 sps:$4 sm:$0xff]   ;;  %v20226_v22 = vld [vmem:[#allocation5 + $0x2288] ss:$12 sps:$4 sm:$0xff]  }
 0x540   :  { %13032 = vmatprep.subr.bf16.mxu0 %v20184_v3  ;;  %v20222_v3 = vld [vmem:[#allocation5 + $0x2940] ss:$12 sps:$4 sm:$0xff]  }
 0x541   :  { %14313 = vmatmul.mubr.bf16.vlgmr.msra.gmra.mrb[88].mxu1 %v21366_v36  ;;  %v20200_v36 = vld [vmem:[#allocation5 + $0x2210] ss:$12 sps:$4 sm:$0xff]  }
 0x542   :  { %13022 = vmatmul.mubr.bf16.vlgmr.msra.gmra.mrb[0].mxu0 %v21476_v47  ;;  %17793 = vmatpush3.bf16.msra.mxu1 %v20186_v55  ;;  %v20236_v55 = vld [vmem:[#allocation5 + $0x22b8] ss:$12 sps:$4 sm:$0xff]  }
 0x543   :  { %13033 = vmatpush1.bf16.msra.mxu0 %v20182_v28  ;;  %17794 = vmatprep.subr.bf16.mxu1 %v20190_v33  ;;  %v20232_v28 = vld [vmem:[#allocation5 + $0x2970] ss:$12 sps:$4 sm:$0xff]  }
 0x544   :  { %13034 = vmatprep.subr.bf16.mxu0 %v20189_v46  ;;  %14353 = vmatprep.mubr.bf16.mxu1 %v21368_v59  ;;  %v20206_v59 = vld [vmem:[#allocation5 + $0x2168] ss:$12 sps:$4 sm:$0xff]   ;;  %v20239_v46 = vld [vmem:[#allocation5 + $0x298c] ss:$12 sps:$4 sm:$0xff]   ;;  %v20240_v33 = vld [vmem:[#allocation5 + $0x2390] ss:$12 sps:$4 sm:$0xff]  }
 0x545   :  { %13064 = vmatprep.mubr.bf16.mxu0 %v21478_v38 }
 0x546   :  { %17795 = vmatpush3.bf16.msra.mxu1 %v20191_v21  ;;  %v20244_v21 = vld [vmem:[#allocation5 + $0x29a4] ss:$12 sps:$4 sm:$0xff]  }
 0x547   :  { %13035 = vmatpush1.bf16.msra.mxu0 %v20187_v26  ;;  %17796 = vmatprep.subr.bf16.mxu1 %v20195_v61  ;;  %v20237_v26 = vld [vmem:[#allocation5 + $0x2988] ss:$12 sps:$4 sm:$0xff]   ;;  %v20242_v61 = vld [vmem:[#allocation5 + $0x29a0] ss:$12 sps:$4 sm:$0xff]  }
 0x548   :  { %13036 = vmatprep.subr.bf16.mxu0 %v20194_v31  ;;  %v20245_v31 = vld [vmem:[#allocation5 + $0x23a8] ss:$12 sps:$4 sm:$0xff]  }
 0x54a   :  { %17797 = vmatpush3.bf16.msra.mxu1 %v20196_v24  ;;  %v20250_v24 = vld [vmem:[#allocation5 + $0x23c0] ss:$12 sps:$4 sm:$0xff]  }
 0x54b   :  { %13037 = vmatpush1.bf16.msra.mxu0 %v20192_v37  ;;  %17798 = vmatprep.subr.bf16.mxu1 %v20200_v36  ;;  %v20246_v37 = vld [vmem:[#allocation5 + $0x22e8] ss:$12 sps:$4 sm:$0xff]   ;;  %v20251_v36 = vld [vmem:[#allocation5 + $0x2300] ss:$12 sps:$4 sm:$0xff]  }
 0x54c   :  { %13038 = vmatprep.subr.bf16.mxu0 %v20199_v13  ;;  %v20247_v13 = vld [vmem:[#allocation5 + $0x29b8] ss:$12 sps:$4 sm:$0xff]  }
 0x54e   :  { %17799 = vmatpush3.bf16.msra.mxu1 %v20201_v35  ;;  %v20255_v35 = vld [vmem:[#allocation5 + $0x23d8] ss:$12 sps:$4 sm:$0xff]  }
 0x54f   :  { %13039 = vmatpush1.bf16.msra.mxu0 %v20197_v30  ;;  %17800 = vmatprep.subr.bf16.mxu1 %v20205_v63  ;;  %v20254_v30 = vld [vmem:[#allocation5 + $0x29d4] ss:$12 sps:$4 sm:$0xff]   ;;  %v20252_v63 = vld [vmem:[#allocation5 + $0x29d0] ss:$12 sps:$4 sm:$0xff]  }
 0x550   :  { %13040 = vmatprep.subr.bf16.mxu0 %v20204_v23 }
 0x552   :  { %17801 = vmatpush3.bf16.msra.mxu1 %v20206_v59 }
 0x553   :  { %13041 = vmatpush1.bf16.msra.mxu0 %v20202_v52  ;;  %17802 = vmatprep.subr.bf16.mxu1 %v20210_v1  ;;  %v20256_v52 = vld [vmem:[#allocation5 + $0x2318] ss:$12 sps:$4 sm:$0xff]  }
 0x554   :  { %13042 = vmatprep.subr.bf16.mxu0 %v20209_v10  ;;  %v17654_v42 = vpop.f32.mrb[64].mxu1 }
 0x555   :  { %v17655_v39 = vpop.f32.mrb[65].mxu1 }
 0x556   :  { %v17656_v7 = vadd.f32 %v17655_v39, %v17654_v42  ;;  %v17657_v45 = vpop.f32.mrb[66].mxu1  ;;  %17803 = vmatpush3.bf16.msra.mxu1 %v20211_v29  ;;  %v20259_v29 = vld [vmem:[#allocation5 + $0x29ec] ss:$12 sps:$4 sm:$0xff]   ;;  %v20261_v39 = vld [vmem:[#allocation5 + $0x2330] ss:$12 sps:$4 sm:$0xff]  }
 0x557   :  { %13043 = vmatpush1.bf16.msra.mxu0 %v20207_v62  ;;  %v17658_v50 = vpop.f32.mrb[67].mxu1  ;;  %17804 = vmatprep.subr.bf16.mxu1 %v20215_v32 }
 0x558   :  { %13044 = vmatprep.subr.bf16.mxu0 %v20214_v25  ;;  %v21485_v49 = vadd.f32 %v17656_v7, %v21471_v8  ;;  %v17659_v16 = vadd.f32 %v17658_v50, %v17657_v45  ;;  %v20230_v8 = vld [vmem:[#allocation5 + $0x2360] ss:$12 sps:$4 sm:$0xff]   ;;  %v20260_v25 = vld [vmem:[#allocation5 + $0x23f0] ss:$12 sps:$4 sm:$0xff]  }
 0x559   :  { %v172_v7 = vld [vmem:[#allocation2 + $0x1b0] sm:$0xff] }
 0x55a   :  { %v21488_v58 = vadd.f32 %v17659_v16, %v21474_v6  ;;  %17805 = vmatpush3.bf16.msra.mxu1 %v20216_v34  ;;  %v20231_v6 = vld [vmem:[#allocation5 + $0x22a0] ss:$12 sps:$4 sm:$0xff]   ;;  %v244_v45 = vld [vmem:[#allocation2 + $0x3f0] sm:$0xf] }
 0x55b   :  { %13045 = vmatpush1.bf16.msra.mxu0 %v20212_v51  ;;  %17806 = vmatprep.subr.bf16.mxu1 %v20220_v57  ;;  %v20257_v51 = vld [vmem:[#allocation5 + $0x29e8] ss:$12 sps:$4 sm:$0xff]   ;;  %v20264_v50 = vld [vmem:[#allocation5 + $0x2a04] ss:$12 sps:$4 sm:$0xff]   ;;  %v21498_v57 = vpack.c.bf16 %v244_v45, %v172_v7  ;;  %v20310_v7 = vld [vmem:[#allocation5 + $0x2660] ss:$12 sps:$4 sm:$0xff]  }
 0x55c   :  { %13046 = vmatprep.subr.bf16.mxu0 %v20219_v60  ;;  %v20265_v60 = vld [vmem:[#allocation5 + $0x24c8] ss:$12 sps:$4 sm:$0xff]   ;;  %v20311_v45 = vld [vmem:[#allocation5 + $0x25a0] ss:$12 sps:$4 sm:$0xff]  }
 0x55d   :  { %v175_v16 = vld [vmem:[#allocation2 + $0x1c8] sm:$0xff] }
 0x55e   :  { %17807 = vmatpush3.bf16.msra.mxu1 %v20221_v9  ;;  %v20266_v9 = vld [vmem:[#allocation5 + $0x2408] ss:$12 sps:$4 sm:$0xff]  }
 0x55f   :  { %13047 = vmatpush1.bf16.msra.mxu0 %v20217_v53  ;;  %17814 = vmatprep.subr.bf16.mxu1 %v20225_v54  ;;  %v247_v53 = vld [vmem:[#allocation2 + $0x408] sm:$0xf] }
 0x560   :  { %13048 = vmatprep.subr.bf16.mxu0 %v20224_v56  ;;  %v20270_v56 = vld [vmem:[#allocation5 + $0x24e0] ss:$12 sps:$4 sm:$0xff]   ;;  %v21500_v54 = vpack.c.bf16 %v247_v53, %v175_v16  ;;  %v20312_v16 = vld [vmem:[#allocation5 + $0x2af0] ss:$12 sps:$4 sm:$0xff]   ;;  %v20316_v53 = vld [vmem:[#allocation5 + $0x25b8] ss:$12 sps:$4 sm:$0xff]  }
 0x561   :  { %14354 = vmatmul.mubr.bf16.vlgmr.msra.gmra.mrb[92].mxu1 %v21388_v5  ;;  %v20241_v5 = vld [vmem:[#allocation5 + $0x22d0] ss:$12 sps:$4 sm:$0xff]  }
 0x562   :  { %17815 = vmatpush3.bf16.msra.mxu1 %v20226_v22  ;;  %14394 = vmatprep.mubr.bf16.mxu1 %v21390_v11  ;;  %v20249_v11 = vld [vmem:[#allocation5 + $0x29bc] ss:$12 sps:$4 sm:$0xff]   ;;  %v20271_v22 = vld [vmem:[#allocation5 + $0x2420] ss:$12 sps:$4 sm:$0xff]  }
 0x563   :  { %13049 = vmatpush1.bf16.msra.mxu0 %v20222_v3  ;;  %17816 = vmatprep.subr.bf16.mxu1 %v20230_v8  ;;  %v20267_v3 = vld [vmem:[#allocation5 + $0x2a18] ss:$12 sps:$4 sm:$0xff]  }
 0x564   :  { %13050 = vmatprep.subr.bf16.mxu0 %v20229_v18  ;;  %v20274_v18 = vld [vmem:[#allocation5 + $0x2a34] ss:$12 sps:$4 sm:$0xff]   ;;  %v20275_v8 = vld [vmem:[#allocation5 + $0x24f8] ss:$12 sps:$4 sm:$0xff]  }
 0x566   :  { %17817 = vmatpush3.bf16.msra.mxu1 %v20231_v6  ;;  %v20276_v6 = vld [vmem:[#allocation5 + $0x2438] ss:$12 sps:$4 sm:$0xff]  }
 0x567   :  { %13051 = vmatpush1.bf16.msra.mxu0 %v20227_v40  ;;  %17818 = vmatprep.subr.bf16.mxu1 %v20235_v27  ;;  %v20272_v40 = vld [vmem:[#allocation5 + $0x2a30] ss:$12 sps:$4 sm:$0xff]   ;;  %v20277_v27 = vld [vmem:[#allocation5 + $0x2a48] ss:$12 sps:$4 sm:$0xff]  }
 0x568   :  { %13052 = vmatprep.subr.bf16.mxu0 %v20234_v15  ;;  %v20280_v15 = vld [vmem:[#allocation5 + $0x2510] ss:$12 sps:$4 sm:$0xff]  }
 0x56a   :  { %17819 = vmatpush3.bf16.msra.mxu1 %v20236_v55  ;;  %v20284_v55 = vld [vmem:[#allocation5 + $0x2a64] ss:$12 sps:$4 sm:$0xff]  }
 0x56b   :  { %13053 = vmatpush1.bf16.msra.mxu0 %v20232_v28  ;;  %17820 = vmatprep.subr.bf16.mxu1 %v20240_v33  ;;  %v20281_v28 = vld [vmem:[#allocation5 + $0x2450] ss:$12 sps:$4 sm:$0xff]   ;;  %v20286_v33 = vld [vmem:[#allocation5 + $0x2468] ss:$12 sps:$4 sm:$0xff]  }
 0x56c   :  { %13054 = vmatprep.subr.bf16.mxu0 %v20239_v46  ;;  %v20285_v46 = vld [vmem:[#allocation5 + $0x2528] ss:$12 sps:$4 sm:$0xff]  }
 0x56e   :  { %17821 = vmatpush3.bf16.msra.mxu1 %v20241_v5  ;;  %v20290_v5 = vld [vmem:[#allocation5 + $0x2540] ss:$12 sps:$4 sm:$0xff]  }
 0x56f   :  { %13055 = vmatpush1.bf16.msra.mxu0 %v20237_v26  ;;  %17822 = vmatprep.subr.bf16.mxu1 %v20245_v31  ;;  %v20289_v26 = vld [vmem:[#allocation5 + $0x2a7c] ss:$12 sps:$4 sm:$0xff]   ;;  %v20291_v31 = vld [vmem:[#allocation5 + $0x2480] ss:$12 sps:$4 sm:$0xff]  }
 0x570   :  { %13056 = vmatprep.subr.bf16.mxu0 %v20244_v21  ;;  %v20287_v21 = vld [vmem:[#allocation5 + $0x2a78] ss:$12 sps:$4 sm:$0xff]  }
 0x572   :  { %17823 = vmatpush3.bf16.msra.mxu1 %v20246_v37  ;;  %v20295_v37 = vld [vmem:[#allocation5 + $0x2558] ss:$12 sps:$4 sm:$0xff]  }
 0x573   :  { %13057 = vmatpush1.bf16.msra.mxu0 %v20242_v61  ;;  %17824 = vmatprep.subr.bf16.mxu1 %v20250_v24  ;;  %v20294_v61 = vld [vmem:[#allocation5 + $0x2a94] ss:$12 sps:$4 sm:$0xff]  }
 0x574   :  { %13058 = vmatprep.subr.bf16.mxu0 %v20249_v11  ;;  %v17676_v23 = vpop.f32.mrb[68].mxu1 }
 0x575   :  { %v17677_v59 = vpop.f32.mrb[69].mxu1 }
 0x576   :  { %v17678_v10 = vadd.f32 %v17677_v59, %v17676_v23  ;;  %v17679_v1 = vpop.f32.mrb[70].mxu1  ;;  %17825 = vmatpush3.bf16.msra.mxu1 %v20251_v36 }
 0x577   :  { %13059 = vmatpush1.bf16.msra.mxu0 %v20247_v13  ;;  %v17680_v62 = vpop.f32.mrb[71].mxu1  ;;  %17826 = vmatprep.subr.bf16.mxu1 %v20255_v35  ;;  %v20296_v35 = vld [vmem:[#allocation5 + $0x2498] ss:$12 sps:$4 sm:$0xff]  }
 0x578   :  { %13060 = vmatprep.subr.bf16.mxu0 %v20254_v30  ;;  %v21493_v32 = vadd.f32 %v17678_v10, %v21485_v49  ;;  %v17681_v42 = vadd.f32 %v17680_v62, %v17679_v1  ;;  %v20262_v49 = vld [vmem:[#allocation5 + $0x2a00] ss:$12 sps:$4 sm:$0xff]   ;;  %v20292_v30 = vld [vmem:[#allocation5 + $0x2a90] ss:$12 sps:$4 sm:$0xff]   ;;  %v20297_v62 = vld [vmem:[#allocation5 + $0x2aa8] ss:$12 sps:$4 sm:$0xff]  }
 0x57a   :  { %v21496_v34 = vadd.f32 %v17681_v42, %v21488_v58  ;;  %17827 = vmatpush3.bf16.msra.mxu1 %v20256_v52  ;;  %v20269_v58 = vld [vmem:[#allocation5 + $0x2a1c] ss:$12 sps:$4 sm:$0xff]  }
 0x57b   :  { %13061 = vmatpush1.bf16.msra.mxu0 %v20252_v63  ;;  %17828 = vmatprep.subr.bf16.mxu1 %v20260_v25  ;;  %v20299_v63 = vld [vmem:[#allocation5 + $0x2aac] ss:$12 sps:$4 sm:$0xff]   ;;  %v20300_v52 = vld [vmem:[#allocation5 + $0x2570] ss:$12 sps:$4 sm:$0xff]   ;;  %v20305_v42 = vld [vmem:[#allocation5 + $0x2648] ss:$12 sps:$4 sm:$0xff]  }
 0x57c   :  { %13062 = vmatprep.subr.bf16.mxu0 %v20259_v29  ;;  %v20301_v29 = vld [vmem:[#allocation5 + $0x24b0] ss:$12 sps:$4 sm:$0xff]  }
 0x57d   :  { %v20304_v25 = vld [vmem:[#allocation5 + $0x2ac4] ss:$12 sps:$4 sm:$0xff]  }
 0x57e   :  { %17829 = vmatpush3.bf16.msra.mxu1 %v20261_v39  ;;  %v20306_v39 = vld [vmem:[#allocation5 + $0x2588] ss:$12 sps:$4 sm:$0xff]  }
 0x57f   :  { %13063 = vmatpush1.bf16.msra.mxu0 %v20257_v51  ;;  %17836 = vmatprep.subr.bf16.mxu1 %v20265_v60  ;;  %v20302_v51 = vld [vmem:[#allocation5 + $0x2ac0] ss:$12 sps:$4 sm:$0xff]   ;;  %v20315_v60 = vld [vmem:[#allocation5 + $0x2678] ss:$12 sps:$4 sm:$0xff]  }
 0x580   :  { %13075 = vmatprep.subr.bf16.mxu0 %v20264_v50  ;;  %v20314_v50 = vld [vmem:[#allocation5 + $0x2af4] ss:$12 sps:$4 sm:$0xff]  }
 0x581   :  { %14395 = vmatmul.mubr.bf16.vlgmr.msra.gmra.mrb[96].mxu1 %v21410_v48  ;;  %v20279_v48 = vld [vmem:[#allocation5 + $0x2a4c] ss:$12 sps:$4 sm:$0xff]  }
 0x582   :  { %13065 = vmatmul.mubr.bf16.vlgmr.msra.gmra.mrb[0].mxu0 %v21498_v57  ;;  %17837 = vmatpush3.bf16.msra.mxu1 %v20266_v9  ;;  %v20320_v9 = vld [vmem:[#allocation5 + $0x2690] ss:$12 sps:$4 sm:$0xff]  }
 0x583   :  { %13076 = vmatpush1.bf16.msra.mxu0 %v20262_v49  ;;  %17838 = vmatprep.subr.bf16.mxu1 %v20270_v56  ;;  %v20319_v49 = vld [vmem:[#allocation5 + $0x2b0c] ss:$12 sps:$4 sm:$0xff]   ;;  %v20324_v56 = vld [vmem:[#allocation5 + $0x2b24] ss:$12 sps:$4 sm:$0xff]  }
 0x584   :  { %13077 = vmatprep.subr.bf16.mxu0 %v20269_v58  ;;  %14435 = vmatprep.mubr.bf16.mxu1 %v21412_v41  ;;  %v20282_v41 = vld [vmem:[#allocation5 + $0x2a60] ss:$12 sps:$4 sm:$0xff]   ;;  %v20321_v58 = vld [vmem:[#allocation5 + $0x25d0] ss:$12 sps:$4 sm:$0xff]  }
 0x585   :  { %13107 = vmatprep.mubr.bf16.mxu0 %v21500_v54 }
 0x586   :  { %17839 = vmatpush3.bf16.msra.mxu1 %v20271_v22  ;;  %v20322_v22 = vld [vmem:[#allocation5 + $0x2b20] ss:$12 sps:$4 sm:$0xff]  }
 0x587   :  { %13078 = vmatpush1.bf16.msra.mxu0 %v20267_v3  ;;  %17840 = vmatprep.subr.bf16.mxu1 %v20275_v8  ;;  %v20325_v3 = vld [vmem:[#allocation5 + $0x26a8] ss:$12 sps:$4 sm:$0xff]   ;;  %v20330_v8 = vld [vmem:[#allocation5 + $0x26c0] ss:$12 sps:$4 sm:$0xff]  }
 0x588   :  { %13079 = vmatprep.subr.bf16.mxu0 %v20274_v18  ;;  %v20329_v18 = vld [vmem:[#allocation5 + $0x2b3c] ss:$12 sps:$4 sm:$0xff]  }
 0x58a   :  { %17841 = vmatpush3.bf16.msra.mxu1 %v20276_v6  ;;  %v20331_v6 = vld [vmem:[#allocation5 + $0x2600] ss:$12 sps:$4 sm:$0xff]  }
 0x58b   :  { %13080 = vmatpush1.bf16.msra.mxu0 %v20272_v40  ;;  %17842 = vmatprep.subr.bf16.mxu1 %v20280_v15  ;;  %v20327_v40 = vld [vmem:[#allocation5 + $0x2b38] ss:$12 sps:$4 sm:$0xff]  }
 0x58c   :  { %13081 = vmatprep.subr.bf16.mxu0 %v20279_v48  ;;  %v20334_v48 = vld [vmem:[#allocation5 + $0x2b54] ss:$12 sps:$4 sm:$0xff]   ;;  %v20335_v15 = vld [vmem:[#allocation5 + $0x26d8] ss:$12 sps:$4 sm:$0xff]  }
 0x58e   :  { %17843 = vmatpush3.bf16.msra.mxu1 %v20281_v28 }
 0x58f   :  { %13082 = vmatpush1.bf16.msra.mxu0 %v20277_v27  ;;  %17844 = vmatprep.subr.bf16.mxu1 %v20285_v46 }
 0x590   :  { %13083 = vmatprep.subr.bf16.mxu0 %v20284_v55 }
 0x592   :  { %17845 = vmatpush3.bf16.msra.mxu1 %v20286_v33  ;;  %v20336_v33 = vld [vmem:[#allocation5 + $0x2618] ss:$12 sps:$4 sm:$0xff]  }
 0x593   :  { %13084 = vmatpush1.bf16.msra.mxu0 %v20282_v41  ;;  %17846 = vmatprep.subr.bf16.mxu1 %v20290_v5  ;;  %v20332_v41 = vld [vmem:[#allocation5 + $0x2b50] ss:$12 sps:$4 sm:$0xff]   ;;  %v20339_v5 = vld [vmem:[#allocation5 + $0x2b6c] ss:$12 sps:$4 sm:$0xff]  }
 0x594   :  { %13085 = vmatprep.subr.bf16.mxu0 %v20289_v26  ;;  %v17698_v11 = vpop.f32.mrb[72].mxu1 }
 0x595   :  { %v17699_v24 = vpop.f32.mrb[73].mxu1 }
 0x596   :  { %v17700_v13 = vadd.f32 %v17699_v24, %v17698_v11  ;;  %v17701_v36 = vpop.f32.mrb[74].mxu1  ;;  %17847 = vmatpush3.bf16.msra.mxu1 %v20291_v31  ;;  %v20341_v24 = vld [vmem:[#allocation5 + $0x2630] ss:$12 sps:$4 sm:$0xff]  }
 0x597   :  { %13086 = vmatpush1.bf16.msra.mxu0 %v20287_v21  ;;  %v17702_v23 = vpop.f32.mrb[75].mxu1  ;;  %17848 = vmatprep.subr.bf16.mxu1 %v20295_v37  ;;  %v20340_v21 = vld [vmem:[#allocation5 + $0x26f0] ss:$12 sps:$4 sm:$0xff]   ;;  %v20337_v37 = vld [vmem:[#allocation5 + $0x2b68] ss:$12 sps:$4 sm:$0xff]  }
 0x598   :  { %13087 = vmatprep.subr.bf16.mxu0 %v20294_v61  ;;  %v21507_v59 = vadd.f32 %v17700_v13, %v21493_v32  ;;  %v17703_v10 = vadd.f32 %v17702_v23, %v17701_v36  ;;  %v20309_v32 = vld [vmem:[#allocation5 + $0x2adc] ss:$12 sps:$4 sm:$0xff]   ;;  %v174_v13 = vld [vmem:[#allocation2 + $0x1c0] sm:$0xff] }
 0x599   :  { %v246_v36 = vld [vmem:[#allocation2 + $0x400] sm:$0xf] }
 0x59a   :  { %v21510_v1 = vadd.f32 %v17703_v10, %v21496_v34  ;;  %17849 = vmatpush3.bf16.msra.mxu1 %v20296_v35  ;;  %v20307_v34 = vld [vmem:[#allocation5 + $0x2ad8] ss:$12 sps:$4 sm:$0xff]   ;;  %v20345_v35 = vld [vmem:[#allocation5 + $0x27c8] ss:$12 sps:$4 sm:$0xff]   ;;  %v21520_v23 = vpack.c.bf16 %v246_v36, %v174_v13 }
 0x59b   :  { %13088 = vmatpush1.bf16.msra.mxu0 %v20292_v30  ;;  %17850 = vmatprep.subr.bf16.mxu1 %v20300_v52  ;;  %v20344_v30 = vld [vmem:[#allocation5 + $0x2b84] ss:$12 sps:$4 sm:$0xff]   ;;  %v249_v52 = vld [vmem:[#allocation2 + $0x418] sm:$0xf]  ;;  %v20346_v10 = vld [vmem:[#allocation5 + $0x2708] ss:$12 sps:$4 sm:$0xff]  }
 0x59c   :  { %13089 = vmatprep.subr.bf16.mxu0 %v20299_v63  ;;  %v177_v63 = vld [vmem:[#allocation2 + $0x1d8] sm:$0xff]  ;;  %v20394_v13 = vld [vmem:[#allocation5 + $0x2c74] ss:$12 sps:$4 sm:$0xff]  }
 0x59d   :  { %v20395_v36 = vld [vmem:[#allocation5 + $0x2978] ss:$12 sps:$4 sm:$0xff]  }
 0x59e   :  { %17851 = vmatpush3.bf16.msra.mxu1 %v20301_v29  ;;  %v21522_v29 = vpack.c.bf16 %v249_v52, %v177_v63  ;;  %v20399_v63 = vld [vmem:[#allocation5 + $0x2c8c] ss:$12 sps:$4 sm:$0xff]   ;;  %v20400_v52 = vld [vmem:[#allocation5 + $0x2990] ss:$12 sps:$4 sm:$0xff]  }
 0x59f   :  { %13090 = vmatpush1.bf16.msra.mxu0 %v20297_v62  ;;  %17858 = vmatprep.subr.bf16.mxu1 %v20305_v42  ;;  %v20350_v62 = vld [vmem:[#allocation5 + $0x27e0] ss:$12 sps:$4 sm:$0xff]  }
 0x5a0   :  { %13091 = vmatprep.subr.bf16.mxu0 %v20304_v25  ;;  %v20347_v25 = vld [vmem:[#allocation5 + $0x2b98] ss:$12 sps:$4 sm:$0xff]   ;;  %v20351_v42 = vld [vmem:[#allocation5 + $0x2720] ss:$12 sps:$4 sm:$0xff]  }
 0x5a1   :  { %14436 = vmatmul.mubr.bf16.vlgmr.msra.gmra.mrb[100].mxu1 %v21432_v12  ;;  %v20317_v12 = vld [vmem:[#allocation5 + $0x2b08] ss:$12 sps:$4 sm:$0xff]  }
 0x5a2   :  { %17859 = vmatpush3.bf16.msra.mxu1 %v20306_v39  ;;  %14476 = vmatprep.mubr.bf16.mxu1 %v21434_v4  ;;  %v20326_v4 = vld [vmem:[#allocation5 + $0x25e8] ss:$12 sps:$4 sm:$0xff]   ;;  %v20355_v39 = vld [vmem:[#allocation5 + $0x27f8] ss:$12 sps:$4 sm:$0xff]  }
 0x5a3   :  { %13092 = vmatpush1.bf16.msra.mxu0 %v20302_v51  ;;  %17860 = vmatprep.subr.bf16.mxu1 %v20310_v7  ;;  %v20354_v51 = vld [vmem:[#allocation5 + $0x2bb4] ss:$12 sps:$4 sm:$0xff]   ;;  %v20356_v7 = vld [vmem:[#allocation5 + $0x2738] ss:$12 sps:$4 sm:$0xff]  }
 0x5a4   :  { %13093 = vmatprep.subr.bf16.mxu0 %v20309_v32  ;;  %v20352_v32 = vld [vmem:[#allocation5 + $0x2bb0] ss:$12 sps:$4 sm:$0xff]  }
 0x5a6   :  { %17861 = vmatpush3.bf16.msra.mxu1 %v20311_v45  ;;  %v20357_v45 = vld [vmem:[#allocation5 + $0x2bc8] ss:$12 sps:$4 sm:$0xff]  }
 0x5a7   :  { %13094 = vmatpush1.bf16.msra.mxu0 %v20307_v34  ;;  %17862 = vmatprep.subr.bf16.mxu1 %v20315_v60  ;;  %v20360_v34 = vld [vmem:[#allocation5 + $0x2810] ss:$12 sps:$4 sm:$0xff]  }
 0x5a8   :  { %13095 = vmatprep.subr.bf16.mxu0 %v20314_v50  ;;  %v20361_v50 = vld [vmem:[#allocation5 + $0x2750] ss:$12 sps:$4 sm:$0xff]  }
 0x5a9   :  { %v20364_v60 = vld [vmem:[#allocation5 + $0x2be4] ss:$12 sps:$4 sm:$0xff]  }
 0x5aa   :  { %17863 = vmatpush3.bf16.msra.mxu1 %v20316_v53  ;;  %v20366_v53 = vld [vmem:[#allocation5 + $0x2768] ss:$12 sps:$4 sm:$0xff]  }
 0x5ab   :  { %13096 = vmatpush1.bf16.msra.mxu0 %v20312_v16  ;;  %17864 = vmatprep.subr.bf16.mxu1 %v20320_v9  ;;  %v20365_v16 = vld [vmem:[#allocation5 + $0x2828] ss:$12 sps:$4 sm:$0xff]   ;;  %v20370_v9 = vld [vmem:[#allocation5 + $0x2840] ss:$12 sps:$4 sm:$0xff]  }
 0x5ac   :  { %13097 = vmatprep.subr.bf16.mxu0 %v20319_v49  ;;  %v20369_v49 = vld [vmem:[#allocation5 + $0x2bfc] ss:$12 sps:$4 sm:$0xff]  }
 0x5ae   :  { %17865 = vmatpush3.bf16.msra.mxu1 %v20321_v58  ;;  %v20371_v58 = vld [vmem:[#allocation5 + $0x2780] ss:$12 sps:$4 sm:$0xff]  }
 0x5af   :  { %13098 = vmatpush1.bf16.msra.mxu0 %v20317_v12  ;;  %17866 = vmatprep.subr.bf16.mxu1 %v20325_v3  ;;  %v20367_v12 = vld [vmem:[#allocation5 + $0x2bf8] ss:$12 sps:$4 sm:$0xff]  }
 0x5b0   :  { %13099 = vmatprep.subr.bf16.mxu0 %v20324_v56  ;;  %v20374_v56 = vld [vmem:[#allocation5 + $0x2c14] ss:$12 sps:$4 sm:$0xff]   ;;  %v20375_v3 = vld [vmem:[#allocation5 + $0x2858] ss:$12 sps:$4 sm:$0xff]  }
 0x5b2   :  { %17867 = vmatpush3.bf16.msra.mxu1 %v20326_v4 }
 0x5b3   :  { %13100 = vmatpush1.bf16.msra.mxu0 %v20322_v22  ;;  %17868 = vmatprep.subr.bf16.mxu1 %v20330_v8 }
 0x5b4   :  { %13101 = vmatprep.subr.bf16.mxu0 %v20329_v18  ;;  %v17720_v27 = vpop.f32.mrb[76].mxu1 }
 0x5b5   :  { %v17721_v28 = vpop.f32.mrb[77].mxu1 }
 0x5b6   :  { %v17722_v55 = vadd.f32 %v17721_v28, %v17720_v27  ;;  %v17723_v46 = vpop.f32.mrb[78].mxu1  ;;  %17869 = vmatpush3.bf16.msra.mxu1 %v20331_v6  ;;  %v20376_v6 = vld [vmem:[#allocation5 + $0x2798] ss:$12 sps:$4 sm:$0xff]   ;;  %v20380_v27 = vld [vmem:[#allocation5 + $0x2870] ss:$12 sps:$4 sm:$0xff]  }
 0x5b7   :  { %13102 = vmatpush1.bf16.msra.mxu0 %v20327_v40  ;;  %v17724_v26 = vpop.f32.mrb[79].mxu1  ;;  %17870 = vmatprep.subr.bf16.mxu1 %v20335_v15  ;;  %v20372_v40 = vld [vmem:[#allocation5 + $0x2c10] ss:$12 sps:$4 sm:$0xff]   ;;  %v20379_v15 = vld [vmem:[#allocation5 + $0x2c2c] ss:$12 sps:$4 sm:$0xff]  }
 0x5b8   :  { %13103 = vmatprep.subr.bf16.mxu0 %v20334_v48  ;;  %v21515_v31 = vadd.f32 %v17722_v55, %v21507_v59  ;;  %v17725_v61 = vadd.f32 %v17724_v26, %v17723_v46  ;;  %v20342_v59 = vld [vmem:[#allocation5 + $0x2b80] ss:$12 sps:$4 sm:$0xff]   ;;  %v20384_v26 = vld [vmem:[#allocation5 + $0x2c44] ss:$12 sps:$4 sm:$0xff]  }
 0x5ba   :  { %v21518_v11 = vadd.f32 %v17725_v61, %v21510_v1  ;;  %17871 = vmatpush3.bf16.msra.mxu1 %v20336_v33  ;;  %v20349_v1 = vld [vmem:[#allocation5 + $0x2b9c] ss:$12 sps:$4 sm:$0xff]  }
 0x5bb   :  { %13104 = vmatpush1.bf16.msra.mxu0 %v20332_v41  ;;  %17872 = vmatprep.subr.bf16.mxu1 %v20340_v21  ;;  %v20377_v41 = vld [vmem:[#allocation5 + $0x2c28] ss:$12 sps:$4 sm:$0xff]   ;;  %v20381_v33 = vld [vmem:[#allocation5 + $0x27b0] ss:$12 sps:$4 sm:$0xff]   ;;  %v20382_v21 = vld [vmem:[#allocation5 + $0x2c40] ss:$12 sps:$4 sm:$0xff]  }
 0x5bc   :  { %13105 = vmatprep.subr.bf16.mxu0 %v20339_v5  ;;  %v20385_v5 = vld [vmem:[#allocation5 + $0x2948] ss:$12 sps:$4 sm:$0xff]  }
 0x5bd   :  { %v20386_v61 = vld [vmem:[#allocation5 + $0x2888] ss:$12 sps:$4 sm:$0xff]  }
 0x5be   :  { %17873 = vmatpush3.bf16.msra.mxu1 %v20341_v24  ;;  %v20391_v24 = vld [vmem:[#allocation5 + $0x28a0] ss:$12 sps:$4 sm:$0xff]  }
 0x5bf   :  { %13106 = vmatpush1.bf16.msra.mxu0 %v20337_v37  ;;  %17880 = vmatprep.subr.bf16.mxu1 %v20345_v35  ;;  %v20390_v37 = vld [vmem:[#allocation5 + $0x2960] ss:$12 sps:$4 sm:$0xff]   ;;  %v20396_v35 = vld [vmem:[#allocation5 + $0x28b8] ss:$12 sps:$4 sm:$0xff]  }
 0x5c0   :  { %13118 = vmatprep.subr.bf16.mxu0 %v20344_v30  ;;  %v20392_v30 = vld [vmem:[#allocation5 + $0x2c70] ss:$12 sps:$4 sm:$0xff]  }
 0x5c1   :  { %14477 = vmatmul.mubr.bf16.vlgmr.msra.gmra.mrb[104].mxu1 %v21454_v2  ;;  %v20359_v2 = vld [vmem:[#allocation5 + $0x2bcc] ss:$12 sps:$4 sm:$0xff]  }
 0x5c2   :  { %13108 = vmatmul.mubr.bf16.vlgmr.msra.gmra.mrb[0].mxu0 %v21520_v23  ;;  %17881 = vmatpush3.bf16.msra.mxu1 %v20346_v10  ;;  %v20404_v10 = vld [vmem:[#allocation5 + $0x2ca4] ss:$12 sps:$4 sm:$0xff]  }
 0x5c3   :  { %13119 = vmatpush1.bf16.msra.mxu0 %v20342_v59  ;;  %17882 = vmatprep.subr.bf16.mxu1 %v20350_v62  ;;  %v20401_v59 = vld [vmem:[#allocation5 + $0x28d0] ss:$12 sps:$4 sm:$0xff]   ;;  %v20402_v62 = vld [vmem:[#allocation5 + $0x2ca0] ss:$12 sps:$4 sm:$0xff]  }
 0x5c4   :  { %13120 = vmatprep.subr.bf16.mxu0 %v20349_v1  ;;  %14517 = vmatprep.mubr.bf16.mxu1 %v21456_v43  ;;  %v20362_v43 = vld [vmem:[#allocation5 + $0x2be0] ss:$12 sps:$4 sm:$0xff]   ;;  %v20405_v1 = vld [vmem:[#allocation5 + $0x29a8] ss:$12 sps:$4 sm:$0xff]  }
 0x5c5   :  { %13150 = vmatprep.mubr.bf16.mxu0 %v21522_v29 }
 0x5c6   :  { %17883 = vmatpush3.bf16.msra.mxu1 %v20351_v42  ;;  %v20410_v42 = vld [vmem:[#allocation5 + $0x29c0] ss:$12 sps:$4 sm:$0xff]  }
 0x5c7   :  { %13121 = vmatpush1.bf16.msra.mxu0 %v20347_v25  ;;  %17884 = vmatprep.subr.bf16.mxu1 %v20355_v39  ;;  %v20409_v25 = vld [vmem:[#allocation5 + $0x2cbc] ss:$12 sps:$4 sm:$0xff]   ;;  %v20411_v39 = vld [vmem:[#allocation5 + $0x2900] ss:$12 sps:$4 sm:$0xff]  }
 0x5c8   :  { %13122 = vmatprep.subr.bf16.mxu0 %v20354_v51  ;;  %v20407_v51 = vld [vmem:[#allocation5 + $0x2cb8] ss:$12 sps:$4 sm:$0xff]  }
 0x5ca   :  { %17885 = vmatpush3.bf16.msra.mxu1 %v20356_v7  ;;  %v20415_v7 = vld [vmem:[#allocation5 + $0x29d8] ss:$12 sps:$4 sm:$0xff]  }
 0x5cb   :  { %13123 = vmatpush1.bf16.msra.mxu0 %v20352_v32  ;;  %17886 = vmatprep.subr.bf16.mxu1 %v20360_v34  ;;  %v20414_v32 = vld [vmem:[#allocation5 + $0x2cd4] ss:$12 sps:$4 sm:$0xff]  }
 0x5cc   :  { %13124 = vmatprep.subr.bf16.mxu0 %v20359_v2 }
 0x5ce   :  { %17887 = vmatpush3.bf16.msra.mxu1 %v20361_v50 }
 0x5cf   :  { %13125 = vmatpush1.bf16.msra.mxu0 %v20357_v45  ;;  %17888 = vmatprep.subr.bf16.mxu1 %v20365_v16  ;;  %v20416_v16 = vld [vmem:[#allocation5 + $0x2918] ss:$12 sps:$4 sm:$0xff]  }
 0x5d0   :  { %13126 = vmatprep.subr.bf16.mxu0 %v20364_v60  ;;  %v20412_v60 = vld [vmem:[#allocation5 + $0x2cd0] ss:$12 sps:$4 sm:$0xff]  }
 0x5d2   :  { %17889 = vmatpush3.bf16.msra.mxu1 %v20366_v53  ;;  %v20419_v53 = vld [vmem:[#allocation5 + $0x2cec] ss:$12 sps:$4 sm:$0xff]  }
 0x5d3   :  { %13127 = vmatpush1.bf16.msra.mxu0 %v20362_v43  ;;  %17890 = vmatprep.subr.bf16.mxu1 %v20370_v9 }
 0x5d4   :  { %13128 = vmatprep.subr.bf16.mxu0 %v20369_v49  ;;  %v17742_v22 = vpop.f32.mrb[80].mxu1  ;;  %v20420_v49 = vld [vmem:[#allocation5 + $0x29f0] ss:$12 sps:$4 sm:$0xff]  }
 0x5d5   :  { %v17743_v4 = vpop.f32.mrb[81].mxu1 }
 0x5d6   :  { %v17744_v18 = vadd.f32 %v17743_v4, %v17742_v22  ;;  %v17745_v8 = vpop.f32.mrb[82].mxu1  ;;  %17891 = vmatpush3.bf16.msra.mxu1 %v20371_v58  ;;  %v20417_v58 = vld [vmem:[#allocation5 + $0x2ce8] ss:$12 sps:$4 sm:$0xff]   ;;  %v248_v4 = vld [vmem:[#allocation2 + $0x410] sm:$0xf] }
 0x5d7   :  { %13129 = vmatpush1.bf16.msra.mxu0 %v20367_v12  ;;  %v17746_v48 = vpop.f32.mrb[83].mxu1  ;;  %17892 = vmatprep.subr.bf16.mxu1 %v20375_v3  ;;  %v20421_v3 = vld [vmem:[#allocation5 + $0x2930] ss:$12 sps:$4 sm:$0xff]  }
 0x5d8   :  { %13130 = vmatprep.subr.bf16.mxu0 %v20374_v56  ;;  %v21529_v28 = vadd.f32 %v17744_v18, %v21515_v31  ;;  %v17747_v55 = vadd.f32 %v17746_v48, %v17745_v8  ;;  %v20389_v31 = vld [vmem:[#allocation5 + $0x2c5c] ss:$12 sps:$4 sm:$0xff]   ;;  %v176_v22 = vld [vmem:[#allocation2 + $0x1d0] sm:$0xff] }
 0x5d9   :  { %v20424_v18 = vld [vmem:[#allocation5 + $0x2d04] ss:$12 sps:$4 sm:$0xff]   ;;  %v20425_v8 = vld [vmem:[#allocation5 + $0x2ac8] ss:$12 sps:$4 sm:$0xff]  }
 0x5da   :  { %v21532_v46 = vadd.f32 %v17747_v55, %v21518_v11  ;;  %17893 = vmatpush3.bf16.msra.mxu1 %v20376_v6  ;;  %v20387_v11 = vld [vmem:[#allocation5 + $0x2c58] ss:$12 sps:$4 sm:$0xff]   ;;  %v179_v6 = vld [vmem:[#allocation2 + $0x1e8] sm:$0xff] }
 0x5db   :  { %13131 = vmatpush1.bf16.msra.mxu0 %v20372_v40  ;;  %17894 = vmatprep.subr.bf16.mxu1 %v20380_v27  ;;  %v21542_v40 = vpack.c.bf16 %v248_v4, %v176_v22  ;;  %v251_v48 = vld [vmem:[#allocation2 + $0x428] sm:$0xf]  ;;  %v20430_v55 = vld [vmem:[#allocation5 + $0x2ae0] ss:$12 sps:$4 sm:$0xff]   ;;  %v20472_v22 = vld [vmem:[#allocation5 + $0x2df0] ss:$12 sps:$4 sm:$0xff]  }
 0x5dc   :  { %13132 = vmatprep.subr.bf16.mxu0 %v20379_v15  ;;  %v20422_v15 = vld [vmem:[#allocation5 + $0x2d00] ss:$12 sps:$4 sm:$0xff]   ;;  %v20426_v27 = vld [vmem:[#allocation5 + $0x2a08] ss:$12 sps:$4 sm:$0xff]   ;;  %v20476_v4 = vld [vmem:[#allocation5 + $0x2bb8] ss:$12 sps:$4 sm:$0xff]  }
 0x5de   :  { %17895 = vmatpush3.bf16.msra.mxu1 %v20381_v33  ;;  %v20431_v33 = vld [vmem:[#allocation5 + $0x2a20] ss:$12 sps:$4 sm:$0xff]  }
 0x5df   :  { %13133 = vmatpush1.bf16.msra.mxu0 %v20377_v41  ;;  %17902 = vmatprep.subr.bf16.mxu1 %v20385_v5  ;;  %v20427_v41 = vld [vmem:[#allocation5 + $0x2d18] ss:$12 sps:$4 sm:$0xff]  }
 0x5e0   :  { %13134 = vmatprep.subr.bf16.mxu0 %v20384_v26  ;;  %v20434_v26 = vld [vmem:[#allocation5 + $0x2d34] ss:$12 sps:$4 sm:$0xff]   ;;  %v20435_v5 = vld [vmem:[#allocation5 + $0x2af8] ss:$12 sps:$4 sm:$0xff]  }
 0x5e1   :  { %14518 = vmatmul.mubr.bf16.vlgmr.msra.gmra.mrb[108].mxu1 %v21476_v47  ;;  %v20397_v47 = vld [vmem:[#allocation5 + $0x2c88] ss:$12 sps:$4 sm:$0xff]  }
 0x5e2   :  { %17903 = vmatpush3.bf16.msra.mxu1 %v20386_v61  ;;  %14558 = vmatprep.mubr.bf16.mxu1 %v21478_v38  ;;  %v20406_v38 = vld [vmem:[#allocation5 + $0x28e8] ss:$12 sps:$4 sm:$0xff]   ;;  %v20436_v61 = vld [vmem:[#allocation5 + $0x2a38] ss:$12 sps:$4 sm:$0xff]  }
 0x5e3   :  { %13135 = vmatpush1.bf16.msra.mxu0 %v20382_v21  ;;  %17904 = vmatprep.subr.bf16.mxu1 %v20390_v37  ;;  %v20432_v21 = vld [vmem:[#allocation5 + $0x2d30] ss:$12 sps:$4 sm:$0xff]   ;;  %v20437_v37 = vld [vmem:[#allocation5 + $0x2d48] ss:$12 sps:$4 sm:$0xff]  }
 0x5e4   :  { %13136 = vmatprep.subr.bf16.mxu0 %v20389_v31  ;;  %v20440_v31 = vld [vmem:[#allocation5 + $0x2b10] ss:$12 sps:$4 sm:$0xff]  }
 0x5e6   :  { %17905 = vmatpush3.bf16.msra.mxu1 %v20391_v24  ;;  %v20444_v24 = vld [vmem:[#allocation5 + $0x2d64] ss:$12 sps:$4 sm:$0xff]  }
 0x5e7   :  { %13137 = vmatpush1.bf16.msra.mxu0 %v20387_v11  ;;  %17906 = vmatprep.subr.bf16.mxu1 %v20395_v36  ;;  %v20441_v11 = vld [vmem:[#allocation5 + $0x2a50] ss:$12 sps:$4 sm:$0xff]   ;;  %v20446_v36 = vld [vmem:[#allocation5 + $0x2a68] ss:$12 sps:$4 sm:$0xff]  }
 0x5e8   :  { %13138 = vmatprep.subr.bf16.mxu0 %v20394_v13  ;;  %v20445_v13 = vld [vmem:[#allocation5 + $0x2b28] ss:$12 sps:$4 sm:$0xff]  }
 0x5ea   :  { %17907 = vmatpush3.bf16.msra.mxu1 %v20396_v35  ;;  %v20450_v35 = vld [vmem:[#allocation5 + $0x2b40] ss:$12 sps:$4 sm:$0xff]  }
 0x5eb   :  { %13139 = vmatpush1.bf16.msra.mxu0 %v20392_v30  ;;  %17908 = vmatprep.subr.bf16.mxu1 %v20400_v52  ;;  %v20449_v30 = vld [vmem:[#allocation5 + $0x2d7c] ss:$12 sps:$4 sm:$0xff]   ;;  %v20451_v52 = vld [vmem:[#allocation5 + $0x2a80] ss:$12 sps:$4 sm:$0xff]  }
 0x5ec   :  { %13140 = vmatprep.subr.bf16.mxu0 %v20399_v63  ;;  %v20447_v63 = vld [vmem:[#allocation5 + $0x2d78] ss:$12 sps:$4 sm:$0xff]  }
 0x5ee   :  { %17909 = vmatpush3.bf16.msra.mxu1 %v20401_v59  ;;  %v20455_v59 = vld [vmem:[#allocation5 + $0x2b58] ss:$12 sps:$4 sm:$0xff]  }
 0x5ef   :  { %13141 = vmatpush1.bf16.msra.mxu0 %v20397_v47  ;;  %17910 = vmatprep.subr.bf16.mxu1 %v20405_v1  ;;  %v20454_v47 = vld [vmem:[#allocation5 + $0x2d94] ss:$12 sps:$4 sm:$0xff]  }
 0x5f0   :  { %13142 = vmatprep.subr.bf16.mxu0 %v20404_v10 }
 0x5f2   :  { %17911 = vmatpush3.bf16.msra.mxu1 %v20406_v38 }
 0x5f3   :  { %13143 = vmatpush1.bf16.msra.mxu0 %v20402_v62  ;;  %17912 = vmatprep.subr.bf16.mxu1 %v20410_v42  ;;  %v20456_v42 = vld [vmem:[#allocation5 + $0x2a98] ss:$12 sps:$4 sm:$0xff]  }
 0x5f4   :  { %13144 = vmatprep.subr.bf16.mxu0 %v20409_v25  ;;  %v17764_v2 = vpop.f32.mrb[84].mxu1  ;;  %v20452_v25 = vld [vmem:[#allocation5 + $0x2d90] ss:$12 sps:$4 sm:$0xff]  }
 0x5f5   :  { %v17765_v34 = vpop.f32.mrb[85].mxu1 }
 0x5f6   :  { %v17766_v45 = vadd.f32 %v17765_v34, %v17764_v2  ;;  %v17767_v50 = vpop.f32.mrb[86].mxu1  ;;  %17913 = vmatpush3.bf16.msra.mxu1 %v20411_v39  ;;  %v20459_v39 = vld [vmem:[#allocation5 + $0x2dac] ss:$12 sps:$4 sm:$0xff]  }
 0x5f7   :  { %13145 = vmatpush1.bf16.msra.mxu0 %v20407_v51  ;;  %v17768_v43 = vpop.f32.mrb[87].mxu1  ;;  %17914 = vmatprep.subr.bf16.mxu1 %v20415_v7 }
 0x5f8   :  { %13146 = vmatprep.subr.bf16.mxu0 %v20414_v32  ;;  %v21537_v9 = vadd.f32 %v17766_v45, %v21529_v28  ;;  %v17769_v12 = vadd.f32 %v17768_v43, %v17767_v50  ;;  %v20429_v28 = vld [vmem:[#allocation5 + $0x2d1c] ss:$12 sps:$4 sm:$0xff]   ;;  %v20462_v43 = vld [vmem:[#allocation5 + $0x2dc0] ss:$12 sps:$4 sm:$0xff]  }
 0x5f9   :  { %v20460_v32 = vld [vmem:[#allocation5 + $0x2b70] ss:$12 sps:$4 sm:$0xff]   ;;  %v20457_v45 = vld [vmem:[#allocation5 + $0x2da8] ss:$12 sps:$4 sm:$0xff]  }
 0x5fa   :  { %v21540_v56 = vadd.f32 %v17769_v12, %v21532_v46  ;;  %17915 = vmatpush3.bf16.msra.mxu1 %v20416_v16  ;;  %v21544_v46 = vpack.c.bf16 %v251_v48, %v179_v6  ;;  %v20461_v50 = vld [vmem:[#allocation5 + $0x2ab0] ss:$12 sps:$4 sm:$0xff]   ;;  %v20465_v16 = vld [vmem:[#allocation5 + $0x2c48] ss:$12 sps:$4 sm:$0xff]   ;;  %v20467_v12 = vld [vmem:[#allocation5 + $0x2dd8] ss:$12 sps:$4 sm:$0xff]  }
 0x5fb   :  { %13147 = vmatpush1.bf16.msra.mxu0 %v20412_v60  ;;  %17916 = vmatprep.subr.bf16.mxu1 %v20420_v49  ;;  %v20464_v60 = vld [vmem:[#allocation5 + $0x2dc4] ss:$12 sps:$4 sm:$0xff]   ;;  %v20469_v49 = vld [vmem:[#allocation5 + $0x2ddc] ss:$12 sps:$4 sm:$0xff]  }
 0x5fc   :  { %13148 = vmatprep.subr.bf16.mxu0 %v20419_v53  ;;  %v20466_v53 = vld [vmem:[#allocation5 + $0x2b88] ss:$12 sps:$4 sm:$0xff]   ;;  %v20481_v6 = vld [vmem:[#allocation5 + $0x2bd0] ss:$12 sps:$4 sm:$0xff]  }
 0x5fd   :  { %v20484_v48 = vld [vmem:[#allocation5 + $0x2e24] ss:$12 sps:$4 sm:$0xff]  }
 0x5fe   :  { %17917 = vmatpush3.bf16.msra.mxu1 %v20421_v3  ;;  %v20475_v3 = vld [vmem:[#allocation5 + $0x2c78] ss:$12 sps:$4 sm:$0xff]  }
 0x5ff   :  { %13149 = vmatpush1.bf16.msra.mxu0 %v20417_v58  ;;  %17924 = vmatprep.subr.bf16.mxu1 %v20425_v8  ;;  %v20471_v58 = vld [vmem:[#allocation5 + $0x2ba0] ss:$12 sps:$4 sm:$0xff]   ;;  %v20480_v8 = vld [vmem:[#allocation5 + $0x2c90] ss:$12 sps:$4 sm:$0xff]  }
 0x600   :  { %13161 = vmatprep.subr.bf16.mxu0 %v20424_v18  ;;  %v20479_v18 = vld [vmem:[#allocation5 + $0x2e0c] ss:$12 sps:$4 sm:$0xff]  }
 0x601   :  { %14559 = vmatmul.mubr.bf16.vlgmr.msra.gmra.mrb[112].mxu1 %v21498_v57  ;;  %v20439_v57 = vld [vmem:[#allocation5 + $0x2d4c] ss:$12 sps:$4 sm:$0xff]  }
 0x602   :  { %13151 = vmatmul.mubr.bf16.vlgmr.msra.gmra.mrb[0].mxu0 %v21542_v40  ;;  %17925 = vmatpush3.bf16.msra.mxu1 %v20426_v27  ;;  %v20482_v27 = vld [vmem:[#allocation5 + $0x2e20] ss:$12 sps:$4 sm:$0xff]  }
 0x603   :  { %13162 = vmatpush1.bf16.msra.mxu0 %v20422_v15  ;;  %17926 = vmatprep.subr.bf16.mxu1 %v20430_v55  ;;  %v20485_v15 = vld [vmem:[#allocation5 + $0x2ca8] ss:$12 sps:$4 sm:$0xff]   ;;  %v20490_v55 = vld [vmem:[#allocation5 + $0x2cc0] ss:$12 sps:$4 sm:$0xff]  }
 0x604   :  { %13163 = vmatprep.subr.bf16.mxu0 %v20429_v28  ;;  %14599 = vmatprep.mubr.bf16.mxu1 %v21500_v54  ;;  %v20442_v54 = vld [vmem:[#allocation5 + $0x2d60] ss:$12 sps:$4 sm:$0xff]   ;;  %v20489_v28 = vld [vmem:[#allocation5 + $0x2e3c] ss:$12 sps:$4 sm:$0xff]  }
 0x605   :  { %13193 = vmatprep.mubr.bf16.mxu0 %v21544_v46 }
 0x606   :  { %17927 = vmatpush3.bf16.msra.mxu1 %v20431_v33  ;;  %v20491_v33 = vld [vmem:[#allocation5 + $0x2c00] ss:$12 sps:$4 sm:$0xff]  }
 0x607   :  { %13164 = vmatpush1.bf16.msra.mxu0 %v20427_v41  ;;  %17928 = vmatprep.subr.bf16.mxu1 %v20435_v5  ;;  %v20487_v41 = vld [vmem:[#allocation5 + $0x2e38] ss:$12 sps:$4 sm:$0xff]  }
 0x608   :  { %13165 = vmatprep.subr.bf16.mxu0 %v20434_v26  ;;  %v20494_v26 = vld [vmem:[#allocation5 + $0x2e54] ss:$12 sps:$4 sm:$0xff]   ;;  %v20495_v5 = vld [vmem:[#allocation5 + $0x2cd8] ss:$12 sps:$4 sm:$0xff]  }
 0x60a   :  { %17929 = vmatpush3.bf16.msra.mxu1 %v20436_v61 }
 0x60b   :  { %13166 = vmatpush1.bf16.msra.mxu0 %v20432_v21  ;;  %17930 = vmatprep.subr.bf16.mxu1 %v20440_v31 }
 0x60c   :  { %13167 = vmatprep.subr.bf16.mxu0 %v20439_v57 }
 0x60e   :  { %17931 = vmatpush3.bf16.msra.mxu1 %v20441_v11  ;;  %v20496_v11 = vld [vmem:[#allocation5 + $0x2c18] ss:$12 sps:$4 sm:$0xff]  }
 0x60f   :  { %13168 = vmatpush1.bf16.msra.mxu0 %v20437_v37  ;;  %17932 = vmatprep.subr.bf16.mxu1 %v20445_v13  ;;  %v20492_v37 = vld [vmem:[#allocation5 + $0x2e50] ss:$12 sps:$4 sm:$0xff]   ;;  %v20499_v13 = vld [vmem:[#allocation5 + $0x2e6c] ss:$12 sps:$4 sm:$0xff]  }
 0x610   :  { %13169 = vmatprep.subr.bf16.mxu0 %v20444_v24 }
 0x612   :  { %17933 = vmatpush3.bf16.msra.mxu1 %v20446_v36 }
 0x613   :  { %13170 = vmatpush1.bf16.msra.mxu0 %v20442_v54  ;;  %17934 = vmatprep.subr.bf16.mxu1 %v20450_v35  ;;  %v20500_v54 = vld [vmem:[#allocation5 + $0x2cf0] ss:$12 sps:$4 sm:$0xff]   ;;  %v20497_v35 = vld [vmem:[#allocation5 + $0x2e68] ss:$12 sps:$4 sm:$0xff]  }
 0x614   :  { %13171 = vmatprep.subr.bf16.mxu0 %v20449_v30  ;;  %v17786_v10 = vpop.f32.mrb[88].mxu1 }
 0x615   :  { %v17787_v1 = vpop.f32.mrb[89].mxu1 }
 0x616   :  { %v17788_v62 = vadd.f32 %v17787_v1, %v17786_v10  ;;  %v17789_v38 = vpop.f32.mrb[90].mxu1  ;;  %17935 = vmatpush3.bf16.msra.mxu1 %v20451_v52  ;;  %v20501_v52 = vld [vmem:[#allocation5 + $0x2c30] ss:$12 sps:$4 sm:$0xff]   ;;  %v20505_v1 = vld [vmem:[#allocation5 + $0x2dc8] ss:$12 sps:$4 sm:$0xff]  }
 0x617   :  { %13172 = vmatpush1.bf16.msra.mxu0 %v20447_v63  ;;  %v17790_v51 = vpop.f32.mrb[91].mxu1  ;;  %17936 = vmatprep.subr.bf16.mxu1 %v20455_v59  ;;  %v250_v59 = vld [vmem:[#allocation2 + $0x420] sm:$0xf]  ;;  %v20504_v10 = vld [vmem:[#allocation5 + $0x2e84] ss:$12 sps:$4 sm:$0xff]  }
 0x618   :  { %13173 = vmatprep.subr.bf16.mxu0 %v20454_v47  ;;  %v21551_v7 = vadd.f32 %v17788_v62, %v21537_v9  ;;  %v17791_v2 = vadd.f32 %v17790_v51, %v17789_v38  ;;  %v20470_v9 = vld [vmem:[#allocation5 + $0x2c60] ss:$12 sps:$4 sm:$0xff]   ;;  %v181_v38 = vld [vmem:[#allocation2 + $0x1f8] sm:$0xff]  ;;  %v20506_v51 = vld [vmem:[#allocation5 + $0x2d08] ss:$12 sps:$4 sm:$0xff]  }
 0x619   :  { %v178_v47 = vld [vmem:[#allocation2 + $0x1e0] sm:$0xff] }
 0x61a   :  { %v21554_v34 = vadd.f32 %v17791_v2, %v21540_v56  ;;  %17937 = vmatpush3.bf16.msra.mxu1 %v20456_v42  ;;  %v20474_v56 = vld [vmem:[#allocation5 + $0x2df4] ss:$12 sps:$4 sm:$0xff]   ;;  %v21564_v62 = vpack.c.bf16 %v250_v59, %v178_v47  ;;  %v20507_v2 = vld [vmem:[#allocation5 + $0x2e98] ss:$12 sps:$4 sm:$0xff]   ;;  %v20560_v59 = vld [vmem:[#allocation5 + $0x2f90] ss:$12 sps:$4 sm:$0xff]  }
 0x61b   :  { %13174 = vmatpush1.bf16.msra.mxu0 %v20452_v25  ;;  %17938 = vmatprep.subr.bf16.mxu1 %v20460_v32  ;;  %v253_v25 = vld [vmem:[#allocation2 + $0x438] sm:$0xf]  ;;  %v20502_v42 = vld [vmem:[#allocation5 + $0x2e80] ss:$12 sps:$4 sm:$0xff]  }
 0x61c   :  { %13175 = vmatprep.subr.bf16.mxu0 %v20459_v39  ;;  %v20509_v39 = vld [vmem:[#allocation5 + $0x2e9c] ss:$12 sps:$4 sm:$0xff]   ;;  %v20510_v32 = vld [vmem:[#allocation5 + $0x2de0] ss:$12 sps:$4 sm:$0xff]  }
 0x61d   :  { %v20559_v47 = vld [vmem:[#allocation5 + $0x2f8c] ss:$12 sps:$4 sm:$0xff]  }
 0x61e   :  { %17939 = vmatpush3.bf16.msra.mxu1 %v20461_v50  ;;  %v20515_v50 = vld [vmem:[#allocation5 + $0x2df8] ss:$12 sps:$4 sm:$0xff]  }
 0x61f   :  { %13176 = vmatpush1.bf16.msra.mxu0 %v20457_v45  ;;  %17946 = vmatprep.subr.bf16.mxu1 %v20465_v16  ;;  %v20514_v45 = vld [vmem:[#allocation5 + $0x2eb4] ss:$12 sps:$4 sm:$0xff]   ;;  %v20516_v16 = vld [vmem:[#allocation5 + $0x2d38] ss:$12 sps:$4 sm:$0xff]  }
 0x620   :  { %13177 = vmatprep.subr.bf16.mxu0 %v20464_v60  ;;  %v20512_v60 = vld [vmem:[#allocation5 + $0x2eb0] ss:$12 sps:$4 sm:$0xff]  }
 0x621   :  { %14600 = vmatmul.mubr.bf16.vlgmr.msra.gmra.mrb[116].mxu1 %v21520_v23  ;;  %v20477_v23 = vld [vmem:[#allocation5 + $0x2e08] ss:$12 sps:$4 sm:$0xff]  }
 0x622   :  { %17947 = vmatpush3.bf16.msra.mxu1 %v20466_v53  ;;  %14640 = vmatprep.mubr.bf16.mxu1 %v21522_v29  ;;  %v20486_v29 = vld [vmem:[#allocation5 + $0x2be8] ss:$12 sps:$4 sm:$0xff]  }
 0x623   :  { %13178 = vmatpush1.bf16.msra.mxu0 %v20462_v43  ;;  %17948 = vmatprep.subr.bf16.mxu1 %v20470_v9  ;;  %v20520_v43 = vld [vmem:[#allocation5 + $0x2e10] ss:$12 sps:$4 sm:$0xff]   ;;  %v20517_v53 = vld [vmem:[#allocation5 + $0x2ec8] ss:$12 sps:$4 sm:$0xff]  }
 0x624   :  { %13179 = vmatprep.subr.bf16.mxu0 %v20469_v49  ;;  %v20521_v49 = vld [vmem:[#allocation5 + $0x2d50] ss:$12 sps:$4 sm:$0xff]  }
 0x625   :  { %v20524_v9 = vld [vmem:[#allocation5 + $0x2ee4] ss:$12 sps:$4 sm:$0xff]  }
 0x626   :  { %17949 = vmatpush3.bf16.msra.mxu1 %v20471_v58  ;;  %v20526_v58 = vld [vmem:[#allocation5 + $0x2d68] ss:$12 sps:$4 sm:$0xff]  }
 0x627   :  { %13180 = vmatpush1.bf16.msra.mxu0 %v20467_v12  ;;  %17950 = vmatprep.subr.bf16.mxu1 %v20475_v3  ;;  %v20525_v12 = vld [vmem:[#allocation5 + $0x2e28] ss:$12 sps:$4 sm:$0xff]   ;;  %v20530_v3 = vld [vmem:[#allocation5 + $0x2e40] ss:$12 sps:$4 sm:$0xff]  }
 0x628   :  { %13181 = vmatprep.subr.bf16.mxu0 %v20474_v56  ;;  %v20529_v56 = vld [vmem:[#allocation5 + $0x2efc] ss:$12 sps:$4 sm:$0xff]  }
 0x62a   :  { %17951 = vmatpush3.bf16.msra.mxu1 %v20476_v4  ;;  %v20531_v4 = vld [vmem:[#allocation5 + $0x2d80] ss:$12 sps:$4 sm:$0xff]  }
 0x62b   :  { %13182 = vmatpush1.bf16.msra.mxu0 %v20472_v22  ;;  %17952 = vmatprep.subr.bf16.mxu1 %v20480_v8  ;;  %v20527_v22 = vld [vmem:[#allocation5 + $0x2ef8] ss:$12 sps:$4 sm:$0xff]  }
 0x62c   :  { %13183 = vmatprep.subr.bf16.mxu0 %v20479_v18  ;;  %v20534_v18 = vld [vmem:[#allocation5 + $0x2f14] ss:$12 sps:$4 sm:$0xff]   ;;  %v20535_v8 = vld [vmem:[#allocation5 + $0x2e58] ss:$12 sps:$4 sm:$0xff]  }
 0x62e   :  { %17953 = vmatpush3.bf16.msra.mxu1 %v20481_v6 }
 0x62f   :  { %13184 = vmatpush1.bf16.msra.mxu0 %v20477_v23  ;;  %17954 = vmatprep.subr.bf16.mxu1 %v20485_v15 }
 0x630   :  { %13185 = vmatprep.subr.bf16.mxu0 %v20484_v48 }
 0x632   :  { %17955 = vmatpush3.bf16.msra.mxu1 %v20486_v29  ;;  %v20536_v29 = vld [vmem:[#allocation5 + $0x2d98] ss:$12 sps:$4 sm:$0xff]  }
 0x633   :  { %13186 = vmatpush1.bf16.msra.mxu0 %v20482_v27  ;;  %17956 = vmatprep.subr.bf16.mxu1 %v20490_v55  ;;  %v20532_v27 = vld [vmem:[#allocation5 + $0x2f10] ss:$12 sps:$4 sm:$0xff]   ;;  %v20539_v55 = vld [vmem:[#allocation5 + $0x2f2c] ss:$12 sps:$4 sm:$0xff]  }
 0x634   :  { %13187 = vmatprep.subr.bf16.mxu0 %v20489_v28  ;;  %v17808_v21 = vpop.f32.mrb[92].mxu1 }
 0x635   :  { %v17809_v61 = vpop.f32.mrb[93].mxu1 }
 0x636   :  { %v17810_v57 = vadd.f32 %v17809_v61, %v17808_v21  ;;  %v17811_v31 = vpop.f32.mrb[94].mxu1  ;;  %17957 = vmatpush3.bf16.msra.mxu1 %v20491_v33  ;;  %v20537_v21 = vld [vmem:[#allocation5 + $0x2f28] ss:$12 sps:$4 sm:$0xff]   ;;  %v20541_v61 = vld [vmem:[#allocation5 + $0x2db0] ss:$12 sps:$4 sm:$0xff]  }
 0x637   :  { %13188 = vmatpush1.bf16.msra.mxu0 %v20487_v41  ;;  %v17812_v24 = vpop.f32.mrb[95].mxu1  ;;  %17958 = vmatprep.subr.bf16.mxu1 %v20495_v5  ;;  %v20540_v41 = vld [vmem:[#allocation5 + $0x2e70] ss:$12 sps:$4 sm:$0xff]  }
 0x638   :  { %13189 = vmatprep.subr.bf16.mxu0 %v20494_v26  ;;  %v21559_v36 = vadd.f32 %v17810_v57, %v21551_v7  ;;  %v17813_v30 = vadd.f32 %v17812_v24, %v17811_v31  ;;  %v21566_v7 = vpack.c.bf16 %v253_v25, %v181_v38  ;;  %v20544_v57 = vld [vmem:[#allocation5 + $0x2f44] ss:$12 sps:$4 sm:$0xff]   ;;  %v20545_v31 = vld [vmem:[#allocation5 + $0x2f48] ss:$12 sps:$4 sm:$0xff]   ;;  %v20562_v25 = vld [vmem:[#allocation5 + $0x2fa0] ss:$12 sps:$4 sm:$0xff]  }
 0x639   :  { %v20549_v24 = vld [vmem:[#allocation5 + $0x2f5c] ss:$12 sps:$4 sm:$0xff]  }
 0x63a   :  { %v21562_v63 = vadd.f32 %v17813_v30, %v21554_v34  ;;  %17959 = vmatpush3.bf16.msra.mxu1 %v20496_v11  ;;  %v20511_v34 = vld [vmem:[#allocation5 + $0x2d20] ss:$12 sps:$4 sm:$0xff]   ;;  %v20546_v11 = vld [vmem:[#allocation5 + $0x2e88] ss:$12 sps:$4 sm:$0xff]  }
 0x63b   :  { %13190 = vmatpush1.bf16.msra.mxu0 %v20492_v37  ;;  %17960 = vmatprep.subr.bf16.mxu1 %v20500_v54  ;;  %v20542_v37 = vld [vmem:[#allocation5 + $0x2f40] ss:$12 sps:$4 sm:$0xff]   ;;  %v20547_v54 = vld [vmem:[#allocation5 + $0x2f58] ss:$12 sps:$4 sm:$0xff]   ;;  %v20565_v38 = vld [vmem:[#allocation5 + $0x2fa8] ss:$12 sps:$4 sm:$0xff]  }
 0x63c   :  { %13191 = vmatprep.subr.bf16.mxu0 %v20499_v13  ;;  %v20550_v13 = vld [vmem:[#allocation5 + $0x2f60] ss:$12 sps:$4 sm:$0xff]  }
 0x63d   :  { %v20554_v30 = vld [vmem:[#allocation5 + $0x2f74] ss:$12 sps:$4 sm:$0xff]  }
 0x63e   :  { %17961 = vmatpush3.bf16.msra.mxu1 %v20501_v52  ;;  %v20556_v52 = vld [vmem:[#allocation5 + $0x2eb8] ss:$12 sps:$4 sm:$0xff]  }
 0x63f   :  { %13192 = vmatpush1.bf16.msra.mxu0 %v20497_v35  ;;  %17968 = vmatprep.subr.bf16.mxu1 %v20505_v1  ;;  %v20555_v35 = vld [vmem:[#allocation5 + $0x2f78] ss:$12 sps:$4 sm:$0xff]   ;;  %v20561_v1 = vld [vmem:[#allocation5 + $0x2ed0] ss:$12 sps:$4 sm:$0xff]  }
 0x640   :  { %13204 = vmatprep.subr.bf16.mxu0 %v20504_v10  ;;  %v20557_v10 = vld [vmem:[#allocation5 + $0x2f88] ss:$12 sps:$4 sm:$0xff]  }
 0x641   :  { %14641 = vmatmul.mubr.bf16.vlgmr.msra.gmra.mrb[120].mxu1 %v21542_v40  ;;  %v20519_v40 = vld [vmem:[#allocation5 + $0x2ecc] ss:$12 sps:$4 sm:$0xff]  }
 0x642   :  { %13194 = vmatmul.mubr.bf16.vlgmr.msra.gmra.mrb[0].mxu0 %v21564_v62  ;;  %17969 = vmatpush3.bf16.msra.mxu1 %v20506_v51  ;;  %v20569_v51 = vld [vmem:[#allocation5 + $0x2fbc] ss:$12 sps:$4 sm:$0xff]  }
 0x643   :  { %13205 = vmatpush1.bf16.msra.mxu0 %v20502_v42  ;;  %17970 = vmatprep.subr.bf16.mxu1 %v20510_v32  ;;  %v20566_v42 = vld [vmem:[#allocation5 + $0x2ee8] ss:$12 sps:$4 sm:$0xff]   ;;  %v20567_v32 = vld [vmem:[#allocation5 + $0x2fb8] ss:$12 sps:$4 sm:$0xff]  }
 0x644   :  { %13206 = vmatprep.subr.bf16.mxu0 %v20509_v39  ;;  %14681 = vmatprep.mubr.bf16.mxu1 %v21544_v46  ;;  %v20522_v46 = vld [vmem:[#allocation5 + $0x2ee0] ss:$12 sps:$4 sm:$0xff]  }
 0x645   :  { %13236 = vmatprep.mubr.bf16.mxu0 %v21566_v7  ;;  %v20570_v39 = vld [vmem:[#allocation5 + $0x2fc0] ss:$12 sps:$4 sm:$0xff]  }
 0x646   :  { %17971 = vmatpush3.bf16.msra.mxu1 %v20511_v34  ;;  %v20575_v34 = vld [vmem:[#allocation5 + $0x2fd8] ss:$12 sps:$4 sm:$0xff]  }
 0x647   :  { %13207 = vmatpush1.bf16.msra.mxu0 %v20507_v2  ;;  %17972 = vmatprep.subr.bf16.mxu1 %v20515_v50  ;;  %v20574_v2 = vld [vmem:[#allocation5 + $0x2fd4] ss:$12 sps:$4 sm:$0xff]  }
 0x648   :  { %13208 = vmatprep.subr.bf16.mxu0 %v20514_v45 }
 0x64a   :  { %17973 = vmatpush3.bf16.msra.mxu1 %v20516_v16 }
 0x64b   :  { %13209 = vmatpush1.bf16.msra.mxu0 %v20512_v60  ;;  %17974 = vmatprep.subr.bf16.mxu1 %v20520_v43  ;;  %v20576_v43 = vld [vmem:[#allocation5 + $0x2f18] ss:$12 sps:$4 sm:$0xff]  }
 0x64c   :  { %13210 = vmatprep.subr.bf16.mxu0 %v20519_v40  ;;  %v20572_v40 = vld [vmem:[#allocation5 + $0x2fd0] ss:$12 sps:$4 sm:$0xff]  }
 0x64e   :  { %17975 = vmatpush3.bf16.msra.mxu1 %v20521_v49  ;;  %v20579_v49 = vld [vmem:[#allocation5 + $0x2fec] ss:$12 sps:$4 sm:$0xff]  }
 0x64f   :  { %13211 = vmatpush1.bf16.msra.mxu0 %v20517_v53  ;;  %17976 = vmatprep.subr.bf16.mxu1 %v20525_v12 }
 0x650   :  { %13212 = vmatprep.subr.bf16.mxu0 %v20524_v9  ;;  %v20580_v9 = vld [vmem:[#allocation5 + $0x2ff0] ss:$12 sps:$4 sm:$0xff]  }
 0x652   :  { %17977 = vmatpush3.bf16.msra.mxu1 %v20526_v58  ;;  %v20577_v58 = vld [vmem:[#allocation5 + $0x2fe8] ss:$12 sps:$4 sm:$0xff]  }
 0x653   :  { %13213 = vmatpush1.bf16.msra.mxu0 %v20522_v46  ;;  %17978 = vmatprep.subr.bf16.mxu1 %v20530_v3  ;;  %v20581_v3 = vld [vmem:[#allocation5 + $0x2f30] ss:$12 sps:$4 sm:$0xff]  }
 0x654   :  { %13214 = vmatprep.subr.bf16.mxu0 %v20529_v56  ;;  %v17830_v23 = vpop.f32.mrb[96].mxu1 }
 0x655   :  { %v17831_v6 = vpop.f32.mrb[97].mxu1 }
 0x656   :  { %v17832_v48 = vadd.f32 %v17831_v6, %v17830_v23  ;;  %v17833_v15 = vpop.f32.mrb[98].mxu1  ;;  %17979 = vmatpush3.bf16.msra.mxu1 %v20531_v4  ;;  %v252_v4 = vld [vmem:[#allocation2 + $0x430] sm:$0xf]  ;;  %v183_v6 = vld [vmem:[#allocation2 + $0x208] sm:$0xff] }
 0x657   :  { %13215 = vmatpush1.bf16.msra.mxu0 %v20527_v22  ;;  %v17834_v28 = vpop.f32.mrb[99].mxu1  ;;  %17980 = vmatprep.subr.bf16.mxu1 %v20535_v8  ;;  %v180_v22 = vld [vmem:[#allocation2 + $0x1f0] sm:$0xff] }
 0x658   :  { %13216 = vmatprep.subr.bf16.mxu0 %v20534_v18  ;;  %v21573_v33 = vadd.f32 %v17832_v48, %v21559_v36  ;;  %v17835_v26 = vadd.f32 %v17834_v28, %v17833_v15  ;;  %v20551_v36 = vld [vmem:[#allocation5 + $0x2ea0] ss:$12 sps:$4 sm:$0xff]   ;;  %v20584_v18 = vld [vmem:[#allocation5 + $0x3004] ss:$12 sps:$4 sm:$0xff]   ;;  %v20585_v8 = vld [vmem:[#allocation5 + $0x30c8] ss:$12 sps:$4 sm:$0xff]   ;;  %v324_v23 = vpack.c.bf16 %v252_v4, %v180_v22 }
 0x659   :  { %v255_v48 = vld [vmem:[#allocation2 + $0x448] sm:$0xf]  ;;  %v20582_v15 = vld [vmem:[#allocation5 + $0x3000] ss:$12 sps:$4 sm:$0xff]   ;;  %v20627_v22 = vld [vmem:[#allocation5 + $0x30d8] ss:$12 sps:$4 sm:$0xff]  }
 0x65a   :  { %v21576_v5 = vadd.f32 %v17835_v26, %v21562_v63  ;;  %17981 = vmatpush3.bf16.msra.mxu1 %v20536_v29  ;;  %v20552_v63 = vld [vmem:[#allocation5 + $0x2f70] ss:$12 sps:$4 sm:$0xff]   ;;  %v20590_v28 = vld [vmem:[#allocation5 + $0x30e0] ss:$12 sps:$4 sm:$0xff]  }
 0x65b   :  { %13217 = vmatpush1.bf16.msra.mxu0 %v20532_v27  ;;  %17982 = vmatprep.subr.bf16.mxu1 %v20540_v41  ;;  %v20586_v27 = vld [vmem:[#allocation5 + $0x3008] ss:$12 sps:$4 sm:$0xff]   ;;  %v20587_v41 = vld [vmem:[#allocation5 + $0x3018] ss:$12 sps:$4 sm:$0xff]   ;;  %v20631_v4 = vld [vmem:[#allocation5 + $0x31a0] ss:$12 sps:$4 sm:$0xff]  }
 0x65c   :  { %13218 = vmatprep.subr.bf16.mxu0 %v20539_v55  ;;  %v20589_v29 = vld [vmem:[#allocation5 + $0x301c] ss:$12 sps:$4 sm:$0xff]   ;;  %v327_v55 = vpack.c.bf16 %v255_v48, %v183_v6  ;;  %v20594_v26 = vld [vmem:[#allocation5 + $0x3034] ss:$12 sps:$4 sm:$0xff]   ;;  %v20636_v6 = vld [vmem:[#allocation5 + $0x31b8] ss:$12 sps:$4 sm:$0xff]  }
 0x65d   :  { %v20639_v48 = vld [vmem:[#allocation5 + $0x310c] ss:$12 sps:$4 sm:$0xff]  }
 0x65e   :  { %17983 = vmatpush3.bf16.msra.mxu1 %v20541_v61  ;;  %v20596_v61 = vld [vmem:[#allocation5 + $0x3038] ss:$12 sps:$4 sm:$0xff]  }
 0x65f   :  { %13219 = vmatpush1.bf16.msra.mxu0 %v20537_v21  ;;  %17990 = vmatprep.subr.bf16.mxu1 %v20545_v31  ;;  %v20592_v21 = vld [vmem:[#allocation5 + $0x3030] ss:$12 sps:$4 sm:$0xff]  }
 0x660   :  { %13220 = vmatprep.subr.bf16.mxu0 %v20544_v57  ;;  %v20599_v57 = vld [vmem:[#allocation5 + $0x304c] ss:$12 sps:$4 sm:$0xff]   ;;  %v20600_v31 = vld [vmem:[#allocation5 + $0x3110] ss:$12 sps:$4 sm:$0xff]  }
 0x661   :  { %14682 = vmatmul.mubr.bf16.vlgmr.msra.gmra.mrb[124].mxu1 %v21564_v62  ;;  %v20564_v62 = vld [vmem:[#allocation5 + $0x2fa4] ss:$12 sps:$4 sm:$0xff]  }
 0x662   :  { %17991 = vmatpush3.bf16.msra.mxu1 %v20546_v11  ;;  %14722 = vmatprep.mubr.bf16.mxu1 %v21566_v7  ;;  %v20571_v7 = vld [vmem:[#allocation5 + $0x2f00] ss:$12 sps:$4 sm:$0xff]   ;;  %v20601_v11 = vld [vmem:[#allocation5 + $0x3050] ss:$12 sps:$4 sm:$0xff]  }
 0x663   :  { %13221 = vmatpush1.bf16.msra.mxu0 %v20542_v37  ;;  %17992 = vmatprep.subr.bf16.mxu1 %v20550_v13  ;;  %v20597_v37 = vld [vmem:[#allocation5 + $0x3048] ss:$12 sps:$4 sm:$0xff]  }
 0x664   :  { %13222 = vmatprep.subr.bf16.mxu0 %v20549_v24  ;;  %v20604_v24 = vld [vmem:[#allocation5 + $0x3064] ss:$12 sps:$4 sm:$0xff]   ;;  %v20605_v13 = vld [vmem:[#allocation5 + $0x3128] ss:$12 sps:$4 sm:$0xff]  }
 0x666   :  { %17993 = vmatpush3.bf16.msra.mxu1 %v20551_v36  ;;  %v20606_v36 = vld [vmem:[#allocation5 + $0x3068] ss:$12 sps:$4 sm:$0xff]  }
 0x667   :  { %13223 = vmatpush1.bf16.msra.mxu0 %v20547_v54  ;;  %17994 = vmatprep.subr.bf16.mxu1 %v20555_v35  ;;  %v20602_v54 = vld [vmem:[#allocation5 + $0x3060] ss:$12 sps:$4 sm:$0xff]  }
 0x668   :  { %13224 = vmatprep.subr.bf16.mxu0 %v20554_v30  ;;  %v20609_v30 = vld [vmem:[#allocation5 + $0x307c] ss:$12 sps:$4 sm:$0xff]   ;;  %v20610_v35 = vld [vmem:[#allocation5 + $0x3140] ss:$12 sps:$4 sm:$0xff]  }
 0x66a   :  { %17995 = vmatpush3.bf16.msra.mxu1 %v20556_v52  ;;  %v20611_v52 = vld [vmem:[#allocation5 + $0x3080] ss:$12 sps:$4 sm:$0xff]  }
 0x66b   :  { %13225 = vmatpush1.bf16.msra.mxu0 %v20552_v63  ;;  %17996 = vmatprep.subr.bf16.mxu1 %v20560_v59  ;;  %v20607_v63 = vld [vmem:[#allocation5 + $0x3078] ss:$12 sps:$4 sm:$0xff]  }
 0x66c   :  { %13226 = vmatprep.subr.bf16.mxu0 %v20559_v47  ;;  %v20614_v47 = vld [vmem:[#allocation5 + $0x3094] ss:$12 sps:$4 sm:$0xff]   ;;  %v20615_v59 = vld [vmem:[#allocation5 + $0x3158] ss:$12 sps:$4 sm:$0xff]  }
 0x66e   :  { %17997 = vmatpush3.bf16.msra.mxu1 %v20561_v1 }
 0x66f   :  { %13227 = vmatpush1.bf16.msra.mxu0 %v20557_v10  ;;  %17998 = vmatprep.subr.bf16.mxu1 %v20565_v38 }
 0x670   :  { %13228 = vmatprep.subr.bf16.mxu0 %v20564_v62 }
 0x672   :  { %17999 = vmatpush3.bf16.msra.mxu1 %v20566_v42  ;;  %v20616_v42 = vld [vmem:[#allocation5 + $0x3098] ss:$12 sps:$4 sm:$0xff]  }
 0x673   :  { %13229 = vmatpush1.bf16.msra.mxu0 %v20562_v25  ;;  %18000 = vmatprep.subr.bf16.mxu1 %v20570_v39  ;;  %v20612_v25 = vld [vmem:[#allocation5 + $0x3090] ss:$12 sps:$4 sm:$0xff]   ;;  %v20619_v39 = vld [vmem:[#allocation5 + $0x30ac] ss:$12 sps:$4 sm:$0xff]  }
 0x674   :  { %13230 = vmatprep.subr.bf16.mxu0 %v20569_v51  ;;  %v17852_v45 = vpop.f32.mrb[100].mxu1 }
 0x675   :  { %v17853_v50 = vpop.f32.mrb[101].mxu1 }
 0x676   :  { %v17854_v60 = vadd.f32 %v17853_v50, %v17852_v45  ;;  %v17855_v16 = vpop.f32.mrb[102].mxu1  ;;  %18001 = vmatpush3.bf16.msra.mxu1 %v20571_v7  ;;  %v20621_v50 = vld [vmem:[#allocation5 + $0x30b0] ss:$12 sps:$4 sm:$0xff]  }
 0x677   :  { %13231 = vmatpush1.bf16.msra.mxu0 %v20567_v32  ;;  %v17856_v53 = vpop.f32.mrb[103].mxu1  ;;  %18002 = vmatprep.subr.bf16.mxu1 %v20575_v34  ;;  %v20620_v32 = vld [vmem:[#allocation5 + $0x3170] ss:$12 sps:$4 sm:$0xff]   ;;  %v20617_v34 = vld [vmem:[#allocation5 + $0x30a8] ss:$12 sps:$4 sm:$0xff]  }
 0x678   :  { %13232 = vmatprep.subr.bf16.mxu0 %v20574_v2  ;;  %v21581_v12 = vadd.f32 %v17854_v60, %v21573_v33  ;;  %v17857_v46 = vadd.f32 %v17856_v53, %v17855_v16  ;;  %v20591_v33 = vld [vmem:[#allocation5 + $0x3020] ss:$12 sps:$4 sm:$0xff]  }
 0x679   :  { %v182_v60 = vld [vmem:[#allocation2 + $0x200] sm:$0xff] }
 0x67a   :  { %v21584_v56 = vadd.f32 %v17857_v46, %v21576_v5  ;;  %18003 = vmatpush3.bf16.msra.mxu1 %v20576_v43  ;;  %v20595_v5 = vld [vmem:[#allocation5 + $0x30f8] ss:$12 sps:$4 sm:$0xff]   ;;  %v254_v16 = vld [vmem:[#allocation2 + $0x440] sm:$0xf]  ;;  %v20625_v43 = vld [vmem:[#allocation5 + $0x3248] ss:$12 sps:$4 sm:$0xff]  }
 0x67b   :  { %13233 = vmatpush1.bf16.msra.mxu0 %v20572_v40  ;;  %18004 = vmatprep.subr.bf16.mxu1 %v20580_v9  ;;  %v20624_v40 = vld [vmem:[#allocation5 + $0x30c4] ss:$12 sps:$4 sm:$0xff]   ;;  %v21592_v53 = vpack.c.bf16 %v254_v16, %v182_v60  ;;  %v257_v9 = vld [vmem:[#allocation2 + $0x458] sm:$0xf]  ;;  %v20626_v46 = vld [vmem:[#allocation5 + $0x3188] ss:$12 sps:$4 sm:$0xff]  }
 0x67c   :  { %13234 = vmatprep.subr.bf16.mxu0 %v20579_v49  ;;  %v185_v49 = vld [vmem:[#allocation2 + $0x218] sm:$0xff]  ;;  %v20671_v16 = vld [vmem:[#allocation5 + $0x3320] ss:$12 sps:$4 sm:$0xff]  }
 0x67d   :  { %v20667_v60 = vld [vmem:[#allocation5 + $0x3198] ss:$12 sps:$4 sm:$0xff]  }
 0x67e   :  { %18005 = vmatpush3.bf16.msra.mxu1 %v20581_v3  ;;  %v21594_v3 = vpack.c.bf16 %v257_v9, %v185_v49  ;;  %v20672_v49 = vld [vmem:[#allocation5 + $0x31b0] ss:$12 sps:$4 sm:$0xff]   ;;  %v20676_v9 = vld [vmem:[#allocation5 + $0x3338] ss:$12 sps:$4 sm:$0xff]  }
 0x67f   :  { %13235 = vmatpush1.bf16.msra.mxu0 %v20577_v58  ;;  %18012 = vmatprep.subr.bf16.mxu1 %v20585_v8  ;;  %v20629_v58 = vld [vmem:[#allocation5 + $0x30dc] ss:$12 sps:$4 sm:$0xff]   ;;  %v20635_v8 = vld [vmem:[#allocation5 + $0x3278] ss:$12 sps:$4 sm:$0xff]  }
 0x680   :  { %13247 = vmatprep.subr.bf16.mxu0 %v20584_v18  ;;  %v20634_v18 = vld [vmem:[#allocation5 + $0x30f4] ss:$12 sps:$4 sm:$0xff]  }
 0x681   :  { %14723 = vmatmul.mubr.bf16.vlgmr.msra.gmra.mrb[128].mxu1 %v324_v23 }
 0x682   :  { %13237 = vmatmul.mubr.bf16.vlgmr.msra.gmra.mrb[0].mxu0 %v324_v23  ;;  %18013 = vmatpush3.bf16.msra.mxu1 %v20586_v27  ;;  %v20632_v23 = vld [vmem:[#allocation5 + $0x30f0] ss:$12 sps:$4 sm:$0xff]   ;;  %v20637_v27 = vld [vmem:[#allocation5 + $0x3108] ss:$12 sps:$4 sm:$0xff]  }
 0x683   :  { %13248 = vmatpush1.bf16.msra.mxu0 %v20582_v15  ;;  %18014 = vmatprep.subr.bf16.mxu1 %v20590_v28  ;;  %v20640_v15 = vld [vmem:[#allocation5 + $0x3290] ss:$12 sps:$4 sm:$0xff]  }
 0x684   :  { %13249 = vmatprep.subr.bf16.mxu0 %v20589_v29  ;;  %14763 = vmatprep.mubr.bf16.mxu1 %v327_v55  ;;  %v20641_v29 = vld [vmem:[#allocation5 + $0x31d0] ss:$12 sps:$4 sm:$0xff]  }
 0x685   :  { %13279 = vmatprep.mubr.bf16.mxu0 %v327_v55  ;;  %v20644_v28 = vld [vmem:[#allocation5 + $0x3124] ss:$12 sps:$4 sm:$0xff]   ;;  %v20645_v55 = vld [vmem:[#allocation5 + $0x32a8] ss:$12 sps:$4 sm:$0xff]  }
 0x686   :  { %18015 = vmatpush3.bf16.msra.mxu1 %v20591_v33  ;;  %v20646_v33 = vld [vmem:[#allocation5 + $0x31e8] ss:$12 sps:$4 sm:$0xff]  }
 0x687   :  { %13250 = vmatpush1.bf16.msra.mxu0 %v20587_v41  ;;  %18016 = vmatprep.subr.bf16.mxu1 %v20595_v5  ;;  %v20642_v41 = vld [vmem:[#allocation5 + $0x3120] ss:$12 sps:$4 sm:$0xff]  }
 0x688   :  { %13251 = vmatprep.subr.bf16.mxu0 %v20594_v26  ;;  %v20649_v26 = vld [vmem:[#allocation5 + $0x313c] ss:$12 sps:$4 sm:$0xff]   ;;  %v20650_v5 = vld [vmem:[#allocation5 + $0x32c0] ss:$12 sps:$4 sm:$0xff]  }
 0x68a   :  { %18017 = vmatpush3.bf16.msra.mxu1 %v20596_v61  ;;  %v20651_v61 = vld [vmem:[#allocation5 + $0x3200] ss:$12 sps:$4 sm:$0xff]  }
 0x68b   :  { %13252 = vmatpush1.bf16.msra.mxu0 %v20592_v21  ;;  %18018 = vmatprep.subr.bf16.mxu1 %v20600_v31  ;;  %v20647_v21 = vld [vmem:[#allocation5 + $0x3138] ss:$12 sps:$4 sm:$0xff]  }
 0x68c   :  { %13253 = vmatprep.subr.bf16.mxu0 %v20599_v57  ;;  %v20654_v57 = vld [vmem:[#allocation5 + $0x3154] ss:$12 sps:$4 sm:$0xff]   ;;  %v20655_v31 = vld [vmem:[#allocation5 + $0x32d8] ss:$12 sps:$4 sm:$0xff]  }
 0x68e   :  { %18019 = vmatpush3.bf16.msra.mxu1 %v20601_v11 }
 0x68f   :  { %13254 = vmatpush1.bf16.msra.mxu0 %v20597_v37  ;;  %18020 = vmatprep.subr.bf16.mxu1 %v20605_v13 }
 0x690   :  { %13255 = vmatprep.subr.bf16.mxu0 %v20604_v24 }
 0x692   :  { %18021 = vmatpush3.bf16.msra.mxu1 %v20606_v36  ;;  %v20656_v36 = vld [vmem:[#allocation5 + $0x3218] ss:$12 sps:$4 sm:$0xff]  }
 0x693   :  { %13256 = vmatpush1.bf16.msra.mxu0 %v20602_v54  ;;  %18022 = vmatprep.subr.bf16.mxu1 %v20610_v35  ;;  %v20652_v54 = vld [vmem:[#allocation5 + $0x3150] ss:$12 sps:$4 sm:$0xff]   ;;  %v20659_v35 = vld [vmem:[#allocation5 + $0x316c] ss:$12 sps:$4 sm:$0xff]  }
 0x694   :  { %13257 = vmatprep.subr.bf16.mxu0 %v20609_v30  ;;  %v17874_v10 = vpop.f32.mrb[104].mxu1 }
 0x695   :  { %v17875_v1 = vpop.f32.mrb[105].mxu1 }
 0x696   :  { %v17876_v62 = vadd.f32 %v17875_v1, %v17874_v10  ;;  %v17877_v38 = vpop.f32.mrb[106].mxu1  ;;  %18023 = vmatpush3.bf16.msra.mxu1 %v20611_v52  ;;  %v20661_v1 = vld [vmem:[#allocation5 + $0x3230] ss:$12 sps:$4 sm:$0xff]  }
 0x697   :  { %13258 = vmatpush1.bf16.msra.mxu0 %v20607_v63  ;;  %v17878_v51 = vpop.f32.mrb[107].mxu1  ;;  %18024 = vmatprep.subr.bf16.mxu1 %v20615_v59  ;;  %v20660_v63 = vld [vmem:[#allocation5 + $0x32f0] ss:$12 sps:$4 sm:$0xff]   ;;  %v20657_v59 = vld [vmem:[#allocation5 + $0x3168] ss:$12 sps:$4 sm:$0xff]  }
 0x698   :  { %13259 = vmatprep.subr.bf16.mxu0 %v20614_v47  ;;  %v21587_v7 = vadd.f32 %v17876_v62, %v21581_v12  ;;  %v17879_v2 = vadd.f32 %v17878_v51, %v17877_v38  ;;  %v20622_v12 = vld [vmem:[#allocation5 + $0x30c0] ss:$12 sps:$4 sm:$0xff]   ;;  %v184_v62 = vld [vmem:[#allocation2 + $0x210] sm:$0xff] }
 0x699   :  { %v256_v38 = vld [vmem:[#allocation2 + $0x450] sm:$0xf] }
 0x69a   :  { %v21590_v45 = vadd.f32 %v17879_v2, %v21584_v56  ;;  %18025 = vmatpush3.bf16.msra.mxu1 %v20616_v42  ;;  %v20630_v56 = vld [vmem:[#allocation5 + $0x3260] ss:$12 sps:$4 sm:$0xff]   ;;  %v20665_v42 = vld [vmem:[#allocation5 + $0x33c8] ss:$12 sps:$4 sm:$0xff]   ;;  %v21604_v51 = vpack.c.bf16 %v256_v38, %v184_v62  ;;  %v20707_v62 = vld [vmem:[#allocation5 + $0x3258] ss:$12 sps:$4 sm:$0xff]  }
 0x69b   :  { %13260 = vmatpush1.bf16.msra.mxu0 %v20612_v25  ;;  %18026 = vmatprep.subr.bf16.mxu1 %v20620_v32  ;;  %v20664_v25 = vld [vmem:[#allocation5 + $0x3184] ss:$12 sps:$4 sm:$0xff]   ;;  %v259_v32 = vld [vmem:[#allocation2 + $0x468] sm:$0xf]  ;;  %v20711_v38 = vld [vmem:[#allocation5 + $0x34a0] ss:$12 sps:$4 sm:$0xff]  }
 0x69c   :  { %13261 = vmatprep.subr.bf16.mxu0 %v20619_v39  ;;  %v187_v39 = vld [vmem:[#allocation2 + $0x228] sm:$0xff] }
 0x69d   :  { %v20666_v2 = vld [vmem:[#allocation5 + $0x3308] ss:$12 sps:$4 sm:$0xff]  }
 0x69e   :  { %18027 = vmatpush3.bf16.msra.mxu1 %v20621_v50  ;;  %v21606_v50 = vpack.c.bf16 %v259_v32, %v187_v39  ;;  %v20712_v39 = vld [vmem:[#allocation5 + $0x3270] ss:$12 sps:$4 sm:$0xff]   ;;  %v20716_v32 = vld [vmem:[#allocation5 + $0x34b8] ss:$12 sps:$4 sm:$0xff]  }
 0x69f   :  { %13262 = vmatpush1.bf16.msra.mxu0 %v20617_v34  ;;  %18034 = vmatprep.subr.bf16.mxu1 %v20625_v43  ;;  %v20669_v34 = vld [vmem:[#allocation5 + $0x319c] ss:$12 sps:$4 sm:$0xff]   ;;  %v20675_v43 = vld [vmem:[#allocation5 + $0x33f8] ss:$12 sps:$4 sm:$0xff]  }
 0x6a0   :  { %13263 = vmatprep.subr.bf16.mxu0 %v20624_v40  ;;  %v20674_v40 = vld [vmem:[#allocation5 + $0x31b4] ss:$12 sps:$4 sm:$0xff]  }
 0x6a1   :  { %14764 = vmatmul.mubr.bf16.vlgmr.msra.gmra.mrb[132].mxu1 %v21592_v53 }
 0x6a2   :  { %18035 = vmatpush3.bf16.msra.mxu1 %v20626_v46  ;;  %14804 = vmatprep.mubr.bf16.mxu1 %v21594_v3  ;;  %v20677_v46 = vld [vmem:[#allocation5 + $0x31c8] ss:$12 sps:$4 sm:$0xff]  }
 0x6a3   :  { %13264 = vmatpush1.bf16.msra.mxu0 %v20622_v12  ;;  %18036 = vmatprep.subr.bf16.mxu1 %v20630_v56  ;;  %v20679_v12 = vld [vmem:[#allocation5 + $0x31cc] ss:$12 sps:$4 sm:$0xff]   ;;  %v20684_v56 = vld [vmem:[#allocation5 + $0x31e4] ss:$12 sps:$4 sm:$0xff]  }
 0x6a4   :  { %13265 = vmatprep.subr.bf16.mxu0 %v20629_v58  ;;  %v20681_v58 = vld [vmem:[#allocation5 + $0x3350] ss:$12 sps:$4 sm:$0xff]  }
 0x6a6   :  { %18037 = vmatpush3.bf16.msra.mxu1 %v20631_v4  ;;  %v20682_v4 = vld [vmem:[#allocation5 + $0x31e0] ss:$12 sps:$4 sm:$0xff]  }
 0x6a7   :  { %13266 = vmatpush1.bf16.msra.mxu0 %v20627_v22  ;;  %18038 = vmatprep.subr.bf16.mxu1 %v20635_v8  ;;  %v20685_v22 = vld [vmem:[#allocation5 + $0x3428] ss:$12 sps:$4 sm:$0xff]   ;;  %v20690_v8 = vld [vmem:[#allocation5 + $0x3440] ss:$12 sps:$4 sm:$0xff]  }
 0x6a8   :  { %13267 = vmatprep.subr.bf16.mxu0 %v20634_v18  ;;  %v20689_v18 = vld [vmem:[#allocation5 + $0x31fc] ss:$12 sps:$4 sm:$0xff]  }
 0x6aa   :  { %18039 = vmatpush3.bf16.msra.mxu1 %v20636_v6  ;;  %v20691_v6 = vld [vmem:[#allocation5 + $0x3380] ss:$12 sps:$4 sm:$0xff]  }
 0x6ab   :  { %13268 = vmatpush1.bf16.msra.mxu0 %v20632_v23  ;;  %18040 = vmatprep.subr.bf16.mxu1 %v20640_v15  ;;  %v20687_v23 = vld [vmem:[#allocation5 + $0x31f8] ss:$12 sps:$4 sm:$0xff]  }
 0x6ac   :  { %13269 = vmatprep.subr.bf16.mxu0 %v20639_v48  ;;  %v20694_v48 = vld [vmem:[#allocation5 + $0x3214] ss:$12 sps:$4 sm:$0xff]   ;;  %v20695_v15 = vld [vmem:[#allocation5 + $0x3458] ss:$12 sps:$4 sm:$0xff]  }
 0x6ae   :  { %18041 = vmatpush3.bf16.msra.mxu1 %v20641_v29 }
 0x6af   :  { %13270 = vmatpush1.bf16.msra.mxu0 %v20637_v27  ;;  %18042 = vmatprep.subr.bf16.mxu1 %v20645_v55 }
 0x6b0   :  { %13271 = vmatprep.subr.bf16.mxu0 %v20644_v28 }
 0x6b2   :  { %18043 = vmatpush3.bf16.msra.mxu1 %v20646_v33  ;;  %v20696_v33 = vld [vmem:[#allocation5 + $0x3398] ss:$12 sps:$4 sm:$0xff]  }
 0x6b3   :  { %13272 = vmatpush1.bf16.msra.mxu0 %v20642_v41  ;;  %18044 = vmatprep.subr.bf16.mxu1 %v20650_v5  ;;  %v20692_v41 = vld [vmem:[#allocation5 + $0x3210] ss:$12 sps:$4 sm:$0xff]   ;;  %v20699_v5 = vld [vmem:[#allocation5 + $0x322c] ss:$12 sps:$4 sm:$0xff]  }
 0x6b4   :  { %13273 = vmatprep.subr.bf16.mxu0 %v20649_v26  ;;  %v17896_v37 = vpop.f32.mrb[108].mxu1 }
 0x6b5   :  { %v17897_v11 = vpop.f32.mrb[109].mxu1 }
 0x6b6   :  { %v17898_v24 = vadd.f32 %v17897_v11, %v17896_v37  ;;  %v17899_v13 = vpop.f32.mrb[110].mxu1  ;;  %18045 = vmatpush3.bf16.msra.mxu1 %v20651_v61  ;;  %v20701_v11 = vld [vmem:[#allocation5 + $0x33b0] ss:$12 sps:$4 sm:$0xff]  }
 0x6b7   :  { %13274 = vmatpush1.bf16.msra.mxu0 %v20647_v21  ;;  %v17900_v30 = vpop.f32.mrb[111].mxu1  ;;  %18046 = vmatprep.subr.bf16.mxu1 %v20655_v31  ;;  %v20700_v21 = vld [vmem:[#allocation5 + $0x3470] ss:$12 sps:$4 sm:$0xff]   ;;  %v20697_v31 = vld [vmem:[#allocation5 + $0x3228] ss:$12 sps:$4 sm:$0xff]  }
 0x6b8   :  { %13275 = vmatprep.subr.bf16.mxu0 %v20654_v57  ;;  %v21599_v52 = vadd.f32 %v17898_v24, %v21587_v7  ;;  %v17901_v47 = vadd.f32 %v17900_v30, %v17899_v13  ;;  %v20662_v7 = vld [vmem:[#allocation5 + $0x3180] ss:$12 sps:$4 sm:$0xff]  }
 0x6b9   :  { %v186_v24 = vld [vmem:[#allocation2 + $0x220] sm:$0xff] }
 0x6ba   :  { %v21602_v10 = vadd.f32 %v17901_v47, %v21590_v45  ;;  %18047 = vmatpush3.bf16.msra.mxu1 %v20656_v36  ;;  %v20670_v45 = vld [vmem:[#allocation5 + $0x33e0] ss:$12 sps:$4 sm:$0xff]   ;;  %v20705_v36 = vld [vmem:[#allocation5 + $0x3548] ss:$12 sps:$4 sm:$0xff]  }
 0x6bb   :  { %13276 = vmatpush1.bf16.msra.mxu0 %v20652_v54  ;;  %18048 = vmatprep.subr.bf16.mxu1 %v20660_v63  ;;  %v258_v13 = vld [vmem:[#allocation2 + $0x460] sm:$0xf]  ;;  %v20704_v54 = vld [vmem:[#allocation5 + $0x3244] ss:$12 sps:$4 sm:$0xff]   ;;  %v261_v63 = vld [vmem:[#allocation2 + $0x478] sm:$0xf] }
 0x6bc   :  { %13277 = vmatprep.subr.bf16.mxu0 %v20659_v35  ;;  %v21618_v30 = vpack.c.bf16 %v258_v13, %v186_v24  ;;  %v189_v35 = vld [vmem:[#allocation2 + $0x238] sm:$0xff]  ;;  %v20706_v47 = vld [vmem:[#allocation5 + $0x3488] ss:$12 sps:$4 sm:$0xff]   ;;  %v20756_v13 = vld [vmem:[#allocation5 + $0x3364] ss:$12 sps:$4 sm:$0xff]  }
 0x6bd   :  { %v20751_v24 = vld [vmem:[#allocation5 + $0x3348] ss:$12 sps:$4 sm:$0xff]  }
 0x6be   :  { %18049 = vmatpush3.bf16.msra.mxu1 %v20661_v1  ;;  %v21620_v1 = vpack.c.bf16 %v261_v63, %v189_v35  ;;  %v20762_v35 = vld [vmem:[#allocation5 + $0x3394] ss:$12 sps:$4 sm:$0xff]  }
 0x6bf   :  { %13278 = vmatpush1.bf16.msra.mxu0 %v20657_v59  ;;  %18056 = vmatprep.subr.bf16.mxu1 %v20665_v42  ;;  %v20709_v59 = vld [vmem:[#allocation5 + $0x325c] ss:$12 sps:$4 sm:$0xff]   ;;  %v20715_v42 = vld [vmem:[#allocation5 + $0x3578] ss:$12 sps:$4 sm:$0xff]  }
 0x6c0   :  { %13290 = vmatprep.subr.bf16.mxu0 %v20664_v25  ;;  %v20714_v25 = vld [vmem:[#allocation5 + $0x3274] ss:$12 sps:$4 sm:$0xff]  }
 0x6c1   :  { %14805 = vmatmul.mubr.bf16.vlgmr.msra.gmra.mrb[136].mxu1 %v21604_v51 }
 0x6c2   :  { %13280 = vmatmul.mubr.bf16.vlgmr.msra.gmra.mrb[0].mxu0 %v21592_v53  ;;  %18057 = vmatpush3.bf16.msra.mxu1 %v20666_v2  ;;  %v20680_v53 = vld [vmem:[#allocation5 + $0x3410] ss:$12 sps:$4 sm:$0xff]  }
 0x6c3   :  { %13291 = vmatpush1.bf16.msra.mxu0 %v20662_v7  ;;  %18058 = vmatprep.subr.bf16.mxu1 %v20670_v45  ;;  %v20719_v7 = vld [vmem:[#allocation5 + $0x328c] ss:$12 sps:$4 sm:$0xff]   ;;  %v20720_v2 = vld [vmem:[#allocation5 + $0x3590] ss:$12 sps:$4 sm:$0xff]  }
 0x6c4   :  { %13292 = vmatprep.subr.bf16.mxu0 %v20669_v34  ;;  %14845 = vmatprep.mubr.bf16.mxu1 %v21606_v50  ;;  %v20717_v34 = vld [vmem:[#allocation5 + $0x3288] ss:$12 sps:$4 sm:$0xff]   ;;  %v20721_v45 = vld [vmem:[#allocation5 + $0x34d0] ss:$12 sps:$4 sm:$0xff]  }
 0x6c5   :  { %13322 = vmatprep.mubr.bf16.mxu0 %v21594_v3  ;;  %v20686_v3 = vld [vmem:[#allocation5 + $0x3368] ss:$12 sps:$4 sm:$0xff]  }
 0x6c6   :  { %18059 = vmatpush3.bf16.msra.mxu1 %v20671_v16  ;;  %v20725_v16 = vld [vmem:[#allocation5 + $0x35a8] ss:$12 sps:$4 sm:$0xff]  }
 0x6c7   :  { %13293 = vmatpush1.bf16.msra.mxu0 %v20667_v60  ;;  %18060 = vmatprep.subr.bf16.mxu1 %v20675_v43  ;;  %v20724_v60 = vld [vmem:[#allocation5 + $0x32a4] ss:$12 sps:$4 sm:$0xff]   ;;  %v20726_v43 = vld [vmem:[#allocation5 + $0x34e8] ss:$12 sps:$4 sm:$0xff]  }
 0x6c8   :  { %13294 = vmatprep.subr.bf16.mxu0 %v20674_v40  ;;  %v20722_v40 = vld [vmem:[#allocation5 + $0x32a0] ss:$12 sps:$4 sm:$0xff]  }
 0x6ca   :  { %18061 = vmatpush3.bf16.msra.mxu1 %v20676_v9  ;;  %v20730_v9 = vld [vmem:[#allocation5 + $0x35c0] ss:$12 sps:$4 sm:$0xff]  }
 0x6cb   :  { %13295 = vmatpush1.bf16.msra.mxu0 %v20672_v49  ;;  %18062 = vmatprep.subr.bf16.mxu1 %v20680_v53  ;;  %v20729_v49 = vld [vmem:[#allocation5 + $0x32bc] ss:$12 sps:$4 sm:$0xff]   ;;  %v20731_v53 = vld [vmem:[#allocation5 + $0x3500] ss:$12 sps:$4 sm:$0xff]  }
 0x6cc   :  { %13296 = vmatprep.subr.bf16.mxu0 %v20679_v12  ;;  %v20727_v12 = vld [vmem:[#allocation5 + $0x32b8] ss:$12 sps:$4 sm:$0xff]  }
 0x6ce   :  { %18063 = vmatpush3.bf16.msra.mxu1 %v20681_v58  ;;  %v20735_v58 = vld [vmem:[#allocation5 + $0x35d8] ss:$12 sps:$4 sm:$0xff]  }
 0x6cf   :  { %13297 = vmatpush1.bf16.msra.mxu0 %v20677_v46  ;;  %18064 = vmatprep.subr.bf16.mxu1 %v20685_v22  ;;  %v20734_v46 = vld [vmem:[#allocation5 + $0x32d4] ss:$12 sps:$4 sm:$0xff]  }
 0x6d0   :  { %13298 = vmatprep.subr.bf16.mxu0 %v20684_v56 }
 0x6d2   :  { %18065 = vmatpush3.bf16.msra.mxu1 %v20686_v3 }
 0x6d3   :  { %13299 = vmatpush1.bf16.msra.mxu0 %v20682_v4  ;;  %18066 = vmatprep.subr.bf16.mxu1 %v20690_v8  ;;  %v20736_v8 = vld [vmem:[#allocation5 + $0x3518] ss:$12 sps:$4 sm:$0xff]  }
 0x6d4   :  { %13300 = vmatprep.subr.bf16.mxu0 %v20689_v18  ;;  %v17918_v27 = vpop.f32.mrb[112].mxu1  ;;  %v20732_v18 = vld [vmem:[#allocation5 + $0x32d0] ss:$12 sps:$4 sm:$0xff]  }
 0x6d5   :  { %v17919_v29 = vpop.f32.mrb[113].mxu1 }
 0x6d6   :  { %v17920_v28 = vadd.f32 %v17919_v29, %v17918_v27  ;;  %v17921_v55 = vpop.f32.mrb[114].mxu1  ;;  %18067 = vmatpush3.bf16.msra.mxu1 %v20691_v6  ;;  %v20739_v6 = vld [vmem:[#allocation5 + $0x32ec] ss:$12 sps:$4 sm:$0xff]   ;;  %v20737_v29 = vld [vmem:[#allocation5 + $0x32e8] ss:$12 sps:$4 sm:$0xff]  }
 0x6d7   :  { %13301 = vmatpush1.bf16.msra.mxu0 %v20687_v23  ;;  %v17922_v26 = vpop.f32.mrb[115].mxu1  ;;  %18068 = vmatprep.subr.bf16.mxu1 %v20695_v15 }
 0x6d8   :  { %13302 = vmatprep.subr.bf16.mxu0 %v20694_v48  ;;  %v21613_v61 = vadd.f32 %v17920_v28, %v21599_v52  ;;  %v17923_v57 = vadd.f32 %v17922_v26, %v17921_v55  ;;  %v20702_v52 = vld [vmem:[#allocation5 + $0x3240] ss:$12 sps:$4 sm:$0xff]   ;;  %v20740_v48 = vld [vmem:[#allocation5 + $0x35f0] ss:$12 sps:$4 sm:$0xff]  }
 0x6d9   :  { %v20741_v55 = vld [vmem:[#allocation5 + $0x3530] ss:$12 sps:$4 sm:$0xff]  }
 0x6da   :  { %v21616_v37 = vadd.f32 %v17923_v57, %v21602_v10  ;;  %18069 = vmatpush3.bf16.msra.mxu1 %v20696_v33  ;;  %v20710_v10 = vld [vmem:[#allocation5 + $0x3560] ss:$12 sps:$4 sm:$0xff]   ;;  %v260_v33 = vld [vmem:[#allocation2 + $0x470] sm:$0xf]  ;;  %v20747_v57 = vld [vmem:[#allocation5 + $0x331c] ss:$12 sps:$4 sm:$0xff]  }
 0x6db   :  { %13303 = vmatpush1.bf16.msra.mxu0 %v20692_v41  ;;  %18070 = vmatprep.subr.bf16.mxu1 %v20700_v21  ;;  %v188_v41 = vld [vmem:[#allocation2 + $0x230] sm:$0xff]  ;;  %v20742_v21 = vld [vmem:[#allocation5 + $0x3300] ss:$12 sps:$4 sm:$0xff]  }
 0x6dc   :  { %13304 = vmatprep.subr.bf16.mxu0 %v20699_v5  ;;  %v20744_v26 = vld [vmem:[#allocation5 + $0x3304] ss:$12 sps:$4 sm:$0xff]   ;;  %v21626_v5 = vpack.c.bf16 %v260_v33, %v188_v41  ;;  %v20801_v33 = vld [vmem:[#allocation5 + $0x34cc] ss:$12 sps:$4 sm:$0xff]  }
 0x6dd   :  { %v20796_v41 = vld [vmem:[#allocation5 + $0x34b0] ss:$12 sps:$4 sm:$0xff]  }
 0x6de   :  { %18071 = vmatpush3.bf16.msra.mxu1 %v20701_v11  ;;  %v20753_v11 = vld [vmem:[#allocation5 + $0x334c] ss:$12 sps:$4 sm:$0xff]  }
 0x6df   :  { %13305 = vmatpush1.bf16.msra.mxu0 %v20697_v31  ;;  %18078 = vmatprep.subr.bf16.mxu1 %v20705_v36  ;;  %v20750_v31 = vld [vmem:[#allocation5 + $0x3334] ss:$12 sps:$4 sm:$0xff]   ;;  %v20759_v36 = vld [vmem:[#allocation5 + $0x337c] ss:$12 sps:$4 sm:$0xff]  }
 0x6e0   :  { %13306 = vmatprep.subr.bf16.mxu0 %v20704_v54  ;;  %v20754_v54 = vld [vmem:[#allocation5 + $0x3360] ss:$12 sps:$4 sm:$0xff]  }
 0x6e1   :  { %14846 = vmatmul.mubr.bf16.vlgmr.msra.gmra.mrb[140].mxu1 %v21618_v30 }
 0x6e2   :  { %18079 = vmatpush3.bf16.msra.mxu1 %v20706_v47  ;;  %14886 = vmatprep.mubr.bf16.mxu1 %v21620_v1 }
 0x6e3   :  { %13307 = vmatpush1.bf16.msra.mxu0 %v20702_v52  ;;  %18080 = vmatprep.subr.bf16.mxu1 %v20710_v10 }
 0x6e4   :  { %13308 = vmatprep.subr.bf16.mxu0 %v20709_v59  ;;  %v20760_v59 = vld [vmem:[#allocation5 + $0x3390] ss:$12 sps:$4 sm:$0xff]  }
 0x6e6   :  { %18081 = vmatpush3.bf16.msra.mxu1 %v20711_v38 }
 0x6e7   :  { %13309 = vmatpush1.bf16.msra.mxu0 %v20707_v62  ;;  %18082 = vmatprep.subr.bf16.mxu1 %v20715_v42  ;;  %v20765_v62 = vld [vmem:[#allocation5 + $0x33ac] ss:$12 sps:$4 sm:$0xff]  }
 0x6e8   :  { %13310 = vmatprep.subr.bf16.mxu0 %v20714_v25 }
 0x6ea   :  { %18083 = vmatpush3.bf16.msra.mxu1 %v20716_v32  ;;  %v20768_v32 = vld [vmem:[#allocation5 + $0x33c4] ss:$12 sps:$4 sm:$0xff]  }
 0x6eb   :  { %13311 = vmatpush1.bf16.msra.mxu0 %v20712_v39  ;;  %18084 = vmatprep.subr.bf16.mxu1 %v20720_v2  ;;  %v20763_v39 = vld [vmem:[#allocation5 + $0x33a8] ss:$12 sps:$4 sm:$0xff]  }
 0x6ec   :  { %13312 = vmatprep.subr.bf16.mxu0 %v20719_v7  ;;  %v20766_v7 = vld [vmem:[#allocation5 + $0x33c0] ss:$12 sps:$4 sm:$0xff]   ;;  %v20771_v2 = vld [vmem:[#allocation5 + $0x33dc] ss:$12 sps:$4 sm:$0xff]  }
 0x6ee   :  { %18085 = vmatpush3.bf16.msra.mxu1 %v20721_v45  ;;  %v20774_v45 = vld [vmem:[#allocation5 + $0x33f4] ss:$12 sps:$4 sm:$0xff]  }
 0x6ef   :  { %13313 = vmatpush1.bf16.msra.mxu0 %v20717_v34  ;;  %18086 = vmatprep.subr.bf16.mxu1 %v20725_v16  ;;  %v20769_v34 = vld [vmem:[#allocation5 + $0x33d8] ss:$12 sps:$4 sm:$0xff]  }
 0x6f0   :  { %13314 = vmatprep.subr.bf16.mxu0 %v20724_v60  ;;  %v20772_v60 = vld [vmem:[#allocation5 + $0x33f0] ss:$12 sps:$4 sm:$0xff]   ;;  %v20777_v16 = vld [vmem:[#allocation5 + $0x340c] ss:$12 sps:$4 sm:$0xff]  }
 0x6f2   :  { %18087 = vmatpush3.bf16.msra.mxu1 %v20726_v43  ;;  %v20780_v43 = vld [vmem:[#allocation5 + $0x3424] ss:$12 sps:$4 sm:$0xff]  }
 0x6f3   :  { %13315 = vmatpush1.bf16.msra.mxu0 %v20722_v40  ;;  %18088 = vmatprep.subr.bf16.mxu1 %v20730_v9  ;;  %v20775_v40 = vld [vmem:[#allocation5 + $0x3408] ss:$12 sps:$4 sm:$0xff]  }
 0x6f4   :  { %13316 = vmatprep.subr.bf16.mxu0 %v20729_v49  ;;  %v17940_v56 = vpop.f32.mrb[116].mxu1  ;;  %v20778_v49 = vld [vmem:[#allocation5 + $0x3420] ss:$12 sps:$4 sm:$0xff]   ;;  %v20783_v9 = vld [vmem:[#allocation5 + $0x343c] ss:$12 sps:$4 sm:$0xff]  }
 0x6f5   :  { %v17941_v22 = vpop.f32.mrb[117].mxu1 }
 0x6f6   :  { %v17942_v4 = vadd.f32 %v17941_v22, %v17940_v56  ;;  %v17943_v3 = vpop.f32.mrb[118].mxu1  ;;  %18089 = vmatpush3.bf16.msra.mxu1 %v20731_v53  ;;  %v20786_v53 = vld [vmem:[#allocation5 + $0x3454] ss:$12 sps:$4 sm:$0xff]  }
 0x6f7   :  { %13317 = vmatpush1.bf16.msra.mxu0 %v20727_v12  ;;  %v17944_v23 = vpop.f32.mrb[119].mxu1  ;;  %18090 = vmatprep.subr.bf16.mxu1 %v20735_v58  ;;  %v20781_v12 = vld [vmem:[#allocation5 + $0x3438] ss:$12 sps:$4 sm:$0xff]  }
 0x6f8   :  { %13318 = vmatprep.subr.bf16.mxu0 %v20734_v46  ;;  %v14602_v15 = vadd.f32 %v17942_v4, %v21613_v61  ;;  %v17945_v27 = vadd.f32 %v17944_v23, %v17943_v3  ;;  %v20745_v61 = vld [vmem:[#allocation5 + $0x3318] ss:$12 sps:$4 sm:$0xff]   ;;  %v20784_v4 = vld [vmem:[#allocation5 + $0x3450] ss:$12 sps:$4 sm:$0xff]  }
 0x6fa   :  { %v14605_v28 = vadd.f32 %v17945_v27, %v21616_v37  ;;  %18091 = vmatpush3.bf16.msra.mxu1 %v20736_v8  ;;  %v20748_v37 = vld [vmem:[#allocation5 + $0x3330] ss:$12 sps:$4 sm:$0xff]   ;;  %v20790_v27 = vld [vmem:[#allocation5 + $0x3480] ss:$12 sps:$4 sm:$0xff]  }
 0x6fb   :  { %13319 = vmatpush1.bf16.msra.mxu0 %v20732_v18  ;;  %18092 = vmatprep.subr.bf16.mxu1 %v20740_v48  ;;  %v20789_v18 = vld [vmem:[#allocation5 + $0x346c] ss:$12 sps:$4 sm:$0xff]   ;;  %v20787_v48 = vld [vmem:[#allocation5 + $0x3468] ss:$12 sps:$4 sm:$0xff]  }
 0x6fc   :  { %13320 = vmatprep.subr.bf16.mxu0 %v20739_v6 }
 0x6fe   :  { %18093 = vmatpush3.bf16.msra.mxu1 %v20741_v55  ;;  %v20798_v55 = vld [vmem:[#allocation5 + $0x34b4] ss:$12 sps:$4 sm:$0xff]  }
 0x6ff   :  { %13321 = vmatpush1.bf16.msra.mxu0 %v20737_v29  ;;  %v20795_v29 = vld [vmem:[#allocation5 + $0x349c] ss:$12 sps:$4 sm:$0xff]  }
 0x700   :  { %13333 = vmatprep.subr.bf16.mxu0 %v20744_v26  ;;  %v20799_v26 = vld [vmem:[#allocation5 + $0x34c8] ss:$12 sps:$4 sm:$0xff]  }
 0x701   :  { %14887 = vmatmul.mubr.bf16.vlgmr.msra.gmra.mrb[144].mxu1 %v21626_v5 }
 0x702   :  { %13323 = vmatmul.mubr.bf16.vlgmr.msra.gmra.mrb[0].mxu0 %v21604_v51  ;;  %v20757_v51 = vld [vmem:[#allocation5 + $0x3378] ss:$12 sps:$4 sm:$0xff]  }
 0x703   :  { %13334 = vmatpush1.bf16.msra.mxu0 %v20742_v21  ;;  %13365 = vmatprep.mubr.bf16.mxu0 %v21606_v50  ;;  %v20804_v21 = vld [vmem:[#allocation5 + $0x34e4] ss:$12 sps:$4 sm:$0xff]  }
 0x704   :  { %13335 = vmatprep.subr.bf16.mxu0 %v20747_v57  ;;  %v20802_v57 = vld [vmem:[#allocation5 + $0x34e0] ss:$12 sps:$4 sm:$0xff]  }
 0x707   :  { %13336 = vmatpush1.bf16.msra.mxu0 %v20745_v61  ;;  %v20807_v61 = vld [vmem:[#allocation5 + $0x34fc] ss:$12 sps:$4 sm:$0xff]  }
 0x708   :  { %13337 = vmatprep.subr.bf16.mxu0 %v20750_v31  ;;  %v20810_v31 = vld [vmem:[#allocation5 + $0x3514] ss:$12 sps:$4 sm:$0xff]  }
 0x70b   :  { %13338 = vmatpush1.bf16.msra.mxu0 %v20748_v37 }
 0x70c   :  { %13339 = vmatprep.subr.bf16.mxu0 %v20753_v11 }
 0x70f   :  { %13340 = vmatpush1.bf16.msra.mxu0 %v20751_v24 }
 0x710   :  { %13341 = vmatprep.subr.bf16.mxu0 %v20756_v13  ;;  %v20808_v13 = vld [vmem:[#allocation5 + $0x3510] ss:$12 sps:$4 sm:$0xff]  }
 0x713   :  { %13342 = vmatpush1.bf16.msra.mxu0 %v20754_v54 }
 0x714   :  { %13343 = vmatprep.subr.bf16.mxu0 %v20759_v36  ;;  %v17962_v63 = vpop.f32.mrb[120].mxu1  ;;  %v20813_v36 = vld [vmem:[#allocation5 + $0x352c] ss:$12 sps:$4 sm:$0xff]  }
 0x715   :  { %v17963_v50 = vpop.f32.mrb[121].mxu1 }
 0x716   :  { %v17964_v52 = vadd.f32 %v17963_v50, %v17962_v63  ;;  %v17965_v47 = vpop.f32.mrb[122].mxu1  ;;  %v20811_v50 = vld [vmem:[#allocation5 + $0x3528] ss:$12 sps:$4 sm:$0xff]  }
 0x717   :  { %13344 = vmatpush1.bf16.msra.mxu0 %v20757_v51  ;;  %v17966_v10 = vpop.f32.mrb[123].mxu1 }
 0x718   :  { %13345 = vmatprep.subr.bf16.mxu0 %v20762_v35  ;;  %v14643_v38 = vadd.f32 %v17964_v52, %v14602_v15  ;;  %v17967_v25 = vadd.f32 %v17966_v10, %v17965_v47  ;;  %v20792_v15 = vld [vmem:[#allocation5 + $0x3484] ss:$12 sps:$4 sm:$0xff]   ;;  %v20814_v47 = vld [vmem:[#allocation5 + $0x3540] ss:$12 sps:$4 sm:$0xff]  }
 0x719   :  { %v20816_v52 = vld [vmem:[#allocation5 + $0x3544] ss:$12 sps:$4 sm:$0xff]  }
 0x71a   :  { %v14646_v42 = vadd.f32 %v17967_v25, %v14605_v28  ;;  %v20793_v28 = vld [vmem:[#allocation5 + $0x3498] ss:$12 sps:$4 sm:$0xff]   ;;  %v14902_v10 = vld [vmem:[#allocation8 + $0x8] sm:$0xff] }
 0x71b   :  { %13346 = vmatpush1.bf16.msra.mxu0 %v20760_v59  ;;  %v20819_v59 = vld [vmem:[#allocation5 + $0x355c] ss:$12 sps:$4 sm:$0xff]  }
 0x71c   :  { %13347 = vmatprep.subr.bf16.mxu0 %v20765_v62  ;;  %v14905_v62 = vld [vmem:[#allocation8 + $0x20] sm:$0xff] }
 0x71d   :  { %v18207_v25 = vpack.c.bf16 %v14905_v62, %v14902_v10 }
 0x71f   :  { %13348 = vmatpush1.bf16.msra.mxu0 %v20763_v39  ;;  %v14908_v39 = vld [vmem:[#allocation8 + $0x38] sm:$0xff]  ;;  %18208 = vmatprep.subr.bf16.mxu1 %v18207_v25  ;;  %v20837_v25 = vld [vmem:[#allocation5 + $0x35ec] ss:$12 sps:$4 sm:$0xff]  }
 0x720   :  { %13349 = vmatprep.subr.bf16.mxu0 %v20768_v32  ;;  %v14911_v32 = vld [vmem:[#allocation8 + $0x50] sm:$0xff] }
 0x723   :  { %13350 = vmatpush1.bf16.msra.mxu0 %v20766_v7 }
 0x724   :  { %13351 = vmatprep.subr.bf16.mxu0 %v20771_v2  ;;  %v18211_v2 = vpack.c.bf16 %v14911_v32, %v14908_v39  ;;  %v14999_v32 = vld [vmem:[#allocation8 + $0x310] sm:$0xff] }
 0x727   :  { %13352 = vmatpush1.bf16.msra.mxu0 %v20769_v34  ;;  %v14907_v34 = vld [vmem:[#allocation8 + $0x30] sm:$0xff] }
 0x728   :  { %13353 = vmatprep.subr.bf16.mxu0 %v20774_v45  ;;  %v14910_v45 = vld [vmem:[#allocation8 + $0x48] sm:$0xff] }
 0x72b   :  { %13354 = vmatpush1.bf16.msra.mxu0 %v20772_v60  ;;  %v14914_v60 = vld [vmem:[#allocation8 + $0x68] sm:$0xff] }
 0x72c   :  { %13355 = vmatprep.subr.bf16.mxu0 %v20777_v16  ;;  %v14917_v16 = vld [vmem:[#allocation8 + $0x80] sm:$0xff] }
 0x72f   :  { %13356 = vmatpush1.bf16.msra.mxu0 %v20775_v40  ;;  %v20817_v40 = vld [vmem:[#allocation5 + $0x3558] ss:$12 sps:$4 sm:$0xff]  }
 0x730   :  { %13357 = vmatprep.subr.bf16.mxu0 %v20780_v43  ;;  %v18213_v43 = vpack.c.bf16 %v14910_v45, %v14907_v34  ;;  %v14946_v34 = vld [vmem:[#allocation8 + $0x168] sm:$0xff] }
 0x733   :  { %13358 = vmatpush1.bf16.msra.mxu0 %v20778_v49  ;;  %v20822_v49 = vld [vmem:[#allocation5 + $0x3574] ss:$12 sps:$4 sm:$0xff]  }
 0x734   :  { %13359 = vmatprep.subr.bf16.mxu0 %v20783_v9  ;;  %v17984_v46 = vpop.f32.mrb[124].mxu1  ;;  %v18215_v9 = vpack.c.bf16 %v14917_v16, %v14914_v60  ;;  %v15002_v16 = vld [vmem:[#allocation8 + $0x328] sm:$0xff] }
 0x735   :  { %v17985_v58 = vpop.f32.mrb[125].mxu1 }
 0x736   :  { %v17986_v56 = vadd.f32 %v17985_v58, %v17984_v46  ;;  %v17987_v22 = vpop.f32.mrb[126].mxu1  ;;  %v14920_v46 = vld [vmem:[#allocation8 + $0x98] sm:$0xff]  ;;  %v14923_v58 = vld [vmem:[#allocation8 + $0xb0] sm:$0xff] }
 0x737   :  { %13360 = vmatpush1.bf16.msra.mxu0 %v20781_v12  ;;  %v17988_v3 = vpop.f32.mrb[127].mxu1  ;;  %v14913_v12 = vld [vmem:[#allocation8 + $0x60] sm:$0xff] }
 0x738   :  { %13361 = vmatprep.subr.bf16.mxu0 %v20786_v53  ;;  %v14684_v8 = vadd.f32 %v17986_v56, %v14643_v38  ;;  %v17989_v23 = vadd.f32 %v17988_v3, %v17987_v22  ;;  %v14901_v38 = vld [vmem:[#allocation8] sm:$0xff]  ;;  %v14916_v53 = vld [vmem:[#allocation8 + $0x78] sm:$0xff]  ;;  %v18219_v3 = vpack.c.bf16 %v14923_v58, %v14920_v46 }
 0x739   :  { %v20820_v56 = vld [vmem:[#allocation5 + $0x3570] ss:$12 sps:$4 sm:$0xff]   ;;  %v18217_v22 = vpack.c.bf16 %v14916_v53, %v14913_v12  ;;  %v18335_v53 = vpack.c.bf16 %v15002_v16, %v14999_v32  ;;  %v15005_v46 = vld [vmem:[#allocation8 + $0x340] sm:$0xff]  ;;  %v15035_v32 = vld [vmem:[#allocation8 + $0x430] sm:$0xff] }
 0x73a   :  { %v14687_v6 = vadd.f32 %v17989_v23, %v14646_v42  ;;  %v14904_v42 = vld [vmem:[#allocation8 + $0x18] sm:$0xff]  ;;  %v14926_v23 = vld [vmem:[#allocation8 + $0xc8] sm:$0xff] }
 0x73b   :  { %13362 = vmatpush1.bf16.msra.mxu0 %v20784_v4  ;;  %v18209_v7 = vpack.c.bf16 %v14904_v42, %v14901_v38  ;;  %v20825_v4 = vld [vmem:[#allocation5 + $0x358c] ss:$12 sps:$4 sm:$0xff]   ;;  %v20832_v38 = vld [vmem:[#allocation5 + $0x35d0] ss:$12 sps:$4 sm:$0xff]  }
 0x73c   :  { %13363 = vmatprep.subr.bf16.mxu0 %v20789_v18  ;;  %v14919_v18 = vld [vmem:[#allocation8 + $0x90] sm:$0xff]  ;;  %v14986_v16 = vld [vmem:[#allocation8 + $0x2a8] sm:$0xff] }
 0x73d   :  { %18210 = vmatpush1.bf16.msra.mxu1 %v18209_v7 }
 0x73e   :  { %18212 = vmatprep.subr.bf16.mxu1 %v18211_v2  ;;  %v14943_v2 = vld [vmem:[#allocation8 + $0x150] sm:$0xff] }
 0x73f   :  { %13364 = vmatpush1.bf16.msra.mxu0 %v20787_v48  ;;  %v20823_v48 = vld [vmem:[#allocation5 + $0x3588] ss:$12 sps:$4 sm:$0xff]   ;;  %v18237_v12 = vpack.c.bf16 %v14946_v34, %v14943_v2  ;;  %v14982_v34 = vld [vmem:[#allocation8 + $0x288] sm:$0xff] }
 0x740   :  { %13376 = vmatprep.subr.bf16.mxu0 %v20792_v15  ;;  %v14979_v2 = vld [vmem:[#allocation8 + $0x270] sm:$0xff] }
 0x741   :  { %18214 = vmatpush1.bf16.msra.mxu1 %v18213_v43  ;;  %v14953_v43 = vld [vmem:[#allocation8 + $0x1a0] sm:$0xff] }
 0x742   :  { %13366 = vmatmul.mubr.bf16.vlgmr.msra.gmra.mrb[0].mxu0 %v21618_v30  ;;  %v20805_v30 = vld [vmem:[#allocation5 + $0x34f8] ss:$12 sps:$4 sm:$0xff]   ;;  %18216 = vmatprep.subr.bf16.mxu1 %v18215_v9  ;;  %v20835_v9 = vld [vmem:[#allocation5 + $0x35e8] ss:$12 sps:$4 sm:$0xff]  }
 0x743   :  { %13377 = vmatpush1.bf16.msra.mxu0 %v20790_v27  ;;  %13408 = vmatprep.mubr.bf16.mxu0 %v21620_v1  ;;  %v20828_v27 = vld [vmem:[#allocation5 + $0x35a4] ss:$12 sps:$4 sm:$0xff]  }
 0x744   :  { %13378 = vmatprep.subr.bf16.mxu0 %v20795_v29 }
 0x745   :  { %18218 = vmatpush1.bf16.msra.mxu1 %v18217_v22  ;;  %v14952_v22 = vld [vmem:[#allocation8 + $0x198] sm:$0xff] }
 0x746   :  { %18220 = vmatprep.subr.bf16.mxu1 %v18219_v3  ;;  %v14959_v3 = vld [vmem:[#allocation8 + $0x1d0] sm:$0xff] }
 0x747   :  { %13379 = vmatpush1.bf16.msra.mxu0 %v20793_v28  ;;  %v14925_v28 = vld [vmem:[#allocation8 + $0xc0] sm:$0xff] }
 0x748   :  { %13380 = vmatprep.subr.bf16.mxu0 %v20798_v55  ;;  %v14928_v55 = vld [vmem:[#allocation8 + $0xd8] sm:$0xff] }
 0x74b   :  { %13381 = vmatpush1.bf16.msra.mxu0 %v20796_v41  ;;  %v14932_v41 = vld [vmem:[#allocation8 + $0xf8] sm:$0xff] }
 0x74c   :  { %13382 = vmatprep.subr.bf16.mxu0 %v20801_v33  ;;  %v14935_v33 = vld [vmem:[#allocation8 + $0x110] sm:$0xff] }
 0x74f   :  { %13383 = vmatpush1.bf16.msra.mxu0 %v20799_v26  ;;  %v20826_v26 = vld [vmem:[#allocation5 + $0x35a0] ss:$12 sps:$4 sm:$0xff]  }
 0x750   :  { %13384 = vmatprep.subr.bf16.mxu0 %v20804_v21  ;;  %v18225_v21 = vpack.c.bf16 %v14928_v55, %v14925_v28 }
 0x753   :  { %13385 = vmatpush1.bf16.msra.mxu0 %v20802_v57  ;;  %v20831_v57 = vld [vmem:[#allocation5 + $0x35bc] ss:$12 sps:$4 sm:$0xff]  }
 0x754   :  { %13386 = vmatprep.subr.bf16.mxu0 %v20807_v61  ;;  %v18006_v37 = vpop.f32.mrb[128].mxu1  ;;  %v18227_v61 = vpack.c.bf16 %v14935_v33, %v14932_v41  ;;  %v15017_v41 = vld [vmem:[#allocation8 + $0x3a0] sm:$0xff] }
 0x755   :  { %v18007_v1 = vpop.f32.mrb[129].mxu1 }
 0x756   :  { %v18008_v11 = vadd.f32 %v18007_v1, %v18006_v37  ;;  %v18009_v24 = vpop.f32.mrb[130].mxu1  ;;  %v14938_v37 = vld [vmem:[#allocation8 + $0x128] sm:$0xff]  ;;  %v14941_v1 = vld [vmem:[#allocation8 + $0x140] sm:$0xff] }
 0x757   :  { %13387 = vmatpush1.bf16.msra.mxu0 %v20805_v30  ;;  %v18010_v54 = vpop.f32.mrb[131].mxu1  ;;  %v14931_v30 = vld [vmem:[#allocation8 + $0xf0] sm:$0xff] }
 0x758   :  { %13388 = vmatprep.subr.bf16.mxu0 %v20810_v31  ;;  %v21633_v51 = vadd.f32 %v18008_v11, %v14684_v8  ;;  %v18011_v35 = vadd.f32 %v18010_v54, %v18009_v24  ;;  %v14922_v8 = vld [vmem:[#allocation8 + $0xa8] sm:$0xff]  ;;  %v20829_v11 = vld [vmem:[#allocation5 + $0x35b8] ss:$12 sps:$4 sm:$0xff]   ;;  %v18231_v54 = vpack.c.bf16 %v14941_v1, %v14938_v37 }
 0x759   :  { %v18221_v15 = vpack.c.bf16 %v14922_v8, %v14919_v18  ;;  %v14934_v31 = vld [vmem:[#allocation8 + $0x108] sm:$0xff]  ;;  %v15011_v8 = vld [vmem:[#allocation8 + $0x370] sm:$0xff] }
 0x75a   :  { %v21635_v63 = vadd.f32 %v18011_v35, %v14687_v6  ;;  %v14929_v6 = vld [vmem:[#allocation8 + $0xe0] sm:$0xff]  ;;  %v18229_v24 = vpack.c.bf16 %v14934_v31, %v14931_v30  ;;  %v14940_v35 = vld [vmem:[#allocation8 + $0x138] sm:$0xff]  ;;  %v14971_v30 = vld [vmem:[#allocation8 + $0x230] sm:$0xff] }
 0x75b   :  { %13389 = vmatpush1.bf16.msra.mxu0 %v20808_v13  ;;  %v18223_v29 = vpack.c.bf16 %v14929_v6, %v14926_v23  ;;  %18222 = vmatpush1.bf16.msra.mxu1 %v18221_v15  ;;  %v20834_v13 = vld [vmem:[#allocation5 + $0x35d4] ss:$12 sps:$4 sm:$0xff]   ;;  %v15014_v15 = vld [vmem:[#allocation8 + $0x388] sm:$0xff] }
 0x75c   :  { %13390 = vmatprep.subr.bf16.mxu0 %v20813_v36  ;;  %v14937_v36 = vld [vmem:[#allocation8 + $0x120] sm:$0xff]  ;;  %v14955_v6 = vld [vmem:[#allocation8 + $0x1b0] sm:$0xff]  ;;  %v18343_v55 = vpack.c.bf16 %v15014_v15, %v15011_v8 }
 0x75d   :  { %18224 = vmatprep.subr.bf16.mxu1 %v18223_v29  ;;  %v18233_v42 = vpack.c.bf16 %v14940_v35, %v14937_v36  ;;  %v14965_v29 = vld [vmem:[#allocation8 + $0x200] sm:$0xff]  ;;  %v15023_v1 = vld [vmem:[#allocation8 + $0x3d0] sm:$0xff] }
 0x75e   :  { %v14977_v36 = vld [vmem:[#allocation8 + $0x260] sm:$0xff] }
 0x75f   :  { %13391 = vmatpush1.bf16.msra.mxu0 %v20811_v50  ;;  %18226 = vmatpush1.bf16.msra.mxu1 %v18225_v21  ;;  %v14964_v21 = vld [vmem:[#allocation8 + $0x1f8] sm:$0xff] }
 0x760   :  { %13392 = vmatprep.subr.bf16.mxu0 %v20816_v52  ;;  %18228 = vmatprep.subr.bf16.mxu1 %v18227_v61  ;;  %v14944_v52 = vld [vmem:[#allocation8 + $0x158] sm:$0xff] }
 0x761   :  { %v14968_v61 = vld [vmem:[#allocation8 + $0x218] sm:$0xff] }
 0x763   :  { %13393 = vmatpush1.bf16.msra.mxu0 %v20814_v47  ;;  %v14947_v47 = vld [vmem:[#allocation8 + $0x170] sm:$0xff]  ;;  %18230 = vmatpush1.bf16.msra.mxu1 %v18229_v24  ;;  %v14970_v24 = vld [vmem:[#allocation8 + $0x228] sm:$0xff] }
 0x764   :  { %13394 = vmatprep.subr.bf16.mxu0 %v20819_v59  ;;  %18232 = vmatprep.subr.bf16.mxu1 %v18231_v54  ;;  %v18235_v7 = vpack.c.bf16 %v14947_v47, %v14944_v52  ;;  %v14974_v54 = vld [vmem:[#allocation8 + $0x248] sm:$0xff]  ;;  %v15029_v52 = vld [vmem:[#allocation8 + $0x400] sm:$0xff] }
 0x765   :  { %v18255_v47 = vpack.c.bf16 %v14977_v36, %v14974_v54 }
 0x767   :  { %13395 = vmatpush1.bf16.msra.mxu0 %v20817_v40  ;;  %v14950_v40 = vld [vmem:[#allocation8 + $0x188] sm:$0xff]  ;;  %18234 = vmatpush1.bf16.msra.mxu1 %v18233_v42 }
 0x768   :  { %13396 = vmatprep.subr.bf16.mxu0 %v20822_v49  ;;  %18236 = vmatprep.subr.bf16.mxu1 %v18235_v7  ;;  %v18239_v58 = vpack.c.bf16 %v14953_v43, %v14950_v40  ;;  %v14989_v40 = vld [vmem:[#allocation8 + $0x2c0] sm:$0xff]  ;;  %v18261_v43 = vpack.c.bf16 %v14982_v34, %v14979_v2 }
 0x76b   :  { %13397 = vmatpush1.bf16.msra.mxu0 %v20820_v56  ;;  %v14949_v56 = vld [vmem:[#allocation8 + $0x180] sm:$0xff]  ;;  %18238 = vmatpush1.bf16.msra.mxu1 %v18237_v12  ;;  %v18263_v12 = vpack.c.bf16 %v14989_v40, %v14986_v16  ;;  %v15000_v16 = vld [vmem:[#allocation8 + $0x318] sm:$0xff] }
 0x76c   :  { %13398 = vmatprep.subr.bf16.mxu0 %v20825_v4  ;;  %v14956_v4 = vld [vmem:[#allocation8 + $0x1b8] sm:$0xff]  ;;  %v18241_v18 = vpack.c.bf16 %v14952_v22, %v14949_v56  ;;  %18240 = vmatprep.subr.bf16.mxu1 %v18239_v58  ;;  %v15041_v56 = vld [vmem:[#allocation8 + $0x460] sm:$0xff] }
 0x76d   :  { %v18243_v23 = vpack.c.bf16 %v14959_v3, %v14956_v4  ;;  %v15044_v22 = vld [vmem:[#allocation8 + $0x478] sm:$0xff] }
 0x76e   :  { %v18363_v8 = vpack.c.bf16 %v15044_v22, %v15041_v56 }
 0x76f   :  { %13399 = vmatpush1.bf16.msra.mxu0 %v20823_v48  ;;  %v14958_v48 = vld [vmem:[#allocation8 + $0x1c8] sm:$0xff]  ;;  %18242 = vmatpush1.bf16.msra.mxu1 %v18241_v18 }
 0x770   :  { %13400 = vmatprep.subr.bf16.mxu0 %v20828_v27  ;;  %v14962_v27 = vld [vmem:[#allocation8 + $0x1e8] sm:$0xff]  ;;  %v18245_v28 = vpack.c.bf16 %v14958_v48, %v14955_v6  ;;  %18244 = vmatprep.subr.bf16.mxu1 %v18243_v23 }
 0x771   :  { %v18247_v33 = vpack.c.bf16 %v14965_v29, %v14962_v27 }
 0x773   :  { %13401 = vmatpush1.bf16.msra.mxu0 %v20826_v26  ;;  %v14961_v26 = vld [vmem:[#allocation8 + $0x1e0] sm:$0xff]  ;;  %18246 = vmatpush1.bf16.msra.mxu1 %v18245_v28 }
 0x774   :  { %13402 = vmatprep.subr.bf16.mxu0 %v20831_v57  ;;  %v18028_v50 = vpop.f32.mrb[132].mxu1  ;;  %v15020_v57 = vld [vmem:[#allocation8 + $0x3b8] sm:$0xff]  ;;  %v18249_v31 = vpack.c.bf16 %v14964_v21, %v14961_v26  ;;  %18248 = vmatprep.subr.bf16.mxu1 %v18247_v33 }
 0x775   :  { %v18029_v59 = vpop.f32.mrb[133].mxu1  ;;  %v18347_v37 = vpack.c.bf16 %v15020_v57, %v15017_v41  ;;  %v14992_v21 = vld [vmem:[#allocation8 + $0x2d8] sm:$0xff]  ;;  %v14995_v57 = vld [vmem:[#allocation8 + $0x2f0] sm:$0xff] }
 0x776   :  { %v18030_v10 = vadd.f32 %v18029_v59, %v18028_v50  ;;  %v18031_v62 = vpop.f32.mrb[134].mxu1  ;;  %v14973_v59 = vld [vmem:[#allocation8 + $0x240] sm:$0xff] }
 0x777   :  { %13403 = vmatpush1.bf16.msra.mxu0 %v20829_v11  ;;  %v18032_v39 = vpop.f32.mrb[135].mxu1  ;;  %v14967_v11 = vld [vmem:[#allocation8 + $0x210] sm:$0xff]  ;;  %18250 = vmatpush1.bf16.msra.mxu1 %v18249_v31  ;;  %v14994_v31 = vld [vmem:[#allocation8 + $0x2e8] sm:$0xff] }
 0x778   :  { %13404 = vmatprep.subr.bf16.mxu0 %v20834_v13  ;;  %v21638_v45 = vadd.f32 %v18030_v10, %v21633_v51  ;;  %v18033_v60 = vadd.f32 %v18032_v39, %v18031_v62  ;;  %v15008_v51 = vld [vmem:[#allocation8 + $0x358] sm:$0xff]  ;;  %v15026_v13 = vld [vmem:[#allocation8 + $0x3e8] sm:$0xff]  ;;  %v18253_v35 = vpack.c.bf16 %v14970_v24, %v14967_v11 }
 0x779   :  { %v18351_v50 = vpack.c.bf16 %v15026_v13, %v15023_v1  ;;  %v14976_v10 = vld [vmem:[#allocation8 + $0x258] sm:$0xff]  ;;  %v14998_v24 = vld [vmem:[#allocation8 + $0x308] sm:$0xff]  ;;  %v15001_v13 = vld [vmem:[#allocation8 + $0x320] sm:$0xff] }
 0x77a   :  { %v21641_v49 = vadd.f32 %v18033_v60, %v21635_v63  ;;  %v18339_v63 = vpack.c.bf16 %v15008_v51, %v15005_v46  ;;  %v15032_v62 = vld [vmem:[#allocation8 + $0x418] sm:$0xff]  ;;  %v18257_v42 = vpack.c.bf16 %v14976_v10, %v14973_v59  ;;  %v15038_v60 = vld [vmem:[#allocation8 + $0x448] sm:$0xff]  ;;  %v2642_v59 = vsub.s32 0, %v21327_v14 }
 0x77b   :  { %13405 = vmatpush1.bf16.msra.mxu0 %v20832_v38  ;;  %v14980_v38 = vld [vmem:[#allocation8 + $0x278] sm:$0xff]  ;;  %v18355_v39 = vpack.c.bf16 %v15032_v62, %v15029_v52  ;;  %v2646_v10 = vsub.s32 1, %v21327_v14 }
 0x77c   :  { %13406 = vmatprep.subr.bf16.mxu0 %v20837_v25  ;;  %v14983_v25 = vld [vmem:[#allocation8 + $0x290] sm:$0xff]  ;;  %v14988_v46 = vld [vmem:[#allocation8 + $0x2b8] sm:$0xff] }
 0x77d   :  { %v18259_v7 = vpack.c.bf16 %v14983_v25, %v14980_v38  ;;  %v20838_v62 = vld [vmem:[#allocation7] sm:$0x7] }
 0x77e   :  { %v2643_v38 = vrot.slane %v20838_v62, %v2642_v59  ;;  %v2647_v25 = vrot.slane %v20838_v62, %v2646_v10  ;;  %v15033_v62 = vld [vmem:[#allocation8 + $0x420] sm:$0xff] }
 0x77f   :  { %13407 = vmatpush1.bf16.msra.mxu0 %v20835_v9  ;;  %v18359_v9 = vpack.c.bf16 %v15038_v60, %v15035_v32  ;;  %v14997_v60 = vld [vmem:[#allocation8 + $0x300] sm:$0xff] }
 0x780   :  { %18336 = vmatprep.subr.bf16.mxu0 %v18335_v53  ;;  %v18373_v40 = vadd.f32 %v21315_v20, %v2647_v25 }
 0x782   :  { %13409 = vmatmul.mubr.bf16.vlgmr.msra.gmra.mrb[0].mxu0 %v21626_v5  ;;  %v18251_v5 = vpack.c.bf16 %v14971_v30, %v14968_v61  ;;  %v18267_v30 = vpack.c.bf16 %v14995_v57, %v14992_v21  ;;  %v15025_v21 = vld [vmem:[#allocation8 + $0x3e0] sm:$0xff] }
 0x783   :  { %18338 = vmatpush3.bf16.msra.mxu0 %v18335_v53  ;;  %v14985_v53 = vld [vmem:[#allocation8 + $0x2a0] sm:$0xff] }
 0x784   :  { %18340 = vmatprep.subr.bf16.mxu0 %v18339_v63  ;;  %18252 = vmatprep.subr.bf16.mxu1 %v18251_v5  ;;  %v18265_v18 = vpack.c.bf16 %v14988_v46, %v14985_v53  ;;  %v15007_v53 = vld [vmem:[#allocation8 + $0x350] sm:$0xff] }
 0x785   :  { %18254 = vmatpush1.bf16.msra.mxu1 %v18253_v35  ;;  %v18271_v35 = vpack.c.bf16 %v15001_v13, %v14998_v24  ;;  %v15034_v24 = vld [vmem:[#allocation8 + $0x428] sm:$0xff]  ;;  %v15037_v13 = vld [vmem:[#allocation8 + $0x440] sm:$0xff] }
 0x786   :  { %18256 = vmatprep.subr.bf16.mxu1 %v18255_v47 }
 0x787   :  { %18342 = vmatpush3.bf16.msra.mxu0 %v18339_v63 }
 0x788   :  { %18344 = vmatprep.subr.bf16.mxu0 %v18343_v55 }
 0x789   :  { %18258 = vmatpush1.bf16.msra.mxu1 %v18257_v42  ;;  %v18367_v42 = vadd.f32 %v21309_v19, %v2643_v38 }
 0x78a   :  { %18260 = vmatprep.subr.bf16.mxu1 %v18259_v7  ;;  %v18371_v7 = vadd.f32 %v21313_v44, %v2643_v38  ;;  %v18273_v44 = vpack.c.bf16 %v15000_v16, %v14997_v60  ;;  %v15036_v38 = vld [vmem:[#allocation8 + $0x438] sm:$0xff]  ;;  %v14951_v60 = vld [vmem:[#allocation8 + $0x190] sm:$0xff]  ;;  %v14954_v16 = vld [vmem:[#allocation8 + $0x1a8] sm:$0xff] }
 0x78b   :  { %18346 = vmatpush3.bf16.msra.mxu0 %v18343_v55 }
 0x78c   :  { %18348 = vmatprep.subr.bf16.mxu0 %v18347_v37 }
 0x78d   :  { %18262 = vmatpush1.bf16.msra.mxu1 %v18261_v43 }
 0x78e   :  { %18264 = vmatprep.subr.bf16.mxu1 %v18263_v12  ;;  %v15004_v12 = vld [vmem:[#allocation8 + $0x338] sm:$0xff] }
 0x78f   :  { %18350 = vmatpush3.bf16.msra.mxu0 %v18347_v37  ;;  %v18275_v22 = vpack.c.bf16 %v15007_v53, %v15004_v12  ;;  %v14903_v12 = vld [vmem:[#allocation8 + $0x10] sm:$0xff]  ;;  %v14906_v53 = vld [vmem:[#allocation8 + $0x28] sm:$0xff] }
 0x790   :  { %18352 = vmatprep.subr.bf16.mxu0 %v18351_v50 }
 0x791   :  { %18266 = vmatpush1.bf16.msra.mxu1 %v18265_v18  ;;  %v15013_v18 = vld [vmem:[#allocation8 + $0x380] sm:$0xff] }
 0x792   :  { %18268 = vmatprep.subr.bf16.mxu1 %v18267_v30  ;;  %v15021_v30 = vld [vmem:[#allocation8 + $0x3c0] sm:$0xff] }
 0x793   :  { %18354 = vmatpush3.bf16.msra.mxu0 %v18351_v50 }
 0x794   :  { %18356 = vmatprep.subr.bf16.mxu0 %v18355_v39  ;;  %v18050_v58 = vpop.f32.mrb[136].mxu1 }
 0x795   :  { %v18051_v51 = vpop.f32.mrb[137].mxu1 }
 0x796   :  { %v18052_v4 = vadd.f32 %v18051_v51, %v18050_v58  ;;  %v18053_v3 = vpop.f32.mrb[138].mxu1  ;;  %v15003_v51 = vld [vmem:[#allocation8 + $0x330] sm:$0xff] }
 0x797   :  { %18358 = vmatpush3.bf16.msra.mxu0 %v18355_v39  ;;  %v18054_v63 = vpop.f32.mrb[139].mxu1  ;;  %v18369_v39 = vadd.f32 %v21311_v0, %v2647_v25  ;;  %v15040_v25 = vld [vmem:[#allocation8 + $0x458] sm:$0xff] }
 0x798   :  { %18360 = vmatprep.subr.bf16.mxu0 %v18359_v9  ;;  %v14807_v23 = vadd.f32 %v18052_v4, %v21638_v45  ;;  %v18055_v6 = vadd.f32 %v18054_v63, %v18053_v3  ;;  %v14991_v45 = vld [vmem:[#allocation8 + $0x2d0] sm:$0xff]  ;;  %v15006_v4 = vld [vmem:[#allocation8 + $0x348] sm:$0xff] }
 0x799   :  { %v15010_v3 = vld [vmem:[#allocation8 + $0x368] sm:$0xff]  ;;  %v18277_v63 = vpack.c.bf16 %v15006_v4, %v15003_v51  ;;  %v14909_v4 = vld [vmem:[#allocation8 + $0x40] sm:$0xff] }
 0x79a   :  { %v14810_v48 = vadd.f32 %v18055_v6, %v21641_v49  ;;  %v18269_v49 = vpack.c.bf16 %v14994_v31, %v14991_v45  ;;  %v15009_v6 = vld [vmem:[#allocation8 + $0x360] sm:$0xff]  ;;  %v15024_v45 = vld [vmem:[#allocation8 + $0x3d8] sm:$0xff] }
 0x79b   :  { %18362 = vmatpush3.bf16.msra.mxu0 %v18359_v9  ;;  %v15028_v31 = vld [vmem:[#allocation8 + $0x3f8] sm:$0xff] }
 0x79c   :  { %18364 = vmatprep.subr.bf16.mxu0 %v18363_v8  ;;  %18270 = vmatpush1.bf16.msra.mxu1 %v18269_v49  ;;  %v18289_v49 = vpack.c.bf16 %v15024_v45, %v15021_v30  ;;  %v14981_v30 = vld [vmem:[#allocation8 + $0x280] sm:$0xff]  ;;  %v14936_v45 = vld [vmem:[#allocation8 + $0x118] sm:$0xff] }
 0x79d   :  { %18272 = vmatprep.subr.bf16.mxu1 %v18271_v35  ;;  %v18295_v35 = vpack.c.bf16 %v15037_v13, %v15034_v24  ;;  %v14993_v24 = vld [vmem:[#allocation8 + $0x2e0] sm:$0xff]  ;;  %v14996_v13 = vld [vmem:[#allocation8 + $0x2f8] sm:$0xff] }
 0x79f   :  { %18366 = vmatpush3.bf16.msra.mxu0 %v18363_v8 }
 0x7b4   :  { %v18072_v15 = vpop.f32.mrb[140].mxu1 }
 0x7b5   :  { %v18073_v27 = vpop.f32.mrb[141].mxu1 }
 0x7b6   :  { %v18074_v29 = vadd.f32 %v18073_v27, %v18072_v15  ;;  %v18075_v28 = vpop.f32.mrb[142].mxu1  ;;  %v15016_v15 = vld [vmem:[#allocation8 + $0x398] sm:$0xff]  ;;  %v15019_v27 = vld [vmem:[#allocation8 + $0x3b0] sm:$0xff] }
 0x7b7   :  { %v18076_v55 = vpop.f32.mrb[143].mxu1 }
 0x7b8   :  { %v14848_v41 = vadd.f32 %v18074_v29, %v14807_v23  ;;  %v18077_v33 = vadd.f32 %v18076_v55, %v18075_v28  ;;  %v18279_v23 = vpack.c.bf16 %v15013_v18, %v15010_v3  ;;  %v21038_v28 = vmov 0.0   ;;  %v14912_v3 = vld [vmem:[#allocation8 + $0x58] sm:$0xff]  ;;  %v14963_v18 = vld [vmem:[#allocation8 + $0x1f0] sm:$0xff] }
 0x7b9   :  { %v18283_v55 = vpack.c.bf16 %v15019_v27, %v15016_v15  ;;  %v14918_v15 = vld [vmem:[#allocation8 + $0x88] sm:$0xff]  ;;  %v14969_v27 = vld [vmem:[#allocation8 + $0x220] sm:$0xff] }
 0x7ba   :  { %v14851_v26 = vadd.f32 %v18077_v33, %v14810_v48  ;;  %v15012_v48 = vld [vmem:[#allocation8 + $0x378] sm:$0xff]  ;;  %v15018_v33 = vld [vmem:[#allocation8 + $0x3a8] sm:$0xff] }
 0x7bb   :  { %v18281_v29 = vpack.c.bf16 %v15012_v48, %v15009_v6  ;;  %v14915_v48 = vld [vmem:[#allocation8 + $0x70] sm:$0xff] }
 0x7d4   :  { %v18094_v61 = vpop.f32.mrb[144].mxu1 }
 0x7d5   :  { %v18095_v37 = vpop.f32.mrb[145].mxu1 }
 0x7d6   :  { %v18096_v1 = vadd.f32 %v18095_v37, %v18094_v61  ;;  %v18097_v5 = vpop.f32.mrb[146].mxu1  ;;  %v15031_v37 = vld [vmem:[#allocation8 + $0x410] sm:$0xff] }
 0x7d7   :  { %v18098_v11 = vpop.f32.mrb[147].mxu1 }
 0x7d8   :  { %v21646_v54 = vadd.f32 %v18096_v1, %v14848_v41  ;;  %v18099_v36 = vadd.f32 %v18098_v11, %v18097_v5  ;;  %v15015_v41 = vld [vmem:[#allocation8 + $0x390] sm:$0xff]  ;;  %v18291_v1 = vpack.c.bf16 %v15031_v37, %v15028_v31  ;;  %v15030_v11 = vld [vmem:[#allocation8 + $0x408] sm:$0xff] }
 0x7d9   :  { %v18285_v57 = vpack.c.bf16 %v15018_v33, %v15015_v41  ;;  %v15027_v5 = vld [vmem:[#allocation8 + $0x3f0] sm:$0xff]  ;;  %v14924_v41 = vld [vmem:[#allocation8 + $0xb8] sm:$0xff]  ;;  %v14978_v33 = vld [vmem:[#allocation8 + $0x268] sm:$0xff] }
 0x7da   :  { %v14897_v50 = vmax.f32 %v21646_v54, 0.0  ;;  %v21649_v52 = vadd.f32 %v18099_v36, %v14851_v26  ;;  %v15022_v26 = vld [vmem:[#allocation8 + $0x3c8] sm:$0xff]  ;;  %v18293_v36 = vpack.c.bf16 %v15030_v11, %v15027_v5  ;;  %v14987_v31 = vld [vmem:[#allocation8 + $0x2b0] sm:$0xff] }
 0x7db   :  { %v18287_v61 = vpack.c.bf16 %v15025_v21, %v15022_v26  ;;  %v14990_v37 = vld [vmem:[#allocation8 + $0x2c8] sm:$0xff]  ;;  %v14939_v5 = vld [vmem:[#allocation8 + $0x130] sm:$0xff] }
 0x7dc   :  { %v14900_v47 = vmax.f32 %v21649_v52, 0.0  ;;  %18194 = vmatprep.mubr.f32.mxu0 %v14897_v50  ;;  %v14984_v52 = vld [vmem:[#allocation8 + $0x298] sm:$0xff]  ;;  %v14942_v11 = vld [vmem:[#allocation8 + $0x148] sm:$0xff] }
 0x7de   :  { %18195 = vmatmul.mubr.f32.vlgmr.msra.gmra.mrb[4].mxu0 %v14900_v47 }
 0x855   :  { %v13410_v32 = vpop.f32.mrb[0].mxu0 }
 0x856   :  { %v21665_v2 = vadd.f32 %v18367_v42, %v13410_v32  ;;  %v13412_v34 = vpop.f32.mrb[1].mxu0  ;;  %v15043_v42 = vld [vmem:[#allocation8 + $0x470] sm:$0xff] }
 0x857   :  { %v21668_v43 = vadd.f32 %v18369_v39, %v13412_v34  ;;  %v13414_v9 = vpop.f32.mrb[2].mxu0  ;;  %v18297_v39 = vpack.c.bf16 %v15036_v38, %v15033_v62  ;;  %v18299_v32 = vpack.c.bf16 %v15043_v42, %v15040_v25  ;;  %v15042_v34 = vld [vmem:[#allocation8 + $0x468] sm:$0xff]  ;;  %v14945_v62 = vld [vmem:[#allocation8 + $0x160] sm:$0xff]  ;;  %v14948_v38 = vld [vmem:[#allocation8 + $0x178] sm:$0xff] }
 0x858   :  { %v21670_v46 = vadd.f32 %v18371_v7, %v13414_v9  ;;  %v13416_v19 = vpop.f32.mrb[3].mxu0  ;;  %v14895_v56 = vmax.f32 %v21665_v2, 0.0  ;;  %v15039_v7 = vld [vmem:[#allocation8 + $0x450] sm:$0xff]  ;;  %v18303_v9 = vpack.c.bf16 %v14954_v16, %v14951_v60  ;;  %v18333_v25 = vpack.c.bf16 %v14948_v38, %v14945_v62  ;;  %v15368_v42 = vld [vmem:[#allocation11] sm:$0xf] }
 0x859   :  { %v14896_v0 = vmax.f32 %v21668_v43, 0.0  ;;  %v21673_v58 = vadd.f32 %v18373_v40, %v13416_v19  ;;  %v18301_v40 = vpack.c.bf16 %v15042_v34, %v15039_v7  ;;  %v14957_v19 = vld [vmem:[#allocation8 + $0x1c0] sm:$0xff]  ;;  %v18323_v43 = vpack.c.bf16 %v14984_v52, %v14981_v30 }
 0x85a   :  { %v14898_v8 = vmax.f32 %v21670_v46, 0.0  ;;  %v15367_v7 = vld [vmem:[%s21730_s5 + $0x8] sm:$0xf]  ;;  %v15045_v16 = vld [vmem:[#allocation10] sm:$0x7] }
 0x85b   :  { %v14899_v20 = vmax.f32 %v21673_v58, 0.0  ;;  %15126 = vmatprep.mubr.f32.mxu1 %v14896_v0  ;;  %v15058_v46 = vrot.slane %v15045_v16, %v2650_v17 }
 0x85c   :  { %15127 = vmatmul.mubr.f32.vlgmr.msra.gmra.mrb[148].mxu1 %v14895_v56 }
 0x85d   :  { %18274 = vmatpush1.bf16.msra.mxu1 %v18273_v44  ;;  %15132 = vmatprep.mubr.f32.mxu1 %v14899_v20  ;;  %v14960_v44 = vld [vmem:[#allocation8 + $0x1d8] sm:$0xff] }
 0x85e   :  { %18276 = vmatprep.subr.bf16.mxu1 %v18275_v22  ;;  %v18305_v22 = vpack.c.bf16 %v14906_v53, %v14903_v12  ;;  %v18307_v51 = vpack.c.bf16 %v14960_v44, %v14957_v19  ;;  %v15050_v44 = vrot.slane %v15045_v16, %v2642_v59 }
 0x860   :  { %15133 = vmatmul.mubr.f32.gmra.mrb[150].mxu1 %v14898_v8 }
 0x861   :  { %18278 = vmatpush1.bf16.msra.mxu1 %v18277_v63  ;;  %15203 = vmatprep.mubr.f32.mxu1 %v21038_v28  ;;  %v14966_v63 = vld [vmem:[#allocation8 + $0x208] sm:$0xff] }
 0x862   :  { %18280 = vmatprep.subr.bf16.mxu1 %v18279_v23  ;;  %v18309_v23 = vpack.c.bf16 %v14912_v3, %v14909_v4  ;;  %v18311_v6 = vpack.c.bf16 %v14966_v63, %v14963_v18 }
 0x865   :  { %18282 = vmatpush1.bf16.msra.mxu1 %v18281_v29  ;;  %v14972_v29 = vld [vmem:[#allocation8 + $0x238] sm:$0xff] }
 0x866   :  { %18284 = vmatprep.subr.bf16.mxu1 %v18283_v55  ;;  %v18313_v55 = vpack.c.bf16 %v14918_v15, %v14915_v48  ;;  %v18315_v54 = vpack.c.bf16 %v14972_v29, %v14969_v27 }
 0x869   :  { %18286 = vmatpush1.bf16.msra.mxu1 %v18285_v57  ;;  %v14927_v57 = vld [vmem:[#allocation8 + $0xd0] sm:$0xff] }
 0x86a   :  { %18288 = vmatprep.subr.bf16.mxu1 %v18287_v61  ;;  %v14930_v61 = vld [vmem:[#allocation8 + $0xe8] sm:$0xff] }
 0x86d   :  { %18290 = vmatpush1.bf16.msra.mxu1 %v18289_v49 }
 0x86e   :  { %18292 = vmatprep.subr.bf16.mxu1 %v18291_v1  ;;  %v18327_v1 = vpack.c.bf16 %v14990_v37, %v14987_v31 }
 0x871   :  { %18294 = vmatpush1.bf16.msra.mxu1 %v18293_v36  ;;  %v18329_v36 = vpack.c.bf16 %v14942_v11, %v14939_v5 }
 0x872   :  { %18296 = vmatprep.subr.bf16.mxu1 %v18295_v35  ;;  %v18331_v35 = vpack.c.bf16 %v14996_v13, %v14993_v24 }
 0x875   :  { %18298 = vmatpush1.bf16.msra.mxu1 %v18297_v39  ;;  %v15455_v39 = vld [vmem:[#allocation13] sm:$0xf] }
 0x876   :  { %18300 = vmatprep.subr.bf16.mxu1 %v18299_v32  ;;  %v15366_v32 = vld [vmem:[%s21730_s5] sm:$0xff]  ;;  %s21039_s5 = smov [#allocation14]  }
 0x877   :  { %s15559_s26 = sshll.u32 %s21039_s5, 4  ;;  %s15560_s26 = int_to_ptr.vmem [resolvable:$true] %s15559_s26 }
 0x878   :  { %s20993_s27 = scalar_lea.vmem %s15560_s26, 768  ;;  %p20998_p1 = scmp.lt.s32.totalorder %s15560_s26, %s15560_s26 }
 0x879   :  { %18302 = vmatpush1.bf16.msra.mxu1 %v18301_v40  ;;  %p20994_p0 = scmp.ne.s32.totalorder %s15560_s26, %s20993_s27  ;;  %p20999_p2 = scmp.lt.s32.totalorder %s20993_s27, %s20993_s27 }
 0x87a   :  { %18304 = vmatprep.subr.bf16.mxu1 %v18303_v9 }
 0x87b   :  { %p21000_p3 = por %p20999_p2, %p20998_p1 }
 0x87c   :  { %15204 = vmatmul.mubr.f32.vlgmr.msra.gmra.mrb[148].mxu1 %v14897_v50  ;;  %v14921_v50 = vld [vmem:[#allocation8 + $0xa0] sm:$0xff] }
 0x87d   :  { %18306 = vmatpush3.bf16.msra.mxu1 %v18305_v22  ;;  %15209 = vmatprep.mubr.f32.mxu1 %v21038_v28  ;;  %v14975_v28 = vld [vmem:[#allocation8 + $0x250] sm:$0xff]  ;;  %v18317_v26 = vpack.c.bf16 %v14924_v41, %v14921_v50  ;;  %v15054_v22 = vrot.slane %v15045_v16, %v2646_v10  ;;  %p21001_p4 = pnand %p21000_p3, %p20994_p0 }
 0x87e   :  { %18308 = vmatprep.subr.bf16.mxu1 %v18307_v51  ;;  %v18319_v21 = vpack.c.bf16 %v14978_v33, %v14975_v28 }
 0x880   :  { %15210 = vmatmul.mubr.f32.gmra.mrb[150].mxu1 %v14900_v47  ;;  %v18321_v47 = vpack.c.bf16 %v14930_v61, %v14927_v57 }
 0x881   :  { %18310 = vmatpush3.bf16.msra.mxu1 %v18309_v23  ;;  %15280 = vmatprep.mubr.f32.mxu1 %v14896_v0  ;;  %v14933_v0 = vld [vmem:[#allocation8 + $0x100] sm:$0xff] }
 0x882   :  { %18312 = vmatprep.subr.bf16.mxu1 %v18311_v6  ;;  %v18325_v49 = vpack.c.bf16 %v14936_v45, %v14933_v0 }
 0x885   :  { %18314 = vmatpush3.bf16.msra.mxu1 %v18313_v55 }
 0x886   :  { %18316 = vmatprep.subr.bf16.mxu1 %v18315_v54 }
 0x889   :  { %18318 = vmatpush3.bf16.msra.mxu1 %v18317_v26 }
 0x88a   :  { %18320 = vmatprep.subr.bf16.mxu1 %v18319_v21 }
 0x88d   :  { %18322 = vmatpush3.bf16.msra.mxu1 %v18321_v47 }
 0x88e   :  { %18324 = vmatprep.subr.bf16.mxu1 %v18323_v43 }
 0x891   :  { %18326 = vmatpush3.bf16.msra.mxu1 %v18325_v49 }
 0x892   :  { %18328 = vmatprep.subr.bf16.mxu1 %v18327_v1 }
 0x895   :  { %18330 = vmatpush3.bf16.msra.mxu1 %v18329_v36 }
 0x896   :  { %18332 = vmatprep.subr.bf16.mxu1 %v18331_v35 }
 0x899   :  { %18334 = vmatpush3.bf16.msra.mxu1 %v18333_v25 }
 0x89a   :  { %18197 = vmatprep.subr.msk.mxu1 %vm15376_vm0, %v15368_v42 }
 0x89c   :  { %15281 = vmatmul.mubr.f32.vlgmr.msra.gmra.mrb[152].mxu1 %v14895_v56 }
 0x89d   :  { %15285 = vmatprep.mubr.f32.mxu1 %v14899_v20  ;;  %18198 = vmatpush3.msk.msra.mxu1 %vm15376_vm0, %v15368_v42 }
 0x89e   :  { %18202 = vmatprep.subr.msk.mxu1 %vm15376_vm0, %v15455_v39 }
 0x8a0   :  { %15286 = vmatmul.mubr.f32.gmra.mrb[154].mxu1 %v14898_v8 }
 0x8a1   :  { %18199 = vmatprep.mubr.msk.f32.mxu1 %vm15369_vm1, %v15366_v32 }
 0x8a4   :  { %18200 = vmatmul.mubr.msk.f32.vlgmr.msra.gmra.mrb[156].mxu1 %vm15369_vm1, %v15367_v7 }
 0x8a5   :  { %18203 = vmatpush3.msk.msra.mxu1 %vm15376_vm0, %v15455_v39  ;;  %18204 = vmatprep.mubr.msk.f32.mxu1 %vm15369_vm1, %v15366_v32 }
 0x8a8   :  { %18205 = vmatmul.mubr.msk.f32.vlgmr.msra.gmra.mrb[158].mxu1 %vm15369_vm1, %v15367_v7 }
 0x8b1   :  { %v18196_v2 = vpop.f32.mrb[4].mxu0 }
 0x8b2   :  { %v15357_v58 = vpop.f32.mrb[5].mxu0 }
 0x94f   :  { %v15205_v56 = vpop.f32.mrb[148].mxu1 }
 0x950   :  { %v15207_v20 = vpop.f32.mrb[149].mxu1  ;;  %v18375_v17 = vadd.f32 %v15205_v56, %v15050_v44 }
 0x951   :  { %v18376_v15 = vadd.f32 %v15207_v20, %v15054_v22 }
 0x953   :  { %v15211_v34 = vpop.f32.mrb[150].mxu1 }
 0x954   :  { %v15213_v60 = vpop.f32.mrb[151].mxu1  ;;  %v18377_v63 = vadd.f32 %v15211_v34, %v15050_v44 }
 0x955   :  { %v18378_v23 = vadd.f32 %v15213_v60, %v15054_v22 }
 0x96f   :  { %v18132_v40 = vpop.f32.mrb[152].mxu1 }
 0x970   :  { %v18133_v8 = vpop.f32.mrb[153].mxu1 }
 0x971   :  { %v18134_v9 = vadd.f32 %v18133_v8, %v18132_v40 }
 0x973   :  { %v15283_v12 = vadd.f32 %v18134_v9, %v15058_v46  ;;  %v18135_v53 = vpop.f32.mrb[154].mxu1 }
 0x974   :  { %v18136_v19 = vpop.f32.mrb[155].mxu1 }
 0x975   :  { %v15358_v51 = vadd.f32 %v15357_v58, %v15283_v12  ;;  %v18137_v4 = vadd.f32 %v18136_v19, %v18135_v53 }
 0x977   :  { %v15288_v3 = vadd.f32 %v18137_v4, %v15058_v46  ;;  %v18201_v18 = vpop.f32.mrb[156].mxu1 }
 0x978   :  { %v15535_v6 = vadd.f32 1.0, %v18201_v18  ;;  %v15446_v48 = vpop.f32.mrb[157].mxu1 }
 0x979   :  { %v15363_v27 = vadd.f32 %v18196_v2, %v15288_v3  ;;  %v15534_v29 = vadd.f32 1.0, %v15446_v48 }
 0x97a   :  { %v15539_v55 = vmul.f32 %v18377_v63, %v15535_v6  ;;  %v15540_v54 = vmul.f32 %v18378_v23, %v15535_v6 }
 0x97b   :  { %v15541_v59 = vmul.f32 %v15535_v6, %v15363_v27  ;;  %v18206_v50 = vpop.f32.mrb[158].mxu1  ;;  %v15536_v14 = vmul.f32 %v18375_v17, %v15534_v29  ;;  %v15537_v10 = vmul.f32 %v18376_v15, %v15534_v29  ;;  %v15538_v41 = vmul.f32 %v15534_v29, %v15358_v51 }
 0x97c   :  { %v15545_v28 = vadd.f32 %v18206_v50, %v15539_v55  ;;  %v15546_v33 = vadd.f32 %v18206_v50, %v15540_v54  ;;  %v15525_v26 = vpop.f32.mrb[159].mxu1 }
 0x97d   :  { %v15547_v21 = vadd.f32 %v18206_v50, %v15541_v59  ;;  %v15542_v57 = vadd.f32 %v15536_v14, %v15525_v26  ;;  %v15543_v61 = vadd.f32 %v15537_v10, %v15525_v26  ;;  %v15544_v30 = vadd.f32 %v15538_v41, %v15525_v26 }
 0x97e   :  { %15551 = vst [vmem:[#allocation14 + $0x18] sm:$0xf] %v15545_v28  ;;  %15552 = vst [vmem:[#allocation14 + $0x20] sm:$0xf] %v15546_v33 }
 0x97f   :  { %15553 = vst [vmem:[#allocation14 + $0x28] sm:$0xf] %v15547_v21  ;;  %15548 = vst [vmem:[#allocation14] sm:$0xff] %v15542_v57 }
 0x980   :  { %15549 = vst [vmem:[#allocation14 + $0x8] sm:$0xff] %v15543_v61  ;;  %15550 = vst [vmem:[#allocation14 + $0x10] sm:$0xff] %v15544_v30 }
 0x981   :  { %21004 = shalt.err (!%p21001_p4)
}
 0x982   :  { %s21005_s9 = scalar_lea.hbm %s21733_s8, 768 }
 0x983   :  { %p21006_p5 = scmp.ne.s32.totalorder %s21733_s8, %s21005_s9  ;;  %p21009_p6 = scmp.lt.u32.totalorder %s21005_s9, %s21733_s8 }
 0x985   :  { %p21011_p7 = pnand %p21009_p6, %p21006_p5 }
 0x987   :  { %21014 = shalt.err (!%p21011_p7)
}
 0x988   :  { %15565 = dma.vmem_to_hbm [thread:$0]  %s15560_s26, 768, %s21733_s8, [#allocation4], %s21029_s1, %s21029_s1, %s21030_s28  }
 0x989   :  { %21023 = dma.done.wait [#allocation4], 768  }
 0x98a   :  { %21024 = vsyncadd [#allocation4], 4294966528 }
 0x98b   :  { %15569 = vsyncpa [#allocation3], 1 }
 0x98c   :  { %15570 = vsyncpa [#allocation6], 1 }
 0x98d   :  { %15571 = vsyncpa [#allocation9], 1 }
 0x98e   :  { %15572 = vsyncpa [#allocation12], 1 }
 0x98f   :  { %15573 = vsyncpa [#allocation4], 1 }

</bundles_post_ra>
